<compile_context>
chip_gen: v6e
topology: v6e:2x2x1
jax: 0.10.0
libtpu: 0.0.40
codegen_flags: <defaults>
</compile_context>

<pallas_src>
import jax
import jax.numpy as jnp
import numpy as np
from jax.experimental import pallas as pl
from jax.experimental.pallas import tpu as pltpu

_BN_EPS = 1e-5


# ----------------------------------------------------------------------------
# Pallas kernel 1: fused [bilinear upsample + concat + depthwise*pointwise conv]
# + per-batch BatchNorm statistics (two-pass BN, pass 1).
# ----------------------------------------------------------------------------
def _conv1_kernel(x_ref, skip_ref, u_ref, wfu_ref, wfs_ref, bf_ref,
                  y_ref, stat_ref, up_pad, sk_pad):
    # x_ref    : (1, H, W, Cx)        pre-upsample input block
    # skip_ref : (1, H2, W2, Cs)      skip connection block
    # u_ref    : (H2*W2, H*W)         bilinear x2 upsample matrix (kron(Mh, Mw))
    # wfu_ref  : (9*Cx, Cout)         fused dw*pw weight, upsample-channel rows
    # wfs_ref  : (9*Cs, Cout)         fused dw*pw weight, skip-channel rows
    # bf_ref   : (1, Cout)            fused bias (bd @ wp + bp)
    # y_ref    : (1, H2*W2, Cout)     conv output (pre-BN)
    # stat_ref : (1, 2, Cout)         per-batch [sum ; sum of squares]
    # up_pad   : (H2+2, W2+2, Cx)     zero-padded VMEM scratch (SAME padding)
    # sk_pad   : (H2+2, W2+2, Cs)     zero-padded VMEM scratch (SAME padding)
    _, H, W, Cx = x_ref.shape
    _, H2, W2, Cs = skip_ref.shape

    # Bilinear x2 upsample (align_corners=True) as a single MXU matmul.
    x_flat = x_ref[0].reshape(H * W, Cx)                       # leading-dim merge
    up = jnp.dot(u_ref[...], x_flat,
                 preferred_element_type=jnp.float32)           # (H2*W2, Cx)

    # In-kernel zero padding for the 3x3 window (no HBM pad copies).
    up_pad[...] = jnp.zeros_like(up_pad)
    up_pad[1:H2 + 1, 1:W2 + 1, :] = up.reshape(H2, W2, Cx)
    sk_pad[...] = jnp.zeros_like(sk_pad)
    sk_pad[1:H2 + 1, 1:W2 + 1, :] = skip_ref[0]

    # im2col of both concat sources; the channel concat is implicit because the
    # fused weight is split into [upsample-channel rows ; skip-channel rows].
    col_u = jnp.concatenate(
        [up_pad[dy:dy + H2, dx:dx + W2, :].reshape(H2 * W2, Cx)
         for dy in range(3) for dx in range(3)], axis=-1)      # (H2*W2, 9*Cx)
    col_s = jnp.concatenate(
        [sk_pad[dy:dy + H2, dx:dx + W2, :].reshape(H2 * W2, Cs)
         for dy in range(3) for dx in range(3)], axis=-1)      # (H2*W2, 9*Cs)

    y = (jnp.dot(col_u, wfu_ref[...], preferred_element_type=jnp.float32)
         + jnp.dot(col_s, wfs_ref[...], preferred_element_type=jnp.float32)
         + bf_ref[...])
    y_ref[0] = y                                               # (H2*W2, Cout)

    stat_ref[0] = jnp.concatenate(
        [jnp.sum(y, axis=0, keepdims=True),
         jnp.sum(y * y, axis=0, keepdims=True)], axis=0)       # (2, Cout)


def _conv1_call(x_nhwc, skip_nhwc, u_mat, wfu, wfs, bf):
    N, H, W, Cx = x_nhwc.shape
    _, H2, W2, Cs = skip_nhwc.shape
    Cout = wfu.shape[1]
    return pl.pallas_call(
        _conv1_kernel,
        grid=(N,),
        in_specs=[
            pl.BlockSpec((1, H, W, Cx), lambda n: (n, 0, 0, 0)),
            pl.BlockSpec((1, H2, W2, Cs), lambda n: (n, 0, 0, 0)),
            pl.BlockSpec((H2 * W2, H * W), lambda n: (0, 0)),   # resident params
            pl.BlockSpec((9 * Cx, Cout), lambda n: (0, 0)),
            pl.BlockSpec((9 * Cs, Cout), lambda n: (0, 0)),
            pl.BlockSpec((1, Cout), lambda n: (0, 0)),
        ],
        out_specs=[
            pl.BlockSpec((1, H2 * W2, Cout), lambda n: (n, 0, 0)),
            pl.BlockSpec((1, 2, Cout), lambda n: (n, 0, 0)),
        ],
        out_shape=[
            jax.ShapeDtypeStruct((N, H2 * W2, Cout), jnp.float32),
            jax.ShapeDtypeStruct((N, 2, Cout), jnp.float32),
        ],
        scratch_shapes=[
            pltpu.VMEM((H2 + 2, W2 + 2, Cx), jnp.float32),
            pltpu.VMEM((H2 + 2, W2 + 2, Cs), jnp.float32),
        ],
        compiler_params=pltpu.CompilerParams(
            dimension_semantics=("parallel",),
            vmem_limit_bytes=32 * 1024 * 1024),
    )(x_nhwc, skip_nhwc, u_mat, wfu, wfs, bf)


# ----------------------------------------------------------------------------
# Pallas kernel 2: [BN1+ReLU1 (fused input affine) + depthwise*pointwise conv]
# + per-batch BatchNorm statistics.
# ----------------------------------------------------------------------------
def _conv2_kernel(x_ref, sin_ref, bin_ref, wf_ref, bf_ref, y_ref, stat_ref, xpad):
    _, H, W, Cin = x_ref.shape

    # Previous DSConv's BatchNorm + ReLU, fused into this kernel's input path.
    x = jnp.maximum(x_ref[0] * sin_ref[...].reshape(1, 1, Cin)
                    + bin_ref[...].reshape(1, 1, Cin), 0.0)

    xpad[...] = jnp.zeros_like(xpad)
    xpad[1:H + 1, 1:W + 1, :] = x

    col = jnp.concatenate(
        [xpad[dy:dy + H, dx:dx + W, :].reshape(H * W, Cin)
         for dy in range(3) for dx in range(3)], axis=-1)      # (H*W, 9*Cin)

    y = jnp.dot(col, wf_ref[...],
                preferred_element_type=jnp.float32) + bf_ref[...]
    y_ref[0] = y

    stat_ref[0] = jnp.concatenate(
        [jnp.sum(y, axis=0, keepdims=True),
         jnp.sum(y * y, axis=0, keepdims=True)], axis=0)


def _conv2_call(x_nhwc, scale_in, shift_in, wf, bf):
    N, H, W, Cin = x_nhwc.shape
    Cout = wf.shape[1]
    return pl.pallas_call(
        _conv2_kernel,
        grid=(N,),
        in_specs=[
            pl.BlockSpec((1, H, W, Cin), lambda n: (n, 0, 0, 0)),
            pl.BlockSpec((1, Cin), lambda n: (0, 0)),
            pl.BlockSpec((1, Cin), lambda n: (0, 0)),
            pl.BlockSpec((9 * Cin, Cout), lambda n: (0, 0)),
            pl.BlockSpec((1, Cout), lambda n: (0, 0)),
        ],
        out_specs=[
            pl.BlockSpec((1, H * W, Cout), lambda n: (n, 0, 0)),
            pl.BlockSpec((1, 2, Cout), lambda n: (n, 0, 0)),
        ],
        out_shape=[
            jax.ShapeDtypeStruct((N, H * W, Cout), jnp.float32),
            jax.ShapeDtypeStruct((N, 2, Cout), jnp.float32),
        ],
        scratch_shapes=[pltpu.VMEM((H + 2, W + 2, Cin), jnp.float32)],
        compiler_params=pltpu.CompilerParams(
            dimension_semantics=("parallel",),
            vmem_limit_bytes=32 * 1024 * 1024),
    )(x_nhwc, scale_in, shift_in, wf, bf)


# ----------------------------------------------------------------------------
# Pallas kernel 3: final BatchNorm (precomputed affine) + ReLU.
# Lane-dense layout: blocks are (1, 1, H*W*Cout) so stores use full 128 lanes.
# ----------------------------------------------------------------------------
def _bn_relu_kernel(y_ref, scale_ref, shift_ref, o_ref):
    o_ref[...] = jnp.maximum(y_ref[...] * scale_ref[...] + shift_ref[...], 0.0)


def _bn_relu_call(y_flat, scale_tiled, shift_tiled):
    N, _, M = y_flat.shape
    return pl.pallas_call(
        _bn_relu_kernel,
        grid=(N,),
        in_specs=[
            pl.BlockSpec((1, 1, M), lambda n: (n, 0, 0)),
            pl.BlockSpec((1, 1, M), lambda n: (0, 0, 0)),
            pl.BlockSpec((1, 1, M), lambda n: (0, 0, 0)),
        ],
        out_specs=pl.BlockSpec((1, 1, M), lambda n: (n, 0, 0)),
        out_shape=jax.ShapeDtypeStruct((N, 1, M), jnp.float32),
        compiler_params=pltpu.CompilerParams(
            dimension_semantics=("parallel",),
            vmem_limit_bytes=32 * 1024 * 1024),
    )(y_flat, scale_tiled, shift_tiled)


# ----------------------------------------------------------------------------
# Wrapper-side parameter fusion and BN finalization (tiny O(Cout) math).
# ----------------------------------------------------------------------------
def _fuse_dw_pw_weight(wd, wp):
    # wd: (9, Cin), wp: (Cin, Cout)  ->  (9*Cin, Cout)
    cin, cout = wp.shape
    return (wd[:, :, None] * wp[None, :, :]).reshape(9 * cin, cout)


def _bn_scale_shift(stats, gamma, beta, count):
    # stats: (N, 2, Cout) per-batch [sum; sumsq]  ->  affine (scale, shift)
    s = jnp.sum(stats[:, 0, :], axis=0)
    ss = jnp.sum(stats[:, 1, :], axis=0)
    mean = s / count
    var = jnp.maximum(ss / count - mean * mean, 0.0)         # biased (training BN)
    scale = gamma[0] * jax.lax.rsqrt(var + _BN_EPS)
    shift = beta[0] - mean * scale
    return scale[None, :], shift[None, :]                    # (1, Cout) each


def _bilinear_matrix(n_in, n_out):
    # PyTorch Upsample(scale_factor=2, mode='bilinear', align_corners=True)
    if n_in == 1:
        return jnp.ones((n_out, 1), jnp.float32)
    src = jnp.arange(n_out, dtype=jnp.float32) * (n_in - 1) / (n_out - 1)
    i0 = jnp.clip(jnp.floor(src).astype(jnp.int32), 0, n_in - 2)
    frac = src - i0.astype(jnp.float32)
    return ((1.0 - frac)[:, None] * jax.nn.one_hot(i0, n_in, dtype=jnp.float32)
            + frac[:, None] * jax.nn.one_hot(i0 + 1, n_in, dtype=jnp.float32))


# ----------------------------------------------------------------------------
# DecoderBlock forward (NCHW in / NCHW out, like the PyTorch module)
# ----------------------------------------------------------------------------
@jax.jit
def decoder_block_forward(x_nchw, skip_nchw, params1, params2):
    N, Cx, H, W = x_nchw.shape
    H2, W2 = 2 * H, 2 * W

    x = jnp.transpose(x_nchw, (0, 2, 3, 1))                  # NHWC (small)
    skip = jnp.transpose(skip_nchw, (0, 2, 3, 1))

    wd1, bd1, wp1, bp1, g1, b1 = params1
    wd2, bd2, wp2, bp2, g2, b2 = params2
    C2, C3 = wp1.shape[1], wp2.shape[1]

    # Fused depthwise x pointwise weights; conv1's weight is split by concat
    # source so the channel concat never has to be materialized.
    wf1u = _fuse_dw_pw_weight(wd1[:, :Cx], wp1[:Cx, :])
    wf1s = _fuse_dw_pw_weight(wd1[:, Cx:], wp1[Cx:, :])
    bf1 = bd1 @ wp1 + bp1
    wf2 = _fuse_dw_pw_weight(wd2, wp2)
    bf2 = bd2 @ wp2 + bp2

    # Full-spatial bilinear x2 upsample matrix (align_corners=True).
    u_mat = jnp.kron(_bilinear_matrix(H, H2), _bilinear_matrix(W, W2))

    cnt = N * H2 * W2

    # DSConv1 conv (upsample + concat + conv fused) + BN1 partial statistics
    y1, st1 = _conv1_call(x, skip, u_mat, wf1u, wf1s, bf1)
    sc1, sh1 = _bn_scale_shift(st1, g1, b1, cnt)

    # DSConv2 conv, with BN1+ReLU1 fused into its input path
    y2, st2 = _conv2_call(y1.reshape(N, H2, W2, C2), sc1, sh1, wf2, bf2)
    sc2, sh2 = _bn_scale_shift(st2, g2, b2, cnt)

    # Final BN2 + ReLU2 (lane-dense elementwise kernel)
    M = H2 * W2 * C3
    out = _bn_relu_call(y2.reshape(N, 1, M),
                        jnp.tile(sc2, (1, H2 * W2)).reshape(1, 1, M),
                        jnp.tile(sh2, (1, H2 * W2)).reshape(1, 1, M))
    out = out.reshape(N, H2, W2, C3)
    return jnp.transpose(out, (0, 3, 1, 2))                  # back to NCHW


# ----------------------------------------------------------------------------
# Pure-JAX reference (lax.conv) used only to sanity-check the kernels
# ----------------------------------------------------------------------------
def _upsample_and_concat_ref(x_nchw, skip_nchw):
    x = jnp.transpose(x_nchw, (0, 2, 3, 1))
    skip = jnp.transpose(skip_nchw, (0, 2, 3, 1))
    N, H, W, C = x.shape
    mh = _bilinear_matrix(H, 2 * H)
    mw = _bilinear_matrix(W, 2 * W)
    up = jnp.einsum('nhwc,Hh,Ww->nHWc', x, mh, mw)
    return jnp.concatenate([up, skip], axis=-1)


def _dsconv_ref(x_nhwc, params):
    wd, bd, wp, bp, gamma, beta = params
    N, H, W, Cin = x_nhwc.shape
    Cout = wp.shape[1]
    k_dw = wd.reshape(3, 3, 1, Cin)
    y = jax.lax.conv_general_dilated(
        x_nhwc, k_dw, (1, 1), 'SAME',
        dimension_numbers=('NHWC', 'HWIO', 'NHWC'),
        feature_group_count=Cin) + bd.reshape(1, 1, 1, Cin)
    y = jnp.einsum('nhwc,cd->nhwd', y, wp) + bp.reshape(1, 1, 1, Cout)
    mean = jnp.mean(y, axis=(0, 1, 2), keepdims=True)
    var = jnp.mean((y - mean) ** 2, axis=(0, 1, 2), keepdims=True)
    y = (y - mean) * jax.lax.rsqrt(var + _BN_EPS)
    y = y * gamma.reshape(1, 1, 1, Cout) + beta.reshape(1, 1, 1, Cout)
    return jnp.maximum(y, 0.0)


def _decoder_block_ref(x_nchw, skip_nchw, p1, p2):
    cat = _upsample_and_concat_ref(x_nchw, skip_nchw)
    y1 = _dsconv_ref(cat, p1)
    y2 = _dsconv_ref(y1, p2)
    return jnp.transpose(y2, (0, 3, 1, 2))


# ----------------------------------------------------------------------------
# Deterministic parameter init (shapes follow the nn.Module __init__)
# ----------------------------------------------------------------------------
def init_dsconv_params(key, cin, cout):
    k1, k2, k3, k4, k5, k6 = jax.random.split(key, 6)
    wd = 0.1 * jax.random.normal(k1, (9, cin), jnp.float32)       # depthwise 3x3
    bd = 0.1 * jax.random.normal(k2, (1, cin), jnp.float32)
    wp = 0.1 * jax.random.normal(k3, (cin, cout), jnp.float32)    # pointwise 1x1
    bp = 0.1 * jax.random.normal(k4, (1, cout), jnp.float32)
    gamma = 1.0 + 0.1 * jax.random.normal(k5, (1, cout), jnp.float32)
    beta = 0.1 * jax.random.normal(k6, (1, cout), jnp.float32)
    return (wd, bd, wp, bp, gamma, beta)


if __name__ == "__main__":
    key = jax.random.PRNGKey(0)
    kx, ks, kp1, kp2 = jax.random.split(key, 4)

    # DecoderBlock(in_channels=8, skip_channels=4, out_channels=8)
    N, Cin, Cskip, Cout = 2, 8, 4, 8
    H = W = 8                                   # x spatial; skip is 2H x 2W
    x = jax.random.normal(kx, (N, Cin, H, W), jnp.float32)            # NCHW
    skip = jax.random.normal(ks, (N, Cskip, 2 * H, 2 * W), jnp.float32)

    p1 = init_dsconv_params(kp1, Cin + Cskip, Cout)
    p2 = init_dsconv_params(kp2, Cout, Cout)

    out = jax.block_until_ready(decoder_block_forward(x, skip, p1, p2))
    assert out.shape == (N, Cout, 2 * H, 2 * W)

    ref = jax.block_until_ready(_decoder_block_ref(x, skip, p1, p2))
    np.testing.assert_allclose(np.asarray(out), np.asarray(ref),
                               rtol=1e-3, atol=1e-3)
    print("KERNEL_OK")
</pallas_src>

<mosaic_0001>
module attributes {stable_mosaic.version = 11 : i64} {
  func.func @_conv1_kernel(%arg0: i32, %arg1: memref<1x8x8x8xf32, #tpu.memory_space<vmem>>, %arg2: memref<1x16x16x4xf32, #tpu.memory_space<vmem>>, %arg3: memref<256x64xf32, #tpu.memory_space<vmem>>, %arg4: memref<72x8xf32, #tpu.memory_space<vmem>>, %arg5: memref<36x8xf32, #tpu.memory_space<vmem>>, %arg6: memref<1x8xf32, #tpu.memory_space<vmem>>, %arg7: memref<1x256x8xf32, #tpu.memory_space<vmem>>, %arg8: memref<1x2x8xf32, #tpu.memory_space<vmem>>, %arg9: memref<18x18x8xf32, #tpu.memory_space<vmem>>, %arg10: memref<18x18x4xf32, #tpu.memory_space<vmem>>) attributes {dimension_semantics = [#tpu.dimension_semantics<parallel>], iteration_bounds = array<i64: 2>, scalar_prefetch = 0 : i64, scratch_operands = 2 : i64, tpu.core_type = #tpu.core_type<tc>, window_params = [{transform_indices = @transform_0, window_bounds = array<i64: 1, 8, 8, 8>}, {transform_indices = @transform_1, window_bounds = array<i64: 1, 16, 16, 4>}, {pipeline_mode = #tpu.pipeline_mode<synchronous>, transform_indices = @transform_2, window_bounds = array<i64: 256, 64>}, {pipeline_mode = #tpu.pipeline_mode<synchronous>, transform_indices = @transform_3, window_bounds = array<i64: 72, 8>}, {pipeline_mode = #tpu.pipeline_mode<synchronous>, transform_indices = @transform_4, window_bounds = array<i64: 36, 8>}, {pipeline_mode = #tpu.pipeline_mode<synchronous>, transform_indices = @transform_5, window_bounds = array<i64: 1, 8>}, {transform_indices = @transform_6, window_bounds = array<i64: 1, 256, 8>}, {transform_indices = @transform_7, window_bounds = array<i64: 1, 2, 8>}]} {
    %c0 = arith.constant 0 : index
    %c0_0 = arith.constant 0 : index
    %c0_1 = arith.constant 0 : index
    %c0_2 = arith.constant 0 : index
    %0 = vector.load %arg1[%c0, %c0_0, %c0_1, %c0_2] : memref<1x8x8x8xf32, #tpu.memory_space<vmem>>, vector<1x8x8x8xf32>
    %1 = vector.shape_cast %0 : vector<1x8x8x8xf32> to vector<8x8x8xf32>
    %2 = vector.shape_cast %1 : vector<8x8x8xf32> to vector<64x8xf32>
    %c0_3 = arith.constant 0 : index
    %c0_4 = arith.constant 0 : index
    %3 = vector.load %arg3[%c0_3, %c0_4] : memref<256x64xf32, #tpu.memory_space<vmem>>, vector<256x64xf32>
    %cst = arith.constant dense<0.000000e+00> : vector<256x8xf32>
    %4 = tpu.matmul %3, %2, %cst {dimension_numbers = #tpu.dot_dimension_numbers<[1], [0], [0], [1], [0, 0, 1, 1], [], []>} : vector<256x64xf32>, vector<64x8xf32>, vector<256x8xf32> -> vector<256x8xf32>
    %cst_5 = arith.constant 0.000000e+00 : f32
    %5 = vector.broadcast %cst_5 : f32 to vector<18x18x8xf32>
    %c0_6 = arith.constant 0 : index
    %c0_7 = arith.constant 0 : index
    %c0_8 = arith.constant 0 : index
    %6 = vector.load %arg9[%c0_6, %c0_7, %c0_8] : memref<18x18x8xf32, #tpu.memory_space<vmem>>, vector<18x18x8xf32>
    tpu.vector_store %arg9[%c0_6, %c0_7, %c0_8], %5 {strides = array<i32>} : memref<18x18x8xf32, #tpu.memory_space<vmem>>, vector<18x18x8xf32>,
    %7 = vector.shape_cast %4 : vector<256x8xf32> to vector<16x16x8xf32>
    %c1 = arith.constant 1 : index
    %c1_9 = arith.constant 1 : index
    %c0_10 = arith.constant 0 : index
    %8 = vector.load %arg9[%c1, %c1_9, %c0_10] : memref<18x18x8xf32, #tpu.memory_space<vmem>>, vector<16x16x8xf32>
    tpu.vector_store %arg9[%c1, %c1_9, %c0_10], %7 {strides = array<i32>} : memref<18x18x8xf32, #tpu.memory_space<vmem>>, vector<16x16x8xf32>,
    %cst_11 = arith.constant 0.000000e+00 : f32
    %9 = vector.broadcast %cst_11 : f32 to vector<18x18x4xf32>
    %c0_12 = arith.constant 0 : index
    %c0_13 = arith.constant 0 : index
    %c0_14 = arith.constant 0 : index
    %10 = vector.load %arg10[%c0_12, %c0_13, %c0_14] : memref<18x18x4xf32, #tpu.memory_space<vmem>>, vector<18x18x4xf32>
    tpu.vector_store %arg10[%c0_12, %c0_13, %c0_14], %9 {strides = array<i32>} : memref<18x18x4xf32, #tpu.memory_space<vmem>>, vector<18x18x4xf32>,
    %c0_15 = arith.constant 0 : index
    %c0_16 = arith.constant 0 : index
    %c0_17 = arith.constant 0 : index
    %c0_18 = arith.constant 0 : index
    %11 = vector.load %arg2[%c0_15, %c0_16, %c0_17, %c0_18] : memref<1x16x16x4xf32, #tpu.memory_space<vmem>>, vector<1x16x16x4xf32>
    %12 = vector.shape_cast %11 : vector<1x16x16x4xf32> to vector<16x16x4xf32>
    %c1_19 = arith.constant 1 : index
    %c1_20 = arith.constant 1 : index
    %c0_21 = arith.constant 0 : index
    %13 = vector.load %arg10[%c1_19, %c1_20, %c0_21] : memref<18x18x4xf32, #tpu.memory_space<vmem>>, vector<16x16x4xf32>
    tpu.vector_store %arg10[%c1_19, %c1_20, %c0_21], %12 {strides = array<i32>} : memref<18x18x4xf32, #tpu.memory_space<vmem>>, vector<16x16x4xf32>,
    %c0_22 = arith.constant 0 : index
    %c0_23 = arith.constant 0 : index
    %c0_24 = arith.constant 0 : index
    %14 = vector.load %arg9[%c0_22, %c0_23, %c0_24] : memref<18x18x8xf32, #tpu.memory_space<vmem>>, vector<16x16x8xf32>
    %15 = vector.shape_cast %14 : vector<16x16x8xf32> to vector<256x8xf32>
    %c0_25 = arith.constant 0 : index
    %c1_26 = arith.constant 1 : index
    %c0_27 = arith.constant 0 : index
    %16 = vector.load %arg9[%c0_25, %c1_26, %c0_27] : memref<18x18x8xf32, #tpu.memory_space<vmem>>, vector<16x16x8xf32>
    %17 = vector.shape_cast %16 : vector<16x16x8xf32> to vector<256x8xf32>
    %c0_28 = arith.constant 0 : index
    %c2 = arith.constant 2 : index
    %c0_29 = arith.constant 0 : index
    %18 = vector.load %arg9[%c0_28, %c2, %c0_29] : memref<18x18x8xf32, #tpu.memory_space<vmem>>, vector<16x16x8xf32>
    %19 = vector.shape_cast %18 : vector<16x16x8xf32> to vector<256x8xf32>
    %c1_30 = arith.constant 1 : index
    %c0_31 = arith.constant 0 : index
    %c0_32 = arith.constant 0 : index
    %20 = vector.load %arg9[%c1_30, %c0_31, %c0_32] : memref<18x18x8xf32, #tpu.memory_space<vmem>>, vector<16x16x8xf32>
    %21 = vector.shape_cast %20 : vector<16x16x8xf32> to vector<256x8xf32>
    %c1_33 = arith.constant 1 : index
    %c1_34 = arith.constant 1 : index
    %c0_35 = arith.constant 0 : index
    %22 = vector.load %arg9[%c1_33, %c1_34, %c0_35] : memref<18x18x8xf32, #tpu.memory_space<vmem>>, vector<16x16x8xf32>
    %23 = vector.shape_cast %22 : vector<16x16x8xf32> to vector<256x8xf32>
    %c1_36 = arith.constant 1 : index
    %c2_37 = arith.constant 2 : index
    %c0_38 = arith.constant 0 : index
    %24 = vector.load %arg9[%c1_36, %c2_37, %c0_38] : memref<18x18x8xf32, #tpu.memory_space<vmem>>, vector<16x16x8xf32>
    %25 = vector.shape_cast %24 : vector<16x16x8xf32> to vector<256x8xf32>
    %c2_39 = arith.constant 2 : index
    %c0_40 = arith.constant 0 : index
    %c0_41 = arith.constant 0 : index
    %26 = vector.load %arg9[%c2_39, %c0_40, %c0_41] : memref<18x18x8xf32, #tpu.memory_space<vmem>>, vector<16x16x8xf32>
    %27 = vector.shape_cast %26 : vector<16x16x8xf32> to vector<256x8xf32>
    %c2_42 = arith.constant 2 : index
    %c1_43 = arith.constant 1 : index
    %c0_44 = arith.constant 0 : index
    %28 = vector.load %arg9[%c2_42, %c1_43, %c0_44] : memref<18x18x8xf32, #tpu.memory_space<vmem>>, vector<16x16x8xf32>
    %29 = vector.shape_cast %28 : vector<16x16x8xf32> to vector<256x8xf32>
    %c2_45 = arith.constant 2 : index
    %c2_46 = arith.constant 2 : index
    %c0_47 = arith.constant 0 : index
    %30 = vector.load %arg9[%c2_45, %c2_46, %c0_47] : memref<18x18x8xf32, #tpu.memory_space<vmem>>, vector<16x16x8xf32>
    %31 = vector.shape_cast %30 : vector<16x16x8xf32> to vector<256x8xf32>
    %32 = tpu.concatenate %15, %17, %19, %21, %23, %25, %27, %29, %31 in 1 : vector<256x8xf32>, vector<256x8xf32>, vector<256x8xf32>, vector<256x8xf32>, vector<256x8xf32>, vector<256x8xf32>, vector<256x8xf32>, vector<256x8xf32>, vector<256x8xf32> -> vector<256x72xf32>
    %c0_48 = arith.constant 0 : index
    %c0_49 = arith.constant 0 : index
    %c0_50 = arith.constant 0 : index
    %33 = vector.load %arg10[%c0_48, %c0_49, %c0_50] : memref<18x18x4xf32, #tpu.memory_space<vmem>>, vector<16x16x4xf32>
    %34 = vector.shape_cast %33 : vector<16x16x4xf32> to vector<256x4xf32>
    %c0_51 = arith.constant 0 : index
    %c1_52 = arith.constant 1 : index
    %c0_53 = arith.constant 0 : index
    %35 = vector.load %arg10[%c0_51, %c1_52, %c0_53] : memref<18x18x4xf32, #tpu.memory_space<vmem>>, vector<16x16x4xf32>
    %36 = vector.shape_cast %35 : vector<16x16x4xf32> to vector<256x4xf32>
    %c0_54 = arith.constant 0 : index
    %c2_55 = arith.constant 2 : index
    %c0_56 = arith.constant 0 : index
    %37 = vector.load %arg10[%c0_54, %c2_55, %c0_56] : memref<18x18x4xf32, #tpu.memory_space<vmem>>, vector<16x16x4xf32>
    %38 = vector.shape_cast %37 : vector<16x16x4xf32> to vector<256x4xf32>
    %c1_57 = arith.constant 1 : index
    %c0_58 = arith.constant 0 : index
    %c0_59 = arith.constant 0 : index
    %39 = vector.load %arg10[%c1_57, %c0_58, %c0_59] : memref<18x18x4xf32, #tpu.memory_space<vmem>>, vector<16x16x4xf32>
    %40 = vector.shape_cast %39 : vector<16x16x4xf32> to vector<256x4xf32>
    %c1_60 = arith.constant 1 : index
    %c1_61 = arith.constant 1 : index
    %c0_62 = arith.constant 0 : index
    %41 = vector.load %arg10[%c1_60, %c1_61, %c0_62] : memref<18x18x4xf32, #tpu.memory_space<vmem>>, vector<16x16x4xf32>
    %42 = vector.shape_cast %41 : vector<16x16x4xf32> to vector<256x4xf32>
    %c1_63 = arith.constant 1 : index
    %c2_64 = arith.constant 2 : index
    %c0_65 = arith.constant 0 : index
    %43 = vector.load %arg10[%c1_63, %c2_64, %c0_65] : memref<18x18x4xf32, #tpu.memory_space<vmem>>, vector<16x16x4xf32>
    %44 = vector.shape_cast %43 : vector<16x16x4xf32> to vector<256x4xf32>
    %c2_66 = arith.constant 2 : index
    %c0_67 = arith.constant 0 : index
    %c0_68 = arith.constant 0 : index
    %45 = vector.load %arg10[%c2_66, %c0_67, %c0_68] : memref<18x18x4xf32, #tpu.memory_space<vmem>>, vector<16x16x4xf32>
    %46 = vector.shape_cast %45 : vector<16x16x4xf32> to vector<256x4xf32>
    %c2_69 = arith.constant 2 : index
    %c1_70 = arith.constant 1 : index
    %c0_71 = arith.constant 0 : index
    %47 = vector.load %arg10[%c2_69, %c1_70, %c0_71] : memref<18x18x4xf32, #tpu.memory_space<vmem>>, vector<16x16x4xf32>
    %48 = vector.shape_cast %47 : vector<16x16x4xf32> to vector<256x4xf32>
    %c2_72 = arith.constant 2 : index
    %c2_73 = arith.constant 2 : index
    %c0_74 = arith.constant 0 : index
    %49 = vector.load %arg10[%c2_72, %c2_73, %c0_74] : memref<18x18x4xf32, #tpu.memory_space<vmem>>, vector<16x16x4xf32>
    %50 = vector.shape_cast %49 : vector<16x16x4xf32> to vector<256x4xf32>
    %51 = tpu.concatenate %34, %36, %38, %40, %42, %44, %46, %48, %50 in 1 : vector<256x4xf32>, vector<256x4xf32>, vector<256x4xf32>, vector<256x4xf32>, vector<256x4xf32>, vector<256x4xf32>, vector<256x4xf32>, vector<256x4xf32>, vector<256x4xf32> -> vector<256x36xf32>
    %c0_75 = arith.constant 0 : index
    %c0_76 = arith.constant 0 : index
    %52 = vector.load %arg4[%c0_75, %c0_76] : memref<72x8xf32, #tpu.memory_space<vmem>>, vector<72x8xf32>
    %cst_77 = arith.constant dense<0.000000e+00> : vector<256x8xf32>
    %53 = tpu.matmul %32, %52, %cst_77 {dimension_numbers = #tpu.dot_dimension_numbers<[1], [0], [0], [1], [0, 0, 1, 1], [], []>} : vector<256x72xf32>, vector<72x8xf32>, vector<256x8xf32> -> vector<256x8xf32>
    %c0_78 = arith.constant 0 : index
    %c0_79 = arith.constant 0 : index
    %54 = vector.load %arg5[%c0_78, %c0_79] : memref<36x8xf32, #tpu.memory_space<vmem>>, vector<36x8xf32>
    %cst_80 = arith.constant dense<0.000000e+00> : vector<256x8xf32>
    %55 = tpu.matmul %51, %54, %cst_80 {dimension_numbers = #tpu.dot_dimension_numbers<[1], [0], [0], [1], [0, 0, 1, 1], [], []>} : vector<256x36xf32>, vector<36x8xf32>, vector<256x8xf32> -> vector<256x8xf32>
    %56 = arith.addf %53, %55 : vector<256x8xf32>
    %c0_81 = arith.constant 0 : index
    %c0_82 = arith.constant 0 : index
    %57 = vector.load %arg6[%c0_81, %c0_82] : memref<1x8xf32, #tpu.memory_space<vmem>>, vector<1x8xf32>
    %58 = vector.broadcast %57 : vector<1x8xf32> to vector<256x8xf32>
    %59 = arith.addf %56, %58 : vector<256x8xf32>
    %c0_83 = arith.constant 0 : index
    %c0_84 = arith.constant 0 : index
    %c0_85 = arith.constant 0 : index
    %60 = vector.load %arg7[%c0_83, %c0_84, %c0_85] : memref<1x256x8xf32, #tpu.memory_space<vmem>>, vector<1x256x8xf32>
    %61 = vector.shape_cast %60 : vector<1x256x8xf32> to vector<256x8xf32>
    %62 = vector.shape_cast %59 : vector<256x8xf32> to vector<1x256x8xf32>
    tpu.vector_store %arg7[%c0_83, %c0_84, %c0_85], %62 {strides = array<i32>} : memref<1x256x8xf32, #tpu.memory_space<vmem>>, vector<1x256x8xf32>,
    %cst_86 = arith.constant dense<0.000000e+00> : vector<8xf32>
    %63 = vector.multi_reduction <add>, %59, %cst_86 [0] : vector<256x8xf32> to vector<8xf32>
    %64 = vector.shape_cast %63 : vector<8xf32> to vector<1x8xf32>
    %65 = arith.mulf %59, %59 : vector<256x8xf32>
    %cst_87 = arith.constant dense<0.000000e+00> : vector<8xf32>
    %66 = vector.multi_reduction <add>, %65, %cst_87 [0] : vector<256x8xf32> to vector<8xf32>
    %67 = vector.shape_cast %66 : vector<8xf32> to vector<1x8xf32>
    %68 = tpu.concatenate %64, %67 in 0 : vector<1x8xf32>, vector<1x8xf32> -> vector<2x8xf32>
    %c0_88 = arith.constant 0 : index
    %c0_89 = arith.constant 0 : index
    %c0_90 = arith.constant 0 : index
    %69 = vector.load %arg8[%c0_88, %c0_89, %c0_90] : memref<1x2x8xf32, #tpu.memory_space<vmem>>, vector<1x2x8xf32>
    %70 = vector.shape_cast %69 : vector<1x2x8xf32> to vector<2x8xf32>
    %71 = vector.shape_cast %68 : vector<2x8xf32> to vector<1x2x8xf32>
    tpu.vector_store %arg8[%c0_88, %c0_89, %c0_90], %71 {strides = array<i32>} : memref<1x2x8xf32, #tpu.memory_space<vmem>>, vector<1x2x8xf32>,
    return
  }
  func.func @transform_0(%arg0: i32) -> (i32, i32, i32, i32) {
    %c0_i32 = arith.constant 0 : i32
    %c0_i32_0 = arith.constant 0 : i32
    %c0_i32_1 = arith.constant 0 : i32
    %c0_i32_2 = arith.constant 0 : i32
    return %arg0, %c0_i32, %c0_i32_0, %c0_i32_1 : i32, i32, i32, i32
  }
  func.func @transform_1(%arg0: i32) -> (i32, i32, i32, i32) {
    %c0_i32 = arith.constant 0 : i32
    %c0_i32_0 = arith.constant 0 : i32
    %c0_i32_1 = arith.constant 0 : i32
    %c0_i32_2 = arith.constant 0 : i32
    return %arg0, %c0_i32, %c0_i32_0, %c0_i32_1 : i32, i32, i32, i32
  }
  func.func @transform_2(%arg0: i32) -> (i32, i32) {
    %c0_i32 = arith.constant 0 : i32
    %c0_i32_0 = arith.constant 0 : i32
    %c0_i32_1 = arith.constant 0 : i32
    return %c0_i32, %c0_i32_0 : i32, i32
  }
  func.func @transform_3(%arg0: i32) -> (i32, i32) {
    %c0_i32 = arith.constant 0 : i32
    %c0_i32_0 = arith.constant 0 : i32
    %c0_i32_1 = arith.constant 0 : i32
    return %c0_i32, %c0_i32_0 : i32, i32
  }
  func.func @transform_4(%arg0: i32) -> (i32, i32) {
    %c0_i32 = arith.constant 0 : i32
    %c0_i32_0 = arith.constant 0 : i32
    %c0_i32_1 = arith.constant 0 : i32
    return %c0_i32, %c0_i32_0 : i32, i32
  }
  func.func @transform_5(%arg0: i32) -> (i32, i32) {
    %c0_i32 = arith.constant 0 : i32
    %c0_i32_0 = arith.constant 0 : i32
    %c0_i32_1 = arith.constant 0 : i32
    return %c0_i32, %c0_i32_0 : i32, i32
  }
  func.func @transform_6(%arg0: i32) -> (i32, i32, i32) {
    %c0_i32 = arith.constant 0 : i32
    %c0_i32_0 = arith.constant 0 : i32
    %c0_i32_1 = arith.constant 0 : i32
    return %arg0, %c0_i32, %c0_i32_0 : i32, i32, i32
  }
  func.func @transform_7(%arg0: i32) -> (i32, i32, i32) {
    %c0_i32 = arith.constant 0 : i32
    %c0_i32_0 = arith.constant 0 : i32
    %c0_i32_1 = arith.constant 0 : i32
    return %arg0, %c0_i32, %c0_i32_0 : i32, i32, i32
  }
}

module attributes {stable_mosaic.version = 11 : i64} {
  func.func @_conv2_kernel(%arg0: i32, %arg1: memref<1x16x16x8xf32, #tpu.memory_space<vmem>>, %arg2: memref<1x8xf32, #tpu.memory_space<vmem>>, %arg3: memref<1x8xf32, #tpu.memory_space<vmem>>, %arg4: memref<72x8xf32, #tpu.memory_space<vmem>>, %arg5: memref<1x8xf32, #tpu.memory_space<vmem>>, %arg6: memref<1x256x8xf32, #tpu.memory_space<vmem>>, %arg7: memref<1x2x8xf32, #tpu.memory_space<vmem>>, %arg8: memref<18x18x8xf32, #tpu.memory_space<vmem>>) attributes {dimension_semantics = [#tpu.dimension_semantics<parallel>], iteration_bounds = array<i64: 2>, scalar_prefetch = 0 : i64, scratch_operands = 1 : i64, tpu.core_type = #tpu.core_type<tc>, window_params = [{transform_indices = @transform_0, window_bounds = array<i64: 1, 16, 16, 8>}, {pipeline_mode = #tpu.pipeline_mode<synchronous>, transform_indices = @transform_1, window_bounds = array<i64: 1, 8>}, {pipeline_mode = #tpu.pipeline_mode<synchronous>, transform_indices = @transform_2, window_bounds = array<i64: 1, 8>}, {pipeline_mode = #tpu.pipeline_mode<synchronous>, transform_indices = @transform_3, window_bounds = array<i64: 72, 8>}, {pipeline_mode = #tpu.pipeline_mode<synchronous>, transform_indices = @transform_4, window_bounds = array<i64: 1, 8>}, {transform_indices = @transform_5, window_bounds = array<i64: 1, 256, 8>}, {transform_indices = @transform_6, window_bounds = array<i64: 1, 2, 8>}]} {
    %c0 = arith.constant 0 : index
    %c0_0 = arith.constant 0 : index
    %c0_1 = arith.constant 0 : index
    %c0_2 = arith.constant 0 : index
    %0 = vector.load %arg1[%c0, %c0_0, %c0_1, %c0_2] : memref<1x16x16x8xf32, #tpu.memory_space<vmem>>, vector<1x16x16x8xf32>
    %1 = vector.shape_cast %0 : vector<1x16x16x8xf32> to vector<16x16x8xf32>
    %c0_3 = arith.constant 0 : index
    %c0_4 = arith.constant 0 : index
    %2 = vector.load %arg2[%c0_3, %c0_4] : memref<1x8xf32, #tpu.memory_space<vmem>>, vector<1x8xf32>
    %3 = vector.shape_cast %2 : vector<1x8xf32> to vector<1x1x8xf32>
    %4 = vector.broadcast %3 : vector<1x1x8xf32> to vector<16x16x8xf32>
    %5 = arith.mulf %1, %4 : vector<16x16x8xf32>
    %c0_5 = arith.constant 0 : index
    %c0_6 = arith.constant 0 : index
    %6 = vector.load %arg3[%c0_5, %c0_6] : memref<1x8xf32, #tpu.memory_space<vmem>>, vector<1x8xf32>
    %7 = vector.shape_cast %6 : vector<1x8xf32> to vector<1x1x8xf32>
    %8 = vector.broadcast %7 : vector<1x1x8xf32> to vector<16x16x8xf32>
    %9 = arith.addf %5, %8 : vector<16x16x8xf32>
    %cst = arith.constant 0.000000e+00 : f32
    %10 = vector.broadcast %cst : f32 to vector<16x16x8xf32>
    %11 = arith.maximumf %9, %10 : vector<16x16x8xf32>
    %cst_7 = arith.constant 0.000000e+00 : f32
    %12 = vector.broadcast %cst_7 : f32 to vector<18x18x8xf32>
    %c0_8 = arith.constant 0 : index
    %c0_9 = arith.constant 0 : index
    %c0_10 = arith.constant 0 : index
    %13 = vector.load %arg8[%c0_8, %c0_9, %c0_10] : memref<18x18x8xf32, #tpu.memory_space<vmem>>, vector<18x18x8xf32>
    tpu.vector_store %arg8[%c0_8, %c0_9, %c0_10], %12 {strides = array<i32>} : memref<18x18x8xf32, #tpu.memory_space<vmem>>, vector<18x18x8xf32>,
    %c1 = arith.constant 1 : index
    %c1_11 = arith.constant 1 : index
    %c0_12 = arith.constant 0 : index
    %14 = vector.load %arg8[%c1, %c1_11, %c0_12] : memref<18x18x8xf32, #tpu.memory_space<vmem>>, vector<16x16x8xf32>
    tpu.vector_store %arg8[%c1, %c1_11, %c0_12], %11 {strides = array<i32>} : memref<18x18x8xf32, #tpu.memory_space<vmem>>, vector<16x16x8xf32>,
    %c0_13 = arith.constant 0 : index
    %c0_14 = arith.constant 0 : index
    %c0_15 = arith.constant 0 : index
    %15 = vector.load %arg8[%c0_13, %c0_14, %c0_15] : memref<18x18x8xf32, #tpu.memory_space<vmem>>, vector<16x16x8xf32>
    %16 = vector.shape_cast %15 : vector<16x16x8xf32> to vector<256x8xf32>
    %c0_16 = arith.constant 0 : index
    %c1_17 = arith.constant 1 : index
    %c0_18 = arith.constant 0 : index
    %17 = vector.load %arg8[%c0_16, %c1_17, %c0_18] : memref<18x18x8xf32, #tpu.memory_space<vmem>>, vector<16x16x8xf32>
    %18 = vector.shape_cast %17 : vector<16x16x8xf32> to vector<256x8xf32>
    %c0_19 = arith.constant 0 : index
    %c2 = arith.constant 2 : index
    %c0_20 = arith.constant 0 : index
    %19 = vector.load %arg8[%c0_19, %c2, %c0_20] : memref<18x18x8xf32, #tpu.memory_space<vmem>>, vector<16x16x8xf32>
    %20 = vector.shape_cast %19 : vector<16x16x8xf32> to vector<256x8xf32>
    %c1_21 = arith.constant 1 : index
    %c0_22 = arith.constant 0 : index
    %c0_23 = arith.constant 0 : index
    %21 = vector.load %arg8[%c1_21, %c0_22, %c0_23] : memref<18x18x8xf32, #tpu.memory_space<vmem>>, vector<16x16x8xf32>
    %22 = vector.shape_cast %21 : vector<16x16x8xf32> to vector<256x8xf32>
    %c1_24 = arith.constant 1 : index
    %c1_25 = arith.constant 1 : index
    %c0_26 = arith.constant 0 : index
    %23 = vector.load %arg8[%c1_24, %c1_25, %c0_26] : memref<18x18x8xf32, #tpu.memory_space<vmem>>, vector<16x16x8xf32>
    %24 = vector.shape_cast %23 : vector<16x16x8xf32> to vector<256x8xf32>
    %c1_27 = arith.constant 1 : index
    %c2_28 = arith.constant 2 : index
    %c0_29 = arith.constant 0 : index
    %25 = vector.load %arg8[%c1_27, %c2_28, %c0_29] : memref<18x18x8xf32, #tpu.memory_space<vmem>>, vector<16x16x8xf32>
    %26 = vector.shape_cast %25 : vector<16x16x8xf32> to vector<256x8xf32>
    %c2_30 = arith.constant 2 : index
    %c0_31 = arith.constant 0 : index
    %c0_32 = arith.constant 0 : index
    %27 = vector.load %arg8[%c2_30, %c0_31, %c0_32] : memref<18x18x8xf32, #tpu.memory_space<vmem>>, vector<16x16x8xf32>
    %28 = vector.shape_cast %27 : vector<16x16x8xf32> to vector<256x8xf32>
    %c2_33 = arith.constant 2 : index
    %c1_34 = arith.constant 1 : index
    %c0_35 = arith.constant 0 : index
    %29 = vector.load %arg8[%c2_33, %c1_34, %c0_35] : memref<18x18x8xf32, #tpu.memory_space<vmem>>, vector<16x16x8xf32>
    %30 = vector.shape_cast %29 : vector<16x16x8xf32> to vector<256x8xf32>
    %c2_36 = arith.constant 2 : index
    %c2_37 = arith.constant 2 : index
    %c0_38 = arith.constant 0 : index
    %31 = vector.load %arg8[%c2_36, %c2_37, %c0_38] : memref<18x18x8xf32, #tpu.memory_space<vmem>>, vector<16x16x8xf32>
    %32 = vector.shape_cast %31 : vector<16x16x8xf32> to vector<256x8xf32>
    %33 = tpu.concatenate %16, %18, %20, %22, %24, %26, %28, %30, %32 in 1 : vector<256x8xf32>, vector<256x8xf32>, vector<256x8xf32>, vector<256x8xf32>, vector<256x8xf32>, vector<256x8xf32>, vector<256x8xf32>, vector<256x8xf32>, vector<256x8xf32> -> vector<256x72xf32>
    %c0_39 = arith.constant 0 : index
    %c0_40 = arith.constant 0 : index
    %34 = vector.load %arg4[%c0_39, %c0_40] : memref<72x8xf32, #tpu.memory_space<vmem>>, vector<72x8xf32>
    %cst_41 = arith.constant dense<0.000000e+00> : vector<256x8xf32>
    %35 = tpu.matmul %33, %34, %cst_41 {dimension_numbers = #tpu.dot_dimension_numbers<[1], [0], [0], [1], [0, 0, 1, 1], [], []>} : vector<256x72xf32>, vector<72x8xf32>, vector<256x8xf32> -> vector<256x8xf32>
    %c0_42 = arith.constant 0 : index
    %c0_43 = arith.constant 0 : index
    %36 = vector.load %arg5[%c0_42, %c0_43] : memref<1x8xf32, #tpu.memory_space<vmem>>, vector<1x8xf32>
    %37 = vector.broadcast %36 : vector<1x8xf32> to vector<256x8xf32>
    %38 = arith.addf %35, %37 : vector<256x8xf32>
    %c0_44 = arith.constant 0 : index
    %c0_45 = arith.constant 0 : index
    %c0_46 = arith.constant 0 : index
    %39 = vector.load %arg6[%c0_44, %c0_45, %c0_46] : memref<1x256x8xf32, #tpu.memory_space<vmem>>, vector<1x256x8xf32>
    %40 = vector.shape_cast %39 : vector<1x256x8xf32> to vector<256x8xf32>
    %41 = vector.shape_cast %38 : vector<256x8xf32> to vector<1x256x8xf32>
    tpu.vector_store %arg6[%c0_44, %c0_45, %c0_46], %41 {strides = array<i32>} : memref<1x256x8xf32, #tpu.memory_space<vmem>>, vector<1x256x8xf32>,
    %cst_47 = arith.constant dense<0.000000e+00> : vector<8xf32>
    %42 = vector.multi_reduction <add>, %38, %cst_47 [0] : vector<256x8xf32> to vector<8xf32>
    %43 = vector.shape_cast %42 : vector<8xf32> to vector<1x8xf32>
    %44 = arith.mulf %38, %38 : vector<256x8xf32>
    %cst_48 = arith.constant dense<0.000000e+00> : vector<8xf32>
    %45 = vector.multi_reduction <add>, %44, %cst_48 [0] : vector<256x8xf32> to vector<8xf32>
    %46 = vector.shape_cast %45 : vector<8xf32> to vector<1x8xf32>
    %47 = tpu.concatenate %43, %46 in 0 : vector<1x8xf32>, vector<1x8xf32> -> vector<2x8xf32>
    %c0_49 = arith.constant 0 : index
    %c0_50 = arith.constant 0 : index
    %c0_51 = arith.constant 0 : index
    %48 = vector.load %arg7[%c0_49, %c0_50, %c0_51] : memref<1x2x8xf32, #tpu.memory_space<vmem>>, vector<1x2x8xf32>
    %49 = vector.shape_cast %48 : vector<1x2x8xf32> to vector<2x8xf32>
    %50 = vector.shape_cast %47 : vector<2x8xf32> to vector<1x2x8xf32>
    tpu.vector_store %arg7[%c0_49, %c0_50, %c0_51], %50 {strides = array<i32>} : memref<1x2x8xf32, #tpu.memory_space<vmem>>, vector<1x2x8xf32>,
    return
  }
  func.func @transform_0(%arg0: i32) -> (i32, i32, i32, i32) {
    %c0_i32 = arith.constant 0 : i32
    %c0_i32_0 = arith.constant 0 : i32
    %c0_i32_1 = arith.constant 0 : i32
    %c0_i32_2 = arith.constant 0 : i32
    return %arg0, %c0_i32, %c0_i32_0, %c0_i32_1 : i32, i32, i32, i32
  }
  func.func @transform_1(%arg0: i32) -> (i32, i32) {
    %c0_i32 = arith.constant 0 : i32
    %c0_i32_0 = arith.constant 0 : i32
    %c0_i32_1 = arith.constant 0 : i32
    return %c0_i32, %c0_i32_0 : i32, i32
  }
  func.func @transform_2(%arg0: i32) -> (i32, i32) {
    %c0_i32 = arith.constant 0 : i32
    %c0_i32_0 = arith.constant 0 : i32
    %c0_i32_1 = arith.constant 0 : i32
    return %c0_i32, %c0_i32_0 : i32, i32
  }
  func.func @transform_3(%arg0: i32) -> (i32, i32) {
    %c0_i32 = arith.constant 0 : i32
    %c0_i32_0 = arith.constant 0 : i32
    %c0_i32_1 = arith.constant 0 : i32
    return %c0_i32, %c0_i32_0 : i32, i32
  }
  func.func @transform_4(%arg0: i32) -> (i32, i32) {
    %c0_i32 = arith.constant 0 : i32
    %c0_i32_0 = arith.constant 0 : i32
    %c0_i32_1 = arith.constant 0 : i32
    return %c0_i32, %c0_i32_0 : i32, i32
  }
  func.func @transform_5(%arg0: i32) -> (i32, i32, i32) {
    %c0_i32 = arith.constant 0 : i32
    %c0_i32_0 = arith.constant 0 : i32
    %c0_i32_1 = arith.constant 0 : i32
    return %arg0, %c0_i32, %c0_i32_0 : i32, i32, i32
  }
  func.func @transform_6(%arg0: i32) -> (i32, i32, i32) {
    %c0_i32 = arith.constant 0 : i32
    %c0_i32_0 = arith.constant 0 : i32
    %c0_i32_1 = arith.constant 0 : i32
    return %arg0, %c0_i32, %c0_i32_0 : i32, i32, i32
  }
}

module attributes {stable_mosaic.version = 11 : i64} {
  func.func @_bn_relu_kernel(%arg0: i32, %arg1: memref<1x1x2048xf32, #tpu.memory_space<vmem>>, %arg2: memref<1x1x2048xf32, #tpu.memory_space<vmem>>, %arg3: memref<1x1x2048xf32, #tpu.memory_space<vmem>>, %arg4: memref<1x1x2048xf32, #tpu.memory_space<vmem>>) attributes {dimension_semantics = [#tpu.dimension_semantics<parallel>], iteration_bounds = array<i64: 2>, scalar_prefetch = 0 : i64, scratch_operands = 0 : i64, tpu.core_type = #tpu.core_type<tc>, window_params = [{transform_indices = @transform_0, window_bounds = array<i64: 1, 1, 2048>}, {pipeline_mode = #tpu.pipeline_mode<synchronous>, transform_indices = @transform_1, window_bounds = array<i64: 1, 1, 2048>}, {pipeline_mode = #tpu.pipeline_mode<synchronous>, transform_indices = @transform_2, window_bounds = array<i64: 1, 1, 2048>}, {transform_indices = @transform_3, window_bounds = array<i64: 1, 1, 2048>}]} {
    %c0 = arith.constant 0 : index
    %c0_0 = arith.constant 0 : index
    %c0_1 = arith.constant 0 : index
    %0 = vector.load %arg1[%c0, %c0_0, %c0_1] : memref<1x1x2048xf32, #tpu.memory_space<vmem>>, vector<1x1x2048xf32>
    %c0_2 = arith.constant 0 : index
    %c0_3 = arith.constant 0 : index
    %c0_4 = arith.constant 0 : index
    %1 = vector.load %arg2[%c0_2, %c0_3, %c0_4] : memref<1x1x2048xf32, #tpu.memory_space<vmem>>, vector<1x1x2048xf32>
    %2 = arith.mulf %0, %1 : vector<1x1x2048xf32>
    %c0_5 = arith.constant 0 : index
    %c0_6 = arith.constant 0 : index
    %c0_7 = arith.constant 0 : index
    %3 = vector.load %arg3[%c0_5, %c0_6, %c0_7] : memref<1x1x2048xf32, #tpu.memory_space<vmem>>, vector<1x1x2048xf32>
    %4 = arith.addf %2, %3 : vector<1x1x2048xf32>
    %cst = arith.constant 0.000000e+00 : f32
    %5 = vector.broadcast %cst : f32 to vector<1x1x2048xf32>
    %6 = arith.maximumf %4, %5 : vector<1x1x2048xf32>
    %c0_8 = arith.constant 0 : index
    %c0_9 = arith.constant 0 : index
    %c0_10 = arith.constant 0 : index
    %7 = vector.load %arg4[%c0_8, %c0_9, %c0_10] : memref<1x1x2048xf32, #tpu.memory_space<vmem>>, vector<1x1x2048xf32>
    tpu.vector_store %arg4[%c0_8, %c0_9, %c0_10], %6 {strides = array<i32>} : memref<1x1x2048xf32, #tpu.memory_space<vmem>>, vector<1x1x2048xf32>,
    return
  }
  func.func @transform_0(%arg0: i32) -> (i32, i32, i32) {
    %c0_i32 = arith.constant 0 : i32
    %c0_i32_0 = arith.constant 0 : i32
    %c0_i32_1 = arith.constant 0 : i32
    return %arg0, %c0_i32, %c0_i32_0 : i32, i32, i32
  }
  func.func @transform_1(%arg0: i32) -> (i32, i32, i32) {
    %c0_i32 = arith.constant 0 : i32
    %c0_i32_0 = arith.constant 0 : i32
    %c0_i32_1 = arith.constant 0 : i32
    %c0_i32_2 = arith.constant 0 : i32
    return %c0_i32, %c0_i32_0, %c0_i32_1 : i32, i32, i32
  }
  func.func @transform_2(%arg0: i32) -> (i32, i32, i32) {
    %c0_i32 = arith.constant 0 : i32
    %c0_i32_0 = arith.constant 0 : i32
    %c0_i32_1 = arith.constant 0 : i32
    %c0_i32_2 = arith.constant 0 : i32
    return %c0_i32, %c0_i32_0, %c0_i32_1 : i32, i32, i32
  }
  func.func @transform_3(%arg0: i32) -> (i32, i32, i32) {
    %c0_i32 = arith.constant 0 : i32
    %c0_i32_0 = arith.constant 0 : i32
    %c0_i32_1 = arith.constant 0 : i32
    return %arg0, %c0_i32, %c0_i32_0 : i32, i32, i32
  }
}

</mosaic_0001>

<bundles_post_ra>
// kernel: decoder_block_forward.5
= control target key start
LH: loop header
LB: loop body
LE: loop exit
PB: predicated region body
PF: predicated region fallthrough
CT: control target
= control target key end

     0   :  { %s278_s12 = smov 0   ;;  %s301_s0 = inlined_call_operand.vmem [shape: f32[2,1,2048], index: 0, kind: input, shape index: {}]   ;;  %s302_s1 = inlined_call_operand.vmem [shape: f32[1,1,2048], index: 1, kind: input, shape index: {}]   ;;  %s303_s2 = inlined_call_operand.vmem [shape: f32[1,1,2048], index: 2, kind: input, shape index: {}]   ;;  %s304_s3 = inlined_call_operand.vmem [shape: f32[2,1,2048], index: 3, kind: output, shape index: {}]  }
   0x1 LB: > { %s233_s13 = sadd.s32 4294967295, %s256_s12   ;;  %p237_p0 = scmp.ge.s32.totalorder %s256_s12, 1  ;;  %s256_s12 = sphi %s278_s12, %s13_s12  }
   0x2   : > { %p136_p1 = scmp.lt.s32.totalorder %s256_s12, 3 }
   0x4   : > { %p137_p2 = pnand %p237_p0, %p136_p1 }
   0x5   : > { %p158_p3 = scmp.lt.s32.totalorder (!%p137_p2), %s233_s13, 1 }
   0x6   : > { %140 = sbr.rel (%p137_p2) target bundleno = 22 (0x16), region = 32 }
   0xb   : > { %s306_s13 = smov (!%p158_p3, %s233_s13), 1  ;;  %v168_v0 = vld [vmem:[%s302_s1] sm:$0xff]  ;;  %v169_v1 = vld [vmem:[%s302_s1 + $0x8] sm:$0xff] }
   0xc   : > { %s238_s14 = sshll.u32 %s306_s13, 4  ;;  %v172_v2 = vld [vmem:[%s303_s2] sm:$0xff]  ;;  %v173_v5 = vld [vmem:[%s303_s2 + $0x8] sm:$0xff] }
   0xd   : > { %s161_s21 = scalar_lea.vmem %s301_s0, %s238_s14  ;;  %s165_s28 = scalar_lea.vmem %s304_s3, %s238_s14 }
   0xe   : > { %v166_v3 = vld [vmem:[%s161_s21] sm:$0xff]  ;;  %v167_v4 = vld [vmem:[%s161_s21 + $0x8] sm:$0xff] }
   0xf   : > { %v170_v6 = vmul.f32 %v168_v0, %v166_v3  ;;  %v171_v7 = vmul.f32 %v169_v1, %v167_v4 }
  0x11   : > { %v174_v8 = vadd.f32 %v172_v2, %v170_v6  ;;  %v175_v9 = vadd.f32 %v173_v5, %v171_v7 }
  0x13   : > { %v176_v10 = vmax.f32 %v174_v8, 0.0  ;;  %v177_v11 = vmax.f32 %v175_v9, 0.0 }
  0x15   : > { %178 = vst [vmem:[%s165_s28] sm:$0xff] %v176_v10  ;;  %179 = vst [vmem:[%s165_s28 + $0x8] sm:$0xff] %v177_v11 }
  0x16 PF: > { %s13_s12 = sadd.s32 1, %s256_s12  }
  0x17   : > { %p10_p4 = scmp.ge.s32.totalorder %s13_s12, 4  }
  0x19   :  { %12 = sbr.rel (!%p10_p4) target bundleno = 1 (0x1), region = 62 }

// kernel: decoder_block_forward.4
= control target key start
LH: loop header
LB: loop body
LE: loop exit
PB: predicated region body
PF: predicated region fallthrough
CT: control target
= control target key end

     0   :  { %s2954_s21 = smov 0   ;;  %s4443_s0 = inlined_call_operand.vmem [shape: f32[2,16,16,8], index: 0, kind: input, shape index: {}]   ;;  %s4444_s1 = inlined_call_operand.vmem [shape: f32[1,8], index: 1, kind: input, shape index: {}]   ;;  %s4445_s2 = inlined_call_operand.vmem [shape: f32[1,8], index: 2, kind: input, shape index: {}]   ;;  %s4446_s3 = inlined_call_operand.vmem [shape: f32[72,8], index: 3, kind: input, shape index: {}]   ;;  %s4447_s4 = inlined_call_operand.vmem [shape: f32[1,8], index: 4, kind: input, shape index: {}]   ;;  %s4448_s5 = inlined_call_operand.vmem [shape: f32[2,256,8], index: 5, kind: output, shape index: {0}]   ;;  %s4449_s6 = inlined_call_operand.vmem [shape: f32[2,2,8], index: 6, kind: output, shape index: {1}]  }
   0x1 LB: > { %s2699_s22 = sadd.s32 4294967295, %s2908_s21   ;;  %p2703_p0 = scmp.ge.s32.totalorder %s2908_s21, 1  ;;  %s2908_s21 = sphi %s2954_s21, %s17_s21  }
   0x2   : > { %p215_p1 = scmp.lt.s32.totalorder %s2908_s21, 3 }
   0x4   : > { %p216_p2 = pnand %p2703_p0, %p215_p1 }
   0x6   : > { %219 = sbr.rel (%p216_p2) target bundleno = 890 (0x37a), region = 40 }
   0xb   : > { %vm405_vm0 = vcmask 64512   ;;  %vm408_vm1 = vcmask 58368   ;;  %p2964_p3 = scmp.lt.s32.totalorder %s2699_s22, 1  ;;  %v2910_v0 = vmov 0.0   ;;  %v3032_v1 = vld [vmem:[%s4444_s1] ss:$0 sm:$0xff] }
   0xc   : > { %406 = vst.msk [vmem:[#allocation2] sm:$0xff] %vm405_vm0, %v2910_v0  ;;  %407 = vst.msk [vmem:[#allocation2 + $0x8] sm:$0xff] %vm405_vm0, %v2910_v0  ;;  %v3044_v2 = vld [vmem:[%s4445_s2] ss:$0 sm:$0xff]  ;;  %s2911_s8 = smov 8   ;;  %s2912_s9 = smov 16  }
   0xd   : > { %410 = vst.msk [vmem:[#allocation2 + $0x18] sm:$0xff] %vm405_vm0, %v2910_v0  ;;  %411 = vst.msk [vmem:[#allocation2 + $0x20] sm:$0xff] %vm405_vm0, %v2910_v0  ;;  %s4574_s22 = smov (!%p2964_p3, %s2699_s22), 1  ;;  %s2913_s10 = smov 24   ;;  %vm1839_vm2 = vcmask 130048   ;;  %vm1872_vm3 = vcmask 195584  }
   0xe   : > { %413 = vst.msk [vmem:[#allocation2 + $0x30] sm:$0xff] %vm405_vm0, %v2910_v0  ;;  %414 = vst.msk [vmem:[#allocation2 + $0x38] sm:$0xff] %vm405_vm0, %v2910_v0  ;;  %s2746_s24 = sshll.u32 %s4574_s22, 8  ;;  %s2914_s17 = smov 32   ;;  %vm1905_vm4 = vcmask 261120   ;;  %vm1938_vm5 = vcmask 326656  }
   0xf   : > { %416 = vst.msk [vmem:[#allocation2 + $0x48] sm:$0xff] %vm405_vm0, %v2910_v0  ;;  %417 = vst.msk [vmem:[#allocation2 + $0x50] sm:$0xff] %vm405_vm0, %v2910_v0  ;;  %s3039_s29 = scalar_lea.vmem %s4443_s0, %s2746_s24  ;;  %s2915_s25 = smov 40   ;;  %vm1971_vm6 = vcmask 392192   ;;  %vm2004_vm7 = vcmask 457728   ;;  %vm2037_vm8 = vcmask 523264  }
  0x10   : > { %419 = vst.msk [vmem:[#allocation2 + $0x60] sm:$0xff] %vm405_vm0, %v2910_v0  ;;  %420 = vst.msk [vmem:[#allocation2 + $0x68] sm:$0xff] %vm405_vm0, %v2910_v0  ;;  %v265_v3 = vld [vmem:[%s3039_s29 + $0x10] sm:$0xff]  ;;  %v263_v4 = vld [vmem:[%s3039_s29] sm:$0xff]  ;;  %s2916_s28 = smov 48   ;;  %s2917_s11 = smov 56  }
  0x11   : > { %422 = vst.msk [vmem:[#allocation2 + $0x78] sm:$0xff] %vm405_vm0, %v2910_v0  ;;  %423 = vst.msk [vmem:[#allocation2 + $0x80] sm:$0xff] %vm405_vm0, %v2910_v0  ;;  %v267_v5 = vld [vmem:[%s3039_s29 + $0x20] sm:$0xff]  ;;  %v304_v6 = vmul.f32 %v3032_v1, %v265_v3  ;;  %v302_v7 = vmul.f32 %v3032_v1, %v263_v4  ;;  %v264_v9 = vld [vmem:[%s3039_s29 + $0x8] sm:$0xff]  ;;  %s2918_s14 = smov 64   ;;  %vm2086_vm9 = vcmask 588800   ;;  %s4118_s23 = scalar_lea.vmem %s4448_s5, %s2746_s24 }
  0x12   : > { %425 = vst.msk [vmem:[#allocation2 + $0x90] sm:$0xff] %vm405_vm0, %v2910_v0  ;;  %426 = vst.msk [vmem:[#allocation2 + $0x98] sm:$0xff] %vm405_vm0, %v2910_v0  ;;  %v306_v8 = vmul.f32 %v3032_v1, %v267_v5  ;;  %v269_v10 = vld [vmem:[%s3039_s29 + $0x30] sm:$0xff]  ;;  %v266_v11 = vld [vmem:[%s3039_s29 + $0x18] sm:$0xff]  ;;  %v303_v13 = vmul.f32 %v3032_v1, %v264_v9  ;;  %s2708_s24 = sshll.u32 %s4574_s22, 1  ;;  %vm2610_vm10 = vcmask 1040384  }
  0x13   : > { %428 = vst.msk [vmem:[#allocation2 + $0xa8] sm:$0xff] %vm405_vm0, %v2910_v0  ;;  %429 = vst.msk [vmem:[#allocation2 + $0xb0] sm:$0xff] %vm405_vm0, %v2910_v0  ;;  %v526_v12 = vld [vmem:[#allocation2 + $0x1] sm:$0xff]  ;;  %v308_v14 = vmul.f32 %v3032_v1, %v269_v10  ;;  %v305_v15 = vmul.f32 %v3032_v1, %v266_v11  ;;  %v343_v18 = vadd.f32 %v3044_v2, %v304_v6  ;;  %v273_v27 = vld [vmem:[%s3039_s29 + $0x50] sm:$0xff]  ;;  %s262_s27 = scalar_lea.vmem %s4449_s6, %s2708_s24 }
  0x14   : > { %431 = vst.msk [vmem:[#allocation2 + $0xc0] sm:$0xff] %vm405_vm0, %v2910_v0  ;;  %432 = vst.msk [vmem:[#allocation2 + $0xc8] sm:$0xff] %vm405_vm0, %v2910_v0  ;;  %v271_v16 = vld [vmem:[%s3039_s29 + $0x40] sm:$0xff]  ;;  %815 = vrot.lane.b32.xlu0 %v526_v12, %s2911_s8  ;;  %v341_v19 = vadd.f32 %v3044_v2, %v302_v7  ;;  %v345_v20 = vadd.f32 %v3044_v2, %v306_v8  ;;  %v268_v22 = vld [vmem:[%s3039_s29 + $0x28] sm:$0xff]  ;;  %v342_v23 = vadd.f32 %v3044_v2, %v303_v13 }
  0x15   : > { %434 = vst.msk [vmem:[#allocation2 + $0xd8] sm:$0xff] %vm405_vm0, %v2910_v0  ;;  %435 = vst.msk [vmem:[#allocation2 + $0xe0] sm:$0xff] %vm405_vm0, %v2910_v0  ;;  %v310_v21 = vmul.f32 %v3032_v1, %v271_v16  ;;  %v347_v24 = vadd.f32 %v3044_v2, %v308_v14  ;;  %v344_v25 = vadd.f32 %v3044_v2, %v305_v15  ;;  %v270_v28 = vld [vmem:[%s3039_s29 + $0x38] sm:$0xff]  ;;  %v275_v29 = vld [vmem:[%s3039_s29 + $0x60] sm:$0xff]  ;;  %v375_v30 = vmax.f32 %v343_v18, 0.0 }
  0x16   : > { %437 = vst.msk [vmem:[#allocation2 + $0xf0] sm:$0xff] %vm405_vm0, %v2910_v0  ;;  %438 = vst.msk [vmem:[#allocation2 + $0xf8] sm:$0xff] %vm405_vm0, %v2910_v0  ;;  %v307_v26 = vmul.f32 %v3032_v1, %v268_v22  ;;  %v373_v31 = vmax.f32 %v341_v19, 0.0  ;;  %v377_v32 = vmax.f32 %v345_v20, 0.0  ;;  %v272_v34 = vld [vmem:[%s3039_s29 + $0x48] sm:$0xff]  ;;  %v277_v35 = vld [vmem:[%s3039_s29 + $0x70] sm:$0xff]  ;;  %v312_v43 = vmul.f32 %v3032_v1, %v273_v27 }
  0x17   : > { %440 = vst.msk [vmem:[#allocation2 + $0x108] sm:$0xff] %vm405_vm0, %v2910_v0  ;;  %441 = vst.msk [vmem:[#allocation2 + $0x110] sm:$0xff] %vm405_vm0, %v2910_v0  ;;  %v349_v33 = vadd.f32 %v3044_v2, %v310_v21  ;;  %v274_v36 = vld [vmem:[%s3039_s29 + $0x58] sm:$0xff]  ;;  %v374_v37 = vmax.f32 %v342_v23, 0.0  ;;  %v379_v38 = vmax.f32 %v347_v24, 0.0  ;;  %v376_v39 = vmax.f32 %v344_v25, 0.0 }
  0x18   : > { %443 = vst.msk [vmem:[#allocation2 + $0x120] sm:$0xff] %vm405_vm0, %v2910_v0  ;;  %444 = vst.msk [vmem:[#allocation2 + $0x128] sm:$0xff] %vm405_vm0, %v2910_v0  ;;  %v346_v40 = vadd.f32 %v3044_v2, %v307_v26  ;;  %v279_v41 = vld [vmem:[%s3039_s29 + $0x80] sm:$0xff]  ;;  %v309_v44 = vmul.f32 %v3032_v1, %v270_v28  ;;  %v314_v45 = vmul.f32 %v3032_v1, %v275_v29  ;;  %v276_v46 = vld [vmem:[%s3039_s29 + $0x68] sm:$0xff] }
  0x19   : > { %446 = vst.msk [vmem:[#allocation2 + $0x138] sm:$0xff] %vm405_vm0, %v2910_v0  ;;  %447 = vst.msk [vmem:[#allocation2 + $0x140] sm:$0xff] %vm405_vm0, %v2910_v0  ;;  %v381_v42 = vmax.f32 %v349_v33, 0.0  ;;  %v311_v48 = vmul.f32 %v3032_v1, %v272_v34  ;;  %v316_v49 = vmul.f32 %v3032_v1, %v277_v35  ;;  %v313_v50 = vmul.f32 %v3032_v1, %v274_v36  ;;  %v281_v59 = vld [vmem:[%s3039_s29 + $0x90] sm:$0xff]  ;;  %v278_v60 = vld [vmem:[%s3039_s29 + $0x78] sm:$0xff] }
  0x1a   : > { %449 = vst.msk [vmem:[#allocation2 + $0x150] sm:$0xff] %vm405_vm0, %v2910_v0  ;;  %450 = vst.msk [vmem:[#allocation2 + $0x158] sm:$0xff] %vm405_vm0, %v2910_v0  ;;  %v378_v47 = vmax.f32 %v346_v40, 0.0  ;;  %v351_v51 = vadd.f32 %v3044_v2, %v312_v43  ;;  %v348_v52 = vadd.f32 %v3044_v2, %v309_v44  ;;  %v353_v53 = vadd.f32 %v3044_v2, %v314_v45  ;;  %v283_v61 = vld [vmem:[%s3039_s29 + $0xa0] sm:$0xff]  ;;  %v280_v4 = vld [vmem:[%s3039_s29 + $0x88] sm:$0xff] }
  0x1b   : > { %452 = vst.msk [vmem:[#allocation2 + $0x168] sm:$0xff] %vm405_vm0, %v2910_v0  ;;  %453 = vst.msk [vmem:[#allocation2 + $0x170] sm:$0xff] %vm405_vm0, %v2910_v0  ;;  %v318_v54 = vmul.f32 %v3032_v1, %v279_v41  ;;  %v350_v55 = vadd.f32 %v3044_v2, %v311_v48  ;;  %v355_v56 = vadd.f32 %v3044_v2, %v316_v49  ;;  %v285_v5 = vld [vmem:[%s3039_s29 + $0xb0] sm:$0xff]  ;;  %v282_v6 = vld [vmem:[%s3039_s29 + $0x98] sm:$0xff] }
  0x1c   : > { %455 = vst.msk [vmem:[#allocation2 + $0x180] sm:$0xff] %vm405_vm0, %v2910_v0  ;;  %456 = vst.msk [vmem:[#allocation2 + $0x188] sm:$0xff] %vm405_vm0, %v2910_v0  ;;  %v352_v57 = vadd.f32 %v3044_v2, %v313_v50  ;;  %v315_v58 = vmul.f32 %v3032_v1, %v276_v46  ;;  %v383_v62 = vmax.f32 %v351_v51, 0.0  ;;  %v380_v63 = vmax.f32 %v348_v52, 0.0  ;;  %v287_v15 = vld [vmem:[%s3039_s29 + $0xc0] sm:$0xff]  ;;  %v284_v22 = vld [vmem:[%s3039_s29 + $0xa8] sm:$0xff] }
  0x1d   : > { %458 = vst.msk [vmem:[#allocation2 + $0x198] sm:$0xff] %vm405_vm0, %v2910_v0  ;;  %459 = vst.msk [vmem:[#allocation2 + $0x1a0] sm:$0xff] %vm405_vm0, %v2910_v0  ;;  %v357_v3 = vadd.f32 %v3044_v2, %v318_v54  ;;  %v382_v7 = vmax.f32 %v350_v55, 0.0  ;;  %v387_v8 = vmax.f32 %v355_v56, 0.0  ;;  %v320_v12 = vmul.f32 %v3032_v1, %v281_v59  ;;  %v289_v26 = vld [vmem:[%s3039_s29 + $0xd0] sm:$0xff]  ;;  %v286_v33 = vld [vmem:[%s3039_s29 + $0xb8] sm:$0xff] }
  0x1e   : > { %409 = vst.msk [vmem:[#allocation2 + $0x10] sm:$0x3] %vm408_vm1, %v2910_v0  ;;  %412 = vst.msk [vmem:[#allocation2 + $0x28] sm:$0x3] %vm408_vm1, %v2910_v0  ;;  %v384_v9 = vmax.f32 %v352_v57, 0.0  ;;  %v354_v10 = vadd.f32 %v3044_v2, %v315_v58  ;;  %v317_v13 = vmul.f32 %v3032_v1, %v278_v60  ;;  %v322_v14 = vmul.f32 %v3032_v1, %v283_v61  ;;  %v290_v40 = vld [vmem:[%s3039_s29 + $0xd8] sm:$0xff] }
  0x1f   : > { %415 = vst.msk [vmem:[#allocation2 + $0x40] sm:$0x3] %vm408_vm1, %v2910_v0  ;;  %418 = vst.msk [vmem:[#allocation2 + $0x58] sm:$0x3] %vm408_vm1, %v2910_v0  ;;  %v389_v11 = vmax.f32 %v357_v3, 0.0  ;;  %v319_v19 = vmul.f32 %v3032_v1, %v280_v4  ;;  %v324_v20 = vmul.f32 %v3032_v1, %v285_v5  ;;  %v321_v21 = vmul.f32 %v3032_v1, %v282_v6  ;;  %v292_v45 = vld [vmem:[%s3039_s29 + $0xe8] sm:$0xff] }
  0x20   : > { %421 = vst.msk [vmem:[#allocation2 + $0x70] sm:$0x3] %vm408_vm1, %v2910_v0  ;;  %424 = vst.msk [vmem:[#allocation2 + $0x88] sm:$0x3] %vm408_vm1, %v2910_v0  ;;  %v386_v18 = vmax.f32 %v354_v10, 0.0  ;;  %v359_v23 = vadd.f32 %v3044_v2, %v320_v12  ;;  %v356_v24 = vadd.f32 %v3044_v2, %v317_v13  ;;  %v361_v25 = vadd.f32 %v3044_v2, %v322_v14 }
  0x21   : > { %427 = vst.msk [vmem:[#allocation2 + $0xa0] sm:$0x3] %vm408_vm1, %v2910_v0  ;;  %430 = vst.msk [vmem:[#allocation2 + $0xb8] sm:$0x3] %vm408_vm1, %v2910_v0  ;;  %v358_v29 = vadd.f32 %v3044_v2, %v319_v19  ;;  %v325_v48 = vmul.f32 %v3032_v1, %v286_v33  ;;  %v329_v54 = vmul.f32 %v3032_v1, %v290_v40 }
  0x22   : > { %433 = vst.msk [vmem:[#allocation2 + $0xd0] sm:$0x3] %vm408_vm1, %v2910_v0  ;;  %436 = vst.msk [vmem:[#allocation2 + $0xe8] sm:$0x3] %vm408_vm1, %v2910_v0  ;;  %v391_v34 = vmax.f32 %v359_v23, 0.0  ;;  %v388_v35 = vmax.f32 %v356_v24, 0.0  ;;  %v331_v58 = vmul.f32 %v3032_v1, %v292_v45 }
  0x23   : > { %439 = vst.msk [vmem:[#allocation2 + $0x100] sm:$0x3] %vm408_vm1, %v2910_v0  ;;  %442 = vst.msk [vmem:[#allocation2 + $0x118] sm:$0x3] %vm408_vm1, %v2910_v0  ;;  %v393_v36 = vmax.f32 %v361_v25, 0.0  ;;  %v390_v41 = vmax.f32 %v358_v29, 0.0  ;;  %v364_v57 = vadd.f32 %v3044_v2, %v325_v48  ;;  %v368_v61 = vadd.f32 %v3044_v2, %v329_v54 }
  0x24   : > { %445 = vst.msk [vmem:[#allocation2 + $0x130] sm:$0x3] %vm408_vm1, %v2910_v0  ;;  %448 = vst.msk [vmem:[#allocation2 + $0x148] sm:$0x3] %vm408_vm1, %v2910_v0 }
  0x25   : > { %451 = vst.msk [vmem:[#allocation2 + $0x160] sm:$0x3] %vm408_vm1, %v2910_v0  ;;  %454 = vst.msk [vmem:[#allocation2 + $0x178] sm:$0x3] %vm408_vm1, %v2910_v0  ;;  %v527_v17 = vld [vmem:[#allocation2 + $0x9] sm:$0xff]  ;;  %v400_v6 = vmax.f32 %v368_v61, 0.0 }
  0x26   : > { %457 = vst.msk [vmem:[#allocation2 + $0x190] sm:$0x3] %vm408_vm1, %v2910_v0  ;;  %460 = vst.msk [vmem:[#allocation2 + $0x1a8] sm:$0x3] %vm408_vm1, %v2910_v0  ;;  %817 = vrot.lane.b32.xlu0 %v527_v17, %s2911_s8  ;;  %v385_v0 = vmax.f32 %v353_v53, 0.0 }
  0x27   : > { %464 = vst.msk [vmem:[#allocation2 + $0x31] sm:$0xff] %vm405_vm0, %v375_v30  ;;  %462 = vst.msk [vmem:[#allocation2 + $0x19] sm:$0xff] %vm405_vm0, %v373_v31  ;;  %v363_v30 = vadd.f32 %v3044_v2, %v324_v20  ;;  %v360_v31 = vadd.f32 %v3044_v2, %v321_v21 }
  0x28   : > { %466 = vst.msk [vmem:[#allocation2 + $0x49] sm:$0xff] %vm405_vm0, %v377_v32  ;;  %463 = vst.msk [vmem:[#allocation2 + $0x21] sm:$0xff] %vm405_vm0, %v374_v37  ;;  %v326_v32 = vmul.f32 %v3032_v1, %v287_v15  ;;  %v323_v37 = vmul.f32 %v3032_v1, %v284_v22 }
  0x29   : > { %468 = vst.msk [vmem:[#allocation2 + $0x61] sm:$0xff] %vm405_vm0, %v379_v38  ;;  %465 = vst.msk [vmem:[#allocation2 + $0x39] sm:$0xff] %vm405_vm0, %v376_v39  ;;  %v291_v38 = vld [vmem:[%s3039_s29 + $0xe0] sm:$0xff]  ;;  %v288_v39 = vld [vmem:[%s3039_s29 + $0xc8] sm:$0xff]  ;;  %v392_v43 = vmax.f32 %v360_v31, 0.0 }
  0x2a   : > { %470 = vst.msk [vmem:[#allocation2 + $0x79] sm:$0xff] %vm405_vm0, %v381_v42  ;;  %467 = vst.msk [vmem:[#allocation2 + $0x51] sm:$0xff] %vm405_vm0, %v378_v47  ;;  %v395_v42 = vmax.f32 %v363_v30, 0.0  ;;  %v365_v44 = vadd.f32 %v3044_v2, %v326_v32  ;;  %v362_v46 = vadd.f32 %v3044_v2, %v323_v37  ;;  %v328_v47 = vmul.f32 %v3032_v1, %v289_v26  ;;  %v558_v31 = vld [vmem:[#allocation2 + $0x2] sm:$0xff] }
  0x2b   : > { %472 = vst.msk [vmem:[#allocation2 + $0x91] sm:$0xff] %vm405_vm0, %v383_v62  ;;  %469 = vst.msk [vmem:[#allocation2 + $0x69] sm:$0xff] %vm405_vm0, %v380_v63  ;;  %v330_v52 = vmul.f32 %v3032_v1, %v291_v38  ;;  %v327_v53 = vmul.f32 %v3032_v1, %v288_v39  ;;  %v396_v63 = vmax.f32 %v364_v57, 0.0  ;;  %v370_v1 = vadd.f32 %v3044_v2, %v331_v58 }
  0x2c   : > { %474 = vst.msk [vmem:[#allocation2 + $0xa9] sm:$0xff] %vm405_vm0, %v385_v0  ;;  %471 = vst.msk [vmem:[#allocation2 + $0x81] sm:$0xff] %vm405_vm0, %v382_v7  ;;  %v397_v51 = vmax.f32 %v365_v44, 0.0  ;;  %v394_v55 = vmax.f32 %v362_v46, 0.0  ;;  %v367_v56 = vadd.f32 %v3044_v2, %v328_v47 }
  0x2d   : > { %476 = vst.msk [vmem:[#allocation2 + $0xc1] sm:$0xff] %vm405_vm0, %v387_v8  ;;  %473 = vst.msk [vmem:[#allocation2 + $0x99] sm:$0xff] %vm405_vm0, %v384_v9  ;;  %v369_v59 = vadd.f32 %v3044_v2, %v330_v52  ;;  %v366_v60 = vadd.f32 %v3044_v2, %v327_v53  ;;  %v402_v7 = vmax.f32 %v370_v1, 0.0 }
  0x2e   : > { %v3117_v16 = vld [vmem:[#allocation2 + $0x31] sm:$0xff]  ;;  %v3119_v17 = vld [vmem:[#allocation2 + $0x19] sm:$0xff]  ;;  %478 = vst.msk [vmem:[#allocation2 + $0xd9] sm:$0xff] %vm405_vm0, %v389_v11  ;;  %475 = vst.msk [vmem:[#allocation2 + $0xb1] sm:$0xff] %vm405_vm0, %v386_v18  ;;  %v399_v62 = vmax.f32 %v367_v56, 0.0 }
  0x2f   : > { %823 = vrot.lane.b32.xlu0 %v3117_v16, %s2911_s8  ;;  %819 = vrot.lane.b32.xlu1 %v3119_v17, %s2911_s8  ;;  %v3137_v27 = vld [vmem:[#allocation2 + $0x49] sm:$0xff]  ;;  %v3139_v28 = vld [vmem:[#allocation2 + $0x21] sm:$0xff]  ;;  %480 = vst.msk [vmem:[#allocation2 + $0xf1] sm:$0xff] %vm405_vm0, %v391_v34  ;;  %477 = vst.msk [vmem:[#allocation2 + $0xc9] sm:$0xff] %vm405_vm0, %v388_v35  ;;  %v401_v4 = vmax.f32 %v369_v59, 0.0  ;;  %v398_v5 = vmax.f32 %v366_v60, 0.0 }
  0x30   : > { %482 = vst.msk [vmem:[#allocation2 + $0x109] sm:$0xff] %vm405_vm0, %v393_v36  ;;  %v3163_v49 = vld [vmem:[#allocation2 + $0x61] sm:$0xff]  ;;  %v3165_v50 = vld [vmem:[#allocation2 + $0x39] sm:$0xff]  ;;  %479 = vst.msk [vmem:[#allocation2 + $0xe1] sm:$0xff] %vm405_vm0, %v390_v41 }
  0x31   : > { %484 = vst.msk [vmem:[#allocation2 + $0x121] sm:$0xff] %vm405_vm0, %v395_v42  ;;  %481 = vst.msk [vmem:[#allocation2 + $0xf9] sm:$0xff] %vm405_vm0, %v392_v43  ;;  %v3186_v0 = vld [vmem:[#allocation2 + $0x79] sm:$0xff]  ;;  %v3188_v3 = vld [vmem:[#allocation2 + $0x51] sm:$0xff] }
  0x32   : > { %486 = vst.msk [vmem:[#allocation2 + $0x139] sm:$0xff] %vm405_vm0, %v397_v51  ;;  %483 = vst.msk [vmem:[#allocation2 + $0x111] sm:$0xff] %vm405_vm0, %v394_v55  ;;  %v538_v2 = vld [vmem:[#allocation2 + $0x91] sm:$0xff]  ;;  %v3200_v8 = vld [vmem:[#allocation2 + $0x69] sm:$0xff] }
  0x33   : > { %827 = vrot.lane.b32.xlu0 %v3137_v27, %s2911_s8  ;;  %821 = vrot.lane.b32.xlu1 %v3139_v28, %s2911_s8  ;;  %488 = vst.msk [vmem:[#allocation2 + $0x151] sm:$0xff] %vm405_vm0, %v399_v62  ;;  %485 = vst.msk [vmem:[#allocation2 + $0x129] sm:$0xff] %vm405_vm0, %v396_v63  ;;  %v540_v9 = vld [vmem:[#allocation2 + $0xa9] sm:$0xff]  ;;  %v3205_v10 = vld [vmem:[#allocation2 + $0x81] sm:$0xff] }
  0x34   : > { %490 = vst.msk [vmem:[#allocation2 + $0x169] sm:$0xff] %vm405_vm0, %v401_v4  ;;  %487 = vst.msk [vmem:[#allocation2 + $0x141] sm:$0xff] %vm405_vm0, %v398_v5  ;;  %v542_v11 = vld [vmem:[#allocation2 + $0xc1] sm:$0xff]  ;;  %v3210_v12 = vld [vmem:[#allocation2 + $0x99] sm:$0xff] }
  0x35   : > { %489 = vst.msk [vmem:[#allocation2 + $0x159] sm:$0xff] %vm405_vm0, %v400_v6  ;;  %491 = vst.msk [vmem:[#allocation2 + $0x171] sm:$0xff] %vm405_vm0, %v402_v7  ;;  %v544_v13 = vld [vmem:[#allocation2 + $0xd9] sm:$0xff]  ;;  %v541_v14 = vld [vmem:[#allocation2 + $0xb1] sm:$0xff] }
  0x36   : > { %v546_v15 = vld [vmem:[#allocation2 + $0xf1] sm:$0xff]  ;;  %v543_v18 = vld [vmem:[#allocation2 + $0xc9] sm:$0xff]  ;;  %v3231_v33 = vld [vmem:[#allocation2 + $0x1a] sm:$0xff] }
  0x37   : > { %831 = vrot.lane.b32.xlu0 %v3163_v49, %s2911_s8  ;;  %825 = vrot.lane.b32.xlu1 %v3165_v50, %s2911_s8  ;;  %v548_v19 = vld [vmem:[#allocation2 + $0x109] sm:$0xff]  ;;  %v545_v20 = vld [vmem:[#allocation2 + $0xe1] sm:$0xff]  ;;  %v3236_v35 = vld [vmem:[#allocation2 + $0x32] sm:$0xff] }
  0x38   : > { %v550_v21 = vld [vmem:[#allocation2 + $0x121] sm:$0xff]  ;;  %v547_v22 = vld [vmem:[#allocation2 + $0xf9] sm:$0xff]  ;;  %v559_v36 = vld [vmem:[#allocation2 + $0xa] sm:$0xff] }
  0x39   : > { %v552_v23 = vld [vmem:[#allocation2 + $0x139] sm:$0xff]  ;;  %v549_v24 = vld [vmem:[#allocation2 + $0x111] sm:$0xff]  ;;  %v3243_v38 = vld [vmem:[#allocation2 + $0x22] sm:$0xff] }
  0x3a   : > { %v554_v25 = vld [vmem:[#allocation2 + $0x151] sm:$0xff]  ;;  %v551_v26 = vld [vmem:[#allocation2 + $0x129] sm:$0xff]  ;;  %v3251_v40 = vld [vmem:[#allocation2 + $0x3a] sm:$0xff] }
  0x3b   : > { %835 = vrot.lane.b32.xlu0 %v3186_v0, %s2911_s8  ;;  %829 = vrot.lane.b32.xlu1 %v3188_v3, %s2911_s8  ;;  %v556_v29 = vld [vmem:[#allocation2 + $0x169] sm:$0xff]  ;;  %v553_v30 = vld [vmem:[#allocation2 + $0x141] sm:$0xff]  ;;  %v3259_v42 = vld [vmem:[#allocation2 + $0x52] sm:$0xff] }
  0x3c   : > { %v555_v32 = vld [vmem:[#allocation2 + $0x159] sm:$0xff]  ;;  %v557_v34 = vld [vmem:[#allocation2 + $0x171] sm:$0xff]  ;;  %v3249_v39 = vld [vmem:[#allocation2 + $0x62] sm:$0xff] }
  0x3d   : > { %v3241_v37 = vld [vmem:[#allocation2 + $0x4a] sm:$0xff]  ;;  %v3257_v41 = vld [vmem:[#allocation2 + $0x7a] sm:$0xff]  ;;  %v3265_v43 = vld [vmem:[#allocation2 + $0x92] sm:$0xff] }
  0x3e   : > { %v3267_v44 = vld [vmem:[#allocation2 + $0x6a] sm:$0xff]  ;;  %v3275_v46 = vld [vmem:[#allocation2 + $0x82] sm:$0xff]  ;;  %v3283_v48 = vld [vmem:[#allocation2 + $0x9a] sm:$0xff] }
  0x3f   : > { %839 = vrot.lane.b32.xlu0 %v538_v2, %s2911_s8  ;;  %833 = vrot.lane.b32.xlu1 %v3200_v8, %s2911_s8  ;;  %v3273_v45 = vld [vmem:[#allocation2 + $0xaa] sm:$0xff]  ;;  %v3281_v47 = vld [vmem:[#allocation2 + $0xc2] sm:$0xff]  ;;  %v576_v51 = vld [vmem:[#allocation2 + $0xda] sm:$0xff] }
  0x40   : > { %v3289_v52 = vld [vmem:[#allocation2 + $0xb2] sm:$0xff]  ;;  %v3294_v54 = vld [vmem:[#allocation2 + $0xca] sm:$0xff]  ;;  %v577_v56 = vld [vmem:[#allocation2 + $0xe2] sm:$0xff] }
  0x41   : > { %v578_v53 = vld [vmem:[#allocation2 + $0xf2] sm:$0xff]  ;;  %v580_v55 = vld [vmem:[#allocation2 + $0x10a] sm:$0xff]  ;;  %v582_v57 = vld [vmem:[#allocation2 + $0x122] sm:$0xff] }
  0x42   : > { %v579_v58 = vld [vmem:[#allocation2 + $0xfa] sm:$0xff]  ;;  %v581_v61 = vld [vmem:[#allocation2 + $0x112] sm:$0xff]  ;;  %v583_v1 = vld [vmem:[#allocation2 + $0x12a] sm:$0xff] }
  0x43   : > { %843 = vrot.lane.b32.xlu0 %v540_v9, %s2911_s8  ;;  %837 = vrot.lane.b32.xlu1 %v3205_v10, %s2911_s8  ;;  %v584_v60 = vld [vmem:[#allocation2 + $0x13a] sm:$0xff]  ;;  %v586_v63 = vld [vmem:[#allocation2 + $0x152] sm:$0xff]  ;;  %v588_v4 = vld [vmem:[#allocation2 + $0x16a] sm:$0xff] }
  0x44   : > { %v585_v5 = vld [vmem:[#allocation2 + $0x142] sm:$0xff]  ;;  %v587_v2 = vld [vmem:[#allocation2 + $0x15a] sm:$0xff] }
  0x47   : > { %847 = vrot.lane.b32.xlu0 %v542_v11, %s2911_s8  ;;  %841 = vrot.lane.b32.xlu1 %v3210_v12, %s2911_s8 }
  0x4b   : > { %851 = vrot.lane.b32.xlu0 %v544_v13, %s2911_s8  ;;  %845 = vrot.lane.b32.xlu1 %v541_v14, %s2911_s8  ;;  %v3321_v13 = vld [vmem:[#allocation2 + $0x18] sm:$0xff] }
  0x4c   : > { %v589_v14 = vld [vmem:[#allocation2 + $0x172] sm:$0xff] }
  0x4f   : > { %855 = vrot.lane.b32.xlu0 %v546_v15, %s2911_s8  ;;  %849 = vrot.lane.b32.xlu1 %v543_v18, %s2911_s8 }
  0x53   : > { %859 = vrot.lane.b32.xlu0 %v548_v19, %s2911_s8  ;;  %853 = vrot.lane.b32.xlu1 %v545_v20, %s2911_s8  ;;  %v3330_v19 = vld [vmem:[#allocation2 + $0x30] sm:$0xff] }
  0x57   : > { %863 = vrot.lane.b32.xlu0 %v550_v21, %s2911_s8  ;;  %857 = vrot.lane.b32.xlu1 %v547_v22, %s2911_s8  ;;  %v3339_v22 = vld [vmem:[#allocation2 + $0x48] sm:$0xff] }
  0x5b   : > { %867 = vrot.lane.b32.xlu0 %v552_v23, %s2911_s8  ;;  %861 = vrot.lane.b32.xlu1 %v549_v24, %s2911_s8  ;;  %v3341_v23 = vld [vmem:[#allocation2 + $0x20] sm:$0xff] }
  0x5f   : > { %871 = vrot.lane.b32.xlu0 %v554_v25, %s2911_s8  ;;  %865 = vrot.lane.b32.xlu1 %v551_v26, %s2911_s8  ;;  %v3351_v26 = vld [vmem:[#allocation2 + $0x60] sm:$0xff] }
  0x63   : > { %875 = vrot.lane.b32.xlu0 %v556_v29, %s2911_s8  ;;  %869 = vrot.lane.b32.xlu1 %v553_v30, %s2911_s8  ;;  %v3353_v29 = vld [vmem:[#allocation2 + $0x38] sm:$0xff] }
  0x67   : > { %943 = vrot.lane.b32.xlu0 %v558_v31, %s2912_s9  ;;  %873 = vrot.lane.b32.xlu1 %v555_v32, %s2911_s8  ;;  %v3363_v32 = vld [vmem:[#allocation2 + $0x78] sm:$0xff] }
  0x6b   : > { %947 = vrot.lane.b32.xlu0 %v3231_v33, %s2912_s9  ;;  %877 = vrot.lane.b32.xlu1 %v557_v34, %s2911_s8  ;;  %v3365_v34 = vld [vmem:[#allocation2 + $0x50] sm:$0xff] }
  0x6f   : > { %951 = vrot.lane.b32.xlu0 %v3236_v35, %s2912_s9  ;;  %945 = vrot.lane.b32.xlu1 %v559_v36, %s2912_s9 }
  0x73   : > { %955 = vrot.lane.b32.xlu0 %v3241_v37, %s2912_s9  ;;  %949 = vrot.lane.b32.xlu1 %v3243_v38, %s2912_s9 }
  0x77   : > { %959 = vrot.lane.b32.xlu0 %v3249_v39, %s2912_s9  ;;  %953 = vrot.lane.b32.xlu1 %v3251_v40, %s2912_s9 }
  0x7b   : > { %963 = vrot.lane.b32.xlu0 %v3257_v41, %s2912_s9  ;;  %957 = vrot.lane.b32.xlu1 %v3259_v42, %s2912_s9 }
  0x7f   : > { %967 = vrot.lane.b32.xlu0 %v3265_v43, %s2912_s9  ;;  %961 = vrot.lane.b32.xlu1 %v3267_v44, %s2912_s9 }
  0x83   : > { %971 = vrot.lane.b32.xlu0 %v3273_v45, %s2912_s9  ;;  %965 = vrot.lane.b32.xlu1 %v3275_v46, %s2912_s9 }
  0x86   : > { %v3301_v59 = vpop.permute.xlu0 %815 }
  0x87   : > { %975 = vrot.lane.b32.xlu0 %v3281_v47, %s2912_s9  ;;  %969 = vrot.lane.b32.xlu1 %v3283_v48, %s2912_s9 }
  0x8b   : > { %979 = vrot.lane.b32.xlu0 %v576_v51, %s2912_s9  ;;  %973 = vrot.lane.b32.xlu1 %v3289_v52, %s2912_s9 }
  0x8f   : > { %983 = vrot.lane.b32.xlu0 %v578_v53, %s2912_s9  ;;  %977 = vrot.lane.b32.xlu1 %v3294_v54, %s2912_s9  ;;  %v3375_v53 = vld [vmem:[#allocation2 + $0x90] sm:$0xff] }
  0x90   : > { %4460 = vst [vmem:[#allocation10_spill] sm:$0xff] %v3375_v53 }
  0x93   : > { %987 = vrot.lane.b32.xlu0 %v580_v55, %s2912_s9  ;;  %981 = vrot.lane.b32.xlu1 %v577_v56, %s2912_s9  ;;  %v3377_v55 = vld [vmem:[#allocation2 + $0x68] sm:$0xff] }
  0x97   : > { %991 = vrot.lane.b32.xlu0 %v582_v57, %s2912_s9  ;;  %985 = vrot.lane.b32.xlu1 %v579_v58, %s2912_s9  ;;  %v3387_v58 = vld [vmem:[#allocation2 + $0xa8] sm:$0xff] }
  0x98   : > { %v3307_v62 = vpop.permute.xlu0 %817 }
  0x9b   : > { %995 = vrot.lane.b32.xlu0 %v584_v60, %s2912_s9  ;;  %989 = vrot.lane.b32.xlu1 %v581_v61, %s2912_s9  ;;  %v3389_v60 = vld [vmem:[#allocation2 + $0x80] sm:$0xff] }
  0x9f   : > { %999 = vrot.lane.b32.xlu0 %v586_v63, %s2912_s9  ;;  %993 = vrot.lane.b32.xlu1 %v583_v1, %s2912_s9  ;;  %v3399_v1 = vld [vmem:[#allocation2 + $0xc0] sm:$0xff] }
  0xa1   : > { %v3311_v6 = vpop.permute.xlu0 %823  ;;  %v3313_v7 = vpop.permute.xlu1 %819 }
  0xa3   : > { %1003 = vrot.lane.b32.xlu0 %v588_v4, %s2912_s9  ;;  %997 = vrot.lane.b32.xlu1 %v585_v5, %s2912_s9  ;;  %v3401_v4 = vld [vmem:[#allocation2 + $0x98] sm:$0xff] }
  0xa4   : > { %4465 = vst [vmem:[#allocation15_spill] sm:$0xff] %v3401_v4 }
  0xa5   : > { %v3317_v9 = vpop.permute.xlu0 %827  ;;  %v3319_v11 = vpop.permute.xlu1 %821 }
  0xa7   : > { %1071 = vrot.lane.b32.xlu0 %v3321_v13, %s2913_s10  ;;  %1001 = vrot.lane.b32.xlu1 %v587_v2, %s2912_s9 }
  0xa9   : > { %v3326_v15 = vpop.permute.xlu0 %831  ;;  %v3328_v18 = vpop.permute.xlu1 %825 }
  0xab   : > { %1075 = vrot.lane.b32.xlu0 %v3330_v19, %s2913_s10  ;;  %1005 = vrot.lane.b32.xlu1 %v589_v14, %s2912_s9  ;;  %v3411_v14 = vld [vmem:[#allocation2 + $0xd8] sm:$0xff] }
  0xad   : > { %v3335_v20 = vpop.permute.xlu0 %835  ;;  %v3337_v21 = vpop.permute.xlu1 %829 }
  0xae   : > { %4453 = vst [vmem:[#allocation3_spill] sm:$0xff] %v3335_v20 }
  0xaf   : > { %1079 = vrot.lane.b32.xlu0 %v3339_v22, %s2913_s10  ;;  %1073 = vrot.lane.b32.xlu1 %v3341_v23, %s2913_s10 }
  0xb1   : > { %v3347_v24 = vpop.permute.xlu0 %839  ;;  %v3349_v25 = vpop.permute.xlu1 %833 }
  0xb2   : > { %4454 = vst [vmem:[#allocation4_spill] sm:$0xff] %v3347_v24  ;;  %4455 = vst [vmem:[#allocation5_spill] sm:$0xff] %v3349_v25  ;;  %v2076_v24 = vld [vmem:[%s4446_s3 + $0x30] sm:$0xff] }
  0xb3   : > { %1083 = vrot.lane.b32.xlu0 %v3351_v26, %s2913_s10  ;;  %1077 = vrot.lane.b32.xlu1 %v3353_v29, %s2913_s10 }
  0xb5   : > { %v3359_v30 = vpop.permute.xlu0 %843  ;;  %v3361_v31 = vpop.permute.xlu1 %837 }
  0xb6   : > { %4456 = vst [vmem:[#allocation6_spill] sm:$0xff] %v3359_v30  ;;  %4457 = vst [vmem:[#allocation7_spill] sm:$0xff] %v3361_v31  ;;  %v3438_v30 = vld [vmem:[#allocation2 + $0x108] sm:$0xff]  ;;  %v3456_v31 = vld [vmem:[#allocation2 + $0xf8] sm:$0xff] }
  0xb7   : > { %1087 = vrot.lane.b32.xlu0 %v3363_v32, %s2913_s10  ;;  %1081 = vrot.lane.b32.xlu1 %v3365_v34, %s2913_s10 }
  0xb9   : > { %v3371_v36 = vpop.permute.xlu0 %847  ;;  %v3373_v51 = vpop.permute.xlu1 %841 }
  0xba   : > { %4458 = vst [vmem:[#allocation8_spill] sm:$0xff] %v3371_v36  ;;  %4459 = vst [vmem:[#allocation9_spill] sm:$0xff] %v3373_v51  ;;  %v3423_v36 = vld [vmem:[#allocation2 + $0xf0] sm:$0xff] }
  0xbb   : > { %1091 = vrot.lane.b32.xlu0 %v3375_v53, %s2913_s10  ;;  %1085 = vrot.lane.b32.xlu1 %v3377_v55, %s2913_s10 }
  0xbd   : > { %v3383_v56 = vpop.permute.xlu0 %851  ;;  %v3385_v57 = vpop.permute.xlu1 %845 }
  0xbe   : > { %4461 = vst [vmem:[#allocation11_spill] sm:$0xff] %v3383_v56  ;;  %4462 = vst [vmem:[#allocation12_spill] sm:$0xff] %v3385_v57  ;;  %v3413_v56 = vld [vmem:[#allocation2 + $0xb0] sm:$0xff]  ;;  %v3425_v57 = vld [vmem:[#allocation2 + $0xc8] sm:$0xff] }
  0xbf   : > { %1095 = vrot.lane.b32.xlu0 %v3387_v58, %s2913_s10  ;;  %1089 = vrot.lane.b32.xlu1 %v3389_v60, %s2913_s10 }
  0xc1   : > { %v3395_v61 = vpop.permute.xlu0 %855  ;;  %v3397_v63 = vpop.permute.xlu1 %849 }
  0xc2   : > { %4463 = vst [vmem:[#allocation13_spill] sm:$0xff] %v3395_v61  ;;  %4464 = vst [vmem:[#allocation14_spill] sm:$0xff] %v3397_v63 }
  0xc3   : > { %1099 = vrot.lane.b32.xlu0 %v3399_v1, %s2913_s10  ;;  %1093 = vrot.lane.b32.xlu1 %v3401_v4, %s2913_s10 }
  0xc5   : > { %v3407_v5 = vpop.permute.xlu0 %859  ;;  %v3409_v2 = vpop.permute.xlu1 %853 }
  0xc6   : > { %4466 = vst [vmem:[#allocation16_spill] sm:$0xff] %v3407_v5  ;;  %4467 = vst [vmem:[#allocation17_spill] sm:$0xff] %v3409_v2 }
  0xc7   : > { %1103 = vrot.lane.b32.xlu0 %v3411_v14, %s2913_s10  ;;  %1097 = vrot.lane.b32.xlu1 %v3413_v56, %s2913_s10 }
  0xc9   : > { %v3419_v61 = vpop.permute.xlu0 %863  ;;  %v3421_v63 = vpop.permute.xlu1 %857 }
  0xca   : > { %4468 = vst [vmem:[#allocation18_spill] sm:$0xff] %v3419_v61  ;;  %4469 = vst [vmem:[#allocation19_spill] sm:$0xff] %v3421_v63  ;;  %v2078_v61 = vld [vmem:[%s4446_s3 + $0x40] sm:$0xff] }
  0xcb   : > { %1107 = vrot.lane.b32.xlu0 %v3423_v36, %s2913_s10  ;;  %1101 = vrot.lane.b32.xlu1 %v3425_v57, %s2913_s10  ;;  %v3440_v63 = vld [vmem:[#allocation2 + $0xe0] sm:$0xff] }
  0xcc   : > { %2789 = vmatprep.subr.mxu0 %v2078_v61  ;;  %2855 = vmatprep.subr.mxu1 %v2078_v61 }
  0xcd   : > { %v3431_v5 = vpop.permute.xlu0 %867  ;;  %v3433_v2 = vpop.permute.xlu1 %861  ;;  %2790 = vmatpush3.msra.mxu0 %v2078_v61  ;;  %2864 = vmatpush3.msra.mxu1 %v2078_v61  ;;  %v2075_v61 = vld [vmem:[%s4446_s3 + $0x28] sm:$0xff] }
  0xce   : > { %4470 = vst [vmem:[#allocation20_spill] sm:$0xff] %v3431_v5  ;;  %4471 = vst [vmem:[#allocation21_spill] sm:$0xff] %v3433_v2  ;;  %v2077_v5 = vld [vmem:[%s4446_s3 + $0x38] sm:$0xff] }
  0xcf   : > { %1111 = vrot.lane.b32.xlu0 %v3438_v30, %s2913_s10  ;;  %1105 = vrot.lane.b32.xlu1 %v3440_v63, %s2913_s10 }
  0xd0   : > { %2791 = vmatprep.subr.mxu0 %v2077_v5  ;;  %2856 = vmatprep.subr.mxu1 %v2077_v5 }
  0xd1   : > { %v3449_v2 = vpop.permute.xlu0 %871  ;;  %v3451_v51 = vpop.permute.xlu1 %865  ;;  %2792 = vmatpush3.msra.mxu0 %v2077_v5  ;;  %2865 = vmatpush3.msra.mxu1 %v2077_v5  ;;  %v3469_v5 = vld [vmem:[#allocation2 + $0x110] sm:$0xff] }
  0xd2   : > { %4472 = vst [vmem:[#allocation22_spill] sm:$0xff] %v3449_v2  ;;  %4473 = vst [vmem:[#allocation23_spill] sm:$0xff] %v3451_v51  ;;  %2793 = vmatprep.subr.mxu0 %v2076_v24  ;;  %2857 = vmatprep.subr.mxu1 %v2076_v24 }
  0xd3   : > { %1199 = vrot.lane.b32.xlu0 %v3119_v17, %s2914_s17  ;;  %1109 = vrot.lane.b32.xlu1 %v3456_v31, %s2913_s10  ;;  %v2074_v17 = vld [vmem:[%s4446_s3 + $0x20] sm:$0xff] }
  0xd4   : > { %2794 = vmatpush3.msra.mxu0 %v2076_v24  ;;  %2866 = vmatpush3.msra.mxu1 %v2076_v24 }
  0xd5   : > { %v3465_v2 = vpop.permute.xlu0 %875  ;;  %v3467_v51 = vpop.permute.xlu1 %869  ;;  %2795 = vmatprep.subr.mxu0 %v2075_v61  ;;  %2858 = vmatprep.subr.mxu1 %v2075_v61 }
  0xd6   : > { %4474 = vst [vmem:[#allocation24_spill] sm:$0xff] %v3465_v2  ;;  %4475 = vst [vmem:[#allocation25_spill] sm:$0xff] %v3467_v51  ;;  %2796 = vmatpush3.msra.mxu0 %v2075_v61  ;;  %2867 = vmatpush3.msra.mxu1 %v2075_v61  ;;  %v2073_v51 = vld [vmem:[%s4446_s3 + $0x18] sm:$0xff] }
  0xd7   : > { %1327 = vrot.lane.b32.xlu0 %v3231_v33, %s2915_s25  ;;  %1113 = vrot.lane.b32.xlu1 %v3469_v5, %s2913_s10  ;;  %v2072_v33 = vld [vmem:[%s4446_s3 + $0x10] sm:$0xff] }
  0xd8   : > { %2797 = vmatprep.subr.mxu0 %v2074_v17  ;;  %2859 = vmatprep.subr.mxu1 %v2074_v17 }
  0xd9   : > { %v3478_v2 = vpop.permute.xlu0 %943  ;;  %v3480_v24 = vpop.permute.xlu1 %873  ;;  %2798 = vmatpush3.msra.mxu0 %v2074_v17  ;;  %2868 = vmatpush3.msra.mxu1 %v2074_v17  ;;  %v2071_v17 = vld [vmem:[%s4446_s3 + $0x8] sm:$0xff] }
  0xda   : > { %4476 = vst [vmem:[#allocation26_spill] sm:$0xff] %v3480_v24  ;;  %2799 = vmatprep.subr.mxu0 %v2073_v51  ;;  %2860 = vmatprep.subr.mxu1 %v2073_v51 }
  0xdb   : > { %1455 = vrot.lane.b32.xlu0 %v3330_v19, %s2916_s28  ;;  %1201 = vrot.lane.b32.xlu1 %v3139_v28, %s2914_s17 }
  0xdc   : > { %2800 = vmatpush3.msra.mxu0 %v2073_v51  ;;  %2869 = vmatpush3.msra.mxu1 %v2073_v51  ;;  %v2070_v51 = vld [vmem:[%s4446_s3] sm:$0xff] }
  0xdd   : > { %v3492_v61 = vpop.permute.xlu0 %947  ;;  %v3494_v24 = vpop.permute.xlu1 %877  ;;  %2801 = vmatprep.subr.mxu0 %v2072_v33  ;;  %2861 = vmatprep.subr.mxu1 %v2072_v33 }
  0xde   : > { %4477 = vst [vmem:[#allocation27_spill] sm:$0xff] %v3494_v24  ;;  %2802 = vmatpush3.msra.mxu0 %v2072_v33  ;;  %2870 = vmatpush3.msra.mxu1 %v2072_v33 }
  0xdf   : > { %1583 = vrot.lane.b32.xlu0 %v3117_v16, %s2917_s11  ;;  %1329 = vrot.lane.b32.xlu1 %v3243_v38, %s2915_s25 }
  0xe0   : > { %2803 = vmatprep.subr.mxu0 %v2071_v17  ;;  %2862 = vmatprep.subr.mxu1 %v2071_v17 }
  0xe1   : > { %v3503_v28 = vpop.permute.xlu0 %951  ;;  %v3505_v24 = vpop.permute.xlu1 %945  ;;  %2804 = vmatpush3.msra.mxu0 %v2071_v17  ;;  %2871 = vmatpush3.msra.mxu1 %v2071_v17 }
  0xe2   : > { %2805 = vmatprep.subr.mxu0 %v2070_v51  ;;  %2863 = vmatprep.subr.mxu1 %v2070_v51 }
  0xe3   : > { %1585 = vrot.lane.b32.xlu0 %v3165_v50, %s2917_s11  ;;  %1457 = vrot.lane.b32.xlu1 %v3353_v29, %s2916_s28 }
  0xe4   : > { %2806 = vmatpush3.msra.mxu0 %v2070_v51  ;;  %2872 = vmatpush3.msra.mxu1 %v2070_v51 }
  0xe5   : > { %v3514_v38 = vpop.permute.xlu0 %955  ;;  %v3516_v33 = vpop.permute.xlu1 %949 }
  0xe7   : > { %1205 = vrot.lane.b32.xlu0 %v3165_v50, %s2914_s17  ;;  %1203 = vrot.lane.b32.xlu1 %v3117_v16, %s2914_s17 }
  0xe9   : > { %v3522_v17 = vpop.permute.xlu0 %959  ;;  %v3524_v20 = vpop.permute.xlu1 %953 }
  0xea   : > { %4478 = vst [vmem:[#allocation28_spill] sm:$0xff] %v3522_v17 }
  0xeb   : > { %1713 = vrot.lane.b32.xlu0 %v3251_v40, %s2918_s14  ;;  %1711 = vrot.lane.b32.xlu1 %v3236_v35, %s2918_s14 }
  0xed   : > { %v3530_v25 = vpop.permute.xlu0 %963  ;;  %v3532_v51 = vpop.permute.xlu1 %957 }
  0xee   : > { %4479 = vst [vmem:[#allocation29_spill] sm:$0xff] %v3530_v25 }
  0xef   : > { %1459 = vrot.lane.b32.xlu0 %v3339_v22, %s2916_s28  ;;  %1331 = vrot.lane.b32.xlu1 %v3236_v35, %s2915_s25 }
  0xf1   : > { %v3538_v16 = vpop.permute.xlu0 %967  ;;  %v3540_v50 = vpop.permute.xlu1 %961 }
  0xf2   : > { %4480 = vst [vmem:[#allocation30_spill] sm:$0xff] %v3538_v16 }
  0xf3   : > { %1587 = vrot.lane.b32.xlu0 %v3137_v27, %s2917_s11  ;;  %1333 = vrot.lane.b32.xlu1 %v3251_v40, %s2915_s25 }
  0xf5   : > { %v3546_v17 = vpop.permute.xlu0 %971  ;;  %v3548_v25 = vpop.permute.xlu1 %965 }
  0xf6   : > { %4481 = vst [vmem:[#allocation31_spill] sm:$0xff] %v3546_v17  ;;  %4482 = vst [vmem:[#allocation32_spill] sm:$0xff] %v3548_v25 }
  0xf7   : > { %1589 = vrot.lane.b32.xlu0 %v3188_v3, %s2917_s11  ;;  %1461 = vrot.lane.b32.xlu1 %v3365_v34, %s2916_s28 }
  0xf9   : > { %v3554_v35 = vpop.permute.xlu0 %975  ;;  %v3556_v16 = vpop.permute.xlu1 %969 }
  0xfa   : > { %4483 = vst [vmem:[#allocation33_spill] sm:$0xff] %v3554_v35  ;;  %4484 = vst [vmem:[#allocation34_spill] sm:$0xff] %v3556_v16 }
  0xfb   : > { %1209 = vrot.lane.b32.xlu0 %v3188_v3, %s2914_s17  ;;  %1207 = vrot.lane.b32.xlu1 %v3137_v27, %s2914_s17 }
  0xfd   : > { %v3562_v40 = vpop.permute.xlu0 %979  ;;  %v3564_v17 = vpop.permute.xlu1 %973 }
  0xfe   : > { %4485 = vst [vmem:[#allocation35_spill] sm:$0xff] %v3562_v40  ;;  %4486 = vst [vmem:[#allocation36_spill] sm:$0xff] %v3564_v17 }
  0xff   : > { %1717 = vrot.lane.b32.xlu0 %v3259_v42, %s2918_s14  ;;  %1715 = vrot.lane.b32.xlu1 %v3241_v37, %s2918_s14 }
 0x101   : > { %v3570_v25 = vpop.permute.xlu0 %983  ;;  %v3572_v35 = vpop.permute.xlu1 %977 }
 0x102   : > { %4487 = vst [vmem:[#allocation37_spill] sm:$0xff] %v3570_v25  ;;  %4488 = vst [vmem:[#allocation38_spill] sm:$0xff] %v3572_v35 }
 0x103   : > { %1463 = vrot.lane.b32.xlu0 %v3351_v26, %s2916_s28  ;;  %1335 = vrot.lane.b32.xlu1 %v3241_v37, %s2915_s25 }
 0x105   : > { %v3578_v27 = vpop.permute.xlu0 %987  ;;  %v3580_v3 = vpop.permute.xlu1 %981 }
 0x106   : > { %4489 = vst [vmem:[#allocation39_spill] sm:$0xff] %v3578_v27  ;;  %4490 = vst [vmem:[#allocation40_spill] sm:$0xff] %v3580_v3 }
 0x107   : > { %1591 = vrot.lane.b32.xlu0 %v3163_v49, %s2917_s11  ;;  %1337 = vrot.lane.b32.xlu1 %v3259_v42, %s2915_s25 }
 0x109   : > { %v3586_v40 = vpop.permute.xlu0 %991  ;;  %v3588_v25 = vpop.permute.xlu1 %985 }
 0x10a   : > { %4491 = vst [vmem:[#allocation41_spill] sm:$0xff] %v3586_v40  ;;  %4492 = vst [vmem:[#allocation42_spill] sm:$0xff] %v3588_v25 }
 0x10b   : > { %1593 = vrot.lane.b32.xlu0 %v3200_v8, %s2917_s11  ;;  %1465 = vrot.lane.b32.xlu1 %v3377_v55, %s2916_s28 }
 0x10d   : > { %v3594_v37 = vpop.permute.xlu0 %995  ;;  %v3596_v27 = vpop.permute.xlu1 %989 }
 0x10e   : > { %4493 = vst [vmem:[#allocation43_spill] sm:$0xff] %v3594_v37  ;;  %4494 = vst [vmem:[#allocation44_spill] sm:$0xff] %v3596_v27 }
 0x10f   : > { %1213 = vrot.lane.b32.xlu0 %v3200_v8, %s2914_s17  ;;  %1211 = vrot.lane.b32.xlu1 %v3163_v49, %s2914_s17 }
 0x111   : > { %v3602_v42 = vpop.permute.xlu0 %999  ;;  %v3604_v40 = vpop.permute.xlu1 %993 }
 0x112   : > { %4495 = vst [vmem:[#allocation45_spill] sm:$0xff] %v3602_v42  ;;  %4496 = vst [vmem:[#allocation46_spill] sm:$0xff] %v3604_v40 }
 0x113   : > { %1721 = vrot.lane.b32.xlu0 %v3267_v44, %s2918_s14  ;;  %1719 = vrot.lane.b32.xlu1 %v3249_v39, %s2918_s14 }
 0x115   : > { %v3610_v25 = vpop.permute.xlu0 %1003  ;;  %v3612_v37 = vpop.permute.xlu1 %997 }
 0x116   : > { %4497 = vst [vmem:[#allocation47_spill] sm:$0xff] %v3610_v25  ;;  %4498 = vst [vmem:[#allocation48_spill] sm:$0xff] %v3612_v37 }
 0x117   : > { %1467 = vrot.lane.b32.xlu0 %v3363_v32, %s2916_s28  ;;  %1339 = vrot.lane.b32.xlu1 %v3249_v39, %s2915_s25  ;;  %v630_v39 = vld [vmem:[#allocation2 + $0x79] sm:$0xff] }
 0x119   : > { %v3618_v49 = vpop.permute.xlu0 %1071  ;;  %v3620_v8 = vpop.permute.xlu1 %1001 }
 0x11a   : > { %4499 = vst [vmem:[#allocation49_spill] sm:$0xff] %v3620_v8 }
 0x11b   : > { %1595 = vrot.lane.b32.xlu0 %v3186_v0, %s2917_s11  ;;  %1341 = vrot.lane.b32.xlu1 %v3267_v44, %s2915_s25 }
 0x11d   : > { %v3626_v42 = vpop.permute.xlu0 %1075  ;;  %v3628_v25 = vpop.permute.xlu1 %1005 }
 0x11e   : > { %4500 = vst [vmem:[#allocation50_spill] sm:$0xff] %v3628_v25 }
 0x11f   : > { %1597 = vrot.lane.b32.xlu0 %v3205_v10, %s2917_s11  ;;  %1469 = vrot.lane.b32.xlu1 %v3389_v60, %s2916_s28 }
 0x121   : > { %v3634_v37 = vpop.permute.xlu0 %1079  ;;  %v3636_v8 = vpop.permute.xlu1 %1073 }
 0x123   : > { %1217 = vrot.lane.b32.xlu0 %v3205_v10, %s2914_s17  ;;  %1215 = vrot.lane.b32.xlu1 %v630_v39, %s2914_s17  ;;  %v727_v10 = vld [vmem:[#allocation2 + $0x91] sm:$0xff] }
 0x125   : > { %v3641_v0 = vpop.permute.xlu0 %1083  ;;  %v3643_v44 = vpop.permute.xlu1 %1077 }
 0x127   : > { %1725 = vrot.lane.b32.xlu0 %v3275_v46, %s2918_s14  ;;  %1723 = vrot.lane.b32.xlu1 %v3257_v41, %s2918_s14 }
 0x129   : > { %v3649_v25 = vpop.permute.xlu0 %1087  ;;  %v3651_v40 = vpop.permute.xlu1 %1081 }
 0x12b   : > { %1471 = vrot.lane.b32.xlu0 %v3375_v53, %s2916_s28  ;;  %1343 = vrot.lane.b32.xlu1 %v3257_v41, %s2915_s25  ;;  %v633_v41 = vld [vmem:[#allocation2 + $0x99] sm:$0xff] }
 0x12d   : > { %v3657_v39 = vpop.permute.xlu0 %1091  ;;  %v3659_v27 = vpop.permute.xlu1 %1085 }
 0x12e   : > { %4501 = vst [vmem:[#allocation51_spill] sm:$0xff] %v3657_v39 }
 0x12f   : > { %1599 = vrot.lane.b32.xlu0 %v727_v10, %s2917_s11  ;;  %1345 = vrot.lane.b32.xlu1 %v3275_v46, %s2915_s25 }
 0x131   : > { %v3664_v3 = vpop.permute.xlu0 %1095  ;;  %v3666_v35 = vpop.permute.xlu1 %1089 }
 0x132   : > { %4502 = vst [vmem:[#allocation52_spill] sm:$0xff] %v3664_v3 }
 0x133   : > { %1601 = vrot.lane.b32.xlu0 %v3210_v12, %s2917_s11  ;;  %1473 = vrot.lane.b32.xlu1 %v3401_v4, %s2916_s28 }
 0x135   : > { %v3672_v17 = vpop.permute.xlu0 %1099  ;;  %v3674_v16 = vpop.permute.xlu1 %1093 }
 0x136   : > { %4503 = vst [vmem:[#allocation53_spill] sm:$0xff] %v3672_v17  ;;  %4504 = vst [vmem:[#allocation54_spill] sm:$0xff] %v3674_v16  ;;  %v730_v17 = vld [vmem:[#allocation2 + $0xb1] sm:$0xff] }
 0x137   : > { %1221 = vrot.lane.b32.xlu0 %v633_v41, %s2914_s17  ;;  %1219 = vrot.lane.b32.xlu1 %v727_v10, %s2914_s17  ;;  %v729_v10 = vld [vmem:[#allocation2 + $0xa9] sm:$0xff] }
 0x139   : > { %v3678_v46 = vpop.permute.xlu0 %1103  ;;  %v3680_v3 = vpop.permute.xlu1 %1097 }
 0x13a   : > { %4505 = vst [vmem:[#allocation55_spill] sm:$0xff] %v3678_v46  ;;  %4506 = vst [vmem:[#allocation56_spill] sm:$0xff] %v3680_v3 }
 0x13b   : > { %1729 = vrot.lane.b32.xlu0 %v3283_v48, %s2918_s14  ;;  %1727 = vrot.lane.b32.xlu1 %v3265_v43, %s2918_s14 }
 0x13d   : > { %v3686_v12 = vpop.permute.xlu0 %1107  ;;  %v3688_v4 = vpop.permute.xlu1 %1101 }
 0x13e   : > { %4507 = vst [vmem:[#allocation57_spill] sm:$0xff] %v3686_v12  ;;  %4508 = vst [vmem:[#allocation58_spill] sm:$0xff] %v3688_v4  ;;  %v495_v4 = vld [vmem:[#allocation2 + $0x8] sm:$0xff] }
 0x13f   : > { %1475 = vrot.lane.b32.xlu0 %v3387_v58, %s2916_s28  ;;  %1347 = vrot.lane.b32.xlu1 %v3265_v43, %s2915_s25 }
 0x141   : > { %v3694_v41 = vpop.permute.xlu0 %1111  ;;  %v3696_v46 = vpop.permute.xlu1 %1105 }
 0x142   : > { %4509 = vst [vmem:[#allocation59_spill] sm:$0xff] %v3694_v41  ;;  %4510 = vst [vmem:[#allocation60_spill] sm:$0xff] %v3696_v46 }
 0x143   : > { %1603 = vrot.lane.b32.xlu0 %v729_v10, %s2917_s11  ;;  %1349 = vrot.lane.b32.xlu1 %v3283_v48, %s2915_s25 }
 0x145   : > { %v1200_v12 = vpop.permute.xlu0 %1199  ;;  %v3701_v3 = vpop.permute.xlu1 %1109 }
 0x146   : > { %4511 = vst [vmem:[#allocation61_spill] sm:$0xff] %v3701_v3 }
 0x147   : > { %1605 = vrot.lane.b32.xlu0 %v730_v17, %s2917_s11  ;;  %1477 = vrot.lane.b32.xlu1 %v3413_v56, %s2916_s28  ;;  %v494_v56 = vld [vmem:[#allocation2] sm:$0xff] }
 0x148   : > { %v1807_v39 = vsel %vm405_vm0, %v494_v56, %v3301_v59 }
 0x149   : > { %v1328_v43 = vpop.permute.xlu0 %1327  ;;  %v3706_v58 = vpop.permute.xlu1 %1113 }
 0x14a   : > { %4512 = vst [vmem:[#allocation62_spill] sm:$0xff] %v3706_v58 }
 0x14b   : > { %1225 = vrot.lane.b32.xlu0 %v730_v17, %s2914_s17  ;;  %1223 = vrot.lane.b32.xlu1 %v729_v10, %s2914_s17  ;;  %v731_v17 = vld [vmem:[#allocation2 + $0xc1] sm:$0xff]  ;;  %v1808_v10 = vsel %vm405_vm0, %v495_v4, %v3307_v62  ;;  %v732_v4 = vld [vmem:[#allocation2 + $0xc9] sm:$0xff] }
 0x14c   : > { %v1841_v16 = vsel %vm1839_vm2, %v1808_v10, %v3505_v24 }
 0x14d   : > { %v1456_v41 = vpop.permute.xlu0 %1455  ;;  %v1202_v46 = vpop.permute.xlu1 %1201 }
 0x14f   : > { %1733 = vrot.lane.b32.xlu0 %v3289_v52, %s2918_s14  ;;  %1731 = vrot.lane.b32.xlu1 %v3273_v45, %s2918_s14 }
 0x151   : > { %v1584_v48 = vpop.permute.xlu0 %1583  ;;  %v1330_v3 = vpop.permute.xlu1 %1329 }
 0x153   : > { %1479 = vrot.lane.b32.xlu0 %v3399_v1, %s2916_s28  ;;  %1351 = vrot.lane.b32.xlu1 %v3273_v45, %s2915_s25  ;;  %v1874_v1 = vsel %vm1872_vm3, %v1841_v16, %v3636_v8  ;;  %v1840_v45 = vsel %vm1839_vm2, %v1807_v39, %v3478_v2 }
 0x154   : > { %v1907_v62 = vsel %vm1905_vm4, %v1874_v1, %v1202_v46  ;;  %v1873_v24 = vsel %vm1872_vm3, %v1840_v45, %v3618_v49  ;;  %v1810_v1 = vsel %vm405_vm0, %v3341_v23, %v3319_v11 }
 0x155   : > { %v1586_v58 = vpop.permute.xlu0 %1585  ;;  %v1458_v53 = vpop.permute.xlu1 %1457  ;;  %v1940_v59 = vsel %vm1938_vm5, %v1907_v62, %v1330_v3  ;;  %v1906_v56 = vsel %vm1905_vm4, %v1873_v24, %v1200_v12 }
 0x156   : > { %v1939_v10 = vsel %vm1938_vm5, %v1906_v56, %v1328_v43 }
 0x157   : > { %1607 = vrot.lane.b32.xlu0 %v731_v17, %s2917_s11  ;;  %1353 = vrot.lane.b32.xlu1 %v3289_v52, %s2915_s25  ;;  %v1973_v52 = vsel %vm1971_vm6, %v1940_v59, %v1458_v53  ;;  %v1972_v2 = vsel %vm1971_vm6, %v1939_v10, %v1456_v41 }
 0x158   : > { %v2005_v49 = vsel %vm2004_vm7, %v1972_v2, %v1584_v48  ;;  %v2006_v39 = vsel %vm2004_vm7, %v1973_v52, %v1586_v58  ;;  %v733_v48 = vld [vmem:[#allocation2 + $0xd9] sm:$0xff] }
 0x159   : > { %v1206_v16 = vpop.permute.xlu0 %1205  ;;  %v1204_v8 = vpop.permute.xlu1 %1203  ;;  %v765_v2 = vld [vmem:[#allocation2 + $0xda] sm:$0xff] }
 0x15b   : > { %1609 = vrot.lane.b32.xlu0 %v732_v4, %s2917_s11  ;;  %1481 = vrot.lane.b32.xlu1 %v3425_v57, %s2916_s28 }
 0x15d   : > { %v1714_v3 = vpop.permute.xlu0 %1713  ;;  %v1712_v46 = vpop.permute.xlu1 %1711 }
 0x15e   : > { %v2039_v12 = vsel %vm2037_vm8, %v2006_v39, %v1714_v3  ;;  %v2038_v53 = vsel %vm2037_vm8, %v2005_v49, %v1712_v46  ;;  %v293_v39 = vld [vmem:[%s3039_s29 + $0xf0] sm:$0xff]  ;;  %v2890_v46 = vld [vmem:[%s4444_s1] ss:$0 sm:$0xff] }
 0x15f   : > { %1229 = vrot.lane.b32.xlu0 %v732_v4, %s2914_s17  ;;  %1227 = vrot.lane.b32.xlu1 %v731_v17, %s2914_s17  ;;  %v1809_v17 = vsel %vm405_vm0, %v3321_v13, %v3313_v7  ;;  %v734_v13 = vld [vmem:[#allocation2 + $0xe1] sm:$0xff] }
 0x160   : > { %2807 = vmatprep.mubr.msk.f32.mxu0 %vm2086_vm9, %v2038_v53  ;;  %v1842_v4 = vsel %vm1839_vm2, %v1809_v17, %v3492_v61  ;;  %v2891_v53 = vld [vmem:[%s4445_s2] ss:$0 sm:$0xff] }
 0x161   : > { %2808 = vmatmul.mubr.msk.f32.vlgmr.msra.gmra.mxu0 %vm2086_vm9, %v2039_v12  ;;  %v1460_v57 = vpop.permute.xlu0 %1459  ;;  %v1332_v41 = vpop.permute.xlu1 %1331  ;;  %v332_v12 = vmul.f32 %v2890_v46, %v293_v39 }
 0x163   : > { %1737 = vrot.lane.b32.xlu0 %v3294_v54, %s2918_s14  ;;  %1735 = vrot.lane.b32.xlu1 %v3281_v47, %s2918_s14 }
 0x165   : > { %v1588_v43 = vpop.permute.xlu0 %1587  ;;  %v1334_v58 = vpop.permute.xlu1 %1333 }
 0x167   : > { %1483 = vrot.lane.b32.xlu0 %v3411_v14, %s2916_s28  ;;  %1355 = vrot.lane.b32.xlu1 %v3281_v47, %s2915_s25  ;;  %v1843_v14 = vsel %vm1839_vm2, %v1810_v1, %v3516_v33  ;;  %v1875_v47 = vsel %vm1872_vm3, %v1842_v4, %v3626_v42  ;;  %v735_v1 = vld [vmem:[#allocation2 + $0xf1] sm:$0xff]  ;;  %v1812_v4 = vsel %vm405_vm0, %v3353_v29, %v3328_v18 }
 0x168   : > { %v1876_v24 = vsel %vm1872_vm3, %v1843_v14, %v3643_v44  ;;  %v1908_v11 = vsel %vm1905_vm4, %v1875_v47, %v1204_v8 }
 0x169   : > { %v1590_v45 = vpop.permute.xlu0 %1589  ;;  %v1462_v62 = vpop.permute.xlu1 %1461  ;;  %v1909_v7 = vsel %vm1905_vm4, %v1876_v24, %v1206_v16  ;;  %v1941_v23 = vsel %vm1938_vm5, %v1908_v11, %v1332_v41 }
 0x16a   : > { %v1942_v61 = vsel %vm1938_vm5, %v1909_v7, %v1334_v58  ;;  %v294_v58 = vld [vmem:[%s3039_s29 + $0xf8] sm:$0xff] }
 0x16b   : > { %1611 = vrot.lane.b32.xlu0 %v733_v48, %s2917_s11  ;;  %1357 = vrot.lane.b32.xlu1 %v3294_v54, %s2915_s25  ;;  %v1975_v42 = vsel %vm1971_vm6, %v1942_v61, %v1462_v62  ;;  %v1974_v54 = vsel %vm1971_vm6, %v1941_v23, %v1460_v57  ;;  %v371_v57 = vadd.f32 %v2891_v53, %v332_v12 }
 0x16c   : > { %v2007_v44 = vsel %vm2004_vm7, %v1974_v54, %v1588_v43  ;;  %v2008_v8 = vsel %vm2004_vm7, %v1975_v42, %v1590_v45  ;;  %v333_v17 = vmul.f32 %v2890_v46, %v294_v58  ;;  %v1811_v62 = vsel %vm405_vm0, %v3330_v19, %v3311_v6  ;;  %v736_v19 = vld [vmem:[#allocation2 + $0xf9] sm:$0xff] }
 0x16d   : > { %v1210_v33 = vpop.permute.xlu0 %1209  ;;  %v1208_v59 = vpop.permute.xlu1 %1207  ;;  %v1844_v24 = vsel %vm1839_vm2, %v1811_v62, %v3503_v28 }
 0x16e   : > { %v372_v45 = vadd.f32 %v2891_v53, %v333_v17  ;;  %v1877_v11 = vsel %vm1872_vm3, %v1844_v24, %v3634_v37  ;;  %v3880_v24 = vld [vmem:[#allocation2 + $0x120] sm:$0xff] }
 0x16f   : > { %1613 = vrot.lane.b32.xlu0 %v734_v13, %s2917_s11  ;;  %1485 = vrot.lane.b32.xlu1 %v3440_v63, %s2916_s28  ;;  %v766_v63 = vld [vmem:[#allocation2 + $0xe2] sm:$0xff]  ;;  %v1910_v18 = vsel %vm1905_vm4, %v1877_v11, %v1208_v59 }
 0x170   : > { %v404_v7 = vmax.f32 %v372_v45, 0.0  ;;  %v770_v45 = vld [vmem:[#allocation2 + $0x112] sm:$0xff] }
 0x171   : > { %v1718_v16 = vpop.permute.xlu0 %1717  ;;  %v1716_v56 = vpop.permute.xlu1 %1715 }
 0x172   : > { %v2041_v52 = vsel %vm2037_vm8, %v2008_v8, %v1718_v16  ;;  %v2040_v10 = vsel %vm2037_vm8, %v2007_v44, %v1716_v56  ;;  %493 = vst.msk [vmem:[#allocation2 + $0x189] sm:$0xff] %vm405_vm0, %v404_v7  ;;  %v768_v16 = vld [vmem:[#allocation2 + $0xfa] sm:$0xff] }
 0x173   : > { %1233 = vrot.lane.b32.xlu0 %v734_v13, %s2914_s17  ;;  %1231 = vrot.lane.b32.xlu1 %v733_v48, %s2914_s17  ;;  %v403_v48 = vmax.f32 %v371_v57, 0.0  ;;  %v4513_v7 = vld [vmem:[#allocation5_spill] sm:$0xff] }
 0x174   : > { %2810 = vmatprep.mubr.msk.f32.mxu0 %vm2086_vm9, %v2040_v10  ;;  %v1816_v11 = vsel %vm405_vm0, %v3377_v55, %v4513_v7  ;;  %v741_v7 = vld [vmem:[#allocation2 + $0x139] sm:$0xff] }
 0x175   : > { %2811 = vmatmul.mubr.msk.f32.gmra.mxu0 %vm2086_vm9, %v2041_v52  ;;  %v1464_v49 = vpop.permute.xlu0 %1463  ;;  %v1336_v3 = vpop.permute.xlu1 %1335  ;;  %492 = vst.msk [vmem:[#allocation2 + $0x181] sm:$0xff] %vm405_vm0, %v403_v48 }
 0x177   : > { %1741 = vrot.lane.b32.xlu0 %v766_v63, %s2918_s14  ;;  %1739 = vrot.lane.b32.xlu1 %v765_v2, %s2918_s14 }
 0x179   : > { %v1592_v41 = vpop.permute.xlu0 %1591  ;;  %v1338_v43 = vpop.permute.xlu1 %1337 }
 0x17b   : > { %1487 = vrot.lane.b32.xlu0 %v3423_v36, %s2916_s28  ;;  %1359 = vrot.lane.b32.xlu1 %v765_v2, %s2915_s25  ;;  %v1845_v36 = vsel %vm1839_vm2, %v1812_v4, %v3524_v20  ;;  %v1943_v20 = vsel %vm1938_vm5, %v1910_v18, %v1336_v3  ;;  %v1813_v2 = vsel %vm405_vm0, %v3339_v22, %v3317_v9  ;;  %v738_v22 = vld [vmem:[#allocation2 + $0x111] sm:$0xff]  ;;  %v3891_v18 = vld [vmem:[#allocation2 + $0x128] sm:$0xff] }
 0x17c   : > { %v1878_v13 = vsel %vm1872_vm3, %v1845_v36, %v3651_v40  ;;  %v1976_v40 = vsel %vm1971_vm6, %v1943_v20, %v1464_v49  ;;  %v1814_v49 = vsel %vm405_vm0, %v3365_v34, %v3337_v21  ;;  %v1846_v46 = vsel %vm1839_vm2, %v1813_v2, %v3514_v38 }
 0x17d   : > { %v1594_v14 = vpop.permute.xlu0 %1593  ;;  %v1466_v47 = vpop.permute.xlu1 %1465  ;;  %v1911_v6 = vsel %vm1905_vm4, %v1878_v13, %v1210_v33  ;;  %v2009_v61 = vsel %vm2004_vm7, %v1976_v40, %v1592_v41  ;;  %v1847_v12 = vsel %vm1839_vm2, %v1814_v49, %v3532_v51  ;;  %v1815_v36 = vsel %vm405_vm0, %v3351_v26, %v3326_v15  ;;  %v709_v49 = vld [vmem:[#allocation2 + $0x138] sm:$0xff] }
 0x17e   : > { %v1944_v29 = vsel %vm1938_vm5, %v1911_v6, %v1338_v43  ;;  %v1880_v53 = vsel %vm1872_vm3, %v1847_v12, %v3659_v27 }
 0x17f   : > { %1615 = vrot.lane.b32.xlu0 %v735_v1, %s2917_s11  ;;  %1361 = vrot.lane.b32.xlu1 %v766_v63, %s2915_s25  ;;  %v1977_v23 = vsel %vm1971_vm6, %v1944_v29, %v1466_v47  ;;  %v737_v63 = vld [vmem:[#allocation2 + $0x109] sm:$0xff]  ;;  %v1849_v29 = vsel %vm1839_vm2, %v1816_v11, %v3540_v50 }
 0x180   : > { %v2010_v59 = vsel %vm2004_vm7, %v1977_v23, %v1594_v14  ;;  %v1882_v15 = vsel %vm1872_vm3, %v1849_v29, %v3666_v35  ;;  %v773_v29 = vld [vmem:[#allocation2 + $0x13a] sm:$0xff] }
 0x181   : > { %v1214_v28 = vpop.permute.xlu0 %1213  ;;  %v1212_v37 = vpop.permute.xlu1 %1211 }
 0x182   : > { %v1913_v9 = vsel %vm1905_vm4, %v1880_v53, %v1214_v28 }
 0x183   : > { %1617 = vrot.lane.b32.xlu0 %v736_v19, %s2917_s11  ;;  %1489 = vrot.lane.b32.xlu1 %v3456_v31, %s2916_s28  ;;  %v767_v31 = vld [vmem:[#allocation2 + $0xf2] sm:$0xff] }
 0x185   : > { %v1722_v33 = vpop.permute.xlu0 %1721  ;;  %v1720_v42 = vpop.permute.xlu1 %1719 }
 0x186   : > { %v2043_v54 = vsel %vm2037_vm8, %v2010_v59, %v1722_v33  ;;  %v2042_v44 = vsel %vm2037_vm8, %v2009_v61, %v1720_v42  ;;  %v740_v61 = vld [vmem:[#allocation2 + $0x129] sm:$0xff]  ;;  %v739_v33 = vld [vmem:[#allocation2 + $0x121] sm:$0xff] }
 0x187   : > { %1237 = vrot.lane.b32.xlu0 %v736_v19, %s2914_s17  ;;  %1235 = vrot.lane.b32.xlu1 %v735_v1, %s2914_s17  ;;  %v4514_v19 = vld [vmem:[#allocation28_spill] sm:$0xff] }
 0x188   : > { %2813 = vmatprep.mubr.msk.f32.mxu0 %vm2086_vm9, %v2042_v44  ;;  %v1848_v20 = vsel %vm1839_vm2, %v1815_v36, %v4514_v19  ;;  %v742_v36 = vld [vmem:[#allocation2 + $0x141] sm:$0xff] }
 0x189   : > { %2814 = vmatmul.mubr.msk.f32.gmra.mxu0 %vm2086_vm9, %v2043_v54  ;;  %v1468_v8 = vpop.permute.xlu0 %1467  ;;  %v1340_v56 = vpop.permute.xlu1 %1339  ;;  %v1881_v28 = vsel %vm1872_vm3, %v1848_v20, %v3649_v25  ;;  %v774_v20 = vld [vmem:[#allocation2 + $0x142] sm:$0xff] }
 0x18b   : > { %1745 = vrot.lane.b32.xlu0 %v768_v16, %s2918_s14  ;;  %1743 = vrot.lane.b32.xlu1 %v767_v31, %s2918_s14 }
 0x18d   : > { %v1596_v52 = vpop.permute.xlu0 %1595  ;;  %v1342_v10 = vpop.permute.xlu1 %1341 }
 0x18e   : > { %v1946_v38 = vsel %vm1938_vm5, %v1913_v9, %v1342_v10  ;;  %v771_v10 = vld [vmem:[#allocation2 + $0x122] sm:$0xff] }
 0x18f   : > { %1491 = vrot.lane.b32.xlu0 %v3438_v30, %s2916_s28  ;;  %1363 = vrot.lane.b32.xlu1 %v767_v31, %s2915_s25  ;;  %v1879_v30 = vsel %vm1872_vm3, %v1846_v46, %v3641_v0  ;;  %v4516_v46 = vld [vmem:[#allocation7_spill] sm:$0xff]  ;;  %v4517_v9 = vld [vmem:[#allocation29_spill] sm:$0xff] }
 0x190   : > { %v1912_v21 = vsel %vm1905_vm4, %v1879_v30, %v1212_v37  ;;  %v1818_v12 = vsel %vm405_vm0, %v3389_v60, %v4516_v46 }
 0x191   : > { %v1598_v3 = vpop.permute.xlu0 %1597  ;;  %v1470_v39 = vpop.permute.xlu1 %1469  ;;  %v1945_v34 = vsel %vm1938_vm5, %v1912_v21, %v1340_v56 }
 0x192   : > { %v1979_v0 = vsel %vm1971_vm6, %v1946_v38, %v1470_v39  ;;  %v1978_v27 = vsel %vm1971_vm6, %v1945_v34, %v1468_v8  ;;  %v4519_v38 = vld [vmem:[#allocation51_spill] sm:$0xff] }
 0x193   : > { %1619 = vrot.lane.b32.xlu0 %v737_v63, %s2917_s11  ;;  %1365 = vrot.lane.b32.xlu1 %v768_v16, %s2915_s25  ;;  %v2011_v41 = vsel %vm2004_vm7, %v1978_v27, %v1596_v52  ;;  %v2012_v58 = vsel %vm2004_vm7, %v1979_v0, %v1598_v3  ;;  %v772_v52 = vld [vmem:[#allocation2 + $0x12a] sm:$0xff]  ;;  %v710_v27 = vld [vmem:[#allocation2 + $0x140] sm:$0xff] }
 0x194   : > { %v4515_v3 = vld [vmem:[#allocation3_spill] sm:$0xff] }
 0x195   : > { %v1218_v51 = vpop.permute.xlu0 %1217  ;;  %v1216_v57 = vpop.permute.xlu1 %1215  ;;  %v1817_v39 = vsel %vm405_vm0, %v3363_v32, %v4515_v3  ;;  %v712_v3 = vld [vmem:[#allocation2 + $0x158] sm:$0xff] }
 0x196   : > { %v1915_v26 = vsel %vm1905_vm4, %v1882_v15, %v1218_v51  ;;  %v1914_v55 = vsel %vm1905_vm4, %v1881_v28, %v1216_v57  ;;  %v1850_v21 = vsel %vm1839_vm2, %v1817_v39, %v4517_v9  ;;  %v4520_v57 = vld [vmem:[#allocation54_spill] sm:$0xff]  ;;  %v4521_v28 = vld [vmem:[#allocation4_spill] sm:$0xff] }
 0x197   : > { %1621 = vrot.lane.b32.xlu0 %v738_v22, %s2917_s11  ;;  %1493 = vrot.lane.b32.xlu1 %v3469_v5, %s2916_s28  ;;  %v769_v5 = vld [vmem:[#allocation2 + $0x10a] sm:$0xff]  ;;  %v1883_v51 = vsel %vm1872_vm3, %v1850_v21, %v4519_v38 }
 0x198   : > { %v4522_v15 = vld [vmem:[#allocation10_spill] sm:$0xff]  ;;  %v743_v38 = vld [vmem:[#allocation2 + $0x151] sm:$0xff] }
 0x199   : > { %v1726_v43 = vpop.permute.xlu0 %1725  ;;  %v1724_v48 = vpop.permute.xlu1 %1723 }
 0x19a   : > { %v2045_v17 = vsel %vm2037_vm8, %v2012_v58, %v1726_v43  ;;  %v2044_v1 = vsel %vm2037_vm8, %v2011_v41, %v1724_v48 }
 0x19b   : > { %1241 = vrot.lane.b32.xlu0 %v738_v22, %s2914_s17  ;;  %1239 = vrot.lane.b32.xlu1 %v737_v63, %s2914_s17  ;;  %v4518_v22 = vld [vmem:[#allocation32_spill] sm:$0xff] }
 0x19c   : > { %2816 = vmatprep.mubr.msk.f32.mxu0 %vm2086_vm9, %v2044_v1  ;;  %v1851_v34 = vsel %vm1839_vm2, %v1818_v12, %v4518_v22 }
 0x19d   : > { %2817 = vmatmul.mubr.msk.f32.gmra.mxu0 %vm2086_vm9, %v2045_v17  ;;  %v1472_v62 = vpop.permute.xlu0 %1471  ;;  %v1344_v4 = vpop.permute.xlu1 %1343  ;;  %v1884_v0 = vsel %vm1872_vm3, %v1851_v34, %v4520_v57  ;;  %v744_v34 = vld [vmem:[#allocation2 + $0x159] sm:$0xff] }
 0x19e   : > { %v1947_v37 = vsel %vm1938_vm5, %v1914_v55, %v1344_v4  ;;  %v4523_v55 = vld [vmem:[#allocation9_spill] sm:$0xff] }
 0x19f   : > { %1749 = vrot.lane.b32.xlu0 %v770_v45, %s2918_s14  ;;  %1747 = vrot.lane.b32.xlu1 %v769_v5, %s2918_s14  ;;  %v1980_v35 = vsel %vm1971_vm6, %v1947_v37, %v1472_v62  ;;  %v4524_v37 = vld [vmem:[#allocation15_spill] sm:$0xff] }
 0x1a1   : > { %v1600_v14 = vpop.permute.xlu0 %1599  ;;  %v1346_v47 = vpop.permute.xlu1 %1345 }
 0x1a2   : > { %v1948_v23 = vsel %vm1938_vm5, %v1915_v26, %v1346_v47  ;;  %v2013_v59 = vsel %vm2004_vm7, %v1980_v35, %v1600_v14  ;;  %v1819_v26 = vsel %vm405_vm0, %v4522_v15, %v4521_v28 }
 0x1a3   : > { %1495 = vrot.lane.b32.xlu0 %v3880_v24, %s2916_s28  ;;  %1367 = vrot.lane.b32.xlu1 %v769_v5, %s2915_s25 }
 0x1a5   : > { %v1602_v13 = vpop.permute.xlu0 %1601  ;;  %v1474_v6 = vpop.permute.xlu1 %1473 }
 0x1a6   : > { %v1981_v25 = vsel %vm1971_vm6, %v1948_v23, %v1474_v6  ;;  %v1820_v23 = vsel %vm405_vm0, %v4524_v37, %v4523_v55 }
 0x1a7   : > { %1497 = vrot.lane.b32.xlu0 %v3891_v18, %s2916_s28  ;;  %1369 = vrot.lane.b32.xlu1 %v770_v45, %s2915_s25  ;;  %v2014_v54 = vsel %vm2004_vm7, %v1981_v25, %v1602_v13  ;;  %v4525_v25 = vld [vmem:[#allocation30_spill] sm:$0xff] }
 0x1a8   : > { %v1852_v35 = vsel %vm1839_vm2, %v1819_v26, %v4525_v25  ;;  %v713_v26 = vld [vmem:[#allocation2 + $0x168] sm:$0xff] }
 0x1a9   : > { %v1222_v50 = vpop.permute.xlu0 %1221  ;;  %v1220_v40 = vpop.permute.xlu1 %1219 }
 0x1aa   : > { %v1917_v32 = vsel %vm1905_vm4, %v1884_v0, %v1222_v50  ;;  %v1916_v60 = vsel %vm1905_vm4, %v1883_v51, %v1220_v40  ;;  %v2892_v0 = vld [vmem:[#allocation2 + $0xa8] sm:$0xff] }
 0x1ab   : > { %1117 = vrot.lane.b32.xlu0 %v3891_v18, %s2913_s10  ;;  %1115 = vrot.lane.b32.xlu1 %v3880_v24, %s2913_s10 }
 0x1ad   : > { %v1730_v42 = vpop.permute.xlu0 %1729  ;;  %v1728_v44 = vpop.permute.xlu1 %1727 }
 0x1ae   : > { %v2047_v16 = vsel %vm2037_vm8, %v2014_v54, %v1730_v42  ;;  %v2046_v31 = vsel %vm2037_vm8, %v2013_v59, %v1728_v44  ;;  %v4527_v59 = vld [vmem:[#allocation52_spill] sm:$0xff] }
 0x1af   : > { %1625 = vrot.lane.b32.xlu0 %v740_v61, %s2917_s11  ;;  %1623 = vrot.lane.b32.xlu1 %v739_v33, %s2917_s11  ;;  %v1885_v42 = vsel %vm1872_vm3, %v1852_v35, %v4527_v59  ;;  %v4528_v54 = vld [vmem:[#allocation56_spill] sm:$0xff]  ;;  %v714_v35 = vld [vmem:[#allocation2 + $0x170] sm:$0xff] }
 0x1b0   : > { %2819 = vmatprep.mubr.msk.f32.mxu0 %vm2086_vm9, %v2046_v31 }
 0x1b1   : > { %2820 = vmatmul.mubr.msk.f32.gmra.mxu0 %vm2086_vm9, %v2047_v16  ;;  %v1476_v8 = vpop.permute.xlu0 %1475  ;;  %v1348_v56 = vpop.permute.xlu1 %1347 }
 0x1b2   : > { %v1949_v41 = vsel %vm1938_vm5, %v1916_v60, %v1348_v56 }
 0x1b3   : > { %1245 = vrot.lane.b32.xlu0 %v740_v61, %s2914_s17  ;;  %1243 = vrot.lane.b32.xlu1 %v739_v33, %s2914_s17  ;;  %v1982_v1 = vsel %vm1971_vm6, %v1949_v41, %v1476_v8  ;;  %v4526_v61 = vld [vmem:[#allocation34_spill] sm:$0xff]  ;;  %v711_v8 = vld [vmem:[#allocation2 + $0x150] sm:$0xff]  ;;  %v4530_v41 = vld [vmem:[#allocation12_spill] sm:$0xff] }
 0x1b4   : > { %v1853_v33 = vsel %vm1839_vm2, %v1820_v23, %v4526_v61 }
 0x1b5   : > { %v1604_v63 = vpop.permute.xlu0 %1603  ;;  %v1350_v2 = vpop.permute.xlu1 %1349  ;;  %v1886_v44 = vsel %vm1872_vm3, %v1853_v33, %v4528_v54  ;;  %v746_v54 = vld [vmem:[#allocation2 + $0x171] sm:$0xff] }
 0x1b6   : > { %v1950_v43 = vsel %vm1938_vm5, %v1917_v32, %v1350_v2  ;;  %v2015_v45 = vsel %vm2004_vm7, %v1982_v1, %v1604_v63  ;;  %v4529_v32 = vld [vmem:[#allocation6_spill] sm:$0xff] }
 0x1b7   : > { %1753 = vrot.lane.b32.xlu0 %v772_v52, %s2918_s14  ;;  %1751 = vrot.lane.b32.xlu1 %v771_v10, %s2918_s14  ;;  %v1821_v60 = vsel %vm405_vm0, %v2892_v0, %v4529_v32 }
 0x1b9   : > { %v1606_v30 = vpop.permute.xlu0 %1605  ;;  %v1478_v53 = vpop.permute.xlu1 %1477 }
 0x1ba   : > { %v1983_v17 = vsel %vm1971_vm6, %v1950_v43, %v1478_v53 }
 0x1bb   : > { %1499 = vrot.lane.b32.xlu0 %v709_v49, %s2916_s28  ;;  %1371 = vrot.lane.b32.xlu1 %v771_v10, %s2915_s25  ;;  %v2016_v62 = vsel %vm2004_vm7, %v1983_v17, %v1606_v30  ;;  %v4531_v17 = vld [vmem:[#allocation31_spill] sm:$0xff] }
 0x1bc   : > { %v1854_v1 = vsel %vm1839_vm2, %v1821_v60, %v4531_v17  ;;  %v778_v60 = vld [vmem:[#allocation2 + $0x172] sm:$0xff] }
 0x1bd   : > { %v1226_v58 = vpop.permute.xlu0 %1225  ;;  %v1224_v48 = vpop.permute.xlu1 %1223 }
 0x1be   : > { %v1919_v16 = vsel %vm1905_vm4, %v1886_v44, %v1226_v58  ;;  %v1918_v31 = vsel %vm1905_vm4, %v1885_v42, %v1224_v48  ;;  %v745_v44 = vld [vmem:[#allocation2 + $0x169] sm:$0xff] }
 0x1bf   : > { %1501 = vrot.lane.b32.xlu0 %v710_v27, %s2916_s28  ;;  %1373 = vrot.lane.b32.xlu1 %v772_v52, %s2915_s25 }
 0x1c1   : > { %v1734_v5 = vpop.permute.xlu0 %1733  ;;  %v1732_v4 = vpop.permute.xlu1 %1731 }
 0x1c2   : > { %v2049_v14 = vsel %vm2037_vm8, %v2016_v62, %v1734_v5  ;;  %v2048_v47 = vsel %vm2037_vm8, %v2015_v45, %v1732_v4  ;;  %v4532_v45 = vld [vmem:[#allocation36_spill] sm:$0xff]  ;;  %v4533_v62 = vld [vmem:[#allocation53_spill] sm:$0xff] }
 0x1c3   : > { %1121 = vrot.lane.b32.xlu0 %v710_v27, %s2913_s10  ;;  %1119 = vrot.lane.b32.xlu1 %v709_v49, %s2913_s10  ;;  %v2893_v27 = vld [vmem:[#allocation2 + $0xb0] sm:$0xff]  ;;  %v1887_v4 = vsel %vm1872_vm3, %v1854_v1, %v4533_v62 }
 0x1c4   : > { %2822 = vmatprep.mubr.msk.f32.mxu0 %vm2086_vm9, %v2048_v47  ;;  %v1822_v43 = vsel %vm405_vm0, %v2893_v27, %v4530_v41  ;;  %v777_v27 = vld [vmem:[#allocation2 + $0x16a] sm:$0xff] }
 0x1c5   : > { %2823 = vmatmul.mubr.msk.f32.gmra.mxu0 %vm2086_vm9, %v2049_v14  ;;  %v1480_v11 = vpop.permute.xlu0 %1479  ;;  %v1352_v13 = vpop.permute.xlu1 %1351  ;;  %v1855_v5 = vsel %vm1839_vm2, %v1822_v43, %v4532_v45  ;;  %v4534_v14 = vld [vmem:[#allocation58_spill] sm:$0xff]  ;;  %v715_v45 = vld [vmem:[#allocation2 + $0x180] sm:$0xff] }
 0x1c6   : > { %v1951_v56 = vsel %vm1938_vm5, %v1918_v31, %v1352_v13  ;;  %v1888_v47 = vsel %vm1872_vm3, %v1855_v5, %v4534_v14  ;;  %v775_v13 = vld [vmem:[#allocation2 + $0x152] sm:$0xff] }
 0x1c7   : > { %1629 = vrot.lane.b32.xlu0 %v742_v36, %s2917_s11  ;;  %1627 = vrot.lane.b32.xlu1 %v741_v7, %s2917_s11  ;;  %v1984_v49 = vsel %vm1971_vm6, %v1951_v56, %v1480_v11  ;;  %v776_v11 = vld [vmem:[#allocation2 + $0x15a] sm:$0xff]  ;;  %v2895_v56 = vld [vmem:[#allocation2 + $0xc8] sm:$0xff] }
 0x1c8   : > { %v4535_v31 = vld [vmem:[#allocation8_spill] sm:$0xff] }
 0x1c9   : > { %v1608_v6 = vpop.permute.xlu0 %1607  ;;  %v1354_v19 = vpop.permute.xlu1 %1353 }
 0x1ca   : > { %v1952_v52 = vsel %vm1938_vm5, %v1919_v16, %v1354_v19  ;;  %v2017_v39 = vsel %vm2004_vm7, %v1984_v49, %v1608_v6  ;;  %v2894_v16 = vld [vmem:[#allocation2 + $0xc0] sm:$0xff] }
 0x1cb   : > { %1249 = vrot.lane.b32.xlu0 %v742_v36, %s2914_s17  ;;  %1247 = vrot.lane.b32.xlu1 %v741_v7, %s2914_s17  ;;  %v4537_v49 = vld [vmem:[#allocation33_spill] sm:$0xff] }
 0x1cd   : > { %v1610_v50 = vpop.permute.xlu0 %1609  ;;  %v1482_v40 = vpop.permute.xlu1 %1481 }
 0x1ce   : > { %v1985_v2 = vsel %vm1971_vm6, %v1952_v52, %v1482_v40  ;;  %v4536_v52 = vld [vmem:[#allocation14_spill] sm:$0xff] }
 0x1cf   : > { %1757 = vrot.lane.b32.xlu0 %v774_v20, %s2918_s14  ;;  %1755 = vrot.lane.b32.xlu1 %v773_v29, %s2918_s14  ;;  %v2018_v12 = vsel %vm2004_vm7, %v1985_v2, %v1610_v50 }
 0x1d1   : > { %v1230_v10 = vpop.permute.xlu0 %1229  ;;  %v1228_v63 = vpop.permute.xlu1 %1227 }
 0x1d2   : > { %v1921_v36 = vsel %vm1905_vm4, %v1888_v47, %v1230_v10  ;;  %v1920_v7 = vsel %vm1905_vm4, %v1887_v4, %v1228_v63  ;;  %v1824_v10 = vsel %vm405_vm0, %v2895_v56, %v4536_v52  ;;  %v716_v4 = vld [vmem:[#allocation2 + $0x188] sm:$0xff] }
 0x1d3   : > { %1503 = vrot.lane.b32.xlu0 %v711_v8, %s2916_s28  ;;  %1375 = vrot.lane.b32.xlu1 %v773_v29, %s2915_s25 }
 0x1d5   : > { %v1738_v46 = vpop.permute.xlu0 %1737  ;;  %v1736_v30 = vpop.permute.xlu1 %1735 }
 0x1d6   : > { %v2051_v53 = vsel %vm2037_vm8, %v2018_v12, %v1738_v46  ;;  %v2050_v9 = vsel %vm2037_vm8, %v2017_v39, %v1736_v30  ;;  %v4538_v39 = vld [vmem:[#allocation38_spill] sm:$0xff]  ;;  %v4539_v12 = vld [vmem:[#allocation55_spill] sm:$0xff] }
 0x1d7   : > { %1505 = vrot.lane.b32.xlu0 %v712_v3, %s2916_s28  ;;  %1377 = vrot.lane.b32.xlu1 %v774_v20, %s2915_s25  ;;  %v1857_v46 = vsel %vm1839_vm2, %v1824_v10, %v4538_v39 }
 0x1d8   : > { %2825 = vmatprep.mubr.msk.f32.mxu0 %vm2086_vm9, %v2050_v9 }
 0x1d9   : > { %2826 = vmatmul.mubr.msk.f32.gmra.mxu0 %vm2086_vm9, %v2051_v53  ;;  %v1484_v21 = vpop.permute.xlu0 %1483  ;;  %v1356_v22 = vpop.permute.xlu1 %1355  ;;  %v4540_v53 = vld [vmem:[#allocation60_spill] sm:$0xff] }
 0x1da   : > { %v1953_v6 = vsel %vm1938_vm5, %v1920_v7, %v1356_v22  ;;  %v1890_v9 = vsel %vm1872_vm3, %v1857_v46, %v4540_v53  ;;  %v4541_v7 = vld [vmem:[#allocation11_spill] sm:$0xff] }
 0x1db   : > { %1125 = vrot.lane.b32.xlu0 %v712_v3, %s2913_s10  ;;  %1123 = vrot.lane.b32.xlu1 %v711_v8, %s2913_s10  ;;  %v1986_v15 = vsel %vm1971_vm6, %v1953_v6, %v1484_v21  ;;  %v1823_v8 = vsel %vm405_vm0, %v2894_v16, %v4535_v31  ;;  %v4542_v6 = vld [vmem:[#allocation17_spill] sm:$0xff] }
 0x1dc   : > { %v1856_v3 = vsel %vm1839_vm2, %v1823_v8, %v4537_v49  ;;  %v780_v49 = vld [vmem:[#allocation2 + $0x18a] sm:$0xff] }
 0x1dd   : > { %v1612_v51 = vpop.permute.xlu0 %1611  ;;  %v1358_v57 = vpop.permute.xlu1 %1357  ;;  %v1889_v30 = vsel %vm1872_vm3, %v1856_v3, %v4539_v12  ;;  %v779_v3 = vld [vmem:[#allocation2 + $0x182] sm:$0xff]  ;;  %v717_v12 = vld [vmem:[#allocation2 + $0x198] sm:$0xff] }
 0x1de   : > { %v1954_v19 = vsel %vm1938_vm5, %v1921_v36, %v1358_v57  ;;  %v2019_v55 = vsel %vm2004_vm7, %v1986_v15, %v1612_v51  ;;  %v2896_v36 = vld [vmem:[#allocation2 + $0xd8] sm:$0xff] }
 0x1df   : > { %1633 = vrot.lane.b32.xlu0 %v744_v34, %s2917_s11  ;;  %1631 = vrot.lane.b32.xlu1 %v743_v38, %s2917_s11 }
 0x1e1   : > { %v1614_v58 = vpop.permute.xlu0 %1613  ;;  %v1486_v48 = vpop.permute.xlu1 %1485 }
 0x1e2   : > { %v1987_v28 = vsel %vm1971_vm6, %v1954_v19, %v1486_v48 }
 0x1e3   : > { %1253 = vrot.lane.b32.xlu0 %v744_v34, %s2914_s17  ;;  %1251 = vrot.lane.b32.xlu1 %v743_v38, %s2914_s17  ;;  %v2020_v23 = vsel %vm2004_vm7, %v1987_v28, %v1614_v58  ;;  %v4543_v28 = vld [vmem:[#allocation35_spill] sm:$0xff] }
 0x1e5   : > { %v1234_v20 = vpop.permute.xlu0 %1233  ;;  %v1232_v29 = vpop.permute.xlu1 %1231 }
 0x1e6   : > { %v1923_v21 = vsel %vm1905_vm4, %v1890_v9, %v1234_v20  ;;  %v1922_v22 = vsel %vm1905_vm4, %v1889_v30, %v1232_v29  ;;  %v749_v9 = vld [vmem:[#allocation2 + $0x199] sm:$0xff] }
 0x1e7   : > { %1761 = vrot.lane.b32.xlu0 %v776_v11, %s2918_s14  ;;  %1759 = vrot.lane.b32.xlu1 %v775_v13, %s2918_s14 }
 0x1e9   : > { %v1742_v37 = vpop.permute.xlu0 %1741  ;;  %v1740_v50 = vpop.permute.xlu1 %1739 }
 0x1ea   : > { %v2053_v40 = vsel %vm2037_vm8, %v2020_v23, %v1742_v37  ;;  %v2052_v25 = vsel %vm2037_vm8, %v2019_v55, %v1740_v50  ;;  %v4545_v37 = vld [vmem:[#allocation57_spill] sm:$0xff] }
 0x1eb   : > { %1507 = vrot.lane.b32.xlu0 %v713_v26, %s2916_s28  ;;  %1379 = vrot.lane.b32.xlu1 %v775_v13, %s2915_s25  ;;  %v2897_v13 = vld [vmem:[#allocation2 + $0xe0] sm:$0xff] }
 0x1ec   : > { %2828 = vmatprep.mubr.msk.f32.mxu0 %vm2086_vm9, %v2052_v25  ;;  %v1826_v19 = vsel %vm405_vm0, %v2897_v13, %v4542_v6  ;;  %v4546_v50 = vld [vmem:[#allocation61_spill] sm:$0xff] }
 0x1ed   : > { %2829 = vmatmul.mubr.msk.f32.gmra.mxu0 %vm2086_vm9, %v2053_v40  ;;  %v1488_v61 = vpop.permute.xlu0 %1487  ;;  %v1360_v33 = vpop.permute.xlu1 %1359 }
 0x1ee   : > { %v1955_v34 = vsel %vm1938_vm5, %v1922_v22, %v1360_v33  ;;  %v747_v33 = vld [vmem:[#allocation2 + $0x181] sm:$0xff] }
 0x1ef   : > { %1509 = vrot.lane.b32.xlu0 %v714_v35, %s2916_s28  ;;  %1381 = vrot.lane.b32.xlu1 %v776_v11, %s2915_s25  ;;  %v1988_v32 = vsel %vm1971_vm6, %v1955_v34, %v1488_v61  ;;  %v1825_v11 = vsel %vm405_vm0, %v2896_v36, %v4541_v7  ;;  %v748_v61 = vld [vmem:[#allocation2 + $0x189] sm:$0xff]  ;;  %v4109_v34 = vld [vmem:[%s4447_s4] ss:$0 sm:$0xff] }
 0x1f0   : > { %v1858_v15 = vsel %vm1839_vm2, %v1825_v11, %v4543_v28  ;;  %v4552_v36 = vld [vmem:[#allocation59_spill] sm:$0xff] }
 0x1f1   : > { %v1616_v59 = vpop.permute.xlu0 %1615  ;;  %v1362_v42 = vpop.permute.xlu1 %1361  ;;  %v1891_v23 = vsel %vm1872_vm3, %v1858_v15, %v4545_v37 }
 0x1f2   : > { %v1956_v38 = vsel %vm1938_vm5, %v1923_v21, %v1362_v42  ;;  %v2021_v41 = vsel %vm2004_vm7, %v1988_v32, %v1616_v59 }
 0x1f3   : > { %1129 = vrot.lane.b32.xlu0 %v714_v35, %s2913_s10  ;;  %1127 = vrot.lane.b32.xlu1 %v713_v26, %s2913_s10  ;;  %v4544_v26 = vld [vmem:[#allocation40_spill] sm:$0xff] }
 0x1f4   : > { %v1859_v55 = vsel %vm1839_vm2, %v1826_v19, %v4544_v26  ;;  %v750_v19 = vld [vmem:[#allocation2 + $0x1a1] sm:$0xff] }
 0x1f5   : > { %v1618_v63 = vpop.permute.xlu0 %1617  ;;  %v1490_v2 = vpop.permute.xlu1 %1489  ;;  %v1892_v40 = vsel %vm1872_vm3, %v1859_v55, %v4546_v50 }
 0x1f6   : > { %v1989_v0 = vsel %vm1971_vm6, %v1956_v38, %v1490_v2  ;;  %v781_v38 = vld [vmem:[#allocation2 + $0x19a] sm:$0xff] }
 0x1f7   : > { %1637 = vrot.lane.b32.xlu0 %v746_v54, %s2917_s11  ;;  %1635 = vrot.lane.b32.xlu1 %v745_v44, %s2917_s11  ;;  %v2022_v58 = vsel %vm2004_vm7, %v1989_v0, %v1618_v63  ;;  %v4547_v0 = vld [vmem:[#allocation19_spill] sm:$0xff] }
 0x1f9   : > { %v1238_v51 = vpop.permute.xlu0 %1237  ;;  %v1236_v57 = vpop.permute.xlu1 %1235 }
 0x1fa   : > { %v1925_v25 = vsel %vm1905_vm4, %v1892_v40, %v1238_v51  ;;  %v1924_v35 = vsel %vm1905_vm4, %v1891_v23, %v1236_v57  ;;  %v718_v51 = vld [vmem:[#allocation2 + $0x1a0] sm:$0xff]  ;;  %v2898_v57 = vld [vmem:[#allocation2 + $0xf8] sm:$0xff] }
 0x1fb   : > { %1257 = vrot.lane.b32.xlu0 %v746_v54, %s2914_s17  ;;  %1255 = vrot.lane.b32.xlu1 %v745_v44, %s2914_s17  ;;  %v1828_v32 = vsel %vm405_vm0, %v2898_v57, %v4547_v0 }
 0x1fd   : > { %v1746_v43 = vpop.permute.xlu0 %1745  ;;  %v1744_v48 = vpop.permute.xlu1 %1743 }
 0x1fe   : > { %v2055_v17 = vsel %vm2037_vm8, %v2022_v58, %v1746_v43  ;;  %v2054_v1 = vsel %vm2037_vm8, %v2021_v41, %v1744_v48  ;;  %v2899_v41 = vld [vmem:[#allocation2 + $0xf0] sm:$0xff]  ;;  %v4548_v43 = vld [vmem:[#allocation13_spill] sm:$0xff]  ;;  %v4549_v48 = vld [vmem:[#allocation42_spill] sm:$0xff] }
 0x1ff   : > { %1765 = vrot.lane.b32.xlu0 %v778_v60, %s2918_s14  ;;  %1763 = vrot.lane.b32.xlu1 %v777_v27, %s2918_s14  ;;  %v1827_v58 = vsel %vm405_vm0, %v2899_v41, %v4548_v43 }
 0x200   : > { %2831 = vmatprep.mubr.msk.f32.mxu1 %vm2086_vm9, %v2054_v1 }
 0x201   : > { %2832 = vmatmul.mubr.msk.f32.vlgmr.msra.gmra.mxu1 %vm2086_vm9, %v2055_v17  ;;  %v1492_v5 = vpop.permute.xlu0 %1491  ;;  %v1364_v62 = vpop.permute.xlu1 %1363  ;;  %v1861_v17 = vsel %vm1839_vm2, %v1828_v32, %v4549_v48  ;;  %v4555_v32 = vld [vmem:[#allocation44_spill] sm:$0xff]  ;;  %v4556_v48 = vld [vmem:[#allocation39_spill] sm:$0xff] }
 0x202   : > { %v1957_v59 = vsel %vm1938_vm5, %v1924_v35, %v1364_v62 }
 0x203   : > { %1511 = vrot.lane.b32.xlu0 %v715_v45, %s2916_s28  ;;  %1383 = vrot.lane.b32.xlu1 %v777_v27, %s2915_s25  ;;  %v1990_v31 = vsel %vm1971_vm6, %v1957_v59, %v1492_v5  ;;  %v4550_v5 = vld [vmem:[#allocation37_spill] sm:$0xff] }
 0x204   : > { %v1860_v62 = vsel %vm1839_vm2, %v1827_v58, %v4550_v5 }
 0x205   : > { %v1620_v14 = vpop.permute.xlu0 %1619  ;;  %v1366_v47 = vpop.permute.xlu1 %1365  ;;  %v1893_v7 = vsel %vm1872_vm3, %v1860_v62, %v4552_v36 }
 0x206   : > { %v1958_v42 = vsel %vm1938_vm5, %v1925_v25, %v1366_v47  ;;  %v2023_v8 = vsel %vm2004_vm7, %v1990_v31, %v1620_v14 }
 0x207   : > { %1513 = vrot.lane.b32.xlu0 %v716_v4, %s2916_s28  ;;  %1385 = vrot.lane.b32.xlu1 %v778_v60, %s2915_s25 }
 0x209   : > { %v1622_v20 = vpop.permute.xlu0 %1621  ;;  %v1494_v29 = vpop.permute.xlu1 %1493 }
 0x20a   : > { %v1991_v16 = vsel %vm1971_vm6, %v1958_v42, %v1494_v29 }
 0x20b   : > { %1133 = vrot.lane.b32.xlu0 %v716_v4, %s2913_s10  ;;  %1131 = vrot.lane.b32.xlu1 %v715_v45, %s2913_s10  ;;  %v2024_v52 = vsel %vm2004_vm7, %v1991_v16, %v1622_v20  ;;  %v4551_v4 = vld [vmem:[#allocation62_spill] sm:$0xff] }
 0x20c   : > { %v1894_v14 = vsel %vm1872_vm3, %v1861_v17, %v4551_v4 }
 0x20d   : > { %v1242_v54 = vpop.permute.xlu0 %1241  ;;  %v1240_v44 = vpop.permute.xlu1 %1239 }
 0x20e   : > { %v1927_v11 = vsel %vm1905_vm4, %v1894_v14, %v1242_v54  ;;  %v1926_v20 = vsel %vm1905_vm4, %v1893_v7, %v1240_v44 }
 0x20f   : > { %1641 = vrot.lane.b32.xlu0 %v748_v61, %s2917_s11  ;;  %1639 = vrot.lane.b32.xlu1 %v747_v33, %s2917_s11 }
 0x211   : > { %v1750_v56 = vpop.permute.xlu0 %1749  ;;  %v1748_v10 = vpop.permute.xlu1 %1747 }
 0x212   : > { %v2057_v63 = vsel %vm2037_vm8, %v2024_v52, %v1750_v56  ;;  %v2056_v2 = vsel %vm2037_vm8, %v2023_v8, %v1748_v10 }
 0x213   : > { %1261 = vrot.lane.b32.xlu0 %v748_v61, %s2914_s17  ;;  %1259 = vrot.lane.b32.xlu1 %v747_v33, %s2914_s17  ;;  %v782_v61 = vld [vmem:[#allocation2 + $0x1a2] sm:$0xff] }
 0x214   : > { %2834 = vmatprep.mubr.msk.f32.mxu1 %vm2086_vm9, %v2056_v2 }
 0x215   : > { %2835 = vmatmul.mubr.msk.f32.gmra.mxu1 %vm2086_vm9, %v2057_v63  ;;  %v1496_v39 = vpop.permute.xlu0 %1495  ;;  %v1368_v46 = vpop.permute.xlu1 %1367 }
 0x216   : > { %v1959_v15 = vsel %vm1938_vm5, %v1926_v20, %v1368_v46 }
 0x217   : > { %1769 = vrot.lane.b32.xlu0 %v780_v49, %s2918_s14  ;;  %1767 = vrot.lane.b32.xlu1 %v779_v3, %s2918_s14  ;;  %v1992_v59 = vsel %vm1971_vm6, %v1959_v15, %v1496_v39 }
 0x219   : > { %v1498_v30 = vpop.permute.xlu0 %1497  ;;  %v1370_v53 = vpop.permute.xlu1 %1369 }
 0x21a   : > { %v1960_v29 = vsel %vm1938_vm5, %v1927_v11, %v1370_v53  ;;  %v4553_v53 = vld [vmem:[#allocation16_spill] sm:$0xff] }
 0x21b   : > { %1515 = vrot.lane.b32.xlu0 %v717_v12, %s2916_s28  ;;  %1387 = vrot.lane.b32.xlu1 %v779_v3, %s2915_s25  ;;  %v1993_v25 = vsel %vm1971_vm6, %v1960_v29, %v1498_v30  ;;  %v2900_v30 = vld [vmem:[#allocation2 + $0x108] sm:$0xff] }
 0x21d   : > { %v4100_v21 = vpop.permute.xlu0 %1117  ;;  %v4102_v22 = vpop.permute.xlu1 %1115 }
 0x21f   : > { %1643 = vrot.lane.b32.xlu0 %v749_v9, %s2917_s11  ;;  %1389 = vrot.lane.b32.xlu1 %v780_v49, %s2915_s25  ;;  %v1829_v9 = vsel %vm405_vm0, %v2900_v30, %v4553_v53  ;;  %v4558_v30 = vld [vmem:[#allocation18_spill] sm:$0xff] }
 0x220   : > { %v1862_v17 = vsel %vm1839_vm2, %v1829_v9, %v4556_v48  ;;  %v1831_v53 = vsel %vm405_vm0, %v3880_v24, %v4558_v30  ;;  %v4559_v9 = vld [vmem:[#allocation46_spill] sm:$0xff] }
 0x221   : > { %v2809_v60 = vpop.f32.mrf.mxu0  ;;  %v1626_v27 = vpop.permute.xlu0 %1625  ;;  %v1895_v5 = vsel %vm1872_vm3, %v1862_v17, %v4102_v22 }
 0x222   : > { %v2255_v1 = vadd.f32 %v2809_v60, %v4109_v34  ;;  %v1624_v45 = vpop.permute.xlu1 %1623  ;;  %v2026_v33 = vsel %vm2004_vm7, %v1993_v25, %v1626_v27 }
 0x223   : > { %v2249_v47 = vpop.f32.mrf.mxu0  ;;  %1771 = vrot.lane.b32.xlu0 %v781_v38, %s2918_s14  ;;  %1517 = vrot.lane.b32.xlu1 %v718_v51, %s2916_s28  ;;  %v2025_v44 = vsel %vm2004_vm7, %v1992_v59, %v1624_v45  ;;  %v2901_v38 = vld [vmem:[#allocation2 + $0x110] sm:$0xff]  ;;  %v4554_v51 = vld [vmem:[#allocation21_spill] sm:$0xff] }
 0x224   : > { %2409 = vst.msk [vmem:[%s4118_s23 + $0x8] sm:$0xff] %vm405_vm0, %v2255_v1  ;;  %v2510_v13 = vmul.f32 %v2255_v1, %v2255_v1  ;;  %v2250_v6 = vadd.f32 %v4109_v34, %v2249_v47  ;;  %v2441_v26 = vsel %vm405_vm0, %v2255_v1, 0.0  ;;  %v1830_v57 = vsel %vm405_vm0, %v2901_v38, %v4554_v51 }
 0x225   : > { %v1246_v28 = vpop.permute.xlu0 %1245  ;;  %v1863_v60 = vsel %vm1839_vm2, %v1830_v57, %v4555_v32 }
 0x226   : > { %2408 = vst.msk [vmem:[%s4118_s23] sm:$0xff] %vm405_vm0, %v2250_v6  ;;  %v2440_v55 = vsel %vm405_vm0, %v2250_v6, 0.0  ;;  %v2509_v37 = vmul.f32 %v2250_v6, %v2250_v6  ;;  %v1244_v23 = vpop.permute.xlu1 %1243  ;;  %v2542_v40 = vsel %vm405_vm0, %v2510_v13, 0.0  ;;  %v1896_v1 = vsel %vm1872_vm3, %v1863_v60, %v4100_v21 }
 0x227   : > { %v2442_v50 = vadd.f32 %v2441_v26, %v2440_v55  ;;  %1645 = vrot.lane.b32.xlu1 %v750_v19, %s2917_s11  ;;  %v1929_v62 = vsel %vm1905_vm4, %v1896_v1, %v1246_v28  ;;  %v1928_v47 = vsel %vm1905_vm4, %v1895_v5, %v1244_v23 }
 0x228   : > { %v2541_v35 = vsel %vm405_vm0, %v2509_v37, 0.0 }
 0x229   : > { %v2543_v42 = vadd.f32 %v2542_v40, %v2541_v35  ;;  %v1754_v54 = vpop.permute.xlu0 %1753 }
 0x22a   : > { %v2059_v16 = vsel %vm2037_vm8, %v2026_v33, %v1754_v54  ;;  %v1752_v31 = vpop.permute.xlu1 %1751 }
 0x22b   : > { %v2058_v8 = vsel %vm2037_vm8, %v2025_v44, %v1752_v31  ;;  %1773 = vrot.lane.b32.xlu1 %v782_v61, %s2918_s14 }
 0x22c   : > { %2837 = vmatprep.mubr.msk.f32.mxu1 %vm2086_vm9, %v2058_v8 }
 0x22d   : > { %2838 = vmatmul.mubr.msk.f32.gmra.mxu1 %vm2086_vm9, %v2059_v16  ;;  %v1500_v56 = vpop.permute.xlu0 %1499 }
 0x22e   : > { %v1372_v52 = vpop.permute.xlu1 %1371 }
 0x22f   : > { %v1961_v6 = vsel %vm1938_vm5, %v1928_v47, %v1372_v52 }
 0x230   : > { %v1994_v28 = vsel %vm1971_vm6, %v1961_v6, %v1500_v56 }
 0x231   : > { %v1502_v10 = vpop.permute.xlu0 %1501 }
 0x232   : > { %v1374_v63 = vpop.permute.xlu1 %1373 }
 0x233   : > { %v1962_v36 = vsel %vm1938_vm5, %v1929_v62, %v1374_v63  ;;  %v4557_v63 = vld [vmem:[#allocation23_spill] sm:$0xff] }
 0x234   : > { %v1995_v22 = vsel %vm1971_vm6, %v1962_v36, %v1502_v10 }
 0x235   : > { %v2812_v2 = vpop.f32.mrf.mxu0  ;;  %v4156_v49 = vpop.permute.xlu0 %1121 }
 0x236   : > { %v2265_v3 = vadd.f32 %v2812_v2, %v4109_v34  ;;  %v4159_v39 = vpop.permute.xlu1 %1119  ;;  %v1832_v2 = vsel %vm405_vm0, %v3891_v18, %v4557_v63 }
 0x237   : > { %v2259_v46 = vpop.f32.mrf.mxu0  ;;  %v1865_v38 = vsel %vm1839_vm2, %v1832_v2, %v4559_v9 }
 0x238   : > { %2411 = vst.msk [vmem:[%s4118_s23 + $0x18] sm:$0xff] %vm405_vm0, %v2265_v3  ;;  %v2260_v12 = vadd.f32 %v4109_v34, %v2259_v46  ;;  %v2512_v27 = vmul.f32 %v2265_v3, %v2265_v3  ;;  %v2445_v4 = vsel %vm405_vm0, %v2265_v3, 0.0  ;;  %v1898_v60 = vsel %vm1872_vm3, %v1865_v38, %v4156_v49 }
 0x239   : > { %v1630_v0 = vpop.permute.xlu0 %1629 }
 0x23a   : > { %2410 = vst.msk [vmem:[%s4118_s23 + $0x10] sm:$0xff] %vm405_vm0, %v2260_v12  ;;  %v2443_v41 = vsel %vm405_vm0, %v2260_v12, 0.0  ;;  %v2511_v43 = vmul.f32 %v2260_v12, %v2260_v12  ;;  %v1628_v58 = vpop.permute.xlu1 %1627  ;;  %v2546_v21 = vsel %vm405_vm0, %v2512_v27, 0.0  ;;  %v2028_v29 = vsel %vm2004_vm7, %v1995_v22, %v1630_v0  ;;  %v4560_v0 = vld [vmem:[#allocation41_spill] sm:$0xff] }
 0x23b   : > { %v2444_v45 = vadd.f32 %v2443_v41, %v2442_v50  ;;  %v2027_v26 = vsel %vm2004_vm7, %v1994_v28, %v1628_v58  ;;  %v1864_v32 = vsel %vm1839_vm2, %v1831_v53, %v4560_v0 }
 0x23c   : > { %v2544_v14 = vsel %vm405_vm0, %v2511_v43, 0.0  ;;  %v1897_v27 = vsel %vm1872_vm3, %v1864_v32, %v4159_v39 }
 0x23d   : > { %v2545_v7 = vadd.f32 %v2544_v14, %v2543_v42  ;;  %v1250_v11 = vpop.permute.xlu0 %1249  ;;  %v2446_v13 = vadd.f32 %v2445_v4, %v2444_v45 }
 0x23e   : > { %v1248_v19 = vpop.permute.xlu1 %1247  ;;  %v1931_v41 = vsel %vm1905_vm4, %v1898_v60, %v1250_v11 }
 0x23f   : > { %v2547_v20 = vadd.f32 %v2546_v21, %v2545_v7  ;;  %v1930_v24 = vsel %vm1905_vm4, %v1897_v27, %v1248_v19 }
 0x241   : > { %v1758_v15 = vpop.permute.xlu0 %1757 }
 0x242   : > { %v2061_v55 = vsel %vm2037_vm8, %v2028_v29, %v1758_v15  ;;  %v1756_v37 = vpop.permute.xlu1 %1755 }
 0x243   : > { %v2060_v23 = vsel %vm2037_vm8, %v2027_v26, %v1756_v37 }
 0x244   : > { %2840 = vmatprep.mubr.msk.f32.mxu1 %vm2086_vm9, %v2060_v23 }
 0x245   : > { %2841 = vmatmul.mubr.msk.f32.gmra.mxu1 %vm2086_vm9, %v2061_v55  ;;  %v1504_v50 = vpop.permute.xlu0 %1503 }
 0x246   : > { %v1376_v40 = vpop.permute.xlu1 %1375 }
 0x247   : > { %v1963_v48 = vsel %vm1938_vm5, %v1930_v24, %v1376_v40 }
 0x248   : > { %v1996_v49 = vsel %vm1971_vm6, %v1963_v48, %v1504_v50  ;;  %v521_v50 = vld [vmem:[#allocation2 + $0x140] sm:$0xff] }
 0x249   : > { %v2815_v25 = vpop.f32.mrf.mxu0  ;;  %v1506_v35 = vpop.permute.xlu0 %1505 }
 0x24a   : > { %v2275_v61 = vadd.f32 %v2815_v25, %v4109_v34  ;;  %v1378_v33 = vpop.permute.xlu1 %1377 }
 0x24b   : > { %v2269_v59 = vpop.f32.mrf.mxu0  ;;  %v1964_v43 = vsel %vm1938_vm5, %v1931_v41, %v1378_v33  ;;  %v4561_v33 = vld [vmem:[#allocation25_spill] sm:$0xff] }
 0x24c   : > { %2413 = vst.msk [vmem:[%s4118_s23 + $0x28] sm:$0xff] %vm405_vm0, %v2275_v61  ;;  %v2270_v42 = vadd.f32 %v4109_v34, %v2269_v59  ;;  %v2514_v44 = vmul.f32 %v2275_v61, %v2275_v61  ;;  %v2449_v52 = vsel %vm405_vm0, %v2275_v61, 0.0  ;;  %v1997_v1 = vsel %vm1971_vm6, %v1964_v43, %v1506_v35  ;;  %v520_v35 = vld [vmem:[#allocation2 + $0x138] sm:$0xff] }
 0x24d   : > { %v4198_v54 = vpop.permute.xlu0 %1125  ;;  %v1834_v59 = vsel %vm405_vm0, %v521_v50, %v4561_v33 }
 0x24e   : > { %2412 = vst.msk [vmem:[%s4118_s23 + $0x20] sm:$0xff] %vm405_vm0, %v2270_v42  ;;  %v2447_v16 = vsel %vm405_vm0, %v2270_v42, 0.0  ;;  %v2513_v31 = vmul.f32 %v2270_v42, %v2270_v42  ;;  %v4203_v8 = vpop.permute.xlu1 %1123  ;;  %v2550_v51 = vsel %vm405_vm0, %v2514_v44, 0.0  ;;  %v4562_v44 = vld [vmem:[#allocation20_spill] sm:$0xff] }
 0x24f   : > { %v2448_v56 = vadd.f32 %v2447_v16, %v2446_v13  ;;  %v1833_v16 = vsel %vm405_vm0, %v520_v35, %v4562_v44 }
 0x250   : > { %v2548_v10 = vsel %vm405_vm0, %v2513_v31, 0.0  ;;  %v4563_v31 = vld [vmem:[#allocation48_spill] sm:$0xff] }
 0x251   : > { %v2549_v3 = vadd.f32 %v2548_v10, %v2547_v20  ;;  %v1634_v46 = vpop.permute.xlu0 %1633  ;;  %v2450_v12 = vadd.f32 %v2449_v52, %v2448_v56  ;;  %v1867_v56 = vsel %vm1839_vm2, %v1834_v59, %v4563_v31  ;;  %v4564_v10 = vld [vmem:[#allocation43_spill] sm:$0xff] }
 0x252   : > { %v1632_v57 = vpop.permute.xlu1 %1631  ;;  %v2030_v45 = vsel %vm2004_vm7, %v1997_v1, %v1634_v46  ;;  %v1866_v63 = vsel %vm1839_vm2, %v1833_v16, %v4564_v10  ;;  %v1900_v2 = vsel %vm1872_vm3, %v1867_v56, %v4198_v54 }
 0x253   : > { %v2551_v18 = vadd.f32 %v2550_v51, %v2549_v3  ;;  %v2029_v39 = vsel %vm2004_vm7, %v1996_v49, %v1632_v57  ;;  %v1899_v3 = vsel %vm1872_vm3, %v1866_v63, %v4203_v8 }
 0x255   : > { %v1254_v58 = vpop.permute.xlu0 %1253 }
 0x256   : > { %v1252_v17 = vpop.permute.xlu1 %1251  ;;  %v1933_v46 = vsel %vm1905_vm4, %v1900_v2, %v1254_v58 }
 0x259   : > { %v1762_v5 = vpop.permute.xlu0 %1761 }
 0x25a   : > { %v2063_v62 = vsel %vm2037_vm8, %v2030_v45, %v1762_v5  ;;  %v1760_v4 = vpop.permute.xlu1 %1759 }
 0x25b   : > { %v2062_v14 = vsel %vm2037_vm8, %v2029_v39, %v1760_v4 }
 0x25c   : > { %2843 = vmatprep.mubr.msk.f32.mxu1 %vm2086_vm9, %v2062_v14 }
 0x25d   : > { %v2818_v47 = vpop.f32.mrf.mxu0  ;;  %2844 = vmatmul.mubr.msk.f32.gmra.mxu1 %vm2086_vm9, %v2063_v62  ;;  %v1508_v36 = vpop.permute.xlu0 %1507 }
 0x25e   : > { %v2285_v7 = vadd.f32 %v2818_v47, %v4109_v34  ;;  %v1380_v11 = vpop.permute.xlu1 %1379 }
 0x25f   : > { %v2279_v13 = vpop.f32.mrf.mxu0 }
 0x260   : > { %2415 = vst.msk [vmem:[%s4118_s23 + $0x38] sm:$0xff] %vm405_vm0, %v2285_v7  ;;  %v2280_v6 = vadd.f32 %v4109_v34, %v2279_v13  ;;  %v2516_v19 = vmul.f32 %v2285_v7, %v2285_v7  ;;  %v2453_v15 = vsel %vm405_vm0, %v2285_v7, 0.0  ;;  %v522_v13 = vld [vmem:[#allocation2 + $0x150] sm:$0xff] }
 0x261   : > { %v1510_v21 = vpop.permute.xlu0 %1509 }
 0x262   : > { %2414 = vst.msk [vmem:[%s4118_s23 + $0x30] sm:$0xff] %vm405_vm0, %v2280_v6  ;;  %v2451_v20 = vsel %vm405_vm0, %v2280_v6, 0.0  ;;  %v2515_v22 = vmul.f32 %v2280_v6, %v2280_v6  ;;  %v1382_v29 = vpop.permute.xlu1 %1381  ;;  %v2554_v40 = vsel %vm405_vm0, %v2516_v19, 0.0  ;;  %v523_v6 = vld [vmem:[#allocation2 + $0x158] sm:$0xff]  ;;  %v4565_v19 = vld [vmem:[#allocation22_spill] sm:$0xff] }
 0x263   : > { %v2452_v28 = vadd.f32 %v2451_v20, %v2450_v12  ;;  %v1932_v12 = vsel %vm1905_vm4, %v1899_v3, %v1252_v17  ;;  %v1966_v30 = vsel %vm1938_vm5, %v1933_v46, %v1382_v29  ;;  %v1835_v20 = vsel %vm405_vm0, %v522_v13, %v4565_v19  ;;  %v524_v46 = vld [vmem:[#allocation2 + $0x168] sm:$0xff] }
 0x264   : > { %v2552_v26 = vsel %vm405_vm0, %v2515_v22, 0.0  ;;  %v1965_v9 = vsel %vm1938_vm5, %v1932_v12, %v1380_v11  ;;  %v1999_v51 = vsel %vm1971_vm6, %v1966_v30, %v1510_v21  ;;  %v4566_v22 = vld [vmem:[#allocation26_spill] sm:$0xff] }
 0x265   : > { %v2553_v55 = vadd.f32 %v2552_v26, %v2551_v18  ;;  %v1130_v37 = vpop.permute.xlu0 %1129  ;;  %v2454_v23 = vadd.f32 %v2453_v15, %v2452_v28  ;;  %v1998_v54 = vsel %vm1971_vm6, %v1965_v9, %v1508_v36  ;;  %v1836_v29 = vsel %vm405_vm0, %v523_v6, %v4566_v22  ;;  %v4567_v15 = vld [vmem:[#allocation45_spill] sm:$0xff]  ;;  %v4572_v6 = vld [vmem:[#allocation50_spill] sm:$0xff] }
 0x266   : > { %v1128_v25 = vpop.permute.xlu1 %1127  ;;  %v1868_v26 = vsel %vm1839_vm2, %v1835_v20, %v4567_v15 }
 0x267   : > { %v2555_v61 = vadd.f32 %v2554_v40, %v2553_v55  ;;  %v4568_v55 = vld [vmem:[#allocation49_spill] sm:$0xff]  ;;  %v1901_v35 = vsel %vm1872_vm3, %v1868_v26, %v1128_v25 }
 0x269   : > { %v1638_v42 = vpop.permute.xlu0 %1637 }
 0x26a   : > { %v1636_v52 = vpop.permute.xlu1 %1635  ;;  %v2032_v57 = vsel %vm2004_vm7, %v1999_v51, %v1638_v42 }
 0x26b   : > { %v2031_v32 = vsel %vm2004_vm7, %v1998_v54, %v1636_v52 }
 0x26d   : > { %v1258_v53 = vpop.permute.xlu0 %1257 }
 0x26e   : > { %v1256_v38 = vpop.permute.xlu1 %1255 }
 0x26f   : > { %v1934_v33 = vsel %vm1905_vm4, %v1901_v35, %v1256_v38 }
 0x271   : > { %v2821_v0 = vpop.f32.mrf.mxu0  ;;  %v1766_v8 = vpop.permute.xlu0 %1765 }
 0x272   : > { %v2295_v60 = vadd.f32 %v2821_v0, %v4109_v34  ;;  %v2065_v18 = vsel %vm2037_vm8, %v2032_v57, %v1766_v8  ;;  %v1764_v27 = vpop.permute.xlu1 %1763  ;;  %v4569_v8 = vld [vmem:[#allocation24_spill] sm:$0xff] }
 0x273   : > { %v2064_v41 = vsel %vm2037_vm8, %v2031_v32, %v1764_v27  ;;  %v2289_v24 = vpop.f32.mrf.mxu0  ;;  %v1837_v32 = vsel %vm405_vm0, %v524_v46, %v4569_v8 }
 0x274   : > { %2417 = vst.msk [vmem:[%s4118_s23 + $0x48] sm:$0xff] %vm405_vm0, %v2295_v60  ;;  %v2290_v43 = vadd.f32 %v4109_v34, %v2289_v24  ;;  %2846 = vmatprep.mubr.msk.f32.mxu1 %vm2086_vm9, %v2064_v41  ;;  %v2518_v48 = vmul.f32 %v2295_v60, %v2295_v60  ;;  %v2457_v5 = vsel %vm405_vm0, %v2295_v60, 0.0  ;;  %v4570_v41 = vld [vmem:[#allocation47_spill] sm:$0xff] }
 0x275   : > { %2847 = vmatmul.mubr.msk.f32.gmra.mxu1 %vm2086_vm9, %v2065_v18  ;;  %v1512_v58 = vpop.permute.xlu0 %1511  ;;  %v1870_v24 = vsel %vm1839_vm2, %v1837_v32, %v4570_v41 }
 0x276   : > { %2416 = vst.msk [vmem:[%s4118_s23 + $0x40] sm:$0xff] %vm405_vm0, %v2290_v43  ;;  %v2455_v17 = vsel %vm405_vm0, %v2290_v43, 0.0  ;;  %v2517_v1 = vmul.f32 %v2290_v43, %v2290_v43  ;;  %v1384_v45 = vpop.permute.xlu1 %1383  ;;  %v2558_v47 = vsel %vm405_vm0, %v2518_v48, 0.0 }
 0x277   : > { %v2456_v49 = vadd.f32 %v2455_v17, %v2454_v23  ;;  %v1869_v23 = vsel %vm1839_vm2, %v1836_v29, %v4568_v55  ;;  %v1967_v59 = vsel %vm1938_vm5, %v1934_v33, %v1384_v45 }
 0x278   : > { %v2556_v39 = vsel %vm405_vm0, %v2517_v1, 0.0  ;;  %v1902_v40 = vsel %vm1872_vm3, %v1869_v23, %v1130_v37  ;;  %v2000_v37 = vsel %vm1971_vm6, %v1967_v59, %v1512_v58 }
 0x279   : > { %v2557_v62 = vadd.f32 %v2556_v39, %v2555_v61  ;;  %v1514_v4 = vpop.permute.xlu0 %1513  ;;  %v2458_v14 = vadd.f32 %v2457_v5, %v2456_v49  ;;  %v1935_v61 = vsel %vm1905_vm4, %v1902_v40, %v1258_v53 }
 0x27a   : > { %v1386_v36 = vpop.permute.xlu1 %1385 }
 0x27b   : > { %v2559_v7 = vadd.f32 %v2558_v47, %v2557_v62  ;;  %v1968_v42 = vsel %vm1938_vm5, %v1935_v61, %v1386_v36  ;;  %v525_v62 = vld [vmem:[#allocation2 + $0x170] sm:$0xff] }
 0x27c   : > { %v2001_v10 = vsel %vm1971_vm6, %v1968_v42, %v1514_v4 }
 0x27d   : > { %v4278_v11 = vpop.permute.xlu0 %1133 }
 0x27e   : > { %v1132_v21 = vpop.permute.xlu1 %1131 }
 0x27f   : > { %v1903_v48 = vsel %vm1872_vm3, %v1870_v24, %v1132_v21 }
 0x281   : > { %v1642_v28 = vpop.permute.xlu0 %1641 }
 0x282   : > { %v1640_v50 = vpop.permute.xlu1 %1639  ;;  %v2034_v63 = vsel %vm2004_vm7, %v2001_v10, %v1642_v28 }
 0x283   : > { %v2033_v2 = vsel %vm2004_vm7, %v2000_v37, %v1640_v50 }
 0x285   : > { %v2824_v44 = vpop.f32.mrf.mxu0  ;;  %v1262_v16 = vpop.permute.xlu0 %1261 }
 0x286   : > { %v2305_v31 = vadd.f32 %v2824_v44, %v4109_v34  ;;  %v1260_v56 = vpop.permute.xlu1 %1259 }
 0x287   : > { %v2299_v52 = vpop.f32.mrf.mxu0  ;;  %v1936_v1 = vsel %vm1905_vm4, %v1903_v48, %v1260_v56 }
 0x288   : > { %2419 = vst.msk [vmem:[%s4118_s23 + $0x58] sm:$0xff] %vm405_vm0, %v2305_v31  ;;  %v2300_v25 = vadd.f32 %v4109_v34, %v2299_v52  ;;  %v2520_v12 = vmul.f32 %v2305_v31, %v2305_v31  ;;  %v2461_v54 = vsel %vm405_vm0, %v2305_v31, 0.0 }
 0x289   : > { %v1770_v3 = vpop.permute.xlu0 %1769 }
 0x28a   : > { %2418 = vst.msk [vmem:[%s4118_s23 + $0x50] sm:$0xff] %vm405_vm0, %v2300_v25  ;;  %v2459_v30 = vsel %vm405_vm0, %v2300_v25, 0.0  ;;  %v2519_v53 = vmul.f32 %v2300_v25, %v2300_v25  ;;  %v2067_v9 = vsel %vm2037_vm8, %v2034_v63, %v1770_v3  ;;  %v1768_v38 = vpop.permute.xlu1 %1767  ;;  %v2562_v43 = vsel %vm405_vm0, %v2520_v12, 0.0 }
 0x28b   : > { %v2460_v51 = vadd.f32 %v2459_v30, %v2458_v14  ;;  %v2066_v57 = vsel %vm2037_vm8, %v2033_v2, %v1768_v38 }
 0x28c   : > { %v2560_v0 = vsel %vm405_vm0, %v2519_v53, 0.0  ;;  %2849 = vmatprep.mubr.msk.f32.mxu1 %vm2086_vm9, %v2066_v57 }
 0x28d   : > { %v2561_v60 = vadd.f32 %v2560_v0, %v2559_v7  ;;  %2850 = vmatmul.mubr.msk.f32.gmra.mxu1 %vm2086_vm9, %v2067_v9  ;;  %v1516_v18 = vpop.permute.xlu0 %1515  ;;  %v2462_v27 = vadd.f32 %v2461_v54, %v2460_v51  ;;  %v4571_v7 = vld [vmem:[#allocation27_spill] sm:$0xff] }
 0x28e   : > { %v1388_v58 = vpop.permute.xlu1 %1387  ;;  %v1838_v13 = vsel %vm405_vm0, %v525_v62, %v4571_v7 }
 0x28f   : > { %v2563_v17 = vadd.f32 %v2562_v43, %v2561_v60  ;;  %v1969_v45 = vsel %vm1938_vm5, %v1936_v1, %v1388_v58  ;;  %v1871_v21 = vsel %vm1839_vm2, %v1838_v13, %v4572_v6 }
 0x290   : > { %v2002_v39 = vsel %vm1971_vm6, %v1969_v45, %v1516_v18  ;;  %v1904_v20 = vsel %vm1872_vm3, %v1871_v21, %v4278_v11 }
 0x291   : > { %v1644_v49 = vpop.permute.xlu0 %1643  ;;  %v1937_v28 = vsel %vm1905_vm4, %v1904_v20, %v1262_v16 }
 0x292   : > { %v1390_v5 = vpop.permute.xlu1 %1389  ;;  %v2035_v4 = vsel %vm2004_vm7, %v2002_v39, %v1644_v49 }
 0x293   : > { %v1970_v26 = vsel %vm1938_vm5, %v1937_v28, %v1390_v5 }
 0x295   : > { %v1772_v14 = vpop.permute.xlu0 %1771 }
 0x296   : > { %v2068_v47 = vsel %vm2037_vm8, %v2035_v4, %v1772_v14  ;;  %v1518_v36 = vpop.permute.xlu1 %1517 }
 0x297   : > { %2852 = vmatprep.mubr.msk.f32.mxu1 %vm2086_vm9, %v2068_v47  ;;  %v2003_v23 = vsel %vm1971_vm6, %v1970_v26, %v1518_v36 }
 0x299   : > { %v2827_v19 = vpop.f32.mrf.mxu0 }
 0x29a   : > { %v2315_v22 = vadd.f32 %v2827_v19, %v4109_v34  ;;  %v1646_v29 = vpop.permute.xlu1 %1645 }
 0x29b   : > { %v2309_v15 = vpop.f32.mrf.mxu0  ;;  %v2036_v40 = vsel %vm2004_vm7, %v2003_v23, %v1646_v29 }
 0x29c   : > { %2421 = vst.msk [vmem:[%s4118_s23 + $0x68] sm:$0xff] %vm405_vm0, %v2315_v22  ;;  %v2310_v55 = vadd.f32 %v4109_v34, %v2309_v15  ;;  %v2522_v50 = vmul.f32 %v2315_v22, %v2315_v22  ;;  %v2465_v42 = vsel %vm405_vm0, %v2315_v22, 0.0 }
 0x29e   : > { %2420 = vst.msk [vmem:[%s4118_s23 + $0x60] sm:$0xff] %vm405_vm0, %v2310_v55  ;;  %v2463_v11 = vsel %vm405_vm0, %v2310_v55, 0.0  ;;  %v2521_v35 = vmul.f32 %v2310_v55, %v2310_v55  ;;  %v1774_v61 = vpop.permute.xlu1 %1773  ;;  %v2566_v56 = vsel %vm405_vm0, %v2522_v50, 0.0 }
 0x29f   : > { %v2464_v33 = vadd.f32 %v2463_v11, %v2462_v27  ;;  %v2069_v59 = vsel %vm2037_vm8, %v2036_v40, %v1774_v61 }
 0x2a0   : > { %v2564_v44 = vsel %vm405_vm0, %v2521_v35, 0.0  ;;  %2853 = vmatmul.mubr.msk.f32.gmra.mxu1 %vm2086_vm9, %v2069_v59 }
 0x2a1   : > { %v2565_v16 = vadd.f32 %v2564_v44, %v2563_v17  ;;  %v2466_v31 = vadd.f32 %v2465_v42, %v2464_v33 }
 0x2a3   : > { %v2567_v52 = vadd.f32 %v2566_v56, %v2565_v16 }
 0x2ad   : > { %v2830_v10 = vpop.f32.mrf.mxu0 }
 0x2ae   : > { %v2325_v37 = vadd.f32 %v2830_v10, %v4109_v34 }
 0x2af   : > { %v2319_v25 = vpop.f32.mrf.mxu0 }
 0x2b0   : > { %2423 = vst.msk [vmem:[%s4118_s23 + $0x78] sm:$0xff] %vm405_vm0, %v2325_v37  ;;  %v2320_v63 = vadd.f32 %v4109_v34, %v2319_v25  ;;  %v2524_v2 = vmul.f32 %v2325_v37, %v2325_v37  ;;  %v2469_v30 = vsel %vm405_vm0, %v2325_v37, 0.0 }
 0x2b2   : > { %2422 = vst.msk [vmem:[%s4118_s23 + $0x70] sm:$0xff] %vm405_vm0, %v2320_v63  ;;  %v2467_v3 = vsel %vm405_vm0, %v2320_v63, 0.0  ;;  %v2523_v46 = vmul.f32 %v2320_v63, %v2320_v63  ;;  %v2570_v51 = vsel %vm405_vm0, %v2524_v2, 0.0 }
 0x2b3   : > { %v2468_v12 = vadd.f32 %v2467_v3, %v2466_v31 }
 0x2b4   : > { %v2568_v53 = vsel %vm405_vm0, %v2523_v46, 0.0 }
 0x2b5   : > { %v2569_v9 = vadd.f32 %v2568_v53, %v2567_v52  ;;  %v2470_v38 = vadd.f32 %v2469_v30, %v2468_v12 }
 0x2b7   : > { %v2571_v57 = vadd.f32 %v2570_v51, %v2569_v9 }
 0x2c1   : > { %v2833_v54 = vpop.f32.mrf.mxu1 }
 0x2c2   : > { %v2335_v0 = vadd.f32 %v2833_v54, %v4109_v34 }
 0x2c3   : > { %v2329_v8 = vpop.f32.mrf.mxu1 }
 0x2c4   : > { %2425 = vst.msk [vmem:[%s4118_s23 + $0x88] sm:$0xff] %vm405_vm0, %v2335_v0  ;;  %v2330_v32 = vadd.f32 %v4109_v34, %v2329_v8  ;;  %v2526_v60 = vmul.f32 %v2335_v0, %v2335_v0  ;;  %v2473_v24 = vsel %vm405_vm0, %v2335_v0, 0.0 }
 0x2c6   : > { %2424 = vst.msk [vmem:[%s4118_s23 + $0x80] sm:$0xff] %vm405_vm0, %v2330_v32  ;;  %v2471_v18 = vsel %vm405_vm0, %v2330_v32, 0.0  ;;  %v2525_v27 = vmul.f32 %v2330_v32, %v2330_v32  ;;  %v2574_v17 = vsel %vm405_vm0, %v2526_v60, 0.0 }
 0x2c7   : > { %v2472_v41 = vadd.f32 %v2471_v18, %v2470_v38 }
 0x2c8   : > { %v2572_v43 = vsel %vm405_vm0, %v2525_v27, 0.0 }
 0x2c9   : > { %v2573_v58 = vadd.f32 %v2572_v43, %v2571_v57  ;;  %v2474_v48 = vadd.f32 %v2473_v24, %v2472_v41 }
 0x2cb   : > { %v2575_v1 = vadd.f32 %v2574_v17, %v2573_v58 }
 0x2d5   : > { %v2836_v45 = vpop.f32.mrf.mxu1 }
 0x2d6   : > { %v2345_v49 = vadd.f32 %v2836_v45, %v4109_v34 }
 0x2d7   : > { %v2339_v5 = vpop.f32.mrf.mxu1 }
 0x2d8   : > { %2427 = vst.msk [vmem:[%s4118_s23 + $0x98] sm:$0xff] %vm405_vm0, %v2345_v49  ;;  %v2340_v39 = vadd.f32 %v4109_v34, %v2339_v5  ;;  %v2528_v62 = vmul.f32 %v2345_v49, %v2345_v49  ;;  %v2477_v36 = vsel %vm405_vm0, %v2345_v49, 0.0 }
 0x2da   : > { %2426 = vst.msk [vmem:[%s4118_s23 + $0x90] sm:$0xff] %vm405_vm0, %v2340_v39  ;;  %v2475_v4 = vsel %vm405_vm0, %v2340_v39, 0.0  ;;  %v2527_v14 = vmul.f32 %v2340_v39, %v2340_v39  ;;  %v2578_v21 = vsel %vm405_vm0, %v2528_v62, 0.0 }
 0x2db   : > { %v2476_v47 = vadd.f32 %v2475_v4, %v2474_v48 }
 0x2dc   : > { %v2576_v7 = vsel %vm405_vm0, %v2527_v14, 0.0 }
 0x2dd   : > { %v2577_v13 = vadd.f32 %v2576_v7, %v2575_v1  ;;  %v2478_v6 = vadd.f32 %v2477_v36, %v2476_v47 }
 0x2df   : > { %v2579_v19 = vadd.f32 %v2578_v21, %v2577_v13 }
 0x2ed   : > { %v2839_v20 = vpop.f32.mrf.mxu1 }
 0x2ee   : > { %v2355_v22 = vadd.f32 %v2839_v20, %v4109_v34 }
 0x2ef   : > { %v2349_v29 = vpop.f32.mrf.mxu1 }
 0x2f0   : > { %2429 = vst.msk [vmem:[%s4118_s23 + $0xa8] sm:$0xff] %vm405_vm0, %v2355_v22  ;;  %v2350_v28 = vadd.f32 %v4109_v34, %v2349_v29  ;;  %v2530_v15 = vmul.f32 %v2355_v22, %v2355_v22  ;;  %v2481_v50 = vsel %vm405_vm0, %v2355_v22, 0.0 }
 0x2f2   : > { %2428 = vst.msk [vmem:[%s4118_s23 + $0xa0] sm:$0xff] %vm405_vm0, %v2350_v28  ;;  %v2479_v26 = vsel %vm405_vm0, %v2350_v28, 0.0  ;;  %v2529_v55 = vmul.f32 %v2350_v28, %v2350_v28  ;;  %v2582_v61 = vsel %vm405_vm0, %v2530_v15, 0.0 }
 0x2f3   : > { %v2480_v23 = vadd.f32 %v2479_v26, %v2478_v6 }
 0x2f4   : > { %v2580_v40 = vsel %vm405_vm0, %v2529_v55, 0.0 }
 0x2f5   : > { %v2581_v11 = vadd.f32 %v2580_v40, %v2579_v19  ;;  %v2482_v35 = vadd.f32 %v2481_v50, %v2480_v23 }
 0x2f7   : > { %v2583_v33 = vadd.f32 %v2582_v61, %v2581_v11 }
 0x305   : > { %v2842_v59 = vpop.f32.mrf.mxu1 }
 0x306   : > { %v2365_v42 = vadd.f32 %v2842_v59, %v4109_v34 }
 0x307   : > { %v2359_v44 = vpop.f32.mrf.mxu1 }
 0x308   : > { %2431 = vst.msk [vmem:[%s4118_s23 + $0xb8] sm:$0xff] %vm405_vm0, %v2365_v42  ;;  %v2360_v16 = vadd.f32 %v4109_v34, %v2359_v44  ;;  %v2532_v31 = vmul.f32 %v2365_v42, %v2365_v42  ;;  %v2485_v37 = vsel %vm405_vm0, %v2365_v42, 0.0 }
 0x30a   : > { %2430 = vst.msk [vmem:[%s4118_s23 + $0xb0] sm:$0xff] %vm405_vm0, %v2360_v16  ;;  %v2483_v56 = vsel %vm405_vm0, %v2360_v16, 0.0  ;;  %v2531_v52 = vmul.f32 %v2360_v16, %v2360_v16  ;;  %v2586_v3 = vsel %vm405_vm0, %v2532_v31, 0.0 }
 0x30b   : > { %v2484_v10 = vadd.f32 %v2483_v56, %v2482_v35 }
 0x30c   : > { %v2584_v25 = vsel %vm405_vm0, %v2531_v52, 0.0 }
 0x30d   : > { %v2585_v63 = vadd.f32 %v2584_v25, %v2583_v33  ;;  %v2486_v2 = vadd.f32 %v2485_v37, %v2484_v10 }
 0x30f   : > { %v2587_v46 = vadd.f32 %v2586_v3, %v2585_v63 }
 0x31d   : > { %v2845_v12 = vpop.f32.mrf.mxu1 }
 0x31e   : > { %v2375_v30 = vadd.f32 %v2845_v12, %v4109_v34 }
 0x31f   : > { %v2369_v53 = vpop.f32.mrf.mxu1 }
 0x320   : > { %2433 = vst.msk [vmem:[%s4118_s23 + $0xc8] sm:$0xff] %vm405_vm0, %v2375_v30  ;;  %v2370_v9 = vadd.f32 %v4109_v34, %v2369_v53  ;;  %v2534_v43 = vmul.f32 %v2375_v30, %v2375_v30  ;;  %v2489_v17 = vsel %vm405_vm0, %v2375_v30, 0.0 }
 0x322   : > { %2432 = vst.msk [vmem:[%s4118_s23 + $0xc0] sm:$0xff] %vm405_vm0, %v2370_v9  ;;  %v2533_v32 = vmul.f32 %v2370_v9, %v2370_v9  ;;  %v2487_v27 = vsel %vm405_vm0, %v2370_v9, 0.0  ;;  %v2590_v49 = vsel %vm405_vm0, %v2534_v43, 0.0 }
 0x323   : > { %v2488_v24 = vadd.f32 %v2487_v27, %v2486_v2 }
 0x324   : > { %v2588_v41 = vsel %vm405_vm0, %v2533_v32, 0.0 }
 0x325   : > { %v2589_v48 = vadd.f32 %v2588_v41, %v2587_v46  ;;  %v2490_v45 = vadd.f32 %v2489_v17, %v2488_v24 }
 0x327   : > { %v2591_v62 = vadd.f32 %v2590_v49, %v2589_v48 }
 0x335   : > { %v2848_v38 = vpop.f32.mrf.mxu1 }
 0x336   : > { %v2385_v51 = vadd.f32 %v2848_v38, %v4109_v34 }
 0x337   : > { %v2379_v57 = vpop.f32.mrf.mxu1 }
 0x338   : > { %2435 = vst.msk [vmem:[%s4118_s23 + $0xd8] sm:$0xff] %vm405_vm0, %v2385_v51  ;;  %v2380_v54 = vadd.f32 %v4109_v34, %v2379_v57  ;;  %v2536_v4 = vmul.f32 %v2385_v51, %v2385_v51  ;;  %v2493_v36 = vsel %vm405_vm0, %v2385_v51, 0.0 }
 0x33a   : > { %2434 = vst.msk [vmem:[%s4118_s23 + $0xd0] sm:$0xff] %vm405_vm0, %v2380_v54  ;;  %v2535_v58 = vmul.f32 %v2380_v54, %v2380_v54  ;;  %v2491_v1 = vsel %vm405_vm0, %v2380_v54, 0.0  ;;  %v2594_v6 = vsel %vm405_vm0, %v2536_v4, 0.0 }
 0x33b   : > { %v2492_v39 = vadd.f32 %v2491_v1, %v2490_v45 }
 0x33c   : > { %v2592_v5 = vsel %vm405_vm0, %v2535_v58, 0.0 }
 0x33d   : > { %v2593_v47 = vadd.f32 %v2592_v5, %v2591_v62  ;;  %v2494_v13 = vadd.f32 %v2493_v36, %v2492_v39 }
 0x33f   : > { %v2595_v20 = vadd.f32 %v2594_v6, %v2593_v47 }
 0x34d   : > { %v2851_v0 = vpop.f32.mrf.mxu1 }
 0x34e   : > { %v2395_v8 = vadd.f32 %v2851_v0, %v4109_v34 }
 0x34f   : > { %v2389_v60 = vpop.f32.mrf.mxu1 }
 0x350   : > { %2437 = vst.msk [vmem:[%s4118_s23 + $0xe8] sm:$0xff] %vm405_vm0, %v2395_v8  ;;  %v2390_v18 = vadd.f32 %v4109_v34, %v2389_v60  ;;  %v2538_v29 = vmul.f32 %v2395_v8, %v2395_v8  ;;  %v2497_v55 = vsel %vm405_vm0, %v2395_v8, 0.0 }
 0x352   : > { %2436 = vst.msk [vmem:[%s4118_s23 + $0xe0] sm:$0xff] %vm405_vm0, %v2390_v18  ;;  %v2537_v14 = vmul.f32 %v2390_v18, %v2390_v18  ;;  %v2495_v7 = vsel %vm405_vm0, %v2390_v18, 0.0  ;;  %v2598_v40 = vsel %vm405_vm0, %v2538_v29, 0.0 }
 0x353   : > { %v2496_v19 = vadd.f32 %v2495_v7, %v2494_v13 }
 0x354   : > { %v2596_v21 = vsel %vm405_vm0, %v2537_v14, 0.0 }
 0x355   : > { %v2597_v15 = vadd.f32 %v2596_v21, %v2595_v20  ;;  %v2498_v50 = vadd.f32 %v2497_v55, %v2496_v19 }
 0x357   : > { %v2599_v59 = vadd.f32 %v2598_v40, %v2597_v15 }
 0x360   : > { %v2854_v22 = vpop.f32.mrf.mxu1 }
 0x361   : > { %v2405_v28 = vadd.f32 %v2854_v22, %v4109_v34 }
 0x362   : > { %v2399_v26 = vpop.f32.mrf.mxu1 }
 0x363   : > { %2439 = vst.msk [vmem:[%s4118_s23 + $0xf8] sm:$0xff] %vm405_vm0, %v2405_v28  ;;  %v2400_v23 = vadd.f32 %v4109_v34, %v2399_v26  ;;  %v2540_v11 = vmul.f32 %v2405_v28, %v2405_v28  ;;  %v2501_v42 = vsel %vm405_vm0, %v2405_v28, 0.0 }
 0x365   : > { %2438 = vst.msk [vmem:[%s4118_s23 + $0xf0] sm:$0xff] %vm405_vm0, %v2400_v23  ;;  %v2499_v35 = vsel %vm405_vm0, %v2400_v23, 0.0  ;;  %v2539_v61 = vmul.f32 %v2400_v23, %v2400_v23  ;;  %v2602_v34 = vsel %vm405_vm0, %v2540_v11, 0.0 }
 0x366   : > { %v2500_v33 = vadd.f32 %v2499_v35, %v2498_v50 }
 0x367   : > { %v2600_v44 = vsel %vm405_vm0, %v2539_v61, 0.0 }
 0x368   : > { %v2502_v16 = vadd.f32 %v2501_v42, %v2500_v33  ;;  %v2601_v31 = vadd.f32 %v2600_v44, %v2599_v59 }
 0x36a   : > { %v2503_v56 = vrot.slane %v2502_v16, 4  ;;  %v2603_v52 = vadd.f32 %v2602_v34, %v2601_v31 }
 0x36c   : > { %v2504_v10 = vadd.f32 %v2503_v56, %v2502_v16  ;;  %v2604_v37 = vrot.slane %v2603_v52, 4 }
 0x36e   : > { %v2505_v25 = vrot.slane %v2504_v10, 2  ;;  %v2605_v63 = vadd.f32 %v2604_v37, %v2603_v52 }
 0x370   : > { %v2506_v2 = vadd.f32 %v2505_v25, %v2504_v10  ;;  %v2606_v3 = vrot.slane %v2605_v63, 2 }
 0x372   : > { %v2507_v46 = vrot.slane %v2506_v2, 1  ;;  %v2607_v12 = vadd.f32 %v2606_v3, %v2605_v63 }
 0x374   : > { %v2608_v30 = vrot.slane %v2607_v12, 1  ;;  %v2508_v53 = vadd.f32 %v2507_v46, %v2506_v2 }
 0x376   : > { %v2609_v9 = vadd.f32 %v2608_v30, %v2607_v12 }
 0x378   : > { %v2611_v38 = vsel %vm2610_vm10, %v2508_v53, %v2609_v9 }
 0x379   : > { %2612 = vst.msk [vmem:[%s262_s27] sm:$0x3] %vm408_vm1, %v2611_v38 }
 0x37a PF: > { %s17_s21 = sadd.s32 1, %s2908_s21  }
 0x37b   : > { %p14_p4 = scmp.ge.s32.totalorder %s17_s21, 4  }
 0x37d   :  { %16 = sbr.rel (!%p14_p4) target bundleno = 1 (0x1), region = 84 }

// kernel: decoder_block_forward.3
= control target key start
LH: loop header
LB: loop body
LE: loop exit
PB: predicated region body
PF: predicated region fallthrough
CT: control target
= control target key end

     0   :  { %s5577_s24 = smov 0   ;;  %s9129_s0 = inlined_call_operand.vmem [shape: f32[2,8,8,8], index: 0, kind: input, shape index: {}]   ;;  %s9130_s1 = inlined_call_operand.vmem [shape: f32[2,16,16,4], index: 1, kind: input, shape index: {}]   ;;  %s9131_s2 = inlined_call_operand.vmem [shape: f32[256,64], index: 2, kind: input, shape index: {}]   ;;  %s9132_s3 = inlined_call_operand.vmem [shape: f32[72,8], index: 3, kind: input, shape index: {}]   ;;  %s9133_s4 = inlined_call_operand.vmem [shape: f32[36,8], index: 4, kind: input, shape index: {}]   ;;  %s9134_s5 = inlined_call_operand.vmem [shape: f32[1,8], index: 5, kind: input, shape index: {}]   ;;  %s9135_s6 = inlined_call_operand.vmem [shape: f32[2,256,8], index: 6, kind: output, shape index: {0}]   ;;  %s9136_s7 = inlined_call_operand.vmem [shape: f32[2,2,8], index: 7, kind: output, shape index: {1}]  }
   0x1 LB: > { %s5033_s25 = sadd.s32 4294967295, %s5522_s24   ;;  %p5037_p0 = scmp.ge.s32.totalorder %s5522_s24, 1  ;;  %s5522_s24 = sphi %s5577_s24, %s18_s24  }
   0x2   : > { %p250_p1 = scmp.lt.s32.totalorder %s5522_s24, 3 }
   0x4   : > { %p251_p2 = pnand %p5037_p0, %p250_p1 }
   0x6   : > { %254 = sbr.rel (%p251_p2) target bundleno = 1639 (0x667), region = 44 }
   0xb   : > { %p291_p3 = scmp.lt.s32.totalorder %s5033_s25, 1  ;;  %v318_v0 = vld [vmem:[%s9131_s2] sm:$0xff]  ;;  %vm350_vm0 = vcmask 523264   ;;  %vm672_vm1 = vcmask 64512   ;;  %v9137_v1 = vmov 0.0   ;;  %s5525_s9 = smov 8  }
   0xc   : > { %5282 = vmatprep.mubr.msk.f32.mxu0 %vm350_vm0, %v318_v0  ;;  %673 = vst.msk [vmem:[#allocation2] sm:$0xff] %vm672_vm1, %v9137_v1  ;;  %674 = vst.msk [vmem:[#allocation2 + $0x8] sm:$0xff] %vm672_vm1, %v9137_v1  ;;  %v319_v11 = vld [vmem:[%s9131_s2 + $0x8] sm:$0xff]  ;;  %v320_v12 = vld [vmem:[%s9131_s2 + $0x10] sm:$0xff]  ;;  %vm675_vm2 = vcmask 58368   ;;  %s5526_s12 = smov 16  }
   0xd   : > { %s9726_s25 = smov (!%p291_p3, %s5033_s25), 1  ;;  %677 = vst.msk [vmem:[#allocation2 + $0x18] sm:$0xff] %vm672_vm1, %v9137_v1  ;;  %678 = vst.msk [vmem:[#allocation2 + $0x20] sm:$0xff] %vm672_vm1, %v9137_v1  ;;  %v321_v13 = vld [vmem:[%s9131_s2 + $0x18] sm:$0xff]  ;;  %v322_v14 = vld [vmem:[%s9131_s2 + $0x20] sm:$0xff]  ;;  %s5527_s14 = smov 24  }
   0xe   : > { %680 = vst.msk [vmem:[#allocation2 + $0x30] sm:$0xff] %vm672_vm1, %v9137_v1  ;;  %681 = vst.msk [vmem:[#allocation2 + $0x38] sm:$0xff] %vm672_vm1, %v9137_v1  ;;  %s5145_s28 = sshll.u32 %s9726_s25, 6  ;;  %v323_v15 = vld [vmem:[%s9131_s2 + $0x28] sm:$0xff]  ;;  %v324_v16 = vld [vmem:[%s9131_s2 + $0x30] sm:$0xff]  ;;  %s5528_s15 = smov 32  }
   0xf   : > { %683 = vst.msk [vmem:[#allocation2 + $0x48] sm:$0xff] %vm672_vm1, %v9137_v1  ;;  %684 = vst.msk [vmem:[#allocation2 + $0x50] sm:$0xff] %vm672_vm1, %v9137_v1  ;;  %s295_s8 = scalar_lea.vmem %s9129_s0, %s5145_s28  ;;  %v325_v17 = vld [vmem:[%s9131_s2 + $0x38] sm:$0xff]  ;;  %v326_v18 = vld [vmem:[%s9131_s2 + $0x40] sm:$0xff]  ;;  %s5529_s16 = smov 40   ;;  %vm761_vm3 = vcmask 31744  }
  0x10   : > { %686 = vst.msk [vmem:[#allocation2 + $0x60] sm:$0xff] %vm672_vm1, %v9137_v1  ;;  %687 = vst.msk [vmem:[#allocation2 + $0x68] sm:$0xff] %vm672_vm1, %v9137_v1  ;;  %v317_v2 = vld [vmem:[%s295_s8 + $0x38] sm:$0xff]  ;;  %v316_v3 = vld [vmem:[%s295_s8 + $0x30] sm:$0xff]  ;;  %s5530_s17 = smov 48   ;;  %s5146_s18 = sshll.u32 %s9726_s25, 8 }
  0x11   : > { %689 = vst.msk [vmem:[#allocation2 + $0x78] sm:$0xff] %vm672_vm1, %v9137_v1  ;;  %690 = vst.msk [vmem:[#allocation2 + $0x80] sm:$0xff] %vm672_vm1, %v9137_v1  ;;  %5266 = vmatprep.subr.mxu0 %v317_v2  ;;  %v315_v4 = vld [vmem:[%s295_s8 + $0x28] sm:$0xff]  ;;  %v314_v5 = vld [vmem:[%s295_s8 + $0x20] sm:$0xff]  ;;  %s6521_s21 = scalar_lea.vmem %s9130_s1, %s5146_s18  ;;  %vm764_vm4 = vcmask 25600   ;;  %s5531_s22 = smov 56  }
  0x12   : > { %692 = vst.msk [vmem:[#allocation2 + $0x90] sm:$0xff] %vm672_vm1, %v9137_v1  ;;  %693 = vst.msk [vmem:[#allocation2 + $0x98] sm:$0xff] %vm672_vm1, %v9137_v1  ;;  %5267 = vmatpush3.msra.mxu0 %v317_v2  ;;  %v313_v7 = vld [vmem:[%s295_s8 + $0x18] sm:$0xff]  ;;  %v312_v8 = vld [vmem:[%s295_s8 + $0x10] sm:$0xff]  ;;  %s5532_s23 = smov 64   ;;  %vm2227_vm5 = vcmask 130048  }
  0x13   : > { %695 = vst.msk [vmem:[#allocation2 + $0xa8] sm:$0xff] %vm672_vm1, %v9137_v1  ;;  %696 = vst.msk [vmem:[#allocation2 + $0xb0] sm:$0xff] %vm672_vm1, %v9137_v1  ;;  %5268 = vmatprep.subr.mxu0 %v316_v3  ;;  %v914_v6 = vld [vmem:[#allocation2 + $0x1] sm:$0xff]  ;;  %v328_v20 = vld [vmem:[%s9131_s2 + $0x50] sm:$0xff]  ;;  %vm2260_vm6 = vcmask 195584   ;;  %vm2293_vm7 = vcmask 261120  }
  0x14   : > { %698 = vst.msk [vmem:[#allocation2 + $0xc0] sm:$0xff] %vm672_vm1, %v9137_v1  ;;  %699 = vst.msk [vmem:[#allocation2 + $0xc8] sm:$0xff] %vm672_vm1, %v9137_v1  ;;  %5269 = vmatpush3.msra.mxu0 %v316_v3  ;;  %1203 = vrot.lane.b32.xlu0 %v914_v6, %s5525_s9  ;;  %v311_v9 = vld [vmem:[%s295_s8 + $0x8] sm:$0xff]  ;;  %v310_v10 = vld [vmem:[%s295_s8] sm:$0xff]  ;;  %vm2326_vm8 = vcmask 326656   ;;  %vm2359_vm9 = vcmask 392192  }
  0x15   : > { %701 = vst.msk [vmem:[#allocation2 + $0xd8] sm:$0xff] %vm672_vm1, %v9137_v1  ;;  %702 = vst.msk [vmem:[#allocation2 + $0xe0] sm:$0xff] %vm672_vm1, %v9137_v1  ;;  %5270 = vmatprep.subr.mxu0 %v315_v4  ;;  %v327_v19 = vld [vmem:[%s9131_s2 + $0x48] sm:$0xff]  ;;  %v329_v21 = vld [vmem:[%s9131_s2 + $0x58] sm:$0xff]  ;;  %s5533_s26 = smov 4   ;;  %vm2392_vm10 = vcmask 457728  }
  0x16   : > { %704 = vst.msk [vmem:[#allocation2 + $0xf0] sm:$0xff] %vm672_vm1, %v9137_v1  ;;  %705 = vst.msk [vmem:[#allocation2 + $0xf8] sm:$0xff] %vm672_vm1, %v9137_v1  ;;  %5271 = vmatpush3.msra.mxu0 %v315_v4  ;;  %v330_v22 = vld [vmem:[%s9131_s2 + $0x60] sm:$0xff]  ;;  %v331_v23 = vld [vmem:[%s9131_s2 + $0x68] sm:$0xff]  ;;  %s5534_s27 = smov 12   ;;  %vm4140_vm11 = vcmask 1043456  }
  0x17   : > { %707 = vst.msk [vmem:[#allocation2 + $0x108] sm:$0xff] %vm672_vm1, %v9137_v1  ;;  %708 = vst.msk [vmem:[#allocation2 + $0x110] sm:$0xff] %vm672_vm1, %v9137_v1  ;;  %5272 = vmatprep.subr.mxu0 %v314_v5  ;;  %v332_v24 = vld [vmem:[%s9131_s2 + $0x70] sm:$0xff]  ;;  %v333_v25 = vld [vmem:[%s9131_s2 + $0x78] sm:$0xff]  ;;  %s5536_s20 = smov 28   ;;  %vm3834_vm12 = vcmask 97280  }
  0x18   : > { %710 = vst.msk [vmem:[#allocation2 + $0x120] sm:$0xff] %vm672_vm1, %v9137_v1  ;;  %711 = vst.msk [vmem:[#allocation2 + $0x128] sm:$0xff] %vm672_vm1, %v9137_v1  ;;  %5273 = vmatpush3.msra.mxu0 %v314_v5  ;;  %v334_v26 = vld [vmem:[%s9131_s2 + $0x80] sm:$0xff]  ;;  %v335_v27 = vld [vmem:[%s9131_s2 + $0x88] sm:$0xff]  ;;  %vm3899_vm13 = vcmask 162816   ;;  %vm3964_vm14 = vcmask 228352  }
  0x19   : > { %713 = vst.msk [vmem:[#allocation2 + $0x138] sm:$0xff] %vm672_vm1, %v9137_v1  ;;  %714 = vst.msk [vmem:[#allocation2 + $0x140] sm:$0xff] %vm672_vm1, %v9137_v1  ;;  %5274 = vmatprep.subr.mxu0 %v313_v7  ;;  %v336_v28 = vld [vmem:[%s9131_s2 + $0x90] sm:$0xff]  ;;  %v337_v29 = vld [vmem:[%s9131_s2 + $0x98] sm:$0xff]  ;;  %vm4043_vm15 = vcmask 293888  }
  0x1a   : > { %716 = vst.msk [vmem:[#allocation2 + $0x150] sm:$0xff] %vm672_vm1, %v9137_v1  ;;  %717 = vst.msk [vmem:[#allocation2 + $0x158] sm:$0xff] %vm672_vm1, %v9137_v1  ;;  %5275 = vmatpush3.msra.mxu0 %v313_v7  ;;  %v338_v30 = vld [vmem:[%s9131_s2 + $0xa0] sm:$0xff]  ;;  %v339_v31 = vld [vmem:[%s9131_s2 + $0xa8] sm:$0xff] }
  0x1b   : > { %719 = vst.msk [vmem:[#allocation2 + $0x168] sm:$0xff] %vm672_vm1, %v9137_v1  ;;  %720 = vst.msk [vmem:[#allocation2 + $0x170] sm:$0xff] %vm672_vm1, %v9137_v1  ;;  %5276 = vmatprep.subr.mxu0 %v312_v8  ;;  %v946_v34 = vld [vmem:[#allocation2 + $0x2] sm:$0xff]  ;;  %v340_v35 = vld [vmem:[%s9131_s2 + $0xb0] sm:$0xff] }
  0x1c   : > { %722 = vst.msk [vmem:[#allocation2 + $0x180] sm:$0xff] %vm672_vm1, %v9137_v1  ;;  %723 = vst.msk [vmem:[#allocation2 + $0x188] sm:$0xff] %vm672_vm1, %v9137_v1  ;;  %5277 = vmatpush3.msra.mxu0 %v312_v8  ;;  %v341_v36 = vld [vmem:[%s9131_s2 + $0xb8] sm:$0xff]  ;;  %v342_v37 = vld [vmem:[%s9131_s2 + $0xc0] sm:$0xff] }
  0x1d   : > { %725 = vst.msk [vmem:[#allocation2 + $0x198] sm:$0xff] %vm672_vm1, %v9137_v1  ;;  %726 = vst.msk [vmem:[#allocation2 + $0x1a0] sm:$0xff] %vm672_vm1, %v9137_v1  ;;  %5278 = vmatprep.subr.mxu0 %v311_v9  ;;  %v343_v38 = vld [vmem:[%s9131_s2 + $0xc8] sm:$0xff]  ;;  %v344_v39 = vld [vmem:[%s9131_s2 + $0xd0] sm:$0xff] }
  0x1e   : > { %5279 = vmatpush3.msra.mxu0 %v311_v9  ;;  %679 = vst.msk [vmem:[#allocation2 + $0x28] sm:$0x3] %vm675_vm2, %v9137_v1  ;;  %676 = vst.msk [vmem:[#allocation2 + $0x10] sm:$0x3] %vm675_vm2, %v9137_v1  ;;  %v345_v40 = vld [vmem:[%s9131_s2 + $0xd8] sm:$0xff]  ;;  %v346_v41 = vld [vmem:[%s9131_s2 + $0xe0] sm:$0xff] }
  0x1f   : > { %5280 = vmatprep.subr.mxu0 %v310_v10  ;;  %682 = vst.msk [vmem:[#allocation2 + $0x40] sm:$0x3] %vm675_vm2, %v9137_v1  ;;  %685 = vst.msk [vmem:[#allocation2 + $0x58] sm:$0x3] %vm675_vm2, %v9137_v1  ;;  %v347_v42 = vld [vmem:[%s9131_s2 + $0xe8] sm:$0xff]  ;;  %v348_v43 = vld [vmem:[%s9131_s2 + $0xf0] sm:$0xff] }
  0x20   : > { %5281 = vmatpush3.msra.mxu0 %v310_v10  ;;  %688 = vst.msk [vmem:[#allocation2 + $0x70] sm:$0x3] %vm675_vm2, %v9137_v1  ;;  %691 = vst.msk [vmem:[#allocation2 + $0x88] sm:$0x3] %vm675_vm2, %v9137_v1  ;;  %v349_v44 = vld [vmem:[%s9131_s2 + $0xf8] sm:$0xff] }
  0x21   : > { %5283 = vmatmul.mubr.msk.f32.vlgmr.msra.gmra.mxu0 %vm350_vm0, %v319_v11  ;;  %694 = vst.msk [vmem:[#allocation2 + $0xa0] sm:$0x3] %vm675_vm2, %v9137_v1  ;;  %697 = vst.msk [vmem:[#allocation2 + $0xb8] sm:$0x3] %vm675_vm2, %v9137_v1 }
  0x22   : > { %5285 = vmatprep.mubr.msk.f32.mxu0 %vm350_vm0, %v320_v12  ;;  %700 = vst.msk [vmem:[#allocation2 + $0xd0] sm:$0x3] %vm675_vm2, %v9137_v1  ;;  %703 = vst.msk [vmem:[#allocation2 + $0xe8] sm:$0x3] %vm675_vm2, %v9137_v1 }
  0x23   : > { %706 = vst.msk [vmem:[#allocation2 + $0x100] sm:$0x3] %vm675_vm2, %v9137_v1  ;;  %709 = vst.msk [vmem:[#allocation2 + $0x118] sm:$0x3] %vm675_vm2, %v9137_v1 }
  0x24   : > { %712 = vst.msk [vmem:[#allocation2 + $0x130] sm:$0x3] %vm675_vm2, %v9137_v1  ;;  %715 = vst.msk [vmem:[#allocation2 + $0x148] sm:$0x3] %vm675_vm2, %v9137_v1 }
  0x25   : > { %5286 = vmatmul.mubr.msk.f32.gmra.mxu0 %vm350_vm0, %v321_v13  ;;  %718 = vst.msk [vmem:[#allocation2 + $0x160] sm:$0x3] %vm675_vm2, %v9137_v1  ;;  %721 = vst.msk [vmem:[#allocation2 + $0x178] sm:$0x3] %vm675_vm2, %v9137_v1  ;;  %v915_v32 = vld [vmem:[#allocation2 + $0x9] sm:$0xff] }
  0x26   : > { %5288 = vmatprep.mubr.msk.f32.mxu0 %vm350_vm0, %v322_v14  ;;  %724 = vst.msk [vmem:[#allocation2 + $0x190] sm:$0x3] %vm675_vm2, %v9137_v1  ;;  %727 = vst.msk [vmem:[#allocation2 + $0x1a8] sm:$0x3] %vm675_vm2, %v9137_v1  ;;  %1205 = vrot.lane.b32.xlu0 %v915_v32, %s5525_s9  ;;  %v947_v33 = vld [vmem:[#allocation2 + $0xa] sm:$0xff] }
  0x27   : > { %1333 = vrot.lane.b32.xlu1 %v947_v33, %s5526_s12 }
  0x29   : > { %5289 = vmatmul.mubr.msk.f32.gmra.mxu0 %vm350_vm0, %v323_v15 }
  0x2a   : > { %5291 = vmatprep.mubr.msk.f32.mxu0 %vm350_vm0, %v324_v16  ;;  %1331 = vrot.lane.b32.xlu0 %v946_v34, %s5526_s12 }
  0x2d   : > { %5292 = vmatmul.mubr.msk.f32.gmra.mxu0 %vm350_vm0, %v325_v17 }
  0x2e   : > { %5294 = vmatprep.mubr.msk.f32.mxu0 %vm350_vm0, %v326_v18 }
  0x31   : > { %5295 = vmatmul.mubr.msk.f32.gmra.mxu0 %vm350_vm0, %v327_v19 }
  0x32   : > { %5297 = vmatprep.mubr.msk.f32.mxu0 %vm350_vm0, %v328_v20 }
  0x35   : > { %5298 = vmatmul.mubr.msk.f32.gmra.mxu0 %vm350_vm0, %v329_v21 }
  0x36   : > { %5300 = vmatprep.mubr.msk.f32.mxu0 %vm350_vm0, %v330_v22 }
  0x39   : > { %5301 = vmatmul.mubr.msk.f32.gmra.mxu0 %vm350_vm0, %v331_v23 }
  0x3a   : > { %5303 = vmatprep.mubr.msk.f32.mxu0 %vm350_vm0, %v332_v24 }
  0x3d   : > { %5304 = vmatmul.mubr.msk.f32.gmra.mxu0 %vm350_vm0, %v333_v25 }
  0x3e   : > { %5306 = vmatprep.mubr.msk.f32.mxu0 %vm350_vm0, %v334_v26 }
  0x41   : > { %5307 = vmatmul.mubr.msk.f32.gmra.mxu0 %vm350_vm0, %v335_v27 }
  0x42   : > { %5309 = vmatprep.mubr.msk.f32.mxu0 %vm350_vm0, %v336_v28 }
  0x45   : > { %5310 = vmatmul.mubr.msk.f32.gmra.mxu0 %vm350_vm0, %v337_v29 }
  0x46   : > { %5312 = vmatprep.mubr.msk.f32.mxu0 %vm350_vm0, %v338_v30 }
  0x49   : > { %5313 = vmatmul.mubr.msk.f32.gmra.mxu0 %vm350_vm0, %v339_v31 }
  0x4a   : > { %5315 = vmatprep.mubr.msk.f32.mxu0 %vm350_vm0, %v340_v35 }
  0x4d   : > { %5316 = vmatmul.mubr.msk.f32.gmra.mxu0 %vm350_vm0, %v341_v36 }
  0x4e   : > { %5318 = vmatprep.mubr.msk.f32.mxu0 %vm350_vm0, %v342_v37 }
  0x51   : > { %5319 = vmatmul.mubr.msk.f32.gmra.mxu0 %vm350_vm0, %v343_v38 }
  0x52   : > { %5321 = vmatprep.mubr.msk.f32.mxu0 %vm350_vm0, %v344_v39 }
  0x55   : > { %5322 = vmatmul.mubr.msk.f32.gmra.mxu0 %vm350_vm0, %v345_v40 }
  0x56   : > { %5324 = vmatprep.mubr.msk.f32.mxu0 %vm350_vm0, %v346_v41 }
  0x59   : > { %5325 = vmatmul.mubr.msk.f32.gmra.mxu0 %vm350_vm0, %v347_v42 }
  0x5a   : > { %5327 = vmatprep.mubr.msk.f32.mxu0 %vm350_vm0, %v348_v43 }
  0x5d   : > { %5328 = vmatmul.mubr.msk.f32.gmra.mxu0 %vm350_vm0, %v349_v44 }
  0x86   : > { %v5911_v41 = vpop.permute.xlu0 %1203 }
  0x87   : > { %9140 = vst [vmem:[#allocation4_spill] sm:$0xff] %v5911_v41 }
  0xe1   : > { %v5284_v45 = vpop.f32.mrf.mxu0 }
  0xe2   : > { %730 = vst.msk [vmem:[#allocation2 + $0x21] sm:$0xff] %vm672_vm1, %v5284_v45  ;;  %v5919_v45 = vpop.permute.xlu0 %1205 }
  0xe3   : > { %v513_v46 = vpop.f32.mrf.mxu0  ;;  %9141 = vst [vmem:[#allocation5_spill] sm:$0xff] %v5919_v45 }
  0xe4   : > { %729 = vst.msk [vmem:[#allocation2 + $0x19] sm:$0xff] %vm672_vm1, %v513_v46 }
  0xe5   : > { %v5287_v47 = vpop.f32.mrf.mxu0 }
  0xe6   : > { %732 = vst.msk [vmem:[#allocation2 + $0x39] sm:$0xff] %vm672_vm1, %v5287_v47  ;;  %v5924_v47 = vpop.permute.xlu1 %1333 }
  0xe7   : > { %v523_v48 = vpop.f32.mrf.mxu0  ;;  %9142 = vst [vmem:[#allocation6_spill] sm:$0xff] %v5924_v47 }
  0xe8   : > { %731 = vst.msk [vmem:[#allocation2 + $0x31] sm:$0xff] %vm672_vm1, %v523_v48  ;;  %v5927_v48 = vpop.permute.xlu0 %1331 }
  0xe9   : > { %v917_v49 = vld [vmem:[#allocation2 + $0x21] sm:$0xff]  ;;  %v5290_v50 = vpop.f32.mrf.mxu0  ;;  %9143 = vst [vmem:[#allocation7_spill] sm:$0xff] %v5927_v48 }
  0xea   : > { %1209 = vrot.lane.b32.xlu1 %v917_v49, %s5525_s9  ;;  %734 = vst.msk [vmem:[#allocation2 + $0x51] sm:$0xff] %vm672_vm1, %v5290_v50  ;;  %v949_v53 = vld [vmem:[#allocation2 + $0x22] sm:$0xff] }
  0xeb   : > { %v948_v51 = vld [vmem:[#allocation2 + $0x1a] sm:$0xff]  ;;  %v533_v52 = vpop.f32.mrf.mxu0 }
  0xec   : > { %1335 = vrot.lane.b32.xlu0 %v948_v51, %s5526_s12  ;;  %733 = vst.msk [vmem:[#allocation2 + $0x49] sm:$0xff] %vm672_vm1, %v533_v52  ;;  %v978_v55 = vld [vmem:[#allocation2 + $0x18] sm:$0xff]  ;;  %v979_v2 = vld [vmem:[#allocation2 + $0x20] sm:$0xff] }
  0xed   : > { %v5293_v54 = vpop.f32.mrf.mxu0  ;;  %v1010_v58 = vld [vmem:[#allocation2 + $0x19] sm:$0xff] }
  0xee   : > { %1337 = vrot.lane.b32.xlu1 %v949_v53, %s5526_s12  ;;  %736 = vst.msk [vmem:[#allocation2 + $0x69] sm:$0xff] %vm672_vm1, %v5293_v54  ;;  %v919_v6 = vld [vmem:[#allocation2 + $0x39] sm:$0xff] }
  0xef   : > { %v543_v56 = vpop.f32.mrf.mxu0  ;;  %v918_v62 = vld [vmem:[#allocation2 + $0x31] sm:$0xff]  ;;  %v951_v10 = vld [vmem:[#allocation2 + $0x3a] sm:$0xff] }
  0xf0   : > { %1459 = vrot.lane.b32.xlu0 %v978_v55, %s5527_s14  ;;  %735 = vst.msk [vmem:[#allocation2 + $0x61] sm:$0xff] %vm672_vm1, %v543_v56  ;;  %v950_v3 = vld [vmem:[#allocation2 + $0x32] sm:$0xff] }
  0xf1   : > { %v5296_v57 = vpop.f32.mrf.mxu0  ;;  %v980_v8 = vld [vmem:[#allocation2 + $0x30] sm:$0xff]  ;;  %v981_v14 = vld [vmem:[#allocation2 + $0x38] sm:$0xff] }
  0xf2   : > { %1589 = vrot.lane.b32.xlu1 %v917_v49, %s5528_s15  ;;  %738 = vst.msk [vmem:[#allocation2 + $0x81] sm:$0xff] %vm672_vm1, %v5296_v57  ;;  %v921_v16 = vld [vmem:[#allocation2 + $0x51] sm:$0xff] }
  0xf3   : > { %v553_v59 = vpop.f32.mrf.mxu0  ;;  %v920_v11 = vld [vmem:[#allocation2 + $0x49] sm:$0xff]  ;;  %v953_v18 = vld [vmem:[#allocation2 + $0x52] sm:$0xff] }
  0xf4   : > { %1587 = vrot.lane.b32.xlu0 %v1010_v58, %s5528_s15  ;;  %737 = vst.msk [vmem:[#allocation2 + $0x79] sm:$0xff] %vm672_vm1, %v553_v59  ;;  %v952_v15 = vld [vmem:[#allocation2 + $0x4a] sm:$0xff] }
  0xf5   : > { %v5299_v60 = vpop.f32.mrf.mxu0  ;;  %v982_v17 = vld [vmem:[#allocation2 + $0x48] sm:$0xff]  ;;  %v983_v22 = vld [vmem:[#allocation2 + $0x50] sm:$0xff] }
  0xf6   : > { %1717 = vrot.lane.b32.xlu1 %v949_v53, %s5529_s16  ;;  %740 = vst.msk [vmem:[#allocation2 + $0x99] sm:$0xff] %vm672_vm1, %v5299_v60  ;;  %v923_v24 = vld [vmem:[#allocation2 + $0x69] sm:$0xff] }
  0xf7   : > { %v563_v61 = vpop.f32.mrf.mxu0  ;;  %v922_v21 = vld [vmem:[#allocation2 + $0x61] sm:$0xff]  ;;  %v955_v26 = vld [vmem:[#allocation2 + $0x6a] sm:$0xff] }
  0xf8   : > { %1715 = vrot.lane.b32.xlu0 %v948_v51, %s5529_s16  ;;  %739 = vst.msk [vmem:[#allocation2 + $0x91] sm:$0xff] %vm672_vm1, %v563_v61  ;;  %v954_v23 = vld [vmem:[#allocation2 + $0x62] sm:$0xff] }
  0xf9   : > { %v5302_v63 = vpop.f32.mrf.mxu0  ;;  %v984_v25 = vld [vmem:[#allocation2 + $0x60] sm:$0xff]  ;;  %v985_v30 = vld [vmem:[#allocation2 + $0x68] sm:$0xff] }
  0xfa   : > { %1207 = vrot.lane.b32.xlu1 %v1010_v58, %s5525_s9  ;;  %742 = vst.msk [vmem:[#allocation2 + $0xb1] sm:$0xff] %vm672_vm1, %v5302_v63  ;;  %v925_v32 = vld [vmem:[#allocation2 + $0x81] sm:$0xff] }
  0xfb   : > { %v573_v0 = vpop.f32.mrf.mxu0  ;;  %v924_v29 = vld [vmem:[#allocation2 + $0x79] sm:$0xff]  ;;  %v957_v36 = vld [vmem:[#allocation2 + $0x82] sm:$0xff] }
  0xfc   : > { %1211 = vrot.lane.b32.xlu0 %v918_v62, %s5525_s9  ;;  %741 = vst.msk [vmem:[#allocation2 + $0xa9] sm:$0xff] %vm672_vm1, %v573_v0  ;;  %v956_v31 = vld [vmem:[#allocation2 + $0x7a] sm:$0xff] }
  0xfd   : > { %v5305_v4 = vpop.f32.mrf.mxu0  ;;  %v986_v34 = vld [vmem:[#allocation2 + $0x78] sm:$0xff]  ;;  %v5907_v38 = vld [vmem:[#allocation2 + $0x80] sm:$0xff] }
  0xfe   : > { %1461 = vrot.lane.b32.xlu1 %v979_v2, %s5527_s14  ;;  %744 = vst.msk [vmem:[#allocation2 + $0xc9] sm:$0xff] %vm672_vm1, %v5305_v4  ;;  %v927_v43 = vld [vmem:[#allocation2 + $0x99] sm:$0xff] }
  0xff   : > { %v583_v5 = vpop.f32.mrf.mxu0  ;;  %v926_v37 = vld [vmem:[#allocation2 + $0x91] sm:$0xff]  ;;  %v959_v46 = vld [vmem:[#allocation2 + $0x9a] sm:$0xff] }
 0x100   : > { %1339 = vrot.lane.b32.xlu0 %v950_v3, %s5526_s12  ;;  %743 = vst.msk [vmem:[#allocation2 + $0xc1] sm:$0xff] %vm672_vm1, %v583_v5  ;;  %v958_v39 = vld [vmem:[#allocation2 + $0x92] sm:$0xff] }
 0x101   : > { %v5308_v7 = vpop.f32.mrf.mxu0  ;;  %v5917_v44 = vld [vmem:[#allocation2 + $0x90] sm:$0xff]  ;;  %v5941_v55 = vld [vmem:[#allocation2 + $0x98] sm:$0xff] }
 0x102   : > { %1213 = vrot.lane.b32.xlu1 %v919_v6, %s5525_s9  ;;  %746 = vst.msk [vmem:[#allocation2 + $0xe1] sm:$0xff] %vm672_vm1, %v5308_v7  ;;  %v929_v59 = vld [vmem:[#allocation2 + $0xb1] sm:$0xff] }
 0x103   : > { %v593_v9 = vpop.f32.mrf.mxu0  ;;  %v928_v50 = vld [vmem:[#allocation2 + $0xa9] sm:$0xff]  ;;  %v961_v63 = vld [vmem:[#allocation2 + $0xb2] sm:$0xff] }
 0x104   : > { %1463 = vrot.lane.b32.xlu0 %v980_v8, %s5527_s14  ;;  %745 = vst.msk [vmem:[#allocation2 + $0xd9] sm:$0xff] %vm672_vm1, %v593_v9  ;;  %v960_v56 = vld [vmem:[#allocation2 + $0xaa] sm:$0xff] }
 0x105   : > { %v5311_v12 = vpop.f32.mrf.mxu0  ;;  %v5953_v61 = vld [vmem:[#allocation2 + $0xa8] sm:$0xff] }
 0x106   : > { %1341 = vrot.lane.b32.xlu1 %v951_v10, %s5526_s12  ;;  %748 = vst.msk [vmem:[#allocation2 + $0xf9] sm:$0xff] %vm672_vm1, %v5311_v12 }
 0x107   : > { %v603_v13 = vpop.f32.mrf.mxu0  ;;  %v930_v7 = vld [vmem:[#allocation2 + $0xc1] sm:$0xff] }
 0x108   : > { %1591 = vrot.lane.b32.xlu0 %v918_v62, %s5528_s15  ;;  %747 = vst.msk [vmem:[#allocation2 + $0xf1] sm:$0xff] %vm672_vm1, %v603_v13 }
 0x109   : > { %v5314_v19 = vpop.f32.mrf.mxu0 }
 0x10a   : > { %1593 = vrot.lane.b32.xlu1 %v919_v6, %s5528_s15  ;;  %750 = vst.msk [vmem:[#allocation2 + $0x111] sm:$0xff] %vm672_vm1, %v5314_v19 }
 0x10b   : > { %v613_v20 = vpop.f32.mrf.mxu0 }
 0x10c   : > { %1719 = vrot.lane.b32.xlu0 %v950_v3, %s5529_s16  ;;  %749 = vst.msk [vmem:[#allocation2 + $0x109] sm:$0xff] %vm672_vm1, %v613_v20 }
 0x10d   : > { %v5317_v27 = vpop.f32.mrf.mxu0 }
 0x10e   : > { %1721 = vrot.lane.b32.xlu1 %v951_v10, %s5529_s16  ;;  %752 = vst.msk [vmem:[#allocation2 + $0x129] sm:$0xff] %vm672_vm1, %v5317_v27  ;;  %v5979_v10 = vld [vmem:[#allocation2 + $0xb0] sm:$0xff]  ;;  %v6017_v27 = vld [vmem:[#allocation2 + $0xda] sm:$0xff] }
 0x10f   : > { %v623_v28 = vpop.f32.mrf.mxu0 }
 0x110   : > { %1215 = vrot.lane.b32.xlu0 %v920_v11, %s5525_s9  ;;  %751 = vst.msk [vmem:[#allocation2 + $0x121] sm:$0xff] %vm672_vm1, %v623_v28 }
 0x111   : > { %v5320_v33 = vpop.f32.mrf.mxu0 }
 0x112   : > { %1465 = vrot.lane.b32.xlu1 %v981_v14, %s5527_s14  ;;  %754 = vst.msk [vmem:[#allocation2 + $0x141] sm:$0xff] %vm672_vm1, %v5320_v33  ;;  %v931_v14 = vld [vmem:[#allocation2 + $0xc9] sm:$0xff] }
 0x113   : > { %v633_v35 = vpop.f32.mrf.mxu0 }
 0x114   : > { %1343 = vrot.lane.b32.xlu0 %v952_v15, %s5526_s12  ;;  %753 = vst.msk [vmem:[#allocation2 + $0x139] sm:$0xff] %vm672_vm1, %v633_v35 }
 0x115   : > { %v5323_v40 = vpop.f32.mrf.mxu0 }
 0x116   : > { %1217 = vrot.lane.b32.xlu1 %v921_v16, %s5525_s9  ;;  %756 = vst.msk [vmem:[#allocation2 + $0x159] sm:$0xff] %vm672_vm1, %v5323_v40 }
 0x117   : > { %v643_v42 = vpop.f32.mrf.mxu0 }
 0x118   : > { %1467 = vrot.lane.b32.xlu0 %v982_v17, %s5527_s14  ;;  %755 = vst.msk [vmem:[#allocation2 + $0x151] sm:$0xff] %vm672_vm1, %v643_v42  ;;  %v6054_v42 = vld [vmem:[#allocation2 + $0xe0] sm:$0xff] }
 0x119   : > { %v5326_v51 = vpop.f32.mrf.mxu0 }
 0x11a   : > { %1345 = vrot.lane.b32.xlu1 %v953_v18, %s5526_s12  ;;  %758 = vst.msk [vmem:[#allocation2 + $0x171] sm:$0xff] %vm672_vm1, %v5326_v51  ;;  %v6066_v51 = vld [vmem:[#allocation2 + $0xf9] sm:$0xff] }
 0x11b   : > { %v653_v53 = vpop.f32.mrf.mxu0 }
 0x11c   : > { %1595 = vrot.lane.b32.xlu0 %v920_v11, %s5528_s15  ;;  %757 = vst.msk [vmem:[#allocation2 + $0x169] sm:$0xff] %vm672_vm1, %v653_v53  ;;  %v962_v11 = vld [vmem:[#allocation2 + $0xc2] sm:$0xff] }
 0x11d   : > { %v5329_v3 = vpop.f32.mrf.mxu0 }
 0x11e   : > { %1597 = vrot.lane.b32.xlu1 %v921_v16, %s5528_s15  ;;  %760 = vst.msk [vmem:[#allocation2 + $0x189] sm:$0xff] %vm672_vm1, %v5329_v3  ;;  %v5991_v16 = vld [vmem:[#allocation2 + $0xc0] sm:$0xff] }
 0x11f   : > { %v663_v5 = vpop.f32.mrf.mxu0 }
 0x120   : > { %1723 = vrot.lane.b32.xlu0 %v952_v15, %s5529_s16  ;;  %759 = vst.msk [vmem:[#allocation2 + $0x181] sm:$0xff] %vm672_vm1, %v663_v5 }
 0x122   : > { %1725 = vrot.lane.b32.xlu1 %v953_v18, %s5529_s16  ;;  %v963_v18 = vld [vmem:[#allocation2 + $0xca] sm:$0xff] }
 0x124   : > { %1219 = vrot.lane.b32.xlu0 %v922_v21, %s5525_s9 }
 0x126   : > { %1469 = vrot.lane.b32.xlu1 %v983_v22, %s5527_s14 }
 0x128   : > { %1347 = vrot.lane.b32.xlu0 %v954_v23, %s5526_s12 }
 0x12a   : > { %1221 = vrot.lane.b32.xlu1 %v923_v24, %s5525_s9 }
 0x12c   : > { %1471 = vrot.lane.b32.xlu0 %v984_v25, %s5527_s14 }
 0x12e   : > { %1349 = vrot.lane.b32.xlu1 %v955_v26, %s5526_s12 }
 0x130   : > { %1599 = vrot.lane.b32.xlu0 %v922_v21, %s5528_s15 }
 0x132   : > { %1601 = vrot.lane.b32.xlu1 %v923_v24, %s5528_s15 }
 0x134   : > { %1727 = vrot.lane.b32.xlu0 %v954_v23, %s5529_s16  ;;  %v932_v23 = vld [vmem:[#allocation2 + $0xd9] sm:$0xff] }
 0x136   : > { %1729 = vrot.lane.b32.xlu1 %v955_v26, %s5529_s16  ;;  %v6015_v26 = vld [vmem:[#allocation2 + $0xc8] sm:$0xff] }
 0x138   : > { %1223 = vrot.lane.b32.xlu0 %v924_v29, %s5525_s9 }
 0x13a   : > { %1473 = vrot.lane.b32.xlu1 %v985_v30, %s5527_s14  ;;  %v933_v30 = vld [vmem:[#allocation2 + $0xe1] sm:$0xff] }
 0x13c   : > { %1351 = vrot.lane.b32.xlu0 %v956_v31, %s5526_s12 }
 0x13e   : > { %1225 = vrot.lane.b32.xlu1 %v925_v32, %s5525_s9 }
 0x140   : > { %1475 = vrot.lane.b32.xlu0 %v986_v34, %s5527_s14  ;;  %v6036_v34 = vld [vmem:[#allocation2 + $0xe2] sm:$0xff] }
 0x142   : > { %1353 = vrot.lane.b32.xlu1 %v957_v36, %s5526_s12 }
 0x144   : > { %1603 = vrot.lane.b32.xlu0 %v924_v29, %s5528_s15 }
 0x146   : > { %1605 = vrot.lane.b32.xlu1 %v925_v32, %s5528_s15  ;;  %v6030_v32 = vld [vmem:[#allocation2 + $0xd8] sm:$0xff] }
 0x148   : > { %1731 = vrot.lane.b32.xlu0 %v956_v31, %s5529_s16 }
 0x14a   : > { %1733 = vrot.lane.b32.xlu1 %v957_v36, %s5529_s16 }
 0x14c   : > { %1227 = vrot.lane.b32.xlu0 %v926_v37, %s5525_s9 }
 0x14e   : > { %1477 = vrot.lane.b32.xlu1 %v5907_v38, %s5527_s14 }
 0x150   : > { %1355 = vrot.lane.b32.xlu0 %v958_v39, %s5526_s12 }
 0x152   : > { %1229 = vrot.lane.b32.xlu1 %v927_v43, %s5525_s9 }
 0x154   : > { %1479 = vrot.lane.b32.xlu0 %v5917_v44, %s5527_s14 }
 0x156   : > { %1357 = vrot.lane.b32.xlu1 %v959_v46, %s5526_s12 }
 0x158   : > { %1607 = vrot.lane.b32.xlu0 %v926_v37, %s5528_s15  ;;  %v6045_v37 = vld [vmem:[#allocation2 + $0xf1] sm:$0xff] }
 0x15a   : > { %1609 = vrot.lane.b32.xlu1 %v927_v43, %s5528_s15  ;;  %v6056_v43 = vld [vmem:[#allocation2 + $0xf2] sm:$0xff] }
 0x15c   : > { %v5930_v49 = vpop.permute.xlu1 %1209  ;;  %1735 = vrot.lane.b32.xlu0 %v958_v39, %s5529_s16 }
 0x15d   : > { %9144 = vst [vmem:[#allocation8_spill] sm:$0xff] %v5930_v49 }
 0x15e   : > { %v5933_v52 = vpop.permute.xlu0 %1335  ;;  %1737 = vrot.lane.b32.xlu1 %v959_v46, %s5529_s16 }
 0x15f   : > { %9145 = vst [vmem:[#allocation9_spill] sm:$0xff] %v5933_v52 }
 0x160   : > { %v5937_v54 = vpop.permute.xlu1 %1337  ;;  %1231 = vrot.lane.b32.xlu0 %v928_v50, %s5525_s9 }
 0x161   : > { %9146 = vst [vmem:[#allocation10_spill] sm:$0xff] %v5937_v54 }
 0x162   : > { %v5943_v57 = vpop.permute.xlu0 %1459  ;;  %1481 = vrot.lane.b32.xlu1 %v5941_v55, %s5527_s14 }
 0x163   : > { %9147 = vst [vmem:[#allocation11_spill] sm:$0xff] %v5943_v57 }
 0x164   : > { %v5947_v58 = vpop.permute.xlu1 %1589  ;;  %1359 = vrot.lane.b32.xlu0 %v960_v56, %s5526_s12 }
 0x165   : > { %9148 = vst [vmem:[#allocation12_spill] sm:$0xff] %v5947_v58  ;;  %v6320_v58 = vld [vmem:[#allocation2 + $0x181] sm:$0xff] }
 0x166   : > { %v5950_v60 = vpop.permute.xlu0 %1587  ;;  %1233 = vrot.lane.b32.xlu1 %v929_v59, %s5525_s9 }
 0x167   : > { %9149 = vst [vmem:[#allocation13_spill] sm:$0xff] %v5950_v60 }
 0x168   : > { %v5955_v62 = vpop.permute.xlu1 %1717  ;;  %1483 = vrot.lane.b32.xlu0 %v5953_v61, %s5527_s14 }
 0x169   : > { %9150 = vst [vmem:[#allocation14_spill] sm:$0xff] %v5955_v62 }
 0x16a   : > { %v5959_v0 = vpop.permute.xlu0 %1715  ;;  %1361 = vrot.lane.b32.xlu1 %v961_v63, %s5526_s12 }
 0x16b   : > { %9151 = vst [vmem:[#allocation15_spill] sm:$0xff] %v5959_v0 }
 0x16c   : > { %v5962_v2 = vpop.permute.xlu1 %1207  ;;  %1611 = vrot.lane.b32.xlu0 %v928_v50, %s5528_s15 }
 0x16d   : > { %9152 = vst [vmem:[#allocation16_spill] sm:$0xff] %v5962_v2 }
 0x16e   : > { %v5965_v4 = vpop.permute.xlu0 %1211  ;;  %1613 = vrot.lane.b32.xlu1 %v929_v59, %s5528_s15 }
 0x16f   : > { %9153 = vst [vmem:[#allocation17_spill] sm:$0xff] %v5965_v4  ;;  %v6292_v4 = vld [vmem:[#allocation2 + $0x168] sm:$0xff] }
 0x170   : > { %v5969_v6 = vpop.permute.xlu1 %1461  ;;  %1739 = vrot.lane.b32.xlu0 %v960_v56, %s5529_s16  ;;  %v6072_v56 = vld [vmem:[#allocation2 + $0xf0] sm:$0xff] }
 0x171   : > { %9154 = vst [vmem:[#allocation18_spill] sm:$0xff] %v5969_v6 }
 0x172   : > { %v5973_v8 = vpop.permute.xlu0 %1339  ;;  %1741 = vrot.lane.b32.xlu1 %v961_v63, %s5529_s16  ;;  %v6078_v63 = vld [vmem:[#allocation2 + $0xfa] sm:$0xff] }
 0x173   : > { %9155 = vst [vmem:[#allocation19_spill] sm:$0xff] %v5973_v8 }
 0x174   : > { %v5976_v9 = vpop.permute.xlu1 %1213  ;;  %1235 = vrot.lane.b32.xlu0 %v930_v7, %s5525_s9 }
 0x175   : > { %9156 = vst [vmem:[#allocation20_spill] sm:$0xff] %v5976_v9 }
 0x176   : > { %v5981_v12 = vpop.permute.xlu0 %1463  ;;  %1485 = vrot.lane.b32.xlu1 %v5979_v10, %s5527_s14 }
 0x177   : > { %9157 = vst [vmem:[#allocation21_spill] sm:$0xff] %v5981_v12 }
 0x178   : > { %v5985_v13 = vpop.permute.xlu1 %1341  ;;  %1363 = vrot.lane.b32.xlu0 %v962_v11, %s5526_s12 }
 0x179   : > { %9158 = vst [vmem:[#allocation22_spill] sm:$0xff] %v5985_v13 }
 0x17a   : > { %v5988_v15 = vpop.permute.xlu0 %1591  ;;  %1237 = vrot.lane.b32.xlu1 %v931_v14, %s5525_s9 }
 0x17b   : > { %9159 = vst [vmem:[#allocation23_spill] sm:$0xff] %v5988_v15 }
 0x17c   : > { %v5993_v17 = vpop.permute.xlu1 %1593  ;;  %1487 = vrot.lane.b32.xlu0 %v5991_v16, %s5527_s14 }
 0x17d   : > { %9160 = vst [vmem:[#allocation24_spill] sm:$0xff] %v5993_v17  ;;  %v6248_v17 = vld [vmem:[#allocation2 + $0x150] sm:$0xff] }
 0x17e   : > { %v5997_v19 = vpop.permute.xlu0 %1719  ;;  %1365 = vrot.lane.b32.xlu1 %v963_v18, %s5526_s12 }
 0x17f   : > { %9161 = vst [vmem:[#allocation25_spill] sm:$0xff] %v5997_v19 }
 0x180   : > { %v6000_v20 = vpop.permute.xlu1 %1721  ;;  %1615 = vrot.lane.b32.xlu0 %v930_v7, %s5528_s15  ;;  %v6088_v7 = vld [vmem:[#allocation2 + $0x109] sm:$0xff] }
 0x181   : > { %9162 = vst [vmem:[#allocation26_spill] sm:$0xff] %v6000_v20 }
 0x182   : > { %v6003_v21 = vpop.permute.xlu0 %1215  ;;  %1617 = vrot.lane.b32.xlu1 %v931_v14, %s5528_s15 }
 0x183   : > { %9163 = vst [vmem:[#allocation27_spill] sm:$0xff] %v6003_v21 }
 0x184   : > { %v6006_v22 = vpop.permute.xlu1 %1465  ;;  %1743 = vrot.lane.b32.xlu0 %v962_v11, %s5529_s16 }
 0x185   : > { %9164 = vst [vmem:[#allocation28_spill] sm:$0xff] %v6006_v22 }
 0x186   : > { %v6009_v24 = vpop.permute.xlu0 %1343  ;;  %1745 = vrot.lane.b32.xlu1 %v963_v18, %s5529_s16  ;;  %v6098_v18 = vld [vmem:[#allocation2 + $0xf8] sm:$0xff] }
 0x187   : > { %9165 = vst [vmem:[#allocation29_spill] sm:$0xff] %v6009_v24  ;;  %v6232_v24 = vld [vmem:[#allocation2 + $0x152] sm:$0xff] }
 0x188   : > { %v6012_v25 = vpop.permute.xlu1 %1217  ;;  %1239 = vrot.lane.b32.xlu0 %v932_v23, %s5525_s9 }
 0x189   : > { %9166 = vst [vmem:[#allocation30_spill] sm:$0xff] %v6012_v25 }
 0x18a   : > { %v6019_v28 = vpop.permute.xlu0 %1467  ;;  %1489 = vrot.lane.b32.xlu1 %v6015_v26, %s5527_s14 }
 0x18b   : > { %9167 = vst [vmem:[#allocation31_spill] sm:$0xff] %v6019_v28 }
 0x18c   : > { %v6023_v29 = vpop.permute.xlu1 %1345  ;;  %1367 = vrot.lane.b32.xlu0 %v6017_v27, %s5526_s12 }
 0x18d   : > { %9168 = vst [vmem:[#allocation32_spill] sm:$0xff] %v6023_v29  ;;  %v6188_v29 = vld [vmem:[#allocation2 + $0x13a] sm:$0xff] }
 0x18e   : > { %v6027_v31 = vpop.permute.xlu0 %1595  ;;  %1241 = vrot.lane.b32.xlu1 %v933_v30, %s5525_s9 }
 0x18f   : > { %9169 = vst [vmem:[#allocation33_spill] sm:$0xff] %v6027_v31  ;;  %v6204_v31 = vld [vmem:[#allocation2 + $0x138] sm:$0xff] }
 0x190   : > { %v6032_v33 = vpop.permute.xlu1 %1597  ;;  %1491 = vrot.lane.b32.xlu0 %v6030_v32, %s5527_s14 }
 0x191   : > { %9170 = vst [vmem:[#allocation34_spill] sm:$0xff] %v6032_v33 }
 0x192   : > { %v6038_v35 = vpop.permute.xlu0 %1723  ;;  %1369 = vrot.lane.b32.xlu1 %v6036_v34, %s5526_s12 }
 0x193   : > { %9171 = vst [vmem:[#allocation35_spill] sm:$0xff] %v6038_v35 }
 0x194   : > { %v6042_v36 = vpop.permute.xlu1 %1725  ;;  %1619 = vrot.lane.b32.xlu0 %v932_v23, %s5528_s15  ;;  %v6100_v23 = vld [vmem:[#allocation2 + $0x10a] sm:$0xff] }
 0x195   : > { %9172 = vst [vmem:[#allocation36_spill] sm:$0xff] %v6042_v36  ;;  %v6144_v36 = vld [vmem:[#allocation2 + $0x122] sm:$0xff] }
 0x196   : > { %v6047_v39 = vpop.permute.xlu0 %1219  ;;  %1621 = vrot.lane.b32.xlu1 %v933_v30, %s5528_s15 }
 0x197   : > { %9173 = vst [vmem:[#allocation37_spill] sm:$0xff] %v6047_v39 }
 0x198   : > { %v6050_v40 = vpop.permute.xlu1 %1469  ;;  %1243 = vrot.lane.b32.xlu0 %v6045_v37, %s5525_s9 }
 0x199   : > { %9174 = vst [vmem:[#allocation38_spill] sm:$0xff] %v6050_v40  ;;  %v6276_v40 = vld [vmem:[#allocation2 + $0x16a] sm:$0xff] }
 0x19a   : > { %v6058_v46 = vpop.permute.xlu0 %1347  ;;  %1493 = vrot.lane.b32.xlu1 %v6054_v42, %s5527_s14 }
 0x19b   : > { %9175 = vst [vmem:[#allocation39_spill] sm:$0xff] %v6058_v46 }
 0x19c   : > { %v6062_v50 = vpop.permute.xlu1 %1221  ;;  %1371 = vrot.lane.b32.xlu0 %v6056_v43, %s5526_s12 }
 0x19d   : > { %9176 = vst [vmem:[#allocation40_spill] sm:$0xff] %v6062_v50 }
 0x19e   : > { %v6068_v53 = vpop.permute.xlu0 %1471  ;;  %1245 = vrot.lane.b32.xlu1 %v6066_v51, %s5525_s9 }
 0x19f   : > { %9177 = vst [vmem:[#allocation41_spill] sm:$0xff] %v6068_v53 }
 0x1a0   : > { %v6074_v59 = vpop.permute.xlu1 %1349  ;;  %1495 = vrot.lane.b32.xlu0 %v6072_v56, %s5527_s14 }
 0x1a1   : > { %9178 = vst [vmem:[#allocation42_spill] sm:$0xff] %v6074_v59  ;;  %v6116_v59 = vld [vmem:[#allocation2 + $0x108] sm:$0xff] }
 0x1a2   : > { %v6080_v3 = vpop.permute.xlu0 %1599  ;;  %1373 = vrot.lane.b32.xlu1 %v6078_v63, %s5526_s12 }
 0x1a3   : > { %9179 = vst [vmem:[#allocation43_spill] sm:$0xff] %v6080_v3 }
 0x1a4   : > { %v6084_v5 = vpop.permute.xlu1 %1601  ;;  %1623 = vrot.lane.b32.xlu0 %v6045_v37, %s5528_s15 }
 0x1a5   : > { %9180 = vst [vmem:[#allocation44_spill] sm:$0xff] %v6084_v5 }
 0x1a6   : > { %v6090_v11 = vpop.permute.xlu0 %1727  ;;  %1625 = vrot.lane.b32.xlu1 %v6066_v51, %s5528_s15 }
 0x1a7   : > { %9181 = vst [vmem:[#allocation45_spill] sm:$0xff] %v6090_v11  ;;  %v6110_v11 = vld [vmem:[#allocation2 + $0x111] sm:$0xff] }
 0x1a8   : > { %v6094_v14 = vpop.permute.xlu1 %1729  ;;  %1247 = vrot.lane.b32.xlu0 %v6088_v7, %s5525_s9 }
 0x1a9   : > { %9182 = vst [vmem:[#allocation46_spill] sm:$0xff] %v6094_v14 }
 0x1aa   : > { %v6102_v30 = vpop.permute.xlu0 %1223  ;;  %1497 = vrot.lane.b32.xlu1 %v6098_v18, %s5527_s14 }
 0x1ab   : > { %9183 = vst [vmem:[#allocation47_spill] sm:$0xff] %v6102_v30  ;;  %v6122_v30 = vld [vmem:[#allocation2 + $0x112] sm:$0xff] }
 0x1ac   : > { %v6106_v1 = vpop.permute.xlu1 %1473  ;;  %1375 = vrot.lane.b32.xlu0 %v6100_v23, %s5526_s12 }
 0x1ad   : > { %9184 = vst [vmem:[#allocation48_spill] sm:$0xff] %v6106_v1  ;;  %v6160_v1 = vld [vmem:[#allocation2 + $0x120] sm:$0xff] }
 0x1ae   : > { %v6112_v14 = vpop.permute.xlu0 %1351  ;;  %1249 = vrot.lane.b32.xlu1 %v6110_v11, %s5525_s9 }
 0x1af   : > { %9185 = vst [vmem:[#allocation49_spill] sm:$0xff] %v6112_v14  ;;  %v6132_v14 = vld [vmem:[#allocation2 + $0x121] sm:$0xff] }
 0x1b0   : > { %v6118_v5 = vpop.permute.xlu1 %1225  ;;  %1499 = vrot.lane.b32.xlu0 %v6116_v59, %s5527_s14 }
 0x1b1   : > { %9186 = vst [vmem:[#allocation50_spill] sm:$0xff] %v6118_v5 }
 0x1b2   : > { %v6124_v3 = vpop.permute.xlu0 %1475  ;;  %1377 = vrot.lane.b32.xlu1 %v6122_v30, %s5526_s12 }
 0x1b3   : > { %9187 = vst [vmem:[#allocation51_spill] sm:$0xff] %v6124_v3  ;;  %v6142_v3 = vld [vmem:[#allocation2 + $0x110] sm:$0xff] }
 0x1b4   : > { %v6128_v53 = vpop.permute.xlu1 %1353  ;;  %1627 = vrot.lane.b32.xlu0 %v6088_v7, %s5528_s15 }
 0x1b5   : > { %9188 = vst [vmem:[#allocation52_spill] sm:$0xff] %v6128_v53 }
 0x1b6   : > { %v6134_v50 = vpop.permute.xlu0 %1603  ;;  %1629 = vrot.lane.b32.xlu1 %v6110_v11, %s5528_s15 }
 0x1b7   : > { %9189 = vst [vmem:[#allocation53_spill] sm:$0xff] %v6134_v50  ;;  %v6154_v50 = vld [vmem:[#allocation2 + $0x129] sm:$0xff] }
 0x1b8   : > { %v6138_v5 = vpop.permute.xlu1 %1605  ;;  %1251 = vrot.lane.b32.xlu0 %v6132_v14, %s5525_s9 }
 0x1b9   : > { %9190 = vst [vmem:[#allocation54_spill] sm:$0xff] %v6138_v5 }
 0x1ba   : > { %v6146_v53 = vpop.permute.xlu0 %1731  ;;  %1501 = vrot.lane.b32.xlu1 %v6142_v3, %s5527_s14 }
 0x1bb   : > { %9191 = vst [vmem:[#allocation55_spill] sm:$0xff] %v6146_v53  ;;  %v6166_v53 = vld [vmem:[#allocation2 + $0x12a] sm:$0xff] }
 0x1bc   : > { %v6150_v46 = vpop.permute.xlu1 %1733  ;;  %1379 = vrot.lane.b32.xlu0 %v6144_v36, %s5526_s12 }
 0x1bd   : > { %9192 = vst [vmem:[#allocation56_spill] sm:$0xff] %v6150_v46 }
 0x1be   : > { %v6156_v5 = vpop.permute.xlu0 %1227  ;;  %1253 = vrot.lane.b32.xlu1 %v6154_v50, %s5525_s9 }
 0x1bf   : > { %9193 = vst [vmem:[#allocation57_spill] sm:$0xff] %v6156_v5  ;;  %v6176_v5 = vld [vmem:[#allocation2 + $0x139] sm:$0xff] }
 0x1c0   : > { %v6162_v39 = vpop.permute.xlu1 %1477  ;;  %1503 = vrot.lane.b32.xlu0 %v6160_v1, %s5527_s14 }
 0x1c1   : > { %9194 = vst [vmem:[#allocation58_spill] sm:$0xff] %v6162_v39 }
 0x1c2   : > { %v6168_v46 = vpop.permute.xlu0 %1355  ;;  %1381 = vrot.lane.b32.xlu1 %v6166_v53, %s5526_s12 }
 0x1c3   : > { %9195 = vst [vmem:[#allocation59_spill] sm:$0xff] %v6168_v46  ;;  %v6186_v46 = vld [vmem:[#allocation2 + $0x128] sm:$0xff] }
 0x1c4   : > { %v6172_v20 = vpop.permute.xlu1 %1229  ;;  %1631 = vrot.lane.b32.xlu0 %v6132_v14, %s5528_s15 }
 0x1c5   : > { %9196 = vst [vmem:[#allocation60_spill] sm:$0xff] %v6172_v20 }
 0x1c6   : > { %v6178_v35 = vpop.permute.xlu0 %1479  ;;  %1633 = vrot.lane.b32.xlu1 %v6154_v50, %s5528_s15 }
 0x1c7   : > { %9197 = vst [vmem:[#allocation61_spill] sm:$0xff] %v6178_v35  ;;  %v6198_v35 = vld [vmem:[#allocation2 + $0x141] sm:$0xff] }
 0x1c8   : > { %v6182_v39 = vpop.permute.xlu1 %1357  ;;  %1255 = vrot.lane.b32.xlu0 %v6176_v5, %s5525_s9 }
 0x1c9   : > { %9198 = vst [vmem:[#allocation62_spill] sm:$0xff] %v6182_v39 }
 0x1ca   : > { %v6190_v20 = vpop.permute.xlu0 %1607  ;;  %1505 = vrot.lane.b32.xlu1 %v6186_v46, %s5527_s14 }
 0x1cb   : > { %9199 = vst [vmem:[#allocation63_spill] sm:$0xff] %v6190_v20  ;;  %v6210_v20 = vld [vmem:[#allocation2 + $0x142] sm:$0xff] }
 0x1cc   : > { %v6194_v33 = vpop.permute.xlu1 %1609  ;;  %1383 = vrot.lane.b32.xlu0 %v6188_v29, %s5526_s12 }
 0x1cd   : > { %9200 = vst [vmem:[#allocation64_spill] sm:$0xff] %v6194_v33 }
 0x1ce   : > { %v6200_v39 = vpop.permute.xlu0 %1735  ;;  %1257 = vrot.lane.b32.xlu1 %v6198_v35, %s5525_s9 }
 0x1cf   : > { %9201 = vst [vmem:[#allocation65_spill] sm:$0xff] %v6200_v39  ;;  %v6220_v39 = vld [vmem:[#allocation2 + $0x151] sm:$0xff] }
 0x1d0   : > { %v6206_v25 = vpop.permute.xlu1 %1737  ;;  %1507 = vrot.lane.b32.xlu0 %v6204_v31, %s5527_s14 }
 0x1d1   : > { %9202 = vst [vmem:[#allocation66_spill] sm:$0xff] %v6206_v25 }
 0x1d2   : > { %v6212_v33 = vpop.permute.xlu0 %1231  ;;  %1385 = vrot.lane.b32.xlu1 %v6210_v20, %s5526_s12 }
 0x1d3   : > { %9203 = vst [vmem:[#allocation67_spill] sm:$0xff] %v6212_v33  ;;  %v6230_v33 = vld [vmem:[#allocation2 + $0x140] sm:$0xff] }
 0x1d4   : > { %v6216_v62 = vpop.permute.xlu1 %1481  ;;  %1635 = vrot.lane.b32.xlu0 %v6176_v5, %s5528_s15 }
 0x1d5   : > { %9204 = vst [vmem:[#allocation68_spill] sm:$0xff] %v6216_v62 }
 0x1d6   : > { %v6222_v28 = vpop.permute.xlu0 %1359  ;;  %1637 = vrot.lane.b32.xlu1 %v6198_v35, %s5528_s15 }
 0x1d7   : > { %9205 = vst [vmem:[#allocation69_spill] sm:$0xff] %v6222_v28  ;;  %v6242_v28 = vld [vmem:[#allocation2 + $0x159] sm:$0xff] }
 0x1d8   : > { %v6226_v25 = vpop.permute.xlu1 %1233  ;;  %1259 = vrot.lane.b32.xlu0 %v6220_v39, %s5525_s9 }
 0x1d9   : > { %9206 = vst [vmem:[#allocation70_spill] sm:$0xff] %v6226_v25 }
 0x1da   : > { %v6234_v62 = vpop.permute.xlu0 %1483  ;;  %1509 = vrot.lane.b32.xlu1 %v6230_v33, %s5527_s14 }
 0x1db   : > { %9207 = vst [vmem:[#allocation71_spill] sm:$0xff] %v6234_v62  ;;  %v6254_v62 = vld [vmem:[#allocation2 + $0x15a] sm:$0xff] }
 0x1dc   : > { %v6238_v19 = vpop.permute.xlu1 %1361  ;;  %1387 = vrot.lane.b32.xlu0 %v6232_v24, %s5526_s12 }
 0x1dd   : > { %9208 = vst [vmem:[#allocation72_spill] sm:$0xff] %v6238_v19 }
 0x1de   : > { %v6244_v25 = vpop.permute.xlu0 %1611  ;;  %1261 = vrot.lane.b32.xlu1 %v6242_v28, %s5525_s9 }
 0x1df   : > { %9209 = vst [vmem:[#allocation73_spill] sm:$0xff] %v6244_v25  ;;  %v6264_v25 = vld [vmem:[#allocation2 + $0x169] sm:$0xff] }
 0x1e0   : > { %v6250_v21 = vpop.permute.xlu1 %1613  ;;  %1511 = vrot.lane.b32.xlu0 %v6248_v17, %s5527_s14 }
 0x1e1   : > { %9210 = vst [vmem:[#allocation74_spill] sm:$0xff] %v6250_v21 }
 0x1e2   : > { %v6256_v19 = vpop.permute.xlu0 %1739  ;;  %1389 = vrot.lane.b32.xlu1 %v6254_v62, %s5526_s12 }
 0x1e3   : > { %9211 = vst [vmem:[#allocation75_spill] sm:$0xff] %v6256_v19  ;;  %v6274_v19 = vld [vmem:[#allocation2 + $0x158] sm:$0xff] }
 0x1e4   : > { %v6260_v15 = vpop.permute.xlu1 %1741  ;;  %1639 = vrot.lane.b32.xlu0 %v6220_v39, %s5528_s15 }
 0x1e5   : > { %9212 = vst [vmem:[#allocation76_spill] sm:$0xff] %v6260_v15 }
 0x1e6   : > { %v6266_v8 = vpop.permute.xlu0 %1235  ;;  %1641 = vrot.lane.b32.xlu1 %v6242_v28, %s5528_s15 }
 0x1e7   : > { %9213 = vst [vmem:[#allocation77_spill] sm:$0xff] %v6266_v8  ;;  %v6286_v8 = vld [vmem:[#allocation2 + $0x171] sm:$0xff] }
 0x1e8   : > { %v6270_v21 = vpop.permute.xlu1 %1485  ;;  %1263 = vrot.lane.b32.xlu0 %v6264_v25, %s5525_s9 }
 0x1e9   : > { %9214 = vst [vmem:[#allocation78_spill] sm:$0xff] %v6270_v21 }
 0x1ea   : > { %v6278_v15 = vpop.permute.xlu0 %1363  ;;  %1513 = vrot.lane.b32.xlu1 %v6274_v19, %s5527_s14 }
 0x1eb   : > { %9215 = vst [vmem:[#allocation79_spill] sm:$0xff] %v6278_v15  ;;  %v6298_v15 = vld [vmem:[#allocation2 + $0x172] sm:$0xff] }
 0x1ec   : > { %v6282_v12 = vpop.permute.xlu1 %1237  ;;  %1391 = vrot.lane.b32.xlu0 %v6276_v40, %s5526_s12 }
 0x1ed   : > { %9216 = vst [vmem:[#allocation80_spill] sm:$0xff] %v6282_v12 }
 0x1ee   : > { %v6288_v21 = vpop.permute.xlu0 %1487  ;;  %1265 = vrot.lane.b32.xlu1 %v6286_v8, %s5525_s9 }
 0x1ef   : > { %9217 = vst [vmem:[#allocation81_spill] sm:$0xff] %v6288_v21  ;;  %v6308_v21 = vld [vmem:[#allocation2 + $0x180] sm:$0xff] }
 0x1f0   : > { %v6294_v0 = vpop.permute.xlu1 %1365  ;;  %1515 = vrot.lane.b32.xlu0 %v6292_v4, %s5527_s14 }
 0x1f1   : > { %9218 = vst [vmem:[#allocation82_spill] sm:$0xff] %v6294_v0 }
 0x1f2   : > { %v6300_v12 = vpop.permute.xlu0 %1615  ;;  %1393 = vrot.lane.b32.xlu1 %v6298_v15, %s5526_s12 }
 0x1f3   : > { %9219 = vst [vmem:[#allocation83_spill] sm:$0xff] %v6300_v12  ;;  %v6318_v12 = vld [vmem:[#allocation2 + $0x170] sm:$0xff] }
 0x1f4   : > { %v6304_v13 = vpop.permute.xlu1 %1617  ;;  %1643 = vrot.lane.b32.xlu0 %v6264_v25, %s5528_s15 }
 0x1f5   : > { %9220 = vst [vmem:[#allocation84_spill] sm:$0xff] %v6304_v13 }
 0x1f6   : > { %v6310_v52 = vpop.permute.xlu0 %1743  ;;  %1645 = vrot.lane.b32.xlu1 %v6286_v8, %s5528_s15 }
 0x1f7   : > { %9221 = vst [vmem:[#allocation85_spill] sm:$0xff] %v6310_v52  ;;  %v6330_v52 = vld [vmem:[#allocation2 + $0x189] sm:$0xff] }
 0x1f8   : > { %v6314_v0 = vpop.permute.xlu1 %1745  ;;  %1519 = vrot.lane.b32.xlu0 %v6308_v21, %s5527_s14 }
 0x1f9   : > { %9222 = vst [vmem:[#allocation86_spill] sm:$0xff] %v6314_v0 }
 0x1fa   : > { %v6322_v13 = vpop.permute.xlu0 %1239  ;;  %1517 = vrot.lane.b32.xlu1 %v6318_v12, %s5527_s14 }
 0x1fb   : > { %9223 = vst [vmem:[#allocation87_spill] sm:$0xff] %v6322_v13  ;;  %v6340_v13 = vld [vmem:[#allocation2 + $0x188] sm:$0xff] }
 0x1fc   : > { %v6326_v60 = vpop.permute.xlu1 %1489  ;;  %1647 = vrot.lane.b32.xlu0 %v6320_v58, %s5528_s15 }
 0x1fd   : > { %9224 = vst [vmem:[#allocation88_spill] sm:$0xff] %v6326_v60 }
 0x1fe   : > { %v6332_v0 = vpop.permute.xlu0 %1367  ;;  %1649 = vrot.lane.b32.xlu1 %v6330_v52, %s5528_s15 }
 0x1ff   : > { %9225 = vst [vmem:[#allocation89_spill] sm:$0xff] %v6332_v0 }
 0x200   : > { %v6336_v22 = vpop.permute.xlu1 %1241  ;;  %1747 = vrot.lane.b32.xlu0 %v6017_v27, %s5529_s16 }
 0x201   : > { %9226 = vst [vmem:[#allocation90_spill] sm:$0xff] %v6336_v22 }
 0x202   : > { %v6342_v9 = vpop.permute.xlu0 %1491  ;;  %1521 = vrot.lane.b32.xlu1 %v6340_v13, %s5527_s14 }
 0x203   : > { %9227 = vst [vmem:[#allocation91_spill] sm:$0xff] %v6342_v9 }
 0x204   : > { %v6346_v60 = vpop.permute.xlu1 %1369  ;;  %1751 = vrot.lane.b32.xlu0 %v6056_v43, %s5529_s16 }
 0x205   : > { %9228 = vst [vmem:[#allocation92_spill] sm:$0xff] %v6346_v60 }
 0x206   : > { %v6350_v0 = vpop.permute.xlu0 %1619  ;;  %1749 = vrot.lane.b32.xlu1 %v6036_v34, %s5529_s16 }
 0x207   : > { %9229 = vst [vmem:[#allocation93_spill] sm:$0xff] %v6350_v0 }
 0x208   : > { %v6354_v22 = vpop.permute.xlu1 %1621  ;;  %1755 = vrot.lane.b32.xlu0 %v6100_v23, %s5529_s16 }
 0x209   : > { %9230 = vst [vmem:[#allocation94_spill] sm:$0xff] %v6354_v22 }
 0x20a   : > { %v6358_v27 = vpop.permute.xlu0 %1243  ;;  %1753 = vrot.lane.b32.xlu1 %v6078_v63, %s5529_s16 }
 0x20b   : > { %9231 = vst [vmem:[#allocation95_spill] sm:$0xff] %v6358_v27 }
 0x20c   : > { %v6362_v9 = vpop.permute.xlu1 %1493  ;;  %1759 = vrot.lane.b32.xlu0 %v6144_v36, %s5529_s16 }
 0x20d   : > { %9232 = vst [vmem:[#allocation96_spill] sm:$0xff] %v6362_v9 }
 0x20e   : > { %v6366_v43 = vpop.permute.xlu0 %1371  ;;  %1757 = vrot.lane.b32.xlu1 %v6122_v30, %s5529_s16 }
 0x20f   : > { %9233 = vst [vmem:[#allocation97_spill] sm:$0xff] %v6366_v43 }
 0x210   : > { %v6370_v34 = vpop.permute.xlu1 %1245  ;;  %1763 = vrot.lane.b32.xlu0 %v6188_v29, %s5529_s16 }
 0x211   : > { %9234 = vst [vmem:[#allocation98_spill] sm:$0xff] %v6370_v34  ;;  %v1081_v34 = vld [vmem:[#allocation2 + $0x78] sm:$0xff] }
 0x212   : > { %v6374_v23 = vpop.permute.xlu0 %1495  ;;  %1761 = vrot.lane.b32.xlu1 %v6166_v53, %s5529_s16  ;;  %v6394_v53 = vld [vmem:[#allocation2 + $0x182] sm:$0xff] }
 0x213   : > { %9235 = vst [vmem:[#allocation99_spill] sm:$0xff] %v6374_v23 }
 0x214   : > { %v6378_v63 = vpop.permute.xlu1 %1373  ;;  %1767 = vrot.lane.b32.xlu0 %v6232_v24, %s5529_s16 }
 0x215   : > { %9236 = vst [vmem:[#allocation100_spill] sm:$0xff] %v6378_v63 }
 0x216   : > { %v6382_v36 = vpop.permute.xlu0 %1623  ;;  %1765 = vrot.lane.b32.xlu1 %v6210_v20, %s5529_s16  ;;  %v1075_v20 = vld [vmem:[#allocation2 + $0x30] sm:$0xff] }
 0x217   : > { %9237 = vst [vmem:[#allocation101_spill] sm:$0xff] %v6382_v36  ;;  %v1077_v36 = vld [vmem:[#allocation2 + $0x48] sm:$0xff] }
 0x218   : > { %v6386_v30 = vpop.permute.xlu1 %1625  ;;  %1771 = vrot.lane.b32.xlu0 %v6276_v40, %s5529_s16 }
 0x219   : > { %9238 = vst [vmem:[#allocation102_spill] sm:$0xff] %v6386_v30 }
 0x21a   : > { %v6390_v29 = vpop.permute.xlu0 %1247  ;;  %1769 = vrot.lane.b32.xlu1 %v6254_v62, %s5529_s16 }
 0x21b   : > { %9239 = vst [vmem:[#allocation103_spill] sm:$0xff] %v6390_v29  ;;  %v6407_v29 = vld [vmem:[#allocation2 + $0x18a] sm:$0xff] }
 0x21c   : > { %v6396_v63 = vpop.permute.xlu1 %1497  ;;  %1775 = vrot.lane.b32.xlu0 %v6394_v53, %s5529_s16 }
 0x21d   : > { %9240 = vst [vmem:[#allocation104_spill] sm:$0xff] %v6396_v63 }
 0x21e   : > { %v6400_v24 = vpop.permute.xlu0 %1375  ;;  %1773 = vrot.lane.b32.xlu1 %v6298_v15, %s5529_s16 }
 0x21f   : > { %9241 = vst [vmem:[#allocation105_spill] sm:$0xff] %v6400_v24  ;;  %v1076_v24 = vld [vmem:[#allocation2 + $0x38] sm:$0xff] }
 0x220   : > { %v6404_v30 = vpop.permute.xlu1 %1249  ;;  %1843 = vrot.lane.b32.xlu0 %v1075_v20, %s5530_s17  ;;  %v1078_v20 = vld [vmem:[#allocation2 + $0x50] sm:$0xff] }
 0x221   : > { %9242 = vst [vmem:[#allocation106_spill] sm:$0xff] %v6404_v30  ;;  %v1079_v30 = vld [vmem:[#allocation2 + $0x60] sm:$0xff] }
 0x222   : > { %v6409_v62 = vpop.permute.xlu0 %1499  ;;  %1777 = vrot.lane.b32.xlu1 %v6407_v29, %s5529_s16 }
 0x223   : > { %9243 = vst [vmem:[#allocation107_spill] sm:$0xff] %v6409_v62 }
 0x224   : > { %v6413_v43 = vpop.permute.xlu1 %1377  ;;  %1847 = vrot.lane.b32.xlu0 %v1077_v36, %s5530_s17  ;;  %v1080_v36 = vld [vmem:[#allocation2 + $0x68] sm:$0xff] }
 0x225   : > { %9244 = vst [vmem:[#allocation108_spill] sm:$0xff] %v6413_v43 }
 0x226   : > { %v6416_v23 = vpop.permute.xlu0 %1627  ;;  %1845 = vrot.lane.b32.xlu1 %v1076_v24, %s5530_s17 }
 0x227   : > { %9245 = vst [vmem:[#allocation109_spill] sm:$0xff] %v6416_v23 }
 0x228   : > { %v6419_v63 = vpop.permute.xlu1 %1629  ;;  %1851 = vrot.lane.b32.xlu0 %v1079_v30, %s5530_s17 }
 0x229   : > { %9246 = vst [vmem:[#allocation110_spill] sm:$0xff] %v6419_v63 }
 0x22a   : > { %v6422_v62 = vpop.permute.xlu0 %1251  ;;  %1849 = vrot.lane.b32.xlu1 %v1078_v20, %s5530_s17 }
 0x22b   : > { %9247 = vst [vmem:[#allocation111_spill] sm:$0xff] %v6422_v62 }
 0x22c   : > { %v6425_v22 = vpop.permute.xlu1 %1501  ;;  %1855 = vrot.lane.b32.xlu0 %v1081_v34, %s5530_s17 }
 0x22d   : > { %9248 = vst [vmem:[#allocation112_spill] sm:$0xff] %v6425_v22 }
 0x22e   : > { %v6428_v43 = vpop.permute.xlu0 %1379  ;;  %1853 = vrot.lane.b32.xlu1 %v1080_v36, %s5530_s17 }
 0x22f   : > { %9249 = vst [vmem:[#allocation113_spill] sm:$0xff] %v6428_v43 }
 0x230   : > { %v6431_v24 = vpop.permute.xlu1 %1253  ;;  %1859 = vrot.lane.b32.xlu0 %v5917_v44, %s5530_s17 }
 0x231   : > { %9250 = vst [vmem:[#allocation114_spill] sm:$0xff] %v6431_v24 }
 0x232   : > { %v6435_v30 = vpop.permute.xlu0 %1503  ;;  %1857 = vrot.lane.b32.xlu1 %v5907_v38, %s5530_s17 }
 0x233   : > { %9251 = vst [vmem:[#allocation115_spill] sm:$0xff] %v6435_v30 }
 0x234   : > { %v6439_v20 = vpop.permute.xlu1 %1381  ;;  %1863 = vrot.lane.b32.xlu0 %v5953_v61, %s5530_s17 }
 0x235   : > { %9252 = vst [vmem:[#allocation116_spill] sm:$0xff] %v6439_v20 }
 0x236   : > { %v6443_v34 = vpop.permute.xlu0 %1631  ;;  %1861 = vrot.lane.b32.xlu1 %v5941_v55, %s5530_s17 }
 0x237   : > { %9253 = vst [vmem:[#allocation117_spill] sm:$0xff] %v6443_v34 }
 0x238   : > { %v6447_v36 = vpop.permute.xlu1 %1633  ;;  %1867 = vrot.lane.b32.xlu0 %v5991_v16, %s5530_s17 }
 0x239   : > { %9254 = vst [vmem:[#allocation118_spill] sm:$0xff] %v6447_v36 }
 0x23a   : > { %v6451_v44 = vpop.permute.xlu0 %1255  ;;  %1865 = vrot.lane.b32.xlu1 %v5979_v10, %s5530_s17 }
 0x23b   : > { %9255 = vst [vmem:[#allocation119_spill] sm:$0xff] %v6451_v44 }
 0x23c   : > { %v6455_v38 = vpop.permute.xlu1 %1505  ;;  %1871 = vrot.lane.b32.xlu0 %v6030_v32, %s5530_s17 }
 0x23d   : > { %9256 = vst [vmem:[#allocation120_spill] sm:$0xff] %v6455_v38 }
 0x23e   : > { %v6459_v61 = vpop.permute.xlu0 %1383  ;;  %1869 = vrot.lane.b32.xlu1 %v6015_v26, %s5530_s17 }
 0x23f   : > { %9257 = vst [vmem:[#allocation121_spill] sm:$0xff] %v6459_v61 }
 0x240   : > { %v6463_v55 = vpop.permute.xlu1 %1257  ;;  %1875 = vrot.lane.b32.xlu0 %v6072_v56, %s5530_s17 }
 0x241   : > { %9258 = vst [vmem:[#allocation122_spill] sm:$0xff] %v6463_v55  ;;  %v1153_v55 = vld [vmem:[#allocation2 + $0xda] sm:$0xff] }
 0x242   : > { %v6467_v16 = vpop.permute.xlu0 %1507  ;;  %1873 = vrot.lane.b32.xlu1 %v6054_v42, %s5530_s17 }
 0x243   : > { %9259 = vst [vmem:[#allocation123_spill] sm:$0xff] %v6467_v16 }
 0x244   : > { %v6471_v10 = vpop.permute.xlu1 %1385  ;;  %1879 = vrot.lane.b32.xlu0 %v6116_v59, %s5530_s17 }
 0x245   : > { %9260 = vst [vmem:[#allocation124_spill] sm:$0xff] %v6471_v10 }
 0x246   : > { %v6475_v32 = vpop.permute.xlu0 %1635  ;;  %1877 = vrot.lane.b32.xlu1 %v6098_v18, %s5530_s17 }
 0x247   : > { %9261 = vst [vmem:[#allocation125_spill] sm:$0xff] %v6475_v32  ;;  %v837_v32 = vld [vmem:[%s6521_s21 + $0xa0] sm:$0xff] }
 0x248   : > { %v6479_v26 = vpop.permute.xlu1 %1637  ;;  %1883 = vrot.lane.b32.xlu0 %v6160_v1, %s5530_s17 }
 0x249   : > { %9262 = vst [vmem:[#allocation126_spill] sm:$0xff] %v6479_v26 }
 0x24a   : > { %v6483_v56 = vpop.permute.xlu0 %1259  ;;  %1881 = vrot.lane.b32.xlu1 %v6142_v3, %s5530_s17 }
 0x24b   : > { %9263 = vst [vmem:[#allocation127_spill] sm:$0xff] %v6483_v56  ;;  %v1108_v56 = vld [vmem:[#allocation2 + $0x39] sm:$0xff] }
 0x24c   : > { %v6487_v42 = vpop.permute.xlu1 %1509  ;;  %1887 = vrot.lane.b32.xlu0 %v6204_v31, %s5530_s17 }
 0x24d   : > { %9264 = vst [vmem:[#allocation128_spill] sm:$0xff] %v6487_v42 }
 0x24e   : > { %v6491_v59 = vpop.permute.xlu0 %1387  ;;  %1885 = vrot.lane.b32.xlu1 %v6186_v46, %s5530_s17 }
 0x24f   : > { %9265 = vst [vmem:[#allocation129_spill] sm:$0xff] %v6491_v59  ;;  %v1106_v59 = vld [vmem:[#allocation2 + $0x1a0] sm:$0xff] }
 0x250   : > { %v6495_v18 = vpop.permute.xlu1 %1261  ;;  %1891 = vrot.lane.b32.xlu0 %v6248_v17, %s5530_s17  ;;  %v1105_v17 = vld [vmem:[#allocation2 + $0x198] sm:$0xff] }
 0x251   : > { %9266 = vst [vmem:[#allocation130_spill] sm:$0xff] %v6495_v18 }
 0x252   : > { %v6499_v1 = vpop.permute.xlu0 %1511  ;;  %1889 = vrot.lane.b32.xlu1 %v6230_v33, %s5530_s17  ;;  %v817_v33 = vld [vmem:[%s6521_s21] sm:$0xff] }
 0x253   : > { %9267 = vst [vmem:[#allocation131_spill] sm:$0xff] %v6499_v1  ;;  %v1121_v1 = vld [vmem:[#allocation2 + $0xd9] sm:$0xff] }
 0x254   : > { %v6503_v3 = vpop.permute.xlu1 %1389  ;;  %1895 = vrot.lane.b32.xlu0 %v6292_v4, %s5530_s17  ;;  %v9271_v4 = vmov 0.0  }
 0x255   : > { %9268 = vst [vmem:[#allocation132_spill] sm:$0xff] %v6503_v3  ;;  %762 = vst.msk [vmem:[#allocation3] sm:$0xff] %vm761_vm3, %v9271_v4  ;;  %v1107_v3 = vld [vmem:[#allocation2 + $0x31] sm:$0xff] }
 0x256   : > { %v6508_v31 = vpop.permute.xlu0 %1639  ;;  %1893 = vrot.lane.b32.xlu1 %v6274_v19, %s5530_s17  ;;  %763 = vst.msk [vmem:[#allocation3 + $0x8] sm:$0xff] %vm761_vm3, %v9271_v4  ;;  %766 = vst.msk [vmem:[#allocation3 + $0x18] sm:$0xff] %vm761_vm3, %v9271_v4 }
 0x257   : > { %9269 = vst [vmem:[#allocation133_spill] sm:$0xff] %v6508_v31  ;;  %767 = vst.msk [vmem:[#allocation3 + $0x20] sm:$0xff] %vm761_vm3, %v9271_v4  ;;  %v1119_v31 = vld [vmem:[#allocation2 + $0xc1] sm:$0xff] }
 0x258   : > { %v6512_v46 = vpop.permute.xlu1 %1641  ;;  %1899 = vrot.lane.b32.xlu0 %v6308_v21, %s5530_s17  ;;  %769 = vst.msk [vmem:[#allocation3 + $0x30] sm:$0xff] %vm761_vm3, %v9271_v4  ;;  %770 = vst.msk [vmem:[#allocation3 + $0x38] sm:$0xff] %vm761_vm3, %v9271_v4 }
 0x259   : > { %9270 = vst [vmem:[#allocation134_spill] sm:$0xff] %v6512_v46  ;;  %772 = vst.msk [vmem:[#allocation3 + $0x48] sm:$0xff] %vm761_vm3, %v9271_v4 }
 0x25a   : > { %773 = vst.msk [vmem:[#allocation3 + $0x50] sm:$0xff] %vm761_vm3, %v9271_v4  ;;  %775 = vst.msk [vmem:[#allocation3 + $0x60] sm:$0xff] %vm761_vm3, %v9271_v4  ;;  %v6595_v19 = vpop.permute.xlu0 %1263  ;;  %1897 = vrot.lane.b32.xlu1 %v6318_v12, %s5530_s17 }
 0x25b   : > { %776 = vst.msk [vmem:[#allocation3 + $0x68] sm:$0xff] %vm761_vm3, %v9271_v4  ;;  %778 = vst.msk [vmem:[#allocation3 + $0x78] sm:$0xff] %vm761_vm3, %v9271_v4 }
 0x25c   : > { %779 = vst.msk [vmem:[#allocation3 + $0x80] sm:$0xff] %vm761_vm3, %v9271_v4  ;;  %781 = vst.msk [vmem:[#allocation3 + $0x90] sm:$0xff] %vm761_vm3, %v9271_v4  ;;  %v6599_v21 = vpop.permute.xlu1 %1513  ;;  %1903 = vrot.lane.b32.xlu0 %v1105_v17, %s5530_s17  ;;  %v819_v17 = vld [vmem:[%s6521_s21 + $0x10] sm:$0xff] }
 0x25d   : > { %782 = vst.msk [vmem:[#allocation3 + $0x98] sm:$0xff] %vm761_vm3, %v9271_v4  ;;  %784 = vst.msk [vmem:[#allocation3 + $0xa8] sm:$0xff] %vm761_vm3, %v9271_v4 }
 0x25e   : > { %785 = vst.msk [vmem:[#allocation3 + $0xb0] sm:$0xff] %vm761_vm3, %v9271_v4  ;;  %787 = vst.msk [vmem:[#allocation3 + $0xc0] sm:$0xff] %vm761_vm3, %v9271_v4  ;;  %v6604_v46 = vpop.permute.xlu0 %1391  ;;  %1901 = vrot.lane.b32.xlu1 %v6340_v13, %s5530_s17 }
 0x25f   : > { %788 = vst.msk [vmem:[#allocation3 + $0xc8] sm:$0xff] %vm761_vm3, %v9271_v4  ;;  %790 = vst.msk [vmem:[#allocation3 + $0xd8] sm:$0xff] %vm761_vm3, %v9271_v4 }
 0x260   : > { %791 = vst.msk [vmem:[#allocation3 + $0xe0] sm:$0xff] %vm761_vm3, %v9271_v4  ;;  %793 = vst.msk [vmem:[#allocation3 + $0xf0] sm:$0xff] %vm761_vm3, %v9271_v4  ;;  %v6644_v13 = vpop.permute.xlu1 %1265  ;;  %1971 = vrot.lane.b32.xlu0 %v1107_v3, %s5531_s22 }
 0x261   : > { %794 = vst.msk [vmem:[#allocation3 + $0xf8] sm:$0xff] %vm761_vm3, %v9271_v4  ;;  %796 = vst.msk [vmem:[#allocation3 + $0x108] sm:$0xff] %vm761_vm3, %v9271_v4 }
 0x262   : > { %797 = vst.msk [vmem:[#allocation3 + $0x110] sm:$0xff] %vm761_vm3, %v9271_v4  ;;  %799 = vst.msk [vmem:[#allocation3 + $0x120] sm:$0xff] %vm761_vm3, %v9271_v4  ;;  %1905 = vrot.lane.b32.xlu1 %v1106_v59, %s5530_s17  ;;  %v820_v59 = vld [vmem:[%s6521_s21 + $0x18] sm:$0xff] }
 0x263   : > { %800 = vst.msk [vmem:[#allocation3 + $0x128] sm:$0xff] %vm761_vm3, %v9271_v4  ;;  %802 = vst.msk [vmem:[#allocation3 + $0x138] sm:$0xff] %vm761_vm3, %v9271_v4 }
 0x264   : > { %803 = vst.msk [vmem:[#allocation3 + $0x140] sm:$0xff] %vm761_vm3, %v9271_v4  ;;  %805 = vst.msk [vmem:[#allocation3 + $0x150] sm:$0xff] %vm761_vm3, %v9271_v4  ;;  %v6654_v18 = vpop.permute.xlu1 %1393 }
 0x265   : > { %806 = vst.msk [vmem:[#allocation3 + $0x158] sm:$0xff] %vm761_vm3, %v9271_v4  ;;  %808 = vst.msk [vmem:[#allocation3 + $0x168] sm:$0xff] %vm761_vm3, %v9271_v4 }
 0x266   : > { %809 = vst.msk [vmem:[#allocation3 + $0x170] sm:$0xff] %vm761_vm3, %v9271_v4  ;;  %811 = vst.msk [vmem:[#allocation3 + $0x180] sm:$0xff] %vm761_vm3, %v9271_v4  ;;  %1973 = vrot.lane.b32.xlu1 %v1108_v56, %s5531_s22  ;;  %v822_v56 = vld [vmem:[%s6521_s21 + $0x28] sm:$0xff] }
 0x267   : > { %812 = vst.msk [vmem:[#allocation3 + $0x188] sm:$0xff] %vm761_vm3, %v9271_v4  ;;  %814 = vst.msk [vmem:[#allocation3 + $0x198] sm:$0xff] %vm761_vm3, %v9271_v4 }
 0x268   : > { %815 = vst.msk [vmem:[#allocation3 + $0x1a0] sm:$0xff] %vm761_vm3, %v9271_v4  ;;  %9272 = vst [vmem:[#allocation135_spill] sm:$0xff] %v6595_v19  ;;  %v1109_v19 = vld [vmem:[#allocation2 + $0x49] sm:$0xff] }
 0x269   : > { %9273 = vst [vmem:[#allocation136_spill] sm:$0xff] %v6599_v21  ;;  %850 = vst.msk [vmem:[#allocation3 + $0x19] sm:$0xff] %vm761_vm3, %v817_v33  ;;  %v6649_v33 = vpop.permute.xlu0 %1515  ;;  %1975 = vrot.lane.b32.xlu0 %v1109_v19, %s5531_s22  ;;  %v1110_v19 = vld [vmem:[#allocation2 + $0x51] sm:$0xff] }
 0x26a   : > { %9274 = vst [vmem:[#allocation137_spill] sm:$0xff] %v6604_v46  ;;  %765 = vst.msk [vmem:[#allocation3 + $0x10] sm:$0x3] %vm764_vm4, %v9271_v4  ;;  %v818_v46 = vld [vmem:[%s6521_s21 + $0x8] sm:$0xff]  ;;  %1977 = vrot.lane.b32.xlu1 %v1110_v19, %s5531_s22  ;;  %v824_v19 = vld [vmem:[%s6521_s21 + $0x38] sm:$0xff] }
 0x26b   : > { %768 = vst.msk [vmem:[#allocation3 + $0x28] sm:$0x3] %vm764_vm4, %v9271_v4  ;;  %771 = vst.msk [vmem:[#allocation3 + $0x40] sm:$0x3] %vm764_vm4, %v9271_v4 }
 0x26c   : > { %774 = vst.msk [vmem:[#allocation3 + $0x58] sm:$0x3] %vm764_vm4, %v9271_v4  ;;  %777 = vst.msk [vmem:[#allocation3 + $0x70] sm:$0x3] %vm764_vm4, %v9271_v4 }
 0x26d   : > { %780 = vst.msk [vmem:[#allocation3 + $0x88] sm:$0x3] %vm764_vm4, %v9271_v4  ;;  %783 = vst.msk [vmem:[#allocation3 + $0xa0] sm:$0x3] %vm764_vm4, %v9271_v4  ;;  %v6659_v3 = vpop.permute.xlu0 %1643 }
 0x26e   : > { %786 = vst.msk [vmem:[#allocation3 + $0xb8] sm:$0x3] %vm764_vm4, %v9271_v4  ;;  %789 = vst.msk [vmem:[#allocation3 + $0xd0] sm:$0x3] %vm764_vm4, %v9271_v4 }
 0x26f   : > { %792 = vst.msk [vmem:[#allocation3 + $0xe8] sm:$0x3] %vm764_vm4, %v9271_v4  ;;  %795 = vst.msk [vmem:[#allocation3 + $0x100] sm:$0x3] %vm764_vm4, %v9271_v4 }
 0x270   : > { %798 = vst.msk [vmem:[#allocation3 + $0x118] sm:$0x3] %vm764_vm4, %v9271_v4  ;;  %801 = vst.msk [vmem:[#allocation3 + $0x130] sm:$0x3] %vm764_vm4, %v9271_v4 }
 0x271   : > { %804 = vst.msk [vmem:[#allocation3 + $0x148] sm:$0x3] %vm764_vm4, %v9271_v4  ;;  %807 = vst.msk [vmem:[#allocation3 + $0x160] sm:$0x3] %vm764_vm4, %v9271_v4 }
 0x272   : > { %810 = vst.msk [vmem:[#allocation3 + $0x178] sm:$0x3] %vm764_vm4, %v9271_v4  ;;  %813 = vst.msk [vmem:[#allocation3 + $0x190] sm:$0x3] %vm764_vm4, %v9271_v4 }
 0x273   : > { %816 = vst.msk [vmem:[#allocation3 + $0x1a8] sm:$0x3] %vm764_vm4, %v9271_v4  ;;  %9275 = vst [vmem:[#allocation138_spill] sm:$0xff] %v6649_v33  ;;  %v821_v4 = vld [vmem:[%s6521_s21 + $0x20] sm:$0xff]  ;;  %v6664_v33 = vpop.permute.xlu1 %1645  ;;  %vm4369_vm4 = vcmask 588800  }
 0x274   : > { %852 = vst.msk [vmem:[#allocation3 + $0x31] sm:$0xff] %vm761_vm3, %v819_v17  ;;  %851 = vst.msk [vmem:[#allocation3 + $0x21] sm:$0xff] %vm761_vm3, %v818_v46  ;;  %v1111_v17 = vld [vmem:[#allocation2 + $0x61] sm:$0xff]  ;;  %v823_v46 = vld [vmem:[%s6521_s21 + $0x30] sm:$0xff] }
 0x275   : > { %854 = vst.msk [vmem:[#allocation3 + $0x49] sm:$0xff] %vm761_vm3, %v821_v4  ;;  %9276 = vst [vmem:[#allocation139_spill] sm:$0xff] %v6659_v3  ;;  %1979 = vrot.lane.b32.xlu0 %v1111_v17, %s5531_s22  ;;  %v6670_v4 = vpop.permute.xlu0 %1519  ;;  %v1113_v3 = vld [vmem:[#allocation2 + $0x79] sm:$0xff]  ;;  %v1112_v17 = vld [vmem:[#allocation2 + $0x69] sm:$0xff] }
 0x276   : > { %853 = vst.msk [vmem:[#allocation3 + $0x39] sm:$0xff] %vm761_vm3, %v820_v59  ;;  %9277 = vst [vmem:[#allocation140_spill] sm:$0xff] %v6664_v33  ;;  %v825_v59 = vld [vmem:[%s6521_s21 + $0x40] sm:$0xff]  ;;  %1981 = vrot.lane.b32.xlu1 %v1112_v17, %s5531_s22  ;;  %v1115_v33 = vld [vmem:[#allocation2 + $0x91] sm:$0xff] }
 0x277   : > { %856 = vst.msk [vmem:[#allocation3 + $0x61] sm:$0xff] %vm761_vm3, %v823_v46  ;;  %9278 = vst [vmem:[#allocation141_spill] sm:$0xff] %v6670_v4  ;;  %v6674_v21 = vpop.permute.xlu1 %1517  ;;  %v826_v17 = vld [vmem:[%s6521_s21 + $0x48] sm:$0xff] }
 0x278   : > { %855 = vst.msk [vmem:[#allocation3 + $0x51] sm:$0xff] %vm761_vm3, %v822_v56  ;;  %9279 = vst [vmem:[#allocation142_spill] sm:$0xff] %v6674_v21  ;;  %v1114_v56 = vld [vmem:[#allocation2 + $0x81] sm:$0xff] }
 0x279   : > { %1983 = vrot.lane.b32.xlu0 %v1113_v3, %s5531_s22  ;;  %858 = vst.msk [vmem:[#allocation3 + $0x79] sm:$0xff] %vm761_vm3, %v825_v59  ;;  %v6680_v46 = vpop.permute.xlu0 %1647  ;;  %857 = vst.msk [vmem:[#allocation3 + $0x69] sm:$0xff] %vm761_vm3, %v824_v19  ;;  %v827_v3 = vld [vmem:[%s6521_s21 + $0x50] sm:$0xff]  ;;  %v1116_v19 = vld [vmem:[#allocation2 + $0x99] sm:$0xff] }
 0x27a   : > { %9280 = vst [vmem:[#allocation143_spill] sm:$0xff] %v6680_v46  ;;  %860 = vst.msk [vmem:[#allocation3 + $0x91] sm:$0xff] %vm761_vm3, %v827_v3  ;;  %1985 = vrot.lane.b32.xlu1 %v1114_v56, %s5531_s22  ;;  %v1117_v46 = vld [vmem:[#allocation2 + $0xa9] sm:$0xff]  ;;  %v828_v56 = vld [vmem:[%s6521_s21 + $0x58] sm:$0xff] }
 0x27b   : > { %v6684_v4 = vpop.permute.xlu1 %1649  ;;  %859 = vst.msk [vmem:[#allocation3 + $0x81] sm:$0xff] %vm761_vm3, %v826_v17  ;;  %861 = vst.msk [vmem:[#allocation3 + $0x99] sm:$0xff] %vm761_vm3, %v828_v56  ;;  %v1118_v17 = vld [vmem:[#allocation2 + $0xb1] sm:$0xff]  ;;  %v1120_v56 = vld [vmem:[#allocation2 + $0xc9] sm:$0xff] }
 0x27c   : > { %870 = vst.msk [vmem:[#allocation3 + $0x109] sm:$0xff] %vm761_vm3, %v837_v32  ;;  %v2524_v27 = vld [vmem:[#allocation3 + $0x22] sm:$0xff] }
 0x27d   : > { %1987 = vrot.lane.b32.xlu0 %v1115_v33, %s5531_s22  ;;  %v6690_v59 = vpop.permute.xlu0 %1747  ;;  %v829_v33 = vld [vmem:[%s6521_s21 + $0x60] sm:$0xff] }
 0x27e   : > { %9281 = vst [vmem:[#allocation144_spill] sm:$0xff] %v6690_v59  ;;  %862 = vst.msk [vmem:[#allocation3 + $0xa9] sm:$0xff] %vm761_vm3, %v829_v33  ;;  %1989 = vrot.lane.b32.xlu1 %v1116_v19, %s5531_s22  ;;  %v830_v19 = vld [vmem:[%s6521_s21 + $0x68] sm:$0xff] }
 0x27f   : > { %v6694_v21 = vpop.permute.xlu1 %1521  ;;  %863 = vst.msk [vmem:[#allocation3 + $0xb1] sm:$0xff] %vm761_vm3, %v830_v19  ;;  %v835_v19 = vld [vmem:[%s6521_s21 + $0x90] sm:$0xff] }
 0x280   : > { %868 = vst.msk [vmem:[#allocation3 + $0xf1] sm:$0xff] %vm761_vm3, %v835_v19  ;;  %v836_v19 = vld [vmem:[%s6521_s21 + $0x98] sm:$0xff] }
 0x281   : > { %1991 = vrot.lane.b32.xlu0 %v1117_v46, %s5531_s22  ;;  %v6700_v3 = vpop.permute.xlu0 %1751  ;;  %v831_v46 = vld [vmem:[%s6521_s21 + $0x70] sm:$0xff]  ;;  %869 = vst.msk [vmem:[#allocation3 + $0xf9] sm:$0xff] %vm761_vm3, %v836_v19  ;;  %v841_v19 = vld [vmem:[%s6521_s21 + $0xc0] sm:$0xff] }
 0x282   : > { %9282 = vst [vmem:[#allocation145_spill] sm:$0xff] %v6700_v3  ;;  %864 = vst.msk [vmem:[#allocation3 + $0xc1] sm:$0xff] %vm761_vm3, %v831_v46  ;;  %1993 = vrot.lane.b32.xlu1 %v1118_v17, %s5531_s22  ;;  %v832_v17 = vld [vmem:[%s6521_s21 + $0x78] sm:$0xff]  ;;  %v2496_v3 = vld [vmem:[#allocation3 + $0x51] sm:$0xff] }
 0x283   : > { %v6704_v26 = vpop.permute.xlu1 %1749  ;;  %865 = vst.msk [vmem:[#allocation3 + $0xc9] sm:$0xff] %vm761_vm3, %v832_v17  ;;  %874 = vst.msk [vmem:[#allocation3 + $0x139] sm:$0xff] %vm761_vm3, %v841_v19  ;;  %v2500_v20 = vld [vmem:[#allocation3 + $0x81] sm:$0xff] }
 0x284   : > { %9283 = vst [vmem:[#allocation146_spill] sm:$0xff] %v6704_v26  ;;  %v2498_v26 = vld [vmem:[#allocation3 + $0x69] sm:$0xff] }
 0x285   : > { %1995 = vrot.lane.b32.xlu0 %v1119_v31, %s5531_s22  ;;  %v6710_v33 = vpop.permute.xlu0 %1755  ;;  %v833_v31 = vld [vmem:[%s6521_s21 + $0x80] sm:$0xff]  ;;  %v2471_v45 = vld [vmem:[#allocation3 + $0xa8] sm:$0xff] }
 0x286   : > { %9284 = vst [vmem:[#allocation147_spill] sm:$0xff] %v6710_v33  ;;  %866 = vst.msk [vmem:[#allocation3 + $0xd9] sm:$0xff] %vm761_vm3, %v833_v31  ;;  %1997 = vrot.lane.b32.xlu1 %v1120_v56, %s5531_s22  ;;  %v834_v56 = vld [vmem:[%s6521_s21 + $0x88] sm:$0xff] }
 0x287   : > { %v6714_v10 = vpop.permute.xlu1 %1753  ;;  %867 = vst.msk [vmem:[#allocation3 + $0xe1] sm:$0xff] %vm761_vm3, %v834_v56  ;;  %v839_v56 = vld [vmem:[%s6521_s21 + $0xb0] sm:$0xff] }
 0x288   : > { %9285 = vst [vmem:[#allocation148_spill] sm:$0xff] %v6714_v10  ;;  %872 = vst.msk [vmem:[#allocation3 + $0x121] sm:$0xff] %vm761_vm3, %v839_v56  ;;  %v1151_v10 = vld [vmem:[#allocation2 + $0xc2] sm:$0xff] }
 0x289   : > { %1999 = vrot.lane.b32.xlu0 %v1121_v1, %s5531_s22  ;;  %v6720_v46 = vpop.permute.xlu0 %1759  ;;  %v1122_v1 = vld [vmem:[#allocation2 + $0xe1] sm:$0xff] }
 0x28a   : > { %9286 = vst [vmem:[#allocation149_spill] sm:$0xff] %v6720_v46  ;;  %2001 = vrot.lane.b32.xlu1 %v1122_v1, %s5531_s22  ;;  %v7468_v57 = vld [vmem:[#allocation3 + $0x138] sm:$0xff] }
 0x28b   : > { %v6724_v42 = vpop.permute.xlu1 %1757 }
 0x28c   : > { %9287 = vst [vmem:[#allocation150_spill] sm:$0xff] %v6724_v42  ;;  %v1149_v42 = vld [vmem:[#allocation2 + $0xaa] sm:$0xff] }
 0x28d   : > { %2003 = vrot.lane.b32.xlu0 %v6045_v37, %s5531_s22  ;;  %v6731_v31 = vpop.permute.xlu0 %1763 }
 0x28e   : > { %9288 = vst [vmem:[#allocation151_spill] sm:$0xff] %v6731_v31  ;;  %2005 = vrot.lane.b32.xlu1 %v6066_v51, %s5531_s22  ;;  %v838_v51 = vld [vmem:[%s6521_s21 + $0xa8] sm:$0xff] }
 0x28f   : > { %v6735_v17 = vpop.permute.xlu1 %1761  ;;  %871 = vst.msk [vmem:[#allocation3 + $0x111] sm:$0xff] %vm761_vm3, %v838_v51  ;;  %v843_v51 = vld [vmem:[%s6521_s21 + $0xd0] sm:$0xff] }
 0x290   : > { %9289 = vst [vmem:[#allocation152_spill] sm:$0xff] %v6735_v17  ;;  %876 = vst.msk [vmem:[#allocation3 + $0x151] sm:$0xff] %vm761_vm3, %v843_v51  ;;  %v1147_v17 = vld [vmem:[#allocation2 + $0x92] sm:$0xff] }
 0x291   : > { %2007 = vrot.lane.b32.xlu0 %v6088_v7, %s5531_s22  ;;  %v6743_v37 = vpop.permute.xlu0 %1767 }
 0x292   : > { %9290 = vst [vmem:[#allocation153_spill] sm:$0xff] %v6743_v37  ;;  %2009 = vrot.lane.b32.xlu1 %v6110_v11, %s5531_s22  ;;  %v840_v11 = vld [vmem:[%s6521_s21 + $0xb8] sm:$0xff] }
 0x293   : > { %v6747_v1 = vpop.permute.xlu1 %1765  ;;  %873 = vst.msk [vmem:[#allocation3 + $0x129] sm:$0xff] %vm761_vm3, %v840_v11  ;;  %v845_v11 = vld [vmem:[%s6521_s21 + $0xe0] sm:$0xff] }
 0x294   : > { %9291 = vst [vmem:[#allocation154_spill] sm:$0xff] %v6747_v1  ;;  %878 = vst.msk [vmem:[#allocation3 + $0x169] sm:$0xff] %vm761_vm3, %v845_v11  ;;  %v846_v11 = vld [vmem:[%s6521_s21 + $0xe8] sm:$0xff]  ;;  %v1145_v1 = vld [vmem:[#allocation2 + $0x7a] sm:$0xff] }
 0x295   : > { %2011 = vrot.lane.b32.xlu0 %v6132_v14, %s5531_s22  ;;  %v6755_v7 = vpop.permute.xlu0 %1771  ;;  %879 = vst.msk [vmem:[#allocation3 + $0x171] sm:$0xff] %vm761_vm3, %v846_v11  ;;  %v1141_v11 = vld [vmem:[#allocation2 + $0x4a] sm:$0xff] }
 0x296   : > { %9292 = vst [vmem:[#allocation155_spill] sm:$0xff] %v6755_v7  ;;  %2013 = vrot.lane.b32.xlu1 %v6154_v50, %s5531_s22  ;;  %v842_v50 = vld [vmem:[%s6521_s21 + $0xc8] sm:$0xff] }
 0x297   : > { %v6759_v32 = vpop.permute.xlu1 %1769  ;;  %875 = vst.msk [vmem:[#allocation3 + $0x141] sm:$0xff] %vm761_vm3, %v842_v50  ;;  %v1137_v50 = vld [vmem:[#allocation2 + $0x199] sm:$0xff] }
 0x298   : > { %9293 = vst [vmem:[#allocation156_spill] sm:$0xff] %v6759_v32  ;;  %v1143_v32 = vld [vmem:[#allocation2 + $0x62] sm:$0xff] }
 0x299   : > { %2015 = vrot.lane.b32.xlu0 %v6176_v5, %s5531_s22  ;;  %v6767_v14 = vpop.permute.xlu0 %1775  ;;  %v7504_v41 = vld [vmem:[#allocation3 + $0x150] sm:$0xff] }
 0x29a   : > { %9294 = vst [vmem:[#allocation157_spill] sm:$0xff] %v6767_v14  ;;  %2017 = vrot.lane.b32.xlu1 %v6198_v35, %s5531_s22  ;;  %v844_v35 = vld [vmem:[%s6521_s21 + $0xd8] sm:$0xff] }
 0x29b   : > { %v6771_v56 = vpop.permute.xlu1 %1773  ;;  %877 = vst.msk [vmem:[#allocation3 + $0x159] sm:$0xff] %vm761_vm3, %v844_v35  ;;  %v1139_v14 = vld [vmem:[#allocation2 + $0x32] sm:$0xff] }
 0x29c   : > { %9295 = vst [vmem:[#allocation158_spill] sm:$0xff] %v6771_v56  ;;  %v7031_v43 = vld [vmem:[#allocation3 + $0x129] sm:$0xff] }
 0x29d   : > { %2019 = vrot.lane.b32.xlu0 %v6220_v39, %s5531_s22  ;;  %v6779_v5 = vpop.permute.xlu0 %1843  ;;  %v2519_v23 = vld [vmem:[#allocation3 + $0x169] sm:$0xff] }
 0x29e   : > { %9296 = vst [vmem:[#allocation159_spill] sm:$0xff] %v6779_v5  ;;  %2021 = vrot.lane.b32.xlu1 %v6242_v28, %s5531_s22  ;;  %v7045_v59 = vld [vmem:[#allocation3 + $0x141] sm:$0xff] }
 0x29f   : > { %v6783_v19 = vpop.permute.xlu1 %1777  ;;  %v7478_v48 = vld [vmem:[#allocation3 + $0x140] sm:$0xff] }
 0x2a0   : > { %9430 = vst [vmem:[#allocation293_spill] sm:$0xff] %v7478_v48 }
 0x2a1   : > { %2023 = vrot.lane.b32.xlu0 %v6264_v25, %s5531_s22  ;;  %v6791_v39 = vpop.permute.xlu0 %1847 }
 0x2a2   : > { %9297 = vst [vmem:[#allocation160_spill] sm:$0xff] %v6791_v39  ;;  %2025 = vrot.lane.b32.xlu1 %v6286_v8, %s5531_s22 }
 0x2a3   : > { %v6795_v51 = vpop.permute.xlu1 %1845 }
 0x2a4   : > { %9298 = vst [vmem:[#allocation161_spill] sm:$0xff] %v6795_v51 }
 0x2a5   : > { %2027 = vrot.lane.b32.xlu0 %v6320_v58, %s5531_s22  ;;  %v6801_v25 = vpop.permute.xlu0 %1851  ;;  %v1138_v58 = vld [vmem:[#allocation2 + $0x1a1] sm:$0xff] }
 0x2a6   : > { %9299 = vst [vmem:[#allocation162_spill] sm:$0xff] %v6801_v25  ;;  %2029 = vrot.lane.b32.xlu1 %v6330_v52, %s5531_s22 }
 0x2a7   : > { %v6805_v28 = vpop.permute.xlu1 %1849 }
 0x2a8   : > { %9300 = vst [vmem:[#allocation163_spill] sm:$0xff] %v6805_v28 }
 0x2a9   : > { %2031 = vrot.lane.b32.xlu0 %v1137_v50, %s5531_s22  ;;  %v6810_v35 = vpop.permute.xlu0 %1855  ;;  %v1140_v50 = vld [vmem:[#allocation2 + $0x3a] sm:$0xff] }
 0x2aa   : > { %9301 = vst [vmem:[#allocation164_spill] sm:$0xff] %v6810_v35  ;;  %2033 = vrot.lane.b32.xlu1 %v1138_v58, %s5531_s22 }
 0x2ab   : > { %v6812_v56 = vpop.permute.xlu1 %1853 }
 0x2ac   : > { %9302 = vst [vmem:[#allocation165_spill] sm:$0xff] %v6812_v56 }
 0x2ad   : > { %2099 = vrot.lane.b32.xlu0 %v1139_v14, %s5532_s23  ;;  %v6816_v8 = vpop.permute.xlu0 %1859  ;;  %v1142_v14 = vld [vmem:[#allocation2 + $0x52] sm:$0xff] }
 0x2ae   : > { %9303 = vst [vmem:[#allocation166_spill] sm:$0xff] %v6816_v8  ;;  %2101 = vrot.lane.b32.xlu1 %v1140_v50, %s5532_s23  ;;  %v7195_v8 = vld [vmem:[#allocation3 + $0x15a] sm:$0xff] }
 0x2af   : > { %v6818_v7 = vpop.permute.xlu1 %1857 }
 0x2b0   : > { %9304 = vst [vmem:[#allocation167_spill] sm:$0xff] %v6818_v7 }
 0x2b1   : > { %2103 = vrot.lane.b32.xlu0 %v1141_v11, %s5532_s23  ;;  %v6822_v52 = vpop.permute.xlu0 %1863  ;;  %v1144_v11 = vld [vmem:[#allocation2 + $0x6a] sm:$0xff] }
 0x2b2   : > { %9305 = vst [vmem:[#allocation168_spill] sm:$0xff] %v6822_v52  ;;  %2105 = vrot.lane.b32.xlu1 %v1142_v14, %s5532_s23  ;;  %v7159_v52 = vld [vmem:[#allocation3 + $0x112] sm:$0xff] }
 0x2b3   : > { %v6824_v37 = vpop.permute.xlu1 %1861 }
 0x2b4   : > { %9306 = vst [vmem:[#allocation169_spill] sm:$0xff] %v6824_v37  ;;  %v7171_v37 = vld [vmem:[#allocation3 + $0x12a] sm:$0xff] }
 0x2b5   : > { %2107 = vrot.lane.b32.xlu0 %v1143_v32, %s5532_s23  ;;  %v6828_v58 = vpop.permute.xlu0 %1867  ;;  %v1146_v32 = vld [vmem:[#allocation2 + $0x82] sm:$0xff] }
 0x2b6   : > { %9307 = vst [vmem:[#allocation170_spill] sm:$0xff] %v6828_v58  ;;  %2109 = vrot.lane.b32.xlu1 %v1144_v11, %s5532_s23 }
 0x2b7   : > { %v6830_v31 = vpop.permute.xlu1 %1865 }
 0x2b8   : > { %9308 = vst [vmem:[#allocation171_spill] sm:$0xff] %v6830_v31 }
 0x2b9   : > { %2111 = vrot.lane.b32.xlu0 %v1145_v1, %s5532_s23  ;;  %v6834_v50 = vpop.permute.xlu0 %1871  ;;  %v1148_v1 = vld [vmem:[#allocation2 + $0x9a] sm:$0xff] }
 0x2ba   : > { %9309 = vst [vmem:[#allocation172_spill] sm:$0xff] %v6834_v50  ;;  %2113 = vrot.lane.b32.xlu1 %v1146_v32, %s5532_s23  ;;  %v2520_v50 = vld [vmem:[#allocation3 + $0x171] sm:$0xff] }
 0x2bb   : > { %v6836_v46 = vpop.permute.xlu1 %1869 }
 0x2bc   : > { %9310 = vst [vmem:[#allocation173_spill] sm:$0xff] %v6836_v46  ;;  %v2523_v46 = vld [vmem:[#allocation3 + $0x1a] sm:$0xff] }
 0x2bd   : > { %2115 = vrot.lane.b32.xlu0 %v1147_v17, %s5532_s23  ;;  %v6840_v14 = vpop.permute.xlu0 %1875  ;;  %v1150_v17 = vld [vmem:[#allocation2 + $0xb2] sm:$0xff] }
 0x2be   : > { %9311 = vst [vmem:[#allocation174_spill] sm:$0xff] %v6840_v14  ;;  %2117 = vrot.lane.b32.xlu1 %v1148_v1, %s5532_s23  ;;  %v7019_v14 = vld [vmem:[#allocation3 + $0x111] sm:$0xff] }
 0x2bf   : > { %v6842_v16 = vpop.permute.xlu1 %1873 }
 0x2c0   : > { %9312 = vst [vmem:[#allocation175_spill] sm:$0xff] %v6842_v16 }
 0x2c1   : > { %2119 = vrot.lane.b32.xlu0 %v1149_v42, %s5532_s23  ;;  %v6846_v11 = vpop.permute.xlu0 %1879  ;;  %v1152_v42 = vld [vmem:[#allocation2 + $0xca] sm:$0xff] }
 0x2c2   : > { %9313 = vst [vmem:[#allocation176_spill] sm:$0xff] %v6846_v11  ;;  %2121 = vrot.lane.b32.xlu1 %v1150_v17, %s5532_s23  ;;  %v1155_v11 = vld [vmem:[#allocation2 + $0xf2] sm:$0xff] }
 0x2c3   : > { %v6848_v33 = vpop.permute.xlu1 %1877 }
 0x2c4   : > { %9314 = vst [vmem:[#allocation177_spill] sm:$0xff] %v6848_v33 }
 0x2c5   : > { %2123 = vrot.lane.b32.xlu0 %v1151_v10, %s5532_s23  ;;  %v6852_v32 = vpop.permute.xlu0 %1883  ;;  %v1154_v10 = vld [vmem:[#allocation2 + $0xe2] sm:$0xff] }
 0x2c6   : > { %9315 = vst [vmem:[#allocation178_spill] sm:$0xff] %v6852_v32  ;;  %2125 = vrot.lane.b32.xlu1 %v1152_v42, %s5532_s23  ;;  %v1157_v32 = vld [vmem:[#allocation2 + $0x10a] sm:$0xff] }
 0x2c7   : > { %v6854_v36 = vpop.permute.xlu1 %1881 }
 0x2c8   : > { %9316 = vst [vmem:[#allocation179_spill] sm:$0xff] %v6854_v36 }
 0x2c9   : > { %2127 = vrot.lane.b32.xlu0 %v1153_v55, %s5532_s23  ;;  %v6858_v1 = vpop.permute.xlu0 %1887  ;;  %v1156_v55 = vld [vmem:[#allocation2 + $0xfa] sm:$0xff] }
 0x2ca   : > { %9317 = vst [vmem:[#allocation180_spill] sm:$0xff] %v6858_v1  ;;  %2129 = vrot.lane.b32.xlu1 %v1154_v10, %s5532_s23  ;;  %v1159_v1 = vld [vmem:[#allocation2 + $0x122] sm:$0xff] }
 0x2cb   : > { %v6860_v61 = vpop.permute.xlu1 %1885 }
 0x2cc   : > { %9318 = vst [vmem:[#allocation181_spill] sm:$0xff] %v6860_v61 }
 0x2cd   : > { %2131 = vrot.lane.b32.xlu0 %v1155_v11, %s5532_s23  ;;  %v6864_v17 = vpop.permute.xlu0 %1891  ;;  %v1158_v11 = vld [vmem:[#allocation2 + $0x112] sm:$0xff] }
 0x2ce   : > { %9319 = vst [vmem:[#allocation182_spill] sm:$0xff] %v6864_v17  ;;  %2133 = vrot.lane.b32.xlu1 %v1156_v55, %s5532_s23  ;;  %v1161_v17 = vld [vmem:[#allocation2 + $0x13a] sm:$0xff]  ;;  %v2226_v55 = vsel %vm672_vm1, %v6318_v12, %v6644_v13 }
 0x2cf   : > { %v6866_v33 = vpop.permute.xlu1 %1889 }
 0x2d0   : > { %9320 = vst [vmem:[#allocation183_spill] sm:$0xff] %v6866_v33 }
 0x2d1   : > { %2135 = vrot.lane.b32.xlu0 %v1157_v32, %s5532_s23  ;;  %v6870_v42 = vpop.permute.xlu0 %1895  ;;  %v1160_v32 = vld [vmem:[#allocation2 + $0x12a] sm:$0xff] }
 0x2d2   : > { %9321 = vst [vmem:[#allocation184_spill] sm:$0xff] %v6870_v42  ;;  %2137 = vrot.lane.b32.xlu1 %v1158_v11, %s5532_s23  ;;  %v1163_v11 = vld [vmem:[#allocation2 + $0x152] sm:$0xff] }
 0x2d3   : > { %v6872_v36 = vpop.permute.xlu1 %1893 }
 0x2d4   : > { %9322 = vst [vmem:[#allocation185_spill] sm:$0xff] %v6872_v36  ;;  %v2494_v36 = vld [vmem:[#allocation3 + $0x39] sm:$0xff] }
 0x2d5   : > { %2139 = vrot.lane.b32.xlu0 %v1159_v1, %s5532_s23  ;;  %v6876_v10 = vpop.permute.xlu0 %1899  ;;  %v2259_v1 = vsel %vm2227_vm5, %v2226_v55, %v6654_v18  ;;  %v1164_v55 = vld [vmem:[#allocation2 + $0x15a] sm:$0xff] }
 0x2d6   : > { %9323 = vst [vmem:[#allocation186_spill] sm:$0xff] %v6876_v10  ;;  %2141 = vrot.lane.b32.xlu1 %v1160_v32, %s5532_s23  ;;  %v2292_v10 = vsel %vm2260_vm6, %v2259_v1, %v6694_v21 }
 0x2d7   : > { %v6878_v61 = vpop.permute.xlu1 %1897  ;;  %v2325_v13 = vsel %vm2293_vm7, %v2292_v10, %v6684_v4  ;;  %v1169_v4 = vld [vmem:[#allocation2 + $0x19a] sm:$0xff]  ;;  %v2489_v10 = vld [vmem:[#allocation3 + $0x1] sm:$0xff] }
 0x2d8   : > { %9324 = vst [vmem:[#allocation187_spill] sm:$0xff] %v6878_v61  ;;  %v2358_v18 = vsel %vm2326_vm8, %v2325_v13, %v6783_v19  ;;  %v1170_v13 = vld [vmem:[#allocation2 + $0x1a2] sm:$0xff] }
 0x2d9   : > { %2143 = vrot.lane.b32.xlu0 %v1161_v17, %s5532_s23  ;;  %v6885_v42 = vpop.permute.xlu0 %1903  ;;  %v1162_v17 = vld [vmem:[#allocation2 + $0x142] sm:$0xff] }
 0x2da   : > { %9325 = vst [vmem:[#allocation188_spill] sm:$0xff] %v6885_v42  ;;  %2145 = vrot.lane.b32.xlu1 %v1162_v17, %s5532_s23  ;;  %v2492_v42 = vld [vmem:[#allocation3 + $0x21] sm:$0xff] }
 0x2db   : > { %v6891_v61 = vpop.permute.xlu1 %1901 }
 0x2dc   : > { %9326 = vst [vmem:[#allocation189_spill] sm:$0xff] %v6891_v61 }
 0x2dd   : > { %2147 = vrot.lane.b32.xlu0 %v1163_v11, %s5532_s23  ;;  %v6895_v12 = vpop.permute.xlu0 %1971 }
 0x2de   : > { %9327 = vst [vmem:[#allocation190_spill] sm:$0xff] %v6895_v12  ;;  %2149 = vrot.lane.b32.xlu1 %v1164_v55, %s5532_s23 }
 0x2df   : > { %v1906_v32 = vpop.permute.xlu1 %1905 }
 0x2e0   : > { %v6904_v21 = vsel %vm2359_vm9, %v2358_v18, %v1906_v32  ;;  %v2490_v32 = vld [vmem:[#allocation3 + $0x9] sm:$0xff] }
 0x2e1   : > { %2151 = vrot.lane.b32.xlu0 %v6276_v40, %s5532_s23  ;;  %v6907_v1 = vpop.permute.xlu0 %1975 }
 0x2e2   : > { %9328 = vst [vmem:[#allocation191_spill] sm:$0xff] %v6907_v1  ;;  %2153 = vrot.lane.b32.xlu1 %v6298_v15, %s5532_s23  ;;  %v848_v1 = vld [vmem:[%s6521_s21 + $0xf8] sm:$0xff] }
 0x2e3   : > { %v6909_v11 = vpop.permute.xlu1 %1973  ;;  %881 = vst.msk [vmem:[#allocation3 + $0x189] sm:$0xff] %vm761_vm3, %v848_v1 }
 0x2e4   : > { %9329 = vst [vmem:[#allocation192_spill] sm:$0xff] %v6909_v11 }
 0x2e5   : > { %2155 = vrot.lane.b32.xlu0 %v6394_v53, %s5532_s23  ;;  %v2491_v53 = vld [vmem:[#allocation3 + $0x19] sm:$0xff] }
 0x2e6   : > { %2157 = vrot.lane.b32.xlu1 %v6407_v29, %s5532_s23 }
 0x2e7   : > { %v6915_v19 = vpop.permute.xlu0 %1979  ;;  %v6917_v40 = vpop.permute.xlu1 %1977 }
 0x2e8   : > { %9330 = vst [vmem:[#allocation193_spill] sm:$0xff] %v6915_v19  ;;  %9331 = vst [vmem:[#allocation194_spill] sm:$0xff] %v6917_v40  ;;  %v7318_v40 = vld [vmem:[#allocation3 + $0xf8] sm:$0xff] }
 0x2e9   : > { %2159 = vrot.lane.b32.xlu0 %v1169_v4, %s5532_s23  ;;  %v2493_v4 = vld [vmem:[#allocation3 + $0x31] sm:$0xff] }
 0x2ea   : > { %2161 = vrot.lane.b32.xlu1 %v1170_v13, %s5532_s23 }
 0x2eb   : > { %v6922_v17 = vpop.permute.xlu0 %1983  ;;  %v6924_v18 = vpop.permute.xlu1 %1981 }
 0x2ec   : > { %9332 = vst [vmem:[#allocation195_spill] sm:$0xff] %v6922_v17  ;;  %9333 = vst [vmem:[#allocation196_spill] sm:$0xff] %v6924_v18 }
 0x2ed   : > { %2778 = vrot.lane.b32.xlu0 %v2489_v10, %s5533_s26  ;;  %v2495_v10 = vld [vmem:[#allocation3 + $0x49] sm:$0xff] }
 0x2ee   : > { %2780 = vrot.lane.b32.xlu1 %v2490_v32, %s5533_s26 }
 0x2ef   : > { %v6928_v15 = vpop.permute.xlu0 %1987  ;;  %v6930_v55 = vpop.permute.xlu1 %1985 }
 0x2f0   : > { %9334 = vst [vmem:[#allocation197_spill] sm:$0xff] %v6928_v15  ;;  %9335 = vst [vmem:[#allocation198_spill] sm:$0xff] %v6930_v55  ;;  %v7189_v55 = vld [vmem:[#allocation3 + $0x16a] sm:$0xff] }
 0x2f1   : > { %2782 = vrot.lane.b32.xlu0 %v2491_v53, %s5533_s26  ;;  %v2497_v53 = vld [vmem:[#allocation3 + $0x61] sm:$0xff] }
 0x2f2   : > { %2784 = vrot.lane.b32.xlu1 %v2492_v42, %s5533_s26 }
 0x2f3   : > { %v6934_v29 = vpop.permute.xlu0 %1991  ;;  %v6936_v61 = vpop.permute.xlu1 %1989 }
 0x2f4   : > { %9336 = vst [vmem:[#allocation199_spill] sm:$0xff] %v6934_v29  ;;  %9337 = vst [vmem:[#allocation200_spill] sm:$0xff] %v6936_v61  ;;  %v2526_v29 = vld [vmem:[#allocation3 + $0x3a] sm:$0xff] }
 0x2f5   : > { %2786 = vrot.lane.b32.xlu0 %v2493_v4, %s5533_s26  ;;  %v2499_v4 = vld [vmem:[#allocation3 + $0x79] sm:$0xff] }
 0x2f6   : > { %2788 = vrot.lane.b32.xlu1 %v2494_v36, %s5533_s26 }
 0x2f7   : > { %v6940_v13 = vpop.permute.xlu0 %1995  ;;  %v6942_v33 = vpop.permute.xlu1 %1993 }
 0x2f8   : > { %9338 = vst [vmem:[#allocation201_spill] sm:$0xff] %v6940_v13  ;;  %9339 = vst [vmem:[#allocation202_spill] sm:$0xff] %v6942_v33  ;;  %v2522_v33 = vld [vmem:[#allocation3 + $0xa] sm:$0xff] }
 0x2f9   : > { %2790 = vrot.lane.b32.xlu0 %v2495_v10, %s5533_s26  ;;  %v2501_v10 = vld [vmem:[#allocation3 + $0x91] sm:$0xff] }
 0x2fa   : > { %2792 = vrot.lane.b32.xlu1 %v2496_v3, %s5533_s26 }
 0x2fb   : > { %v6946_v32 = vpop.permute.xlu0 %1999  ;;  %v6948_v44 = vpop.permute.xlu1 %1997 }
 0x2fc   : > { %9340 = vst [vmem:[#allocation203_spill] sm:$0xff] %v6946_v32  ;;  %9341 = vst [vmem:[#allocation204_spill] sm:$0xff] %v6948_v44  ;;  %v2521_v32 = vld [vmem:[#allocation3 + $0x2] sm:$0xff] }
 0x2fd   : > { %2794 = vrot.lane.b32.xlu0 %v2497_v53, %s5533_s26  ;;  %v2503_v53 = vld [vmem:[#allocation3 + $0xa9] sm:$0xff] }
 0x2fe   : > { %2796 = vrot.lane.b32.xlu1 %v2498_v26, %s5533_s26 }
 0x2ff   : > { %v6952_v42 = vpop.permute.xlu0 %2003  ;;  %v6954_v34 = vpop.permute.xlu1 %2001 }
 0x300   : > { %9342 = vst [vmem:[#allocation205_spill] sm:$0xff] %v6952_v42  ;;  %9343 = vst [vmem:[#allocation206_spill] sm:$0xff] %v6954_v34  ;;  %v2502_v42 = vld [vmem:[#allocation3 + $0x99] sm:$0xff] }
 0x301   : > { %2798 = vrot.lane.b32.xlu0 %v2499_v4, %s5533_s26  ;;  %v6969_v4 = vld [vmem:[#allocation3 + $0xc1] sm:$0xff] }
 0x302   : > { %2800 = vrot.lane.b32.xlu1 %v2500_v20, %s5533_s26  ;;  %v6978_v20 = vld [vmem:[#allocation3 + $0xd9] sm:$0xff] }
 0x303   : > { %v6958_v36 = vpop.permute.xlu0 %2007  ;;  %v6960_v38 = vpop.permute.xlu1 %2005 }
 0x304   : > { %9344 = vst [vmem:[#allocation207_spill] sm:$0xff] %v6958_v36  ;;  %9345 = vst [vmem:[#allocation208_spill] sm:$0xff] %v6960_v38  ;;  %v2504_v36 = vld [vmem:[#allocation3 + $0xb1] sm:$0xff] }
 0x305   : > { %2802 = vrot.lane.b32.xlu0 %v2501_v10, %s5533_s26 }
 0x306   : > { %2804 = vrot.lane.b32.xlu1 %v2502_v42, %s5533_s26  ;;  %v6989_v42 = vld [vmem:[#allocation3 + $0xf1] sm:$0xff] }
 0x307   : > { %v6964_v3 = vpop.permute.xlu0 %2011  ;;  %v6966_v30 = vpop.permute.xlu1 %2009 }
 0x308   : > { %9346 = vst [vmem:[#allocation209_spill] sm:$0xff] %v6964_v3  ;;  %9347 = vst [vmem:[#allocation210_spill] sm:$0xff] %v6966_v30  ;;  %v6983_v3 = vld [vmem:[#allocation3 + $0xc9] sm:$0xff] }
 0x309   : > { %2806 = vrot.lane.b32.xlu0 %v2503_v53, %s5533_s26 }
 0x30a   : > { %2808 = vrot.lane.b32.xlu1 %v2504_v36, %s5533_s26  ;;  %v7001_v36 = vld [vmem:[#allocation3 + $0x109] sm:$0xff] }
 0x30b   : > { %v6972_v26 = vpop.permute.xlu0 %2015  ;;  %v6974_v38 = vpop.permute.xlu1 %2013 }
 0x30c   : > { %9348 = vst [vmem:[#allocation211_spill] sm:$0xff] %v6972_v26  ;;  %9349 = vst [vmem:[#allocation212_spill] sm:$0xff] %v6974_v38  ;;  %v6995_v38 = vld [vmem:[#allocation3 + $0xe1] sm:$0xff] }
 0x30d   : > { %2810 = vrot.lane.b32.xlu0 %v6969_v4, %s5533_s26 }
 0x30e   : > { %2812 = vrot.lane.b32.xlu1 %v6983_v3, %s5533_s26 }
 0x30f   : > { %v6981_v10 = vpop.permute.xlu0 %2019  ;;  %v6985_v53 = vpop.permute.xlu1 %2017 }
 0x310   : > { %9350 = vst [vmem:[#allocation213_spill] sm:$0xff] %v6981_v10  ;;  %9351 = vst [vmem:[#allocation214_spill] sm:$0xff] %v6985_v53  ;;  %v7007_v53 = vld [vmem:[#allocation3 + $0xf9] sm:$0xff] }
 0x311   : > { %2814 = vrot.lane.b32.xlu0 %v6978_v20, %s5533_s26 }
 0x312   : > { %2816 = vrot.lane.b32.xlu1 %v6995_v38, %s5533_s26 }
 0x313   : > { %v6993_v26 = vpop.permute.xlu0 %2023  ;;  %v6997_v30 = vpop.permute.xlu1 %2021 }
 0x314   : > { %9352 = vst [vmem:[#allocation215_spill] sm:$0xff] %v6993_v26  ;;  %9353 = vst [vmem:[#allocation216_spill] sm:$0xff] %v6997_v30  ;;  %v7013_v26 = vld [vmem:[#allocation3 + $0x121] sm:$0xff] }
 0x315   : > { %2818 = vrot.lane.b32.xlu0 %v6989_v42, %s5533_s26 }
 0x316   : > { %2820 = vrot.lane.b32.xlu1 %v7007_v53, %s5533_s26 }
 0x317   : > { %v7005_v10 = vpop.permute.xlu0 %2027  ;;  %v7009_v34 = vpop.permute.xlu1 %2025 }
 0x318   : > { %9354 = vst [vmem:[#allocation217_spill] sm:$0xff] %v7005_v10  ;;  %9355 = vst [vmem:[#allocation218_spill] sm:$0xff] %v7009_v34  ;;  %v7025_v10 = vld [vmem:[#allocation3 + $0x139] sm:$0xff] }
 0x319   : > { %2822 = vrot.lane.b32.xlu0 %v7001_v36, %s5533_s26 }
 0x31a   : > { %2824 = vrot.lane.b32.xlu1 %v7019_v14, %s5533_s26 }
 0x31b   : > { %v7017_v30 = vpop.permute.xlu0 %2031  ;;  %v7021_v24 = vpop.permute.xlu1 %2029 }
 0x31c   : > { %9356 = vst [vmem:[#allocation219_spill] sm:$0xff] %v7017_v30  ;;  %9357 = vst [vmem:[#allocation220_spill] sm:$0xff] %v7021_v24  ;;  %v7039_v24 = vld [vmem:[#allocation3 + $0x151] sm:$0xff] }
 0x31d   : > { %2826 = vrot.lane.b32.xlu0 %v7013_v26, %s5533_s26 }
 0x31e   : > { %2828 = vrot.lane.b32.xlu1 %v7031_v43, %s5533_s26 }
 0x31f   : > { %v7029_v34 = vpop.permute.xlu0 %2099  ;;  %v2034_v16 = vpop.permute.xlu1 %2033 }
 0x320   : > { %9358 = vst [vmem:[#allocation221_spill] sm:$0xff] %v7029_v34  ;;  %v7037_v30 = vsel %vm2392_vm10, %v6904_v21, %v2034_v16  ;;  %v7055_v21 = vld [vmem:[#allocation3 + $0x159] sm:$0xff] }
 0x321   : > { %2830 = vrot.lane.b32.xlu0 %v7025_v10, %s5533_s26  ;;  %9359 = vst [vmem:[#allocation222_spill] sm:$0xff] %v7037_v30 }
 0x322   : > { %2832 = vrot.lane.b32.xlu1 %v7045_v59, %s5533_s26 }
 0x323   : > { %v7043_v63 = vpop.permute.xlu0 %2103  ;;  %v7047_v62 = vpop.permute.xlu1 %2101 }
 0x324   : > { %9360 = vst [vmem:[#allocation223_spill] sm:$0xff] %v7043_v63  ;;  %9361 = vst [vmem:[#allocation224_spill] sm:$0xff] %v7047_v62 }
 0x325   : > { %2834 = vrot.lane.b32.xlu0 %v7039_v24, %s5533_s26 }
 0x326   : > { %2836 = vrot.lane.b32.xlu1 %v7055_v21, %s5533_s26 }
 0x327   : > { %v7053_v16 = vpop.permute.xlu0 %2107  ;;  %v7057_v30 = vpop.permute.xlu1 %2105 }
 0x328   : > { %9362 = vst [vmem:[#allocation225_spill] sm:$0xff] %v7053_v16  ;;  %9363 = vst [vmem:[#allocation226_spill] sm:$0xff] %v7057_v30 }
 0x329   : > { %2838 = vrot.lane.b32.xlu0 %v2519_v23, %s5533_s26  ;;  %v2525_v23 = vld [vmem:[#allocation3 + $0x32] sm:$0xff] }
 0x32a   : > { %2840 = vrot.lane.b32.xlu1 %v2520_v50, %s5533_s26 }
 0x32b   : > { %v7062_v44 = vpop.permute.xlu0 %2111  ;;  %v7064_v22 = vpop.permute.xlu1 %2109 }
 0x32c   : > { %9364 = vst [vmem:[#allocation227_spill] sm:$0xff] %v7062_v44  ;;  %9365 = vst [vmem:[#allocation228_spill] sm:$0xff] %v7064_v22 }
 0x32d   : > { %2906 = vrot.lane.b32.xlu0 %v2521_v32, %s5525_s9  ;;  %v2527_v32 = vld [vmem:[#allocation3 + $0x4a] sm:$0xff] }
 0x32e   : > { %2908 = vrot.lane.b32.xlu1 %v2522_v33, %s5525_s9 }
 0x32f   : > { %v7068_v13 = vpop.permute.xlu0 %2115  ;;  %v7070_v58 = vpop.permute.xlu1 %2113 }
 0x330   : > { %9366 = vst [vmem:[#allocation229_spill] sm:$0xff] %v7068_v13  ;;  %9367 = vst [vmem:[#allocation230_spill] sm:$0xff] %v7070_v58  ;;  %v7183_v58 = vld [vmem:[#allocation3 + $0x142] sm:$0xff] }
 0x331   : > { %2910 = vrot.lane.b32.xlu0 %v2523_v46, %s5525_s9  ;;  %v2529_v46 = vld [vmem:[#allocation3 + $0x62] sm:$0xff] }
 0x332   : > { %2912 = vrot.lane.b32.xlu1 %v2524_v27, %s5525_s9 }
 0x333   : > { %v7074_v31 = vpop.permute.xlu0 %2119  ;;  %v7076_v0 = vpop.permute.xlu1 %2117 }
 0x334   : > { %9368 = vst [vmem:[#allocation231_spill] sm:$0xff] %v7074_v31  ;;  %9369 = vst [vmem:[#allocation232_spill] sm:$0xff] %v7076_v0  ;;  %v2528_v31 = vld [vmem:[#allocation3 + $0x52] sm:$0xff] }
 0x335   : > { %2914 = vrot.lane.b32.xlu0 %v2525_v23, %s5525_s9  ;;  %v2531_v23 = vld [vmem:[#allocation3 + $0x7a] sm:$0xff] }
 0x336   : > { %2916 = vrot.lane.b32.xlu1 %v2526_v29, %s5525_s9 }
 0x337   : > { %v7080_v50 = vpop.permute.xlu0 %2123  ;;  %v7082_v60 = vpop.permute.xlu1 %2121 }
 0x338   : > { %9370 = vst [vmem:[#allocation233_spill] sm:$0xff] %v7080_v50  ;;  %9371 = vst [vmem:[#allocation234_spill] sm:$0xff] %v7082_v60  ;;  %v2530_v50 = vld [vmem:[#allocation3 + $0x6a] sm:$0xff] }
 0x339   : > { %2918 = vrot.lane.b32.xlu0 %v2527_v32, %s5525_s9  ;;  %v2533_v32 = vld [vmem:[#allocation3 + $0x92] sm:$0xff] }
 0x33a   : > { %2920 = vrot.lane.b32.xlu1 %v2528_v31, %s5525_s9 }
 0x33b   : > { %v7086_v33 = vpop.permute.xlu0 %2127  ;;  %v7088_v61 = vpop.permute.xlu1 %2125 }
 0x33c   : > { %9372 = vst [vmem:[#allocation235_spill] sm:$0xff] %v7086_v33  ;;  %9373 = vst [vmem:[#allocation236_spill] sm:$0xff] %v7088_v61  ;;  %v2532_v33 = vld [vmem:[#allocation3 + $0x82] sm:$0xff] }
 0x33d   : > { %2922 = vrot.lane.b32.xlu0 %v2529_v46, %s5525_s9  ;;  %v2535_v46 = vld [vmem:[#allocation3 + $0xaa] sm:$0xff] }
 0x33e   : > { %2924 = vrot.lane.b32.xlu1 %v2530_v50, %s5525_s9 }
 0x33f   : > { %v7092_v27 = vpop.permute.xlu0 %2131  ;;  %v7094_v0 = vpop.permute.xlu1 %2129 }
 0x340   : > { %9374 = vst [vmem:[#allocation237_spill] sm:$0xff] %v7092_v27  ;;  %9375 = vst [vmem:[#allocation238_spill] sm:$0xff] %v7094_v0  ;;  %v2534_v27 = vld [vmem:[#allocation3 + $0x9a] sm:$0xff] }
 0x341   : > { %2926 = vrot.lane.b32.xlu0 %v2531_v23, %s5525_s9  ;;  %v7109_v23 = vld [vmem:[#allocation3 + $0xc2] sm:$0xff] }
 0x342   : > { %2928 = vrot.lane.b32.xlu1 %v2532_v33, %s5525_s9  ;;  %v7118_v33 = vld [vmem:[#allocation3 + $0xda] sm:$0xff] }
 0x343   : > { %v7098_v29 = vpop.permute.xlu0 %2135  ;;  %v7100_v60 = vpop.permute.xlu1 %2133 }
 0x344   : > { %9376 = vst [vmem:[#allocation239_spill] sm:$0xff] %v7098_v29  ;;  %9377 = vst [vmem:[#allocation240_spill] sm:$0xff] %v7100_v60  ;;  %v2536_v29 = vld [vmem:[#allocation3 + $0xb2] sm:$0xff] }
 0x345   : > { %2930 = vrot.lane.b32.xlu0 %v2533_v32, %s5525_s9 }
 0x346   : > { %2932 = vrot.lane.b32.xlu1 %v2534_v27, %s5525_s9  ;;  %v7129_v27 = vld [vmem:[#allocation3 + $0xf2] sm:$0xff] }
 0x347   : > { %v7104_v31 = vpop.permute.xlu0 %2139  ;;  %v7106_v61 = vpop.permute.xlu1 %2137 }
 0x348   : > { %9378 = vst [vmem:[#allocation241_spill] sm:$0xff] %v7104_v31  ;;  %9379 = vst [vmem:[#allocation242_spill] sm:$0xff] %v7106_v61  ;;  %v7123_v31 = vld [vmem:[#allocation3 + $0xca] sm:$0xff] }
 0x349   : > { %2934 = vrot.lane.b32.xlu0 %v2535_v46, %s5525_s9 }
 0x34a   : > { %2936 = vrot.lane.b32.xlu1 %v2536_v29, %s5525_s9  ;;  %v7141_v29 = vld [vmem:[#allocation3 + $0x10a] sm:$0xff] }
 0x34b   : > { %v7112_v50 = vpop.permute.xlu0 %2143  ;;  %v7114_v60 = vpop.permute.xlu1 %2141 }
 0x34c   : > { %9380 = vst [vmem:[#allocation243_spill] sm:$0xff] %v7112_v50  ;;  %9381 = vst [vmem:[#allocation244_spill] sm:$0xff] %v7114_v60  ;;  %v7135_v60 = vld [vmem:[#allocation3 + $0xe2] sm:$0xff] }
 0x34d   : > { %2938 = vrot.lane.b32.xlu0 %v7109_v23, %s5525_s9 }
 0x34e   : > { %2940 = vrot.lane.b32.xlu1 %v7123_v31, %s5525_s9 }
 0x34f   : > { %v7121_v32 = vpop.permute.xlu0 %2147  ;;  %v7125_v46 = vpop.permute.xlu1 %2145 }
 0x350   : > { %9382 = vst [vmem:[#allocation245_spill] sm:$0xff] %v7121_v32  ;;  %9383 = vst [vmem:[#allocation246_spill] sm:$0xff] %v7125_v46  ;;  %v7147_v46 = vld [vmem:[#allocation3 + $0xfa] sm:$0xff] }
 0x351   : > { %2942 = vrot.lane.b32.xlu0 %v7118_v33, %s5525_s9 }
 0x352   : > { %2944 = vrot.lane.b32.xlu1 %v7135_v60, %s5525_s9 }
 0x353   : > { %v7133_v50 = vpop.permute.xlu0 %2151  ;;  %v7137_v61 = vpop.permute.xlu1 %2149 }
 0x354   : > { %9384 = vst [vmem:[#allocation247_spill] sm:$0xff] %v7133_v50  ;;  %9385 = vst [vmem:[#allocation248_spill] sm:$0xff] %v7137_v61  ;;  %v7153_v50 = vld [vmem:[#allocation3 + $0x122] sm:$0xff] }
 0x355   : > { %2946 = vrot.lane.b32.xlu0 %v7129_v27, %s5525_s9 }
 0x356   : > { %2948 = vrot.lane.b32.xlu1 %v7147_v46, %s5525_s9 }
 0x357   : > { %v7145_v32 = vpop.permute.xlu0 %2155  ;;  %v7149_v0 = vpop.permute.xlu1 %2153 }
 0x358   : > { %9386 = vst [vmem:[#allocation249_spill] sm:$0xff] %v7145_v32  ;;  %9387 = vst [vmem:[#allocation250_spill] sm:$0xff] %v7149_v0  ;;  %v7165_v32 = vld [vmem:[#allocation3 + $0x13a] sm:$0xff] }
 0x359   : > { %2950 = vrot.lane.b32.xlu0 %v7141_v29, %s5525_s9 }
 0x35a   : > { %2952 = vrot.lane.b32.xlu1 %v7159_v52, %s5525_s9 }
 0x35b   : > { %v7157_v61 = vpop.permute.xlu0 %2159  ;;  %v7161_v9 = vpop.permute.xlu1 %2157 }
 0x35c   : > { %9388 = vst [vmem:[#allocation251_spill] sm:$0xff] %v7157_v61  ;;  %9389 = vst [vmem:[#allocation252_spill] sm:$0xff] %v7161_v9  ;;  %v7177_v61 = vld [vmem:[#allocation3 + $0x152] sm:$0xff] }
 0x35d   : > { %2954 = vrot.lane.b32.xlu0 %v7153_v50, %s5525_s9 }
 0x35e   : > { %2956 = vrot.lane.b32.xlu1 %v7171_v37, %s5525_s9 }
 0x35f   : > { %v7169_v0 = vpop.permute.xlu0 %2778  ;;  %v7173_v13 = vpop.permute.xlu1 %2161 }
 0x360   : > { %9390 = vst [vmem:[#allocation253_spill] sm:$0xff] %v7169_v0  ;;  %9391 = vst [vmem:[#allocation254_spill] sm:$0xff] %v7173_v13  ;;  %v7205_v0 = vld [vmem:[#allocation3 + $0x172] sm:$0xff] }
 0x361   : > { %2958 = vrot.lane.b32.xlu0 %v7165_v32, %s5525_s9 }
 0x362   : > { %2960 = vrot.lane.b32.xlu1 %v7183_v58, %s5525_s9 }
 0x363   : > { %v7181_v9 = vpop.permute.xlu0 %2782  ;;  %v7185_v15 = vpop.permute.xlu1 %2780 }
 0x364   : > { %9392 = vst [vmem:[#allocation255_spill] sm:$0xff] %v7181_v9  ;;  %9393 = vst [vmem:[#allocation256_spill] sm:$0xff] %v7185_v15  ;;  %v2459_v15 = vld [vmem:[#allocation3 + $0x18] sm:$0xff] }
 0x365   : > { %2962 = vrot.lane.b32.xlu0 %v7177_v61, %s5525_s9 }
 0x366   : > { %2964 = vrot.lane.b32.xlu1 %v7195_v8, %s5525_s9 }
 0x367   : > { %v7193_v13 = vpop.permute.xlu0 %2786  ;;  %v7197_v7 = vpop.permute.xlu1 %2784 }
 0x368   : > { %9394 = vst [vmem:[#allocation257_spill] sm:$0xff] %v7193_v13  ;;  %9395 = vst [vmem:[#allocation258_spill] sm:$0xff] %v7197_v7  ;;  %v7210_v13 = vld [vmem:[#allocation3 + $0xc0] sm:$0xff] }
 0x369   : > { %2966 = vrot.lane.b32.xlu0 %v7189_v55, %s5525_s9 }
 0x36a   : > { %2968 = vrot.lane.b32.xlu1 %v7205_v0, %s5525_s9  ;;  %s5535_s9 = smov 20  }
 0x36b   : > { %v7203_v9 = vpop.permute.xlu0 %2790  ;;  %v7207_v44 = vpop.permute.xlu1 %2788 }
 0x36c   : > { %9396 = vst [vmem:[#allocation259_spill] sm:$0xff] %v7203_v9  ;;  %9397 = vst [vmem:[#allocation260_spill] sm:$0xff] %v7207_v44  ;;  %v2460_v9 = vld [vmem:[#allocation3 + $0x20] sm:$0xff]  ;;  %v7223_v44 = vld [vmem:[#allocation3 + $0xc8] sm:$0xff] }
 0x36d   : > { %3034 = vrot.lane.b32.xlu0 %v2459_v15, %s5534_s27 }
 0x36e   : > { %3036 = vrot.lane.b32.xlu1 %v2460_v9, %s5534_s27  ;;  %v7237_v9 = vld [vmem:[#allocation3 + $0xd8] sm:$0xff] }
 0x36f   : > { %v7214_v7 = vpop.permute.xlu0 %2794  ;;  %v7216_v22 = vpop.permute.xlu1 %2792 }
 0x370   : > { %9398 = vst [vmem:[#allocation261_spill] sm:$0xff] %v7214_v7  ;;  %9399 = vst [vmem:[#allocation262_spill] sm:$0xff] %v7216_v22 }
 0x371   : > { %3062 = vrot.lane.b32.xlu0 %v7210_v13, %s5534_s27 }
 0x372   : > { %3064 = vrot.lane.b32.xlu1 %v7223_v44, %s5534_s27 }
 0x373   : > { %v7221_v17 = vpop.permute.xlu0 %2798  ;;  %v7225_v15 = vpop.permute.xlu1 %2796 }
 0x374   : > { %9400 = vst [vmem:[#allocation263_spill] sm:$0xff] %v7221_v17  ;;  %9401 = vst [vmem:[#allocation264_spill] sm:$0xff] %v7225_v15  ;;  %v4042_v17 = vld [vmem:[%s9133_s4 + $0x20] sm:$0xf] }
 0x375   : > { %3190 = vrot.lane.b32.xlu0 %v6969_v4, %s5526_s12  ;;  %5454 = vmatprep.subr.msk.mxu1 %vm4140_vm11, %v4042_v17 }
 0x376   : > { %3192 = vrot.lane.b32.xlu1 %v6983_v3, %s5526_s12  ;;  %5459 = vmatpush3.msk.msra.mxu1 %vm4140_vm11, %v4042_v17  ;;  %v4040_v3 = vld [vmem:[%s9133_s4 + $0x10] sm:$0xff] }
 0x377   : > { %v7231_v7 = vpop.permute.xlu0 %2802  ;;  %v7233_v22 = vpop.permute.xlu1 %2800  ;;  %5330 = vmatprep.subr.msk.mxu0 %vm4140_vm11, %v4042_v17 }
 0x378   : > { %9402 = vst [vmem:[#allocation265_spill] sm:$0xff] %v7231_v7  ;;  %9403 = vst [vmem:[#allocation266_spill] sm:$0xff] %v7233_v22  ;;  %v4041_v7 = vld [vmem:[%s9133_s4 + $0x18] sm:$0xff]  ;;  %v7253_v22 = vld [vmem:[#allocation3 + $0xe0] sm:$0xff]  ;;  %5331 = vmatpush3.msk.msra.mxu0 %vm4140_vm11, %v4042_v17 }
 0x379   : > { %3318 = vrot.lane.b32.xlu0 %v7109_v23, %s5535_s9  ;;  %5455 = vmatprep.subr.mxu1 %v4041_v7  ;;  %v4038_v17 = vld [vmem:[%s9133_s4] sm:$0xff] }
 0x37a   : > { %5460 = vmatpush3.msra.mxu1 %v4041_v7  ;;  %3320 = vrot.lane.b32.xlu1 %v7123_v31, %s5535_s9 }
 0x37b   : > { %v7244_v4 = vpop.permute.xlu0 %2806  ;;  %v7249_v23 = vpop.permute.xlu1 %2804  ;;  %5456 = vmatprep.subr.mxu1 %v4040_v3  ;;  %5332 = vmatprep.subr.mxu0 %v4041_v7 }
 0x37c   : > { %9404 = vst [vmem:[#allocation267_spill] sm:$0xff] %v7249_v23  ;;  %5461 = vmatpush3.msra.mxu1 %v4040_v3  ;;  %v4039_v23 = vld [vmem:[%s9133_s4 + $0x8] sm:$0xff]  ;;  %5333 = vmatpush3.msra.mxu0 %v4041_v7 }
 0x37d   : > { %3446 = vrot.lane.b32.xlu0 %v7237_v9, %s5527_s14  ;;  %5457 = vmatprep.subr.mxu1 %v4039_v23 }
 0x37e   : > { %5462 = vmatpush3.msra.mxu1 %v4039_v23  ;;  %3066 = vrot.lane.b32.xlu1 %v7237_v9, %s5534_s27 }
 0x37f   : > { %v7260_v15 = vpop.permute.xlu0 %2810  ;;  %v7265_v18 = vpop.permute.xlu1 %2808  ;;  %5458 = vmatprep.subr.mxu1 %v4038_v17  ;;  %5334 = vmatprep.subr.mxu0 %v4040_v3 }
 0x380   : > { %5463 = vmatpush3.msra.mxu1 %v4038_v17  ;;  %5335 = vmatpush3.msra.mxu0 %v4040_v3 }
 0x381   : > { %3448 = vrot.lane.b32.xlu0 %v7253_v22, %s5527_s14  ;;  %5336 = vmatprep.subr.mxu0 %v4039_v23 }
 0x382   : > { %3574 = vrot.lane.b32.xlu1 %v6978_v20, %s5536_s20  ;;  %5337 = vmatpush3.msra.mxu0 %v4039_v23 }
 0x383   : > { %v7274_v31 = vpop.permute.xlu0 %2814  ;;  %v7276_v35 = vpop.permute.xlu1 %2812  ;;  %5338 = vmatprep.subr.mxu0 %v4038_v17 }
 0x384   : > { %5339 = vmatpush3.msra.mxu0 %v4038_v17  ;;  %v7308_v17 = vld [vmem:[#allocation3 + $0xf0] sm:$0xff] }
 0x385   : > { %3068 = vrot.lane.b32.xlu0 %v7253_v22, %s5534_s27 }
 0x386   : > { %3194 = vrot.lane.b32.xlu1 %v6978_v20, %s5526_s12 }
 0x387   : > { %v7282_v7 = vpop.permute.xlu0 %2818  ;;  %v7284_v56 = vpop.permute.xlu1 %2816 }
 0x389   : > { %3576 = vrot.lane.b32.xlu0 %v6995_v38, %s5536_s20 }
 0x38a   : > { %3702 = vrot.lane.b32.xlu1 %v7118_v33, %s5528_s15 }
 0x38b   : > { %v7290_v16 = vpop.permute.xlu0 %2822  ;;  %v7292_v3 = vpop.permute.xlu1 %2820 }
 0x38d   : > { %3196 = vrot.lane.b32.xlu0 %v6995_v38, %s5526_s12 }
 0x38e   : > { %3322 = vrot.lane.b32.xlu1 %v7118_v33, %s5535_s9 }
 0x38f   : > { %v7298_v23 = vpop.permute.xlu0 %2826  ;;  %v7300_v30 = vpop.permute.xlu1 %2824 }
 0x391   : > { %3704 = vrot.lane.b32.xlu0 %v7135_v60, %s5528_s15 }
 0x392   : > { %3324 = vrot.lane.b32.xlu1 %v7135_v60, %s5535_s9  ;;  %v847_v60 = vld [vmem:[%s6521_s21 + $0xf0] sm:$0xff] }
 0x393   : > { %v7306_v20 = vpop.permute.xlu0 %2830  ;;  %v7310_v19 = vpop.permute.xlu1 %2828  ;;  %880 = vst.msk [vmem:[#allocation3 + $0x181] sm:$0xff] %vm761_vm3, %v847_v60 }
 0x395   : > { %3450 = vrot.lane.b32.xlu0 %v7308_v17, %s5527_s14 }
 0x396   : > { %3070 = vrot.lane.b32.xlu1 %v7308_v17, %s5534_s27 }
 0x397   : > { %v7316_v38 = vpop.permute.xlu0 %2834  ;;  %v7320_v25 = vpop.permute.xlu1 %2832 }
 0x398   : > { %9405 = vst [vmem:[#allocation268_spill] sm:$0xff] %v7316_v38  ;;  %9406 = vst [vmem:[#allocation269_spill] sm:$0xff] %v7320_v25 }
 0x399   : > { %3452 = vrot.lane.b32.xlu0 %v7318_v40, %s5527_s14 }
 0x39a   : > { %3578 = vrot.lane.b32.xlu1 %v6989_v42, %s5536_s20 }
 0x39b   : > { %v7326_v33 = vpop.permute.xlu0 %2838  ;;  %v7328_v28 = vpop.permute.xlu1 %2836 }
 0x39c   : > { %9407 = vst [vmem:[#allocation270_spill] sm:$0xff] %v7326_v33  ;;  %9408 = vst [vmem:[#allocation271_spill] sm:$0xff] %v7328_v28  ;;  %v7512_v28 = vld [vmem:[#allocation3 + $0x158] sm:$0xff] }
 0x39d   : > { %3072 = vrot.lane.b32.xlu0 %v7318_v40, %s5534_s27 }
 0x39e   : > { %3198 = vrot.lane.b32.xlu1 %v6989_v42, %s5526_s12  ;;  %v7364_v42 = vld [vmem:[#allocation3 + $0x108] sm:$0xff] }
 0x39f   : > { %v7336_v63 = vpop.permute.xlu0 %2906  ;;  %v7338_v62 = vpop.permute.xlu1 %2840 }
 0x3a0   : > { %9409 = vst [vmem:[#allocation272_spill] sm:$0xff] %v7336_v63  ;;  %9410 = vst [vmem:[#allocation273_spill] sm:$0xff] %v7338_v62 }
 0x3a1   : > { %3580 = vrot.lane.b32.xlu0 %v7007_v53, %s5536_s20 }
 0x3a2   : > { %3706 = vrot.lane.b32.xlu1 %v7129_v27, %s5528_s15 }
 0x3a3   : > { %v7346_v11 = vpop.permute.xlu0 %2910  ;;  %v7348_v39 = vpop.permute.xlu1 %2908 }
 0x3a4   : > { %9411 = vst [vmem:[#allocation274_spill] sm:$0xff] %v7346_v11  ;;  %9412 = vst [vmem:[#allocation275_spill] sm:$0xff] %v7348_v39 }
 0x3a5   : > { %3200 = vrot.lane.b32.xlu0 %v7007_v53, %s5526_s12 }
 0x3a6   : > { %3326 = vrot.lane.b32.xlu1 %v7129_v27, %s5535_s9 }
 0x3a7   : > { %v7354_v60 = vpop.permute.xlu0 %2914  ;;  %v7356_v63 = vpop.permute.xlu1 %2912 }
 0x3a8   : > { %9413 = vst [vmem:[#allocation276_spill] sm:$0xff] %v7354_v60  ;;  %9414 = vst [vmem:[#allocation277_spill] sm:$0xff] %v7356_v63  ;;  %v7374_v60 = vld [vmem:[#allocation3 + $0x110] sm:$0xff] }
 0x3a9   : > { %3708 = vrot.lane.b32.xlu0 %v7147_v46, %s5528_s15 }
 0x3aa   : > { %3328 = vrot.lane.b32.xlu1 %v7147_v46, %s5535_s9 }
 0x3ab   : > { %v7362_v1 = vpop.permute.xlu0 %2918  ;;  %v7366_v11 = vpop.permute.xlu1 %2916 }
 0x3ac   : > { %9415 = vst [vmem:[#allocation278_spill] sm:$0xff] %v7362_v1  ;;  %9416 = vst [vmem:[#allocation279_spill] sm:$0xff] %v7366_v11  ;;  %v7426_v11 = vld [vmem:[#allocation3 + $0x128] sm:$0xff] }
 0x3ad   : > { %3454 = vrot.lane.b32.xlu0 %v7364_v42, %s5527_s14 }
 0x3ae   : > { %3074 = vrot.lane.b32.xlu1 %v7364_v42, %s5534_s27 }
 0x3af   : > { %v7372_v53 = vpop.permute.xlu0 %2922  ;;  %v7376_v63 = vpop.permute.xlu1 %2920 }
 0x3b0   : > { %9417 = vst [vmem:[#allocation280_spill] sm:$0xff] %v7372_v53  ;;  %9418 = vst [vmem:[#allocation281_spill] sm:$0xff] %v7376_v63 }
 0x3b1   : > { %3456 = vrot.lane.b32.xlu0 %v7374_v60, %s5527_s14 }
 0x3b2   : > { %3582 = vrot.lane.b32.xlu1 %v7001_v36, %s5536_s20 }
 0x3b3   : > { %v7382_v27 = vpop.permute.xlu0 %2926  ;;  %v7384_v1 = vpop.permute.xlu1 %2924 }
 0x3b4   : > { %9419 = vst [vmem:[#allocation282_spill] sm:$0xff] %v7382_v27  ;;  %9420 = vst [vmem:[#allocation283_spill] sm:$0xff] %v7384_v1 }
 0x3b5   : > { %3076 = vrot.lane.b32.xlu0 %v7374_v60, %s5534_s27 }
 0x3b6   : > { %3202 = vrot.lane.b32.xlu1 %v7001_v36, %s5526_s12 }
 0x3b7   : > { %v7390_v46 = vpop.permute.xlu0 %2930  ;;  %v7392_v53 = vpop.permute.xlu1 %2928 }
 0x3b8   : > { %9421 = vst [vmem:[#allocation284_spill] sm:$0xff] %v7390_v46  ;;  %9422 = vst [vmem:[#allocation285_spill] sm:$0xff] %v7392_v53  ;;  %v7416_v53 = vld [vmem:[#allocation3 + $0x120] sm:$0xff] }
 0x3b9   : > { %3584 = vrot.lane.b32.xlu0 %v7019_v14, %s5536_s20 }
 0x3ba   : > { %3710 = vrot.lane.b32.xlu1 %v7141_v29, %s5528_s15 }
 0x3bb   : > { %v7398_v63 = vpop.permute.xlu0 %2934  ;;  %v7400_v27 = vpop.permute.xlu1 %2932 }
 0x3bc   : > { %9423 = vst [vmem:[#allocation286_spill] sm:$0xff] %v7400_v27 }
 0x3bd   : > { %3204 = vrot.lane.b32.xlu0 %v7019_v14, %s5526_s12 }
 0x3be   : > { %3330 = vrot.lane.b32.xlu1 %v7141_v29, %s5535_s9 }
 0x3bf   : > { %v7406_v1 = vpop.permute.xlu0 %2938  ;;  %v7408_v46 = vpop.permute.xlu1 %2936 }
 0x3c1   : > { %3712 = vrot.lane.b32.xlu0 %v7159_v52, %s5528_s15 }
 0x3c2   : > { %3332 = vrot.lane.b32.xlu1 %v7159_v52, %s5535_s9 }
 0x3c3   : > { %v7414_v36 = vpop.permute.xlu0 %2942  ;;  %v7418_v27 = vpop.permute.xlu1 %2940 }
 0x3c5   : > { %3458 = vrot.lane.b32.xlu0 %v7416_v53, %s5527_s14 }
 0x3c6   : > { %3078 = vrot.lane.b32.xlu1 %v7416_v53, %s5534_s27 }
 0x3c7   : > { %v7424_v14 = vpop.permute.xlu0 %2946  ;;  %v7428_v39 = vpop.permute.xlu1 %2944 }
 0x3c9   : > { %3460 = vrot.lane.b32.xlu0 %v7426_v11, %s5527_s14 }
 0x3ca   : > { %3586 = vrot.lane.b32.xlu1 %v7013_v26, %s5536_s20 }
 0x3cb   : > { %v7434_v29 = vpop.permute.xlu0 %2950  ;;  %v7436_v51 = vpop.permute.xlu1 %2948 }
 0x3cd   : > { %3080 = vrot.lane.b32.xlu0 %v7426_v11, %s5534_s27 }
 0x3ce   : > { %3206 = vrot.lane.b32.xlu1 %v7013_v26, %s5526_s12 }
 0x3cf   : > { %v7442_v52 = vpop.permute.xlu0 %2954  ;;  %v7444_v34 = vpop.permute.xlu1 %2952 }
 0x3d1   : > { %3588 = vrot.lane.b32.xlu0 %v7031_v43, %s5536_s20 }
 0x3d2   : > { %3714 = vrot.lane.b32.xlu1 %v7153_v50, %s5528_s15 }
 0x3d3   : > { %v7450_v12 = vpop.permute.xlu0 %2958  ;;  %v7452_v5 = vpop.permute.xlu1 %2956 }
 0x3d4   : > { %9424 = vst [vmem:[#allocation287_spill] sm:$0xff] %v7450_v12 }
 0x3d5   : > { %3208 = vrot.lane.b32.xlu0 %v7031_v43, %s5526_s12 }
 0x3d6   : > { %3334 = vrot.lane.b32.xlu1 %v7153_v50, %s5535_s9 }
 0x3d7   : > { %v7458_v62 = vpop.permute.xlu0 %2962  ;;  %v7460_v33 = vpop.permute.xlu1 %2960 }
 0x3d8   : > { %9425 = vst [vmem:[#allocation288_spill] sm:$0xff] %v7458_v62  ;;  %9426 = vst [vmem:[#allocation289_spill] sm:$0xff] %v7460_v33 }
 0x3d9   : > { %3716 = vrot.lane.b32.xlu0 %v7171_v37, %s5528_s15 }
 0x3da   : > { %3336 = vrot.lane.b32.xlu1 %v7171_v37, %s5535_s9 }
 0x3db   : > { %v7466_v26 = vpop.permute.xlu0 %2966  ;;  %v7470_v54 = vpop.permute.xlu1 %2964 }
 0x3dc   : > { %9427 = vst [vmem:[#allocation290_spill] sm:$0xff] %v7466_v26  ;;  %9428 = vst [vmem:[#allocation291_spill] sm:$0xff] %v7470_v54  ;;  %v2472_v54 = vld [vmem:[#allocation3 + $0xb0] sm:$0xff] }
 0x3dd   : > { %3462 = vrot.lane.b32.xlu0 %v7468_v57, %s5527_s14  ;;  %v3785_v38 = vsel %vm761_vm3, %v2472_v54, %v7265_v18 }
 0x3de   : > { %3082 = vrot.lane.b32.xlu1 %v7468_v57, %s5534_s27 }
 0x3df   : > { %v7476_v43 = vpop.permute.xlu0 %3034  ;;  %v7480_v6 = vpop.permute.xlu1 %2968 }
 0x3e0   : > { %9429 = vst [vmem:[#allocation292_spill] sm:$0xff] %v7476_v43  ;;  %9431 = vst [vmem:[#allocation294_spill] sm:$0xff] %v7480_v6 }
 0x3e1   : > { %3464 = vrot.lane.b32.xlu0 %v7478_v48, %s5527_s14 }
 0x3e2   : > { %3590 = vrot.lane.b32.xlu1 %v7025_v10, %s5536_s20 }
 0x3e3   : > { %v3063_v50 = vpop.permute.xlu0 %3062  ;;  %v7486_v26 = vpop.permute.xlu1 %3036 }
 0x3e4   : > { %9432 = vst [vmem:[#allocation295_spill] sm:$0xff] %v7486_v26 }
 0x3e5   : > { %3084 = vrot.lane.b32.xlu0 %v7478_v48, %s5534_s27  ;;  %v3817_v48 = vsel %vm672_vm1, %v3785_v38, %v7408_v46 }
 0x3e6   : > { %3210 = vrot.lane.b32.xlu1 %v7025_v10, %s5526_s12 }
 0x3e7   : > { %v3191_v37 = vpop.permute.xlu0 %3190  ;;  %v3065_v43 = vpop.permute.xlu1 %3064 }
 0x3e8   : > { %v3850_v12 = vsel %vm3834_vm12, %v3817_v48, %v3065_v43  ;;  %v7556_v43 = vld [vmem:[#allocation3 + $0x168] sm:$0xff] }
 0x3e9   : > { %3592 = vrot.lane.b32.xlu0 %v7045_v59, %s5536_s20 }
 0x3ea   : > { %3718 = vrot.lane.b32.xlu1 %v7165_v32, %s5528_s15 }
 0x3eb   : > { %v3319_v6 = vpop.permute.xlu0 %3318  ;;  %v3193_v2 = vpop.permute.xlu1 %3192 }
 0x3ec   : > { %v3882_v18 = vsel %vm2227_vm5, %v3850_v12, %v3193_v2 }
 0x3ed   : > { %3212 = vrot.lane.b32.xlu0 %v7045_v59, %s5526_s12 }
 0x3ee   : > { %3338 = vrot.lane.b32.xlu1 %v7165_v32, %s5535_s9  ;;  %v3784_v32 = vsel %vm761_vm3, %v2471_v45, %v7244_v4 }
 0x3ef   : > { %v3447_v26 = vpop.permute.xlu0 %3446  ;;  %v3321_v49 = vpop.permute.xlu1 %3320  ;;  %v3816_v33 = vsel %vm672_vm1, %v3784_v32, %v7398_v63  ;;  %v3786_v32 = vsel %vm761_vm3, %v7210_v13, %v7260_v15 }
 0x3f0   : > { %v3849_v25 = vsel %vm3834_vm12, %v3816_v33, %v3063_v50  ;;  %v3915_v4 = vsel %vm3899_vm13, %v3882_v18, %v3321_v49 }
 0x3f1   : > { %3720 = vrot.lane.b32.xlu0 %v7183_v58, %s5528_s15  ;;  %v3881_v54 = vsel %vm2227_vm5, %v3849_v25, %v3191_v37  ;;  %v7562_v37 = vld [vmem:[#allocation3 + $0x170] sm:$0xff] }
 0x3f2   : > { %3340 = vrot.lane.b32.xlu1 %v7183_v58, %s5535_s9  ;;  %v3914_v63 = vsel %vm3899_vm13, %v3881_v54, %v3319_v6  ;;  %v3787_v54 = vsel %vm761_vm3, %v7223_v44, %v7276_v35  ;;  %v2709_v35 = vld [vmem:[#allocation3 + $0x171] sm:$0xff] }
 0x3f3   : > { %v3449_v47 = vpop.permute.xlu0 %3448  ;;  %v3067_v10 = vpop.permute.xlu1 %3066  ;;  %v3946_v33 = vsel %vm2260_vm6, %v3914_v63, %v3447_v26  ;;  %v3819_v13 = vsel %vm672_vm1, %v3787_v54, %v7418_v27  ;;  %v2708_v63 = vld [vmem:[#allocation3 + $0x169] sm:$0xff] }
 0x3f4   : > { %v3947_v2 = vsel %vm2260_vm6, %v3915_v4, %v3449_v47 }
 0x3f5   : > { %3466 = vrot.lane.b32.xlu0 %v7504_v41, %s5527_s14 }
 0x3f6   : > { %3086 = vrot.lane.b32.xlu1 %v7504_v41, %s5534_s27 }
 0x3f7   : > { %v7510_v59 = vpop.permute.xlu0 %3068  ;;  %v3575_v62 = vpop.permute.xlu1 %3574 }
 0x3f8   : > { %v3979_v48 = vsel %vm3964_vm14, %v3946_v33, %v3575_v62  ;;  %v3852_v4 = vsel %vm3834_vm12, %v3819_v13, %v7510_v59 }
 0x3f9   : > { %3468 = vrot.lane.b32.xlu0 %v7512_v28, %s5527_s14 }
 0x3fa   : > { %3594 = vrot.lane.b32.xlu1 %v7039_v24, %s5536_s20 }
 0x3fb   : > { %v3577_v58 = vpop.permute.xlu0 %3576  ;;  %v3195_v45 = vpop.permute.xlu1 %3194 }
 0x3fc   : > { %v3980_v6 = vsel %vm3964_vm14, %v3947_v2, %v3577_v58 }
 0x3fd   : > { %3088 = vrot.lane.b32.xlu0 %v7512_v28, %s5534_s27 }
 0x3fe   : > { %3214 = vrot.lane.b32.xlu1 %v7039_v24, %s5526_s12 }
 0x3ff   : > { %v3197_v38 = vpop.permute.xlu0 %3196  ;;  %v3703_v46 = vpop.permute.xlu1 %3702 }
 0x400   : > { %v4011_v25 = vsel %vm2293_vm7, %v3979_v48, %v3703_v46  ;;  %v3884_v44 = vsel %vm2227_vm5, %v3852_v4, %v3197_v38 }
 0x401   : > { %3596 = vrot.lane.b32.xlu0 %v7055_v21, %s5536_s20  ;;  %5361 = vmatprep.mubr.msk.f32.mxu1 %vm4043_vm15, %v4011_v25 }
 0x402   : > { %3722 = vrot.lane.b32.xlu1 %v7177_v61, %s5528_s15 }
 0x403   : > { %v3705_v49 = vpop.permute.xlu0 %3704  ;;  %v3323_v26 = vpop.permute.xlu1 %3322 }
 0x404   : > { %v4012_v12 = vsel %vm2293_vm7, %v3980_v6, %v3705_v49 }
 0x405   : > { %3216 = vrot.lane.b32.xlu0 %v7055_v21, %s5526_s12  ;;  %5362 = vmatmul.mubr.msk.f32.vlgmr.msra.gmra.mxu1 %vm4043_vm15, %v4012_v12 }
 0x406   : > { %3342 = vrot.lane.b32.xlu1 %v7177_v61, %s5535_s9  ;;  %v3818_v61 = vsel %vm672_vm1, %v3786_v32, %v7406_v1  ;;  %v2679_v32 = vld [vmem:[#allocation3 + $0x188] sm:$0xff] }
 0x407   : > { %v3451_v47 = vpop.permute.xlu0 %3450  ;;  %v3325_v62 = vpop.permute.xlu1 %3324 }
 0x409   : > { %3724 = vrot.lane.b32.xlu0 %v7195_v8, %s5528_s15 }
 0x40a   : > { %3344 = vrot.lane.b32.xlu1 %v7195_v8, %s5535_s9  ;;  %v3851_v8 = vsel %vm3834_vm12, %v3818_v61, %v3067_v10  ;;  %v3917_v10 = vsel %vm3899_vm13, %v3884_v44, %v3325_v62  ;;  %v3788_v61 = vsel %vm761_vm3, %v7237_v9, %v7274_v31  ;;  %v2710_v31 = vld [vmem:[#allocation3 + $0x181] sm:$0xff] }
 0x40b   : > { %v3453_v24 = vpop.permute.xlu0 %3452  ;;  %v3071_v50 = vpop.permute.xlu1 %3070  ;;  %v3883_v15 = vsel %vm2227_vm5, %v3851_v8, %v3195_v45  ;;  %v3789_v8 = vsel %vm761_vm3, %v7253_v22, %v7284_v56  ;;  %v2711_v56 = vld [vmem:[#allocation3 + $0x189] sm:$0xff] }
 0x40c   : > { %v3916_v1 = vsel %vm3899_vm13, %v3883_v15, %v3323_v26  ;;  %v3949_v59 = vsel %vm2260_vm6, %v3917_v10, %v3453_v24  ;;  %v3821_v13 = vsel %vm672_vm1, %v3789_v8, %v7428_v39  ;;  %v2681_v8 = vld [vmem:[#allocation3 + $0x1a0] sm:$0xff] }
 0x40d   : > { %3470 = vrot.lane.b32.xlu0 %v7556_v43, %s5527_s14  ;;  %v3948_v45 = vsel %vm2260_vm6, %v3916_v1, %v3451_v47  ;;  %v2678_v47 = vld [vmem:[#allocation3 + $0x180] sm:$0xff] }
 0x40e   : > { %3090 = vrot.lane.b32.xlu1 %v7556_v43, %s5534_s27 }
 0x40f   : > { %v3073_v21 = vpop.permute.xlu0 %3072  ;;  %v3579_v58 = vpop.permute.xlu1 %3578 }
 0x410   : > { %v3981_v48 = vsel %vm3964_vm14, %v3948_v45, %v3579_v58  ;;  %v3854_v15 = vsel %vm3834_vm12, %v3821_v13, %v3073_v21  ;;  %v4030_v13 = vld [vmem:[%s9132_s3 + $0x8] sm:$0xff] }
 0x411   : > { %3472 = vrot.lane.b32.xlu0 %v7562_v37, %s5527_s14 }
 0x412   : > { %3598 = vrot.lane.b32.xlu1 %v2708_v63, %s5536_s20 }
 0x413   : > { %v3581_v18 = vpop.permute.xlu0 %3580  ;;  %v3199_v33 = vpop.permute.xlu1 %3198 }
 0x414   : > { %v3982_v25 = vsel %vm3964_vm14, %v3949_v59, %v3581_v18  ;;  %v4036_v59 = vld [vmem:[%s9132_s3 + $0x38] sm:$0xff] }
 0x415   : > { %3092 = vrot.lane.b32.xlu0 %v7562_v37, %s5534_s27 }
 0x416   : > { %3218 = vrot.lane.b32.xlu1 %v2708_v63, %s5526_s12 }
 0x417   : > { %v3201_v27 = vpop.permute.xlu0 %3200  ;;  %v3707_v46 = vpop.permute.xlu1 %3706 }
 0x418   : > { %v4013_v2 = vsel %vm2293_vm7, %v3981_v48, %v3707_v46  ;;  %v3886_v22 = vsel %vm2227_vm5, %v3854_v15, %v3201_v27  ;;  %v2742_v48 = vld [vmem:[#allocation3 + $0x182] sm:$0xff]  ;;  %v3791_v15 = vsel %vm761_vm3, %v7318_v40, %v7292_v3 }
 0x419   : > { %3600 = vrot.lane.b32.xlu0 %v2709_v35, %s5536_s20  ;;  %5364 = vmatprep.mubr.msk.f32.mxu1 %vm4043_vm15, %v4013_v2  ;;  %v2743_v2 = vld [vmem:[#allocation3 + $0x18a] sm:$0xff] }
 0x41a   : > { %3726 = vrot.lane.b32.xlu1 %v7189_v55, %s5528_s15 }
 0x41b   : > { %v3709_v38 = vpop.permute.xlu0 %3708  ;;  %v3327_v49 = vpop.permute.xlu1 %3326 }
 0x41c   : > { %v4014_v6 = vsel %vm2293_vm7, %v3982_v25, %v3709_v38  ;;  %v4035_v38 = vld [vmem:[%s9132_s3 + $0x30] sm:$0xff] }
 0x41d   : > { %3220 = vrot.lane.b32.xlu0 %v2709_v35, %s5526_s12  ;;  %5365 = vmatmul.mubr.msk.f32.gmra.mxu1 %vm4043_vm15, %v4014_v6  ;;  %v4037_v35 = vld [vmem:[%s9132_s3 + $0x40] sm:$0xff] }
 0x41e   : > { %3346 = vrot.lane.b32.xlu1 %v7189_v55, %s5535_s9  ;;  %v3820_v55 = vsel %vm672_vm1, %v3788_v61, %v7414_v36  ;;  %5388 = vmatprep.subr.mxu1 %v4037_v35  ;;  %v2712_v61 = vld [vmem:[#allocation3 + $0x199] sm:$0xff] }
 0x41f   : > { %v3455_v12 = vpop.permute.xlu0 %3454  ;;  %v3329_v26 = vpop.permute.xlu1 %3328  ;;  %v3853_v18 = vsel %vm3834_vm12, %v3820_v55, %v3071_v50  ;;  %5389 = vmatpush3.msra.mxu1 %v4037_v35  ;;  %v4031_v55 = vld [vmem:[%s9132_s3 + $0x10] sm:$0xff] }
 0x420   : > { %v3885_v9 = vsel %vm2227_vm5, %v3853_v18, %v3199_v33  ;;  %v3919_v50 = vsel %vm3899_vm13, %v3886_v22, %v3329_v26  ;;  %5390 = vmatprep.subr.mxu1 %v4036_v59  ;;  %v3790_v18 = vsel %vm761_vm3, %v7308_v17, %v7282_v7 }
 0x421   : > { %3728 = vrot.lane.b32.xlu0 %v7205_v0, %s5528_s15  ;;  %v3918_v63 = vsel %vm3899_vm13, %v3885_v9, %v3327_v49  ;;  %5391 = vmatpush3.msra.mxu1 %v4036_v59  ;;  %v4034_v49 = vld [vmem:[%s9132_s3 + $0x28] sm:$0xff]  ;;  %v3822_v9 = vsel %vm672_vm1, %v3790_v18, %v7424_v14  ;;  %v3823_v14 = vsel %vm672_vm1, %v3791_v15, %v7436_v51  ;;  %v2650_v59 = vld [vmem:[#allocation3 + $0x30] sm:$0xff] }
 0x422   : > { %3348 = vrot.lane.b32.xlu1 %v7205_v0, %s5535_s9  ;;  %v3950_v39 = vsel %vm2260_vm6, %v3918_v63, %v3455_v12  ;;  %5392 = vmatprep.subr.mxu1 %v4035_v38  ;;  %v2680_v12 = vld [vmem:[#allocation3 + $0x198] sm:$0xff]  ;;  %v4029_v63 = vld [vmem:[%s9132_s3] sm:$0xff]  ;;  %v3793_v18 = vsel %vm761_vm3, %v7374_v60, %v7300_v30 }
 0x423   : > { %v3457_v62 = vpop.permute.xlu0 %3456  ;;  %v7605_v24 = vpop.permute.xlu1 %3074  ;;  %5393 = vmatpush3.msra.mxu1 %v4035_v38 }
 0x424   : > { %v3951_v33 = vsel %vm2260_vm6, %v3919_v50, %v3457_v62  ;;  %5394 = vmatprep.subr.mxu1 %v4034_v49  ;;  %v3855_v7 = vsel %vm3834_vm12, %v3822_v9, %v7605_v24 }
 0x425   : > { %3474 = vrot.lane.b32.xlu0 %v2678_v47, %s5527_s14  ;;  %5395 = vmatpush3.msra.mxu1 %v4034_v49 }
 0x426   : > { %3094 = vrot.lane.b32.xlu1 %v2678_v47, %s5534_s27  ;;  %v4033_v47 = vld [vmem:[%s9132_s3 + $0x20] sm:$0xff] }
 0x427   : > { %v7610_v58 = vpop.permute.xlu0 %3076  ;;  %v3583_v54 = vpop.permute.xlu1 %3582  ;;  %5396 = vmatprep.subr.mxu1 %v4033_v47 }
 0x428   : > { %v3983_v1 = vsel %vm3964_vm14, %v3950_v39, %v3583_v54  ;;  %5397 = vmatpush3.msra.mxu1 %v4033_v47  ;;  %v3856_v40 = vsel %vm3834_vm12, %v3823_v14, %v7610_v58  ;;  %v2586_v39 = vld [vmem:[#allocation3 + $0x21] sm:$0xff]  ;;  %v2682_v47 = vld [vmem:[#allocation3 + $0x31] sm:$0xff] }
 0x429   : > { %3476 = vrot.lane.b32.xlu0 %v2679_v32, %s5527_s14  ;;  %v2715_v14 = vld [vmem:[#allocation3 + $0x3a] sm:$0xff] }
 0x42a   : > { %3602 = vrot.lane.b32.xlu1 %v2710_v31, %s5536_s20 }
 0x42b   : > { %v3585_v0 = vpop.permute.xlu0 %3584  ;;  %v7628_v36 = vpop.permute.xlu1 %3202 }
 0x42c   : > { %v3984_v10 = vsel %vm3964_vm14, %v3951_v33, %v3585_v0  ;;  %v3887_v22 = vsel %vm2227_vm5, %v3855_v7, %v7628_v36 }
 0x42d   : > { %3096 = vrot.lane.b32.xlu0 %v2679_v32, %s5534_s27  ;;  %v4032_v32 = vld [vmem:[%s9132_s3 + $0x18] sm:$0xff] }
 0x42e   : > { %3222 = vrot.lane.b32.xlu1 %v2710_v31, %s5526_s12  ;;  %5398 = vmatprep.subr.mxu1 %v4032_v32  ;;  %v2713_v31 = vld [vmem:[#allocation3 + $0x1a1] sm:$0xff] }
 0x42f   : > { %v7634_v4 = vpop.permute.xlu0 %3204  ;;  %v3711_v21 = vpop.permute.xlu1 %3710  ;;  %5399 = vmatpush3.msra.mxu1 %v4032_v32  ;;  %v3792_v32 = vsel %vm761_vm3, %v7364_v42, %v7290_v16  ;;  %v3825_v16 = vsel %vm672_vm1, %v3793_v18, %v7444_v34  ;;  %v2714_v34 = vld [vmem:[#allocation3 + $0x32] sm:$0xff] }
 0x430   : > { %v4015_v44 = vsel %vm2293_vm7, %v3983_v1, %v3711_v21  ;;  %5400 = vmatprep.subr.mxu1 %v4031_v55  ;;  %v3888_v50 = vsel %vm2227_vm5, %v3856_v40, %v7634_v4  ;;  %v2744_v21 = vld [vmem:[#allocation3 + $0x19a] sm:$0xff]  ;;  %v2745_v4 = vld [vmem:[#allocation3 + $0x1a2] sm:$0xff] }
 0x431   : > { %3604 = vrot.lane.b32.xlu0 %v2711_v56, %s5536_s20  ;;  %5367 = vmatprep.mubr.msk.f32.mxu1 %vm4043_vm15, %v4015_v44 }
 0x432   : > { %3730 = vrot.lane.b32.xlu1 %v2742_v48, %s5528_s15  ;;  %5401 = vmatpush3.msra.mxu1 %v4031_v55  ;;  %v3824_v55 = vsel %vm672_vm1, %v3792_v32, %v7434_v29 }
 0x433   : > { %v3713_v27 = vpop.permute.xlu0 %3712  ;;  %v3331_v46 = vpop.permute.xlu1 %3330  ;;  %5402 = vmatprep.subr.mxu1 %v4030_v13 }
 0x434   : > { %v4016_v45 = vsel %vm2293_vm7, %v3984_v10, %v3713_v27  ;;  %5403 = vmatpush3.msra.mxu1 %v4030_v13  ;;  %v3920_v3 = vsel %vm3899_vm13, %v3887_v22, %v3331_v46 }
 0x435   : > { %3224 = vrot.lane.b32.xlu0 %v2711_v56, %s5526_s12  ;;  %5368 = vmatmul.mubr.msk.f32.gmra.mxu1 %vm4043_vm15, %v4016_v45  ;;  %v2585_v56 = vld [vmem:[#allocation3 + $0x19] sm:$0xff] }
 0x436   : > { %3350 = vrot.lane.b32.xlu1 %v2742_v48, %s5535_s9  ;;  %5404 = vmatprep.subr.mxu1 %v4029_v63  ;;  %v2617_v48 = vld [vmem:[#allocation3 + $0x1a] sm:$0xff] }
 0x437   : > { %v3459_v25 = vpop.permute.xlu0 %3458  ;;  %v3333_v6 = vpop.permute.xlu1 %3332  ;;  %5405 = vmatpush3.msra.mxu1 %v4029_v63 }
 0x438   : > { %v3921_v51 = vsel %vm3899_vm13, %v3888_v50, %v3333_v6  ;;  %v3952_v1 = vsel %vm2260_vm6, %v3920_v3, %v3459_v25  ;;  %v2618_v25 = vld [vmem:[#allocation3 + $0x22] sm:$0xff]  ;;  %v2651_v6 = vld [vmem:[#allocation3 + $0x38] sm:$0xff] }
 0x439   : > { %3732 = vrot.lane.b32.xlu0 %v2743_v2, %s5528_s15 }
 0x43a   : > { %3352 = vrot.lane.b32.xlu1 %v2743_v2, %s5535_s9 }
 0x43b   : > { %v3461_v26 = vpop.permute.xlu0 %3460  ;;  %v7665_v62 = vpop.permute.xlu1 %3078 }
 0x43c   : > { %v3953_v44 = vsel %vm2260_vm6, %v3921_v51, %v3461_v26  ;;  %v2653_v51 = vld [vmem:[#allocation3 + $0x50] sm:$0xff] }
 0x43d   : > { %3478 = vrot.lane.b32.xlu0 %v2680_v12, %s5527_s14 }
 0x43e   : > { %3480 = vrot.lane.b32.xlu1 %v2681_v8, %s5527_s14  ;;  %v2683_v8 = vld [vmem:[#allocation3 + $0x39] sm:$0xff] }
 0x43f   : > { %v7672_v54 = vpop.permute.xlu0 %3080  ;;  %v3587_v0 = vpop.permute.xlu1 %3586 }
 0x440   : > { %v3985_v58 = vsel %vm3964_vm14, %v3952_v1, %v3587_v0  ;;  %v3857_v0 = vsel %vm3834_vm12, %v3824_v55, %v7665_v62  ;;  %v3858_v9 = vsel %vm3834_vm12, %v3825_v16, %v7672_v54  ;;  %v2654_v55 = vld [vmem:[#allocation3 + $0x60] sm:$0xff] }
 0x441   : > { %3606 = vrot.lane.b32.xlu0 %v2712_v61, %s5536_s20 }
 0x442   : > { %3162 = vrot.lane.b32.xlu1 %v2585_v56, %s5526_s12 }
 0x443   : > { %v3589_v17 = vpop.permute.xlu0 %3588  ;;  %v3207_v24 = vpop.permute.xlu1 %3206 }
 0x444   : > { %v3986_v10 = vsel %vm3964_vm14, %v3953_v44, %v3589_v17  ;;  %v3889_v42 = vsel %vm2227_vm5, %v3857_v0, %v3207_v24  ;;  %v2652_v24 = vld [vmem:[#allocation3 + $0x48] sm:$0xff] }
 0x445   : > { %3608 = vrot.lane.b32.xlu0 %v2713_v31, %s5536_s20  ;;  %v2655_v0 = vld [vmem:[#allocation3 + $0x68] sm:$0xff] }
 0x446   : > { %3734 = vrot.lane.b32.xlu1 %v2744_v21, %s5528_s15 }
 0x447   : > { %v3209_v36 = vpop.permute.xlu0 %3208  ;;  %v3715_v33 = vpop.permute.xlu1 %3714 }
 0x448   : > { %v4017_v35 = vsel %vm2293_vm7, %v3985_v58, %v3715_v33  ;;  %v3890_v30 = vsel %vm2227_vm5, %v3858_v9, %v3209_v36  ;;  %v2684_v58 = vld [vmem:[#allocation3 + $0x49] sm:$0xff]  ;;  %v3794_v33 = vsel %vm761_vm3, %v7416_v53, %v7298_v23  ;;  %v2686_v9 = vld [vmem:[#allocation3 + $0x61] sm:$0xff] }
 0x449   : > { %3164 = vrot.lane.b32.xlu0 %v2586_v39, %s5526_s12  ;;  %5370 = vmatprep.mubr.msk.f32.mxu1 %vm4043_vm15, %v4017_v35  ;;  %v3826_v35 = vsel %vm672_vm1, %v3794_v33, %v7442_v52 }
 0x44a   : > { %3290 = vrot.lane.b32.xlu1 %v2617_v48, %s5535_s9 }
 0x44b   : > { %v3717_v27 = vpop.permute.xlu0 %3716  ;;  %v3335_v46 = vpop.permute.xlu1 %3334 }
 0x44c   : > { %v4018_v45 = vsel %vm2293_vm7, %v3986_v10, %v3717_v27  ;;  %v3922_v29 = vsel %vm3899_vm13, %v3889_v42, %v3335_v46  ;;  %v3795_v10 = vsel %vm761_vm3, %v7426_v11, %v7310_v19 }
 0x44d   : > { %3736 = vrot.lane.b32.xlu0 %v2745_v4, %s5528_s15  ;;  %5371 = vmatmul.mubr.msk.f32.gmra.mxu1 %vm4043_vm15, %v4018_v45  ;;  %v2685_v4 = vld [vmem:[#allocation3 + $0x51] sm:$0xff]  ;;  %v3827_v48 = vsel %vm672_vm1, %v3795_v10, %v7452_v5 }
 0x44e   : > { %3292 = vrot.lane.b32.xlu1 %v2618_v25, %s5535_s9  ;;  %v2716_v25 = vld [vmem:[#allocation3 + $0x4a] sm:$0xff]  ;;  %v2656_v10 = vld [vmem:[#allocation3 + $0x78] sm:$0xff] }
 0x44f   : > { %v3463_v2 = vpop.permute.xlu0 %3462  ;;  %v3337_v38 = vpop.permute.xlu1 %3336 }
 0x450   : > { %v3923_v60 = vsel %vm3899_vm13, %v3890_v30, %v3337_v38  ;;  %v3954_v15 = vsel %vm2260_vm6, %v3922_v29, %v3463_v2  ;;  %v3796_v29 = vsel %vm761_vm3, %v7468_v57, %v7306_v20  ;;  %v9433_v30 = vld [vmem:[#allocation287_spill] sm:$0xff] }
 0x451   : > { %3418 = vrot.lane.b32.xlu0 %v2650_v59, %s5527_s14 }
 0x452   : > { %3038 = vrot.lane.b32.xlu1 %v2650_v59, %s5534_s27 }
 0x453   : > { %v3465_v49 = vpop.permute.xlu0 %3464  ;;  %v3083_v12 = vpop.permute.xlu1 %3082 }
 0x454   : > { %v3955_v54 = vsel %vm2260_vm6, %v3923_v60, %v3465_v49  ;;  %v3859_v27 = vsel %vm3834_vm12, %v3826_v35, %v3083_v12  ;;  %v2717_v12 = vld [vmem:[#allocation3 + $0x52] sm:$0xff]  ;;  %v3828_v60 = vsel %vm672_vm1, %v3796_v29, %v9433_v30 }
 0x455   : > { %3420 = vrot.lane.b32.xlu0 %v2651_v6, %s5527_s14 }
 0x456   : > { %3546 = vrot.lane.b32.xlu1 %v2682_v47, %s5536_s20 }
 0x457   : > { %v3085_v26 = vpop.permute.xlu0 %3084  ;;  %v3591_v61 = vpop.permute.xlu1 %3590 }
 0x458   : > { %v3987_v7 = vsel %vm3964_vm14, %v3954_v15, %v3591_v61  ;;  %v3860_v53 = vsel %vm3834_vm12, %v3827_v48, %v3085_v26  ;;  %v9434_v15 = vld [vmem:[#allocation269_spill] sm:$0xff]  ;;  %v2657_v48 = vld [vmem:[#allocation3 + $0x80] sm:$0xff] }
 0x459   : > { %3040 = vrot.lane.b32.xlu0 %v2651_v6, %s5534_s27 }
 0x45a   : > { %3166 = vrot.lane.b32.xlu1 %v2682_v47, %s5526_s12 }
 0x45b   : > { %v3593_v13 = vpop.permute.xlu0 %3592  ;;  %v3211_v31 = vpop.permute.xlu1 %3210 }
 0x45c   : > { %v3988_v22 = vsel %vm3964_vm14, %v3955_v54, %v3593_v13  ;;  %v3891_v23 = vsel %vm2227_vm5, %v3859_v27, %v3211_v31 }
 0x45d   : > { %3548 = vrot.lane.b32.xlu0 %v2683_v8, %s5536_s20 }
 0x45e   : > { %3674 = vrot.lane.b32.xlu1 %v2714_v34, %s5528_s15 }
 0x45f   : > { %v3213_v62 = vpop.permute.xlu0 %3212  ;;  %v3719_v17 = vpop.permute.xlu1 %3718 }
 0x460   : > { %v4019_v63 = vsel %vm2293_vm7, %v3987_v7, %v3719_v17  ;;  %v3892_v59 = vsel %vm2227_vm5, %v3860_v53, %v3213_v62  ;;  %v2687_v62 = vld [vmem:[#allocation3 + $0x69] sm:$0xff] }
 0x461   : > { %3168 = vrot.lane.b32.xlu0 %v2683_v8, %s5526_s12  ;;  %5373 = vmatprep.mubr.msk.f32.mxu1 %vm4043_vm15, %v4019_v63  ;;  %v9436_v63 = vld [vmem:[#allocation289_spill] sm:$0xff] }
 0x462   : > { %3294 = vrot.lane.b32.xlu1 %v2714_v34, %s5535_s9  ;;  %v9435_v34 = vld [vmem:[#allocation293_spill] sm:$0xff] }
 0x463   : > { %v3721_v56 = vpop.permute.xlu0 %3720  ;;  %v3339_v3 = vpop.permute.xlu1 %3338  ;;  %v3797_v7 = vsel %vm761_vm3, %v9435_v34, %v9434_v15  ;;  %v2721_v15 = vld [vmem:[#allocation3 + $0x82] sm:$0xff] }
 0x464   : > { %v4020_v40 = vsel %vm2293_vm7, %v3988_v22, %v3721_v56  ;;  %v3924_v46 = vsel %vm3899_vm13, %v3891_v23, %v3339_v3 }
 0x465   : > { %3676 = vrot.lane.b32.xlu0 %v2715_v14, %s5528_s15  ;;  %5374 = vmatmul.mubr.msk.f32.gmra.mxu1 %vm4043_vm15, %v4020_v40 }
 0x466   : > { %3296 = vrot.lane.b32.xlu1 %v2715_v14, %s5535_s9  ;;  %v3829_v14 = vsel %vm672_vm1, %v3797_v7, %v9436_v63 }
 0x467   : > { %v3467_v50 = vpop.permute.xlu0 %3466  ;;  %v3341_v39 = vpop.permute.xlu1 %3340 }
 0x468   : > { %v3925_v11 = vsel %vm3899_vm13, %v3892_v59, %v3341_v39  ;;  %v3956_v2 = vsel %vm2260_vm6, %v3924_v46, %v3467_v50  ;;  %v2718_v39 = vld [vmem:[#allocation3 + $0x62] sm:$0xff]  ;;  %v9437_v59 = vld [vmem:[#allocation268_spill] sm:$0xff] }
 0x469   : > { %3422 = vrot.lane.b32.xlu0 %v2652_v24, %s5527_s14 }
 0x46a   : > { %3042 = vrot.lane.b32.xlu1 %v2652_v24, %s5534_s27 }
 0x46b   : > { %v3469_v36 = vpop.permute.xlu0 %3468  ;;  %v3087_v1 = vpop.permute.xlu1 %3086 }
 0x46c   : > { %v3957_v6 = vsel %vm2260_vm6, %v3925_v11, %v3469_v36  ;;  %v3861_v17 = vsel %vm3834_vm12, %v3828_v60, %v3087_v1  ;;  %v3798_v11 = vsel %vm761_vm3, %v7504_v41, %v9437_v59 }
 0x46d   : > { %3424 = vrot.lane.b32.xlu0 %v2653_v51, %s5527_s14 }
 0x46e   : > { %3550 = vrot.lane.b32.xlu1 %v2684_v58, %s5536_s20 }
 0x46f   : > { %v3089_v21 = vpop.permute.xlu0 %3088  ;;  %v3595_v44 = vpop.permute.xlu1 %3594 }
 0x470   : > { %v3989_v5 = vsel %vm3964_vm14, %v3956_v2, %v3595_v44  ;;  %v3862_v20 = vsel %vm3834_vm12, %v3829_v14, %v3089_v21  ;;  %v9438_v2 = vld [vmem:[#allocation288_spill] sm:$0xff]  ;;  %v9443_v14 = vld [vmem:[#allocation6_spill] sm:$0xff] }
 0x471   : > { %3044 = vrot.lane.b32.xlu0 %v2653_v51, %s5534_s27 }
 0x472   : > { %3170 = vrot.lane.b32.xlu1 %v2684_v58, %s5526_s12  ;;  %v2719_v58 = vld [vmem:[#allocation3 + $0x6a] sm:$0xff] }
 0x473   : > { %v3597_v45 = vpop.permute.xlu0 %3596  ;;  %v3215_v52 = vpop.permute.xlu1 %3214 }
 0x474   : > { %v3990_v26 = vsel %vm3964_vm14, %v3957_v6, %v3597_v45  ;;  %v3893_v57 = vsel %vm2227_vm5, %v3861_v17, %v3215_v52  ;;  %v2688_v52 = vld [vmem:[#allocation3 + $0x79] sm:$0xff]  ;;  %v9442_v17 = vld [vmem:[#allocation4_spill] sm:$0xff] }
 0x475   : > { %3552 = vrot.lane.b32.xlu0 %v2685_v4, %s5536_s20 }
 0x476   : > { %3678 = vrot.lane.b32.xlu1 %v2716_v25, %s5528_s15 }
 0x477   : > { %v3217_v19 = vpop.permute.xlu0 %3216  ;;  %v3723_v38 = vpop.permute.xlu1 %3722 }
 0x478   : > { %v4021_v49 = vsel %vm2293_vm7, %v3989_v5, %v3723_v38  ;;  %v3894_v40 = vsel %vm2227_vm5, %v3862_v20, %v3217_v19  ;;  %v2689_v5 = vld [vmem:[#allocation3 + $0x81] sm:$0xff] }
 0x479   : > { %3172 = vrot.lane.b32.xlu0 %v2685_v4, %s5526_s12  ;;  %5376 = vmatprep.mubr.msk.f32.mxu1 %vm4043_vm15, %v4021_v49  ;;  %v9439_v38 = vld [vmem:[#allocation271_spill] sm:$0xff] }
 0x47a   : > { %3298 = vrot.lane.b32.xlu1 %v2716_v25, %s5535_s9  ;;  %v3830_v25 = vsel %vm672_vm1, %v3798_v11, %v9438_v2  ;;  %v3799_v6 = vsel %vm761_vm3, %v7512_v28, %v9439_v38  ;;  %v9453_v11 = vld [vmem:[#allocation12_spill] sm:$0xff]  ;;  %v9454_v2 = vld [vmem:[#allocation9_spill] sm:$0xff] }
 0x47b   : > { %v3725_v47 = vpop.permute.xlu0 %3724  ;;  %v3343_v61 = vpop.permute.xlu1 %3342 }
 0x47c   : > { %v4022_v32 = vsel %vm2293_vm7, %v3990_v26, %v3725_v47  ;;  %v3926_v22 = vsel %vm3899_vm13, %v3893_v57, %v3343_v61  ;;  %v9440_v26 = vld [vmem:[#allocation291_spill] sm:$0xff] }
 0x47d   : > { %3680 = vrot.lane.b32.xlu0 %v2717_v12, %s5528_s15  ;;  %5377 = vmatmul.mubr.msk.f32.gmra.mxu1 %vm4043_vm15, %v4022_v32  ;;  %v3831_v47 = vsel %vm672_vm1, %v3799_v6, %v9440_v26  ;;  %v5488_v26 = vld [vmem:[#allocation2 + $0x30] sm:$0xff] }
 0x47e   : > { %3300 = vrot.lane.b32.xlu1 %v2717_v12, %s5535_s9 }
 0x47f   : > { %v3471_v8 = vpop.permute.xlu0 %3470  ;;  %v3345_v18 = vpop.permute.xlu1 %3344 }
 0x480   : > { %v3927_v3 = vsel %vm3899_vm13, %v3894_v40, %v3345_v18  ;;  %v3958_v50 = vsel %vm2260_vm6, %v3926_v22, %v3471_v8  ;;  %v883_v8 = vld [vmem:[#allocation2 + $0x8] sm:$0xff]  ;;  %v5485_v22 = vld [vmem:[#allocation2 + $0x20] sm:$0xff] }
 0x481   : > { %3426 = vrot.lane.b32.xlu0 %v2654_v55, %s5527_s14 }
 0x482   : > { %3046 = vrot.lane.b32.xlu1 %v2654_v55, %s5534_s27 }
 0x483   : > { %v3473_v13 = vpop.permute.xlu0 %3472  ;;  %v3091_v16 = vpop.permute.xlu1 %3090 }
 0x484   : > { %v3959_v1 = vsel %vm2260_vm6, %v3927_v3, %v3473_v13  ;;  %v3863_v49 = vsel %vm3834_vm12, %v3830_v25, %v3091_v16  ;;  %v2720_v16 = vld [vmem:[#allocation3 + $0x7a] sm:$0xff]  ;;  %v5486_v3 = vld [vmem:[#allocation2 + $0x18] sm:$0xff] }
 0x485   : > { %3428 = vrot.lane.b32.xlu0 %v2655_v0, %s5527_s14 }
 0x486   : > { %3554 = vrot.lane.b32.xlu1 %v2686_v9, %s5536_s20 }
 0x487   : > { %v3093_v42 = vpop.permute.xlu0 %3092  ;;  %v3599_v31 = vpop.permute.xlu1 %3598 }
 0x488   : > { %v3991_v51 = vsel %vm3964_vm14, %v3958_v50, %v3599_v31  ;;  %v3864_v32 = vsel %vm3834_vm12, %v3831_v47, %v3093_v42  ;;  %v9441_v31 = vld [vmem:[#allocation5_spill] sm:$0xff] }
 0x489   : > { %3048 = vrot.lane.b32.xlu0 %v2655_v0, %s5534_s27  ;;  %v2196_v30 = vsel %vm672_vm1, %v883_v8, %v9441_v31  ;;  %v9457_v47 = vld [vmem:[#allocation17_spill] sm:$0xff]  ;;  %v9462_v31 = vld [vmem:[#allocation27_spill] sm:$0xff] }
 0x48a   : > { %3174 = vrot.lane.b32.xlu1 %v2686_v9, %s5526_s12  ;;  %v882_v9 = vld [vmem:[#allocation2] sm:$0xff]  ;;  %v2229_v57 = vsel %vm2227_vm5, %v2196_v30, %v9443_v14  ;;  %v9466_v14 = vld [vmem:[#allocation31_spill] sm:$0xff] }
 0x48b   : > { %v3601_v54 = vpop.permute.xlu0 %3600  ;;  %v3219_v56 = vpop.permute.xlu1 %3218 }
 0x48c   : > { %v3992_v33 = vsel %vm3964_vm14, %v3959_v1, %v3601_v54  ;;  %v3895_v41 = vsel %vm2227_vm5, %v3863_v49, %v3219_v56  ;;  %v2195_v54 = vsel %vm672_vm1, %v882_v9, %v9442_v17  ;;  %v9444_v56 = vld [vmem:[#allocation8_spill] sm:$0xff]  ;;  %v9447_v1 = vld [vmem:[#allocation7_spill] sm:$0xff] }
 0x48d   : > { %3556 = vrot.lane.b32.xlu0 %v2687_v62, %s5536_s20  ;;  %v2198_v40 = vsel %vm672_vm1, %v5485_v22, %v9444_v56  ;;  %v9456_v49 = vld [vmem:[#allocation15_spill] sm:$0xff]  ;;  %v9467_v22 = vld [vmem:[#allocation14_spill] sm:$0xff] }
 0x48e   : > { %3682 = vrot.lane.b32.xlu1 %v2718_v39, %s5528_s15  ;;  %v9461_v9 = vld [vmem:[#allocation23_spill] sm:$0xff] }
 0x48f   : > { %v3221_v24 = vpop.permute.xlu0 %3220  ;;  %v3727_v36 = vpop.permute.xlu1 %3726 }
 0x490   : > { %v4023_v21 = vsel %vm2293_vm7, %v3991_v51, %v3727_v36  ;;  %v3896_v28 = vsel %vm2227_vm5, %v3864_v32, %v3221_v24  ;;  %v9445_v24 = vld [vmem:[#allocation16_spill] sm:$0xff]  ;;  %v9458_v32 = vld [vmem:[#allocation21_spill] sm:$0xff] }
 0x491   : > { %3176 = vrot.lane.b32.xlu0 %v2687_v62, %s5526_s12  ;;  %5379 = vmatprep.mubr.msk.f32.mxu1 %vm4043_vm15, %v4023_v21  ;;  %v2197_v50 = vsel %vm672_vm1, %v5486_v3, %v9445_v24  ;;  %v2658_v36 = vld [vmem:[#allocation3 + $0x90] sm:$0xff]  ;;  %v2228_v21 = vsel %vm2227_vm5, %v2195_v54, %v9447_v1  ;;  %v9465_v54 = vld [vmem:[#allocation29_spill] sm:$0xff]  ;;  %v9468_v3 = vld [vmem:[#allocation30_spill] sm:$0xff] }
 0x492   : > { %3302 = vrot.lane.b32.xlu1 %v2718_v39, %s5535_s9  ;;  %v9446_v39 = vld [vmem:[#allocation18_spill] sm:$0xff]  ;;  %v2230_v25 = vsel %vm2227_vm5, %v2197_v50, %v9454_v2  ;;  %v9478_v2 = vld [vmem:[#allocation273_spill] sm:$0xff] }
 0x493   : > { %v3729_v44 = vpop.permute.xlu0 %3728  ;;  %v3347_v4 = vpop.permute.xlu1 %3346  ;;  %v2262_v51 = vsel %vm2260_vm6, %v2229_v57, %v9446_v39  ;;  %v9470_v39 = vld [vmem:[#allocation34_spill] sm:$0xff] }
 0x494   : > { %v4024_v35 = vsel %vm2293_vm7, %v3992_v33, %v3729_v44  ;;  %v3928_v61 = vsel %vm3899_vm13, %v3895_v41, %v3347_v4  ;;  %v2199_v41 = vsel %vm672_vm1, %v5488_v26, %v9457_v47  ;;  %v9471_v1 = vld [vmem:[#allocation270_spill] sm:$0xff]  ;;  %v9480_v47 = vld [vmem:[#allocation36_spill] sm:$0xff] }
 0x495   : > { %3684 = vrot.lane.b32.xlu0 %v2719_v58, %s5528_s15  ;;  %5380 = vmatmul.mubr.msk.f32.gmra.mxu1 %vm4043_vm15, %v4024_v35  ;;  %v9449_v35 = vld [vmem:[#allocation11_spill] sm:$0xff] }
 0x496   : > { %3304 = vrot.lane.b32.xlu1 %v2719_v58, %s5535_s9  ;;  %v9448_v58 = vld [vmem:[#allocation10_spill] sm:$0xff]  ;;  %v2261_v4 = vsel %vm2260_vm6, %v2228_v21, %v9449_v35  ;;  %v3800_v21 = vsel %vm761_vm3, %v7556_v43, %v9471_v1 }
 0x497   : > { %v3475_v27 = vpop.permute.xlu0 %3474  ;;  %v3349_v45 = vpop.permute.xlu1 %3348  ;;  %v2231_v33 = vsel %vm2227_vm5, %v2198_v40, %v9448_v58  ;;  %v5490_v40 = vld [vmem:[#allocation2 + $0x50] sm:$0xff] }
 0x498   : > { %v3929_v18 = vsel %vm3899_vm13, %v3896_v28, %v3349_v45  ;;  %v3960_v13 = vsel %vm2260_vm6, %v3928_v61, %v3475_v27  ;;  %v9450_v27 = vld [vmem:[#allocation20_spill] sm:$0xff]  ;;  %v2263_v61 = vsel %vm2260_vm6, %v2230_v25, %v9458_v32  ;;  %v9459_v28 = vld [vmem:[#allocation38_spill] sm:$0xff]  ;;  %v2202_v24 = vsel %vm672_vm1, %v5490_v40, %v9468_v3 }
 0x499   : > { %3430 = vrot.lane.b32.xlu0 %v2656_v10, %s5527_s14  ;;  %v3801_v25 = vsel %vm761_vm3, %v7562_v37, %v9478_v2  ;;  %v9481_v32 = vld [vmem:[#allocation294_spill] sm:$0xff]  ;;  %v2690_v37 = vld [vmem:[#allocation3 + $0x91] sm:$0xff] }
 0x49a   : > { %3050 = vrot.lane.b32.xlu1 %v2656_v10, %s5534_s27  ;;  %v5487_v10 = vld [vmem:[#allocation2 + $0x38] sm:$0xff] }
 0x49b   : > { %v3477_v23 = vpop.permute.xlu0 %3476  ;;  %v7831_v53 = vpop.permute.xlu1 %3094  ;;  %v2200_v45 = vsel %vm672_vm1, %v5487_v10, %v9450_v27  ;;  %v9474_v27 = vld [vmem:[#allocation26_spill] sm:$0xff] }
 0x49c   : > { %v3961_v60 = vsel %vm2260_vm6, %v3929_v18, %v3477_v23  ;;  %v2659_v18 = vld [vmem:[#allocation3 + $0x98] sm:$0xff] }
 0x49d   : > { %3432 = vrot.lane.b32.xlu0 %v2657_v48, %s5527_s14 }
 0x49e   : > { %3558 = vrot.lane.b32.xlu1 %v2688_v52, %s5536_s20 }
 0x49f   : > { %v7835_v46 = vpop.permute.xlu0 %3096  ;;  %v3603_v19 = vpop.permute.xlu1 %3602 }
 0x4a0   : > { %v3993_v42 = vsel %vm3964_vm14, %v3960_v13, %v3603_v19  ;;  %v2295_v19 = vsel %vm2293_vm7, %v2262_v51, %v9453_v11  ;;  %v9460_v13 = vld [vmem:[#allocation19_spill] sm:$0xff]  ;;  %v9477_v11 = vld [vmem:[#allocation48_spill] sm:$0xff] }
 0x4a1   : > { %3052 = vrot.lane.b32.xlu0 %v2657_v48, %s5534_s27  ;;  %v9451_v48 = vld [vmem:[#allocation28_spill] sm:$0xff]  ;;  %v7937_v56 = vsel %vm2326_vm8, %v2295_v19, %v9467_v22  ;;  %v9489_v22 = vld [vmem:[#allocation49_spill] sm:$0xff] }
 0x4a2   : > { %3178 = vrot.lane.b32.xlu1 %v2688_v52, %s5526_s12  ;;  %v2264_v23 = vsel %vm2260_vm6, %v2231_v33, %v9451_v48  ;;  %v9452_v52 = vld [vmem:[#allocation13_spill] sm:$0xff]  ;;  %v9472_v33 = vld [vmem:[#allocation32_spill] sm:$0xff]  ;;  %v9475_v48 = vld [vmem:[#allocation290_spill] sm:$0xff] }
 0x4a3   : > { %v3605_v12 = vpop.permute.xlu0 %3604  ;;  %v7853_v55 = vpop.permute.xlu1 %3222  ;;  %v2294_v59 = vsel %vm2293_vm7, %v2261_v4, %v9452_v52  ;;  %v2235_v35 = vsel %vm2227_vm5, %v2202_v24, %v9472_v33  ;;  %v9473_v4 = vld [vmem:[#allocation35_spill] sm:$0xff]  ;;  %v5491_v52 = vld [vmem:[#allocation2 + $0x60] sm:$0xff]  ;;  %v9492_v33 = vld [vmem:[#allocation50_spill] sm:$0xff] }
 0x4a4   : > { %v3994_v34 = vsel %vm3964_vm14, %v3961_v60, %v3605_v12  ;;  %v7910_v12 = vsel %vm2326_vm8, %v2294_v59, %v9456_v49  ;;  %v9463_v60 = vld [vmem:[#allocation24_spill] sm:$0xff]  ;;  %v9476_v59 = vld [vmem:[#allocation37_spill] sm:$0xff]  ;;  %v2268_v19 = vsel %vm2260_vm6, %v2235_v35, %v9477_v11  ;;  %v9479_v49 = vld [vmem:[#allocation39_spill] sm:$0xff] }
 0x4a5   : > { %3560 = vrot.lane.b32.xlu0 %v2689_v5, %s5536_s20  ;;  %v2203_v43 = vsel %vm672_vm1, %v5491_v52, %v9476_v59  ;;  %v9495_v59 = vld [vmem:[#allocation52_spill] sm:$0xff]  ;;  %v5495_v11 = vld [vmem:[#allocation2 + $0x90] sm:$0xff] }
 0x4a6   : > { %3686 = vrot.lane.b32.xlu1 %v2720_v16, %s5528_s15  ;;  %v2236_v26 = vsel %vm2227_vm5, %v2203_v43, %v9479_v49 }
 0x4a7   : > { %v7859_v0 = vpop.permute.xlu0 %3224  ;;  %v3731_v29 = vpop.permute.xlu1 %3730 }
 0x4a8   : > { %v4025_v62 = vsel %vm2293_vm7, %v3993_v42, %v3731_v29  ;;  %v2296_v42 = vsel %vm2293_vm7, %v2263_v61, %v9461_v9  ;;  %v5489_v29 = vld [vmem:[#allocation2 + $0x48] sm:$0xff]  ;;  %v3833_v61 = vsel %vm672_vm1, %v3801_v25, %v9481_v32 }
 0x4a9   : > { %3180 = vrot.lane.b32.xlu0 %v2689_v5, %s5526_s12  ;;  %5382 = vmatprep.mubr.msk.f32.mxu1 %vm4043_vm15, %v4025_v62  ;;  %v9455_v5 = vld [vmem:[#allocation22_spill] sm:$0xff]  ;;  %v2201_v30 = vsel %vm672_vm1, %v5489_v29, %v9462_v31  ;;  %v2297_v62 = vsel %vm2293_vm7, %v2264_v23, %v9463_v60  ;;  %v3832_v23 = vsel %vm672_vm1, %v3800_v21, %v9475_v48  ;;  %v9484_v31 = vld [vmem:[#allocation43_spill] sm:$0xff]  ;;  %v5494_v21 = vld [vmem:[#allocation2 + $0x80] sm:$0xff] }
 0x4aa   : > { %3306 = vrot.lane.b32.xlu1 %v2720_v16, %s5535_s9  ;;  %v2233_v38 = vsel %vm2227_vm5, %v2200_v45, %v9455_v5  ;;  %v2232_v16 = vsel %vm2227_vm5, %v2199_v41, %v9460_v13  ;;  %v7957_v45 = vsel %vm2326_vm8, %v2297_v62, %v9474_v27  ;;  %v3865_v5 = vsel %vm3834_vm12, %v3832_v23, %v7831_v53  ;;  %v9482_v13 = vld [vmem:[#allocation40_spill] sm:$0xff]  ;;  %v9485_v60 = vld [vmem:[#allocation47_spill] sm:$0xff]  ;;  %v9494_v27 = vld [vmem:[#allocation46_spill] sm:$0xff] }
 0x4ab   : > { %v3733_v7 = vpop.permute.xlu0 %3732  ;;  %v7876_v20 = vpop.permute.xlu1 %3350  ;;  %v2266_v8 = vsel %vm2260_vm6, %v2233_v38, %v9459_v28  ;;  %v2265_v57 = vsel %vm2260_vm6, %v2232_v16, %v9466_v14  ;;  %v3897_v28 = vsel %vm2227_vm5, %v3865_v5, %v7853_v55  ;;  %v3866_v9 = vsel %vm3834_vm12, %v3833_v61, %v7835_v46  ;;  %v9487_v14 = vld [vmem:[#allocation42_spill] sm:$0xff]  ;;  %v9500_v61 = vld [vmem:[#allocation59_spill] sm:$0xff] }
 0x4ac   : > { %v4026_v63 = vsel %vm2293_vm7, %v3994_v34, %v3733_v7  ;;  %v9464_v7 = vld [vmem:[#allocation25_spill] sm:$0xff]  ;;  %v2299_v51 = vsel %vm2293_vm7, %v2266_v8, %v9470_v39  ;;  %v3898_v46 = vsel %vm2227_vm5, %v3866_v9, %v7859_v0  ;;  %v2206_v35 = vsel %vm672_vm1, %v5494_v21, %v9492_v33  ;;  %v9498_v5 = vld [vmem:[#allocation54_spill] sm:$0xff]  ;;  %v5496_v9 = vld [vmem:[#allocation2 + $0x98] sm:$0xff] }
 0x4ad   : > { %3688 = vrot.lane.b32.xlu0 %v2721_v15, %s5528_s15  ;;  %5383 = vmatmul.mubr.msk.f32.gmra.mxu1 %vm4043_vm15, %v4026_v63  ;;  %v7929_v17 = vsel %vm2326_vm8, %v2296_v42, %v9464_v7  ;;  %v2234_v63 = vsel %vm2227_vm5, %v2201_v30, %v9465_v54  ;;  %v7975_v41 = vsel %vm2326_vm8, %v2299_v51, %v9480_v47  ;;  %v5492_v8 = vld [vmem:[#allocation2 + $0x68] sm:$0xff]  ;;  %v5493_v30 = vld [vmem:[#allocation2 + $0x78] sm:$0xff]  ;;  %v9486_v7 = vld [vmem:[#allocation44_spill] sm:$0xff] }
 0x4ae   : > { %3308 = vrot.lane.b32.xlu1 %v2721_v15, %s5535_s9  ;;  %v9469_v15 = vld [vmem:[#allocation33_spill] sm:$0xff]  ;;  %v2204_v53 = vsel %vm672_vm1, %v5492_v8, %v9482_v13  ;;  %v3930_v42 = vsel %vm3899_vm13, %v3897_v28, %v7876_v20  ;;  %v2205_v62 = vsel %vm672_vm1, %v5493_v30, %v9485_v60  ;;  %v2301_v54 = vsel %vm2293_vm7, %v2268_v19, %v9486_v7  ;;  %v9501_v8 = vld [vmem:[#allocation68_spill] sm:$0xff]  ;;  %v9514_v33 = vld [vmem:[#allocation67_spill] sm:$0xff] }
 0x4af   : > { %v7891_v44 = vpop.permute.xlu0 %3478  ;;  %v3353_v6 = vpop.permute.xlu1 %3352  ;;  %v2298_v50 = vsel %vm2293_vm7, %v2265_v57, %v9469_v15  ;;  %v2237_v20 = vsel %vm2227_vm5, %v2204_v53, %v9487_v14  ;;  %v9488_v57 = vld [vmem:[#allocation45_spill] sm:$0xff]  ;;  %v2238_v40 = vsel %vm2227_vm5, %v2205_v62, %v9489_v22  ;;  %v9490_v15 = vld [vmem:[#allocation51_spill] sm:$0xff]  ;;  %v8025_v48 = vsel %vm2326_vm8, %v2301_v54, %v9494_v27  ;;  %v9502_v53 = vld [vmem:[#allocation190_spill] sm:$0xff] }
 0x4b0   : > { %v7953_v10 = vsel %vm2326_vm8, %v2298_v50, %v9473_v4  ;;  %v3931_v3 = vsel %vm3899_vm13, %v3898_v46, %v3353_v6  ;;  %v2269_v0 = vsel %vm2260_vm6, %v2236_v26, %v9490_v15  ;;  %v9491_v50 = vld [vmem:[#allocation58_spill] sm:$0xff]  ;;  %v3962_v51 = vsel %vm2260_vm6, %v3930_v42, %v7891_v44  ;;  %v9493_v6 = vld [vmem:[#allocation53_spill] sm:$0xff]  ;;  %v9507_v54 = vld [vmem:[#allocation63_spill] sm:$0xff] }
 0x4b1   : > { %3434 = vrot.lane.b32.xlu0 %v2658_v36, %s5527_s14  ;;  %v2270_v39 = vsel %vm2260_vm6, %v2237_v20, %v9491_v50  ;;  %v2302_v4 = vsel %vm2293_vm7, %v2269_v0, %v9493_v6  ;;  %v2239_v44 = vsel %vm2227_vm5, %v2206_v35, %v9495_v59  ;;  %v9497_v19 = vld [vmem:[#allocation57_spill] sm:$0xff]  ;;  %v9506_v62 = vld [vmem:[#allocation62_spill] sm:$0xff]  ;;  %v9511_v15 = vld [vmem:[#allocation64_spill] sm:$0xff] }
 0x4b2   : > { %3054 = vrot.lane.b32.xlu1 %v2658_v36, %s5534_s27  ;;  %v9483_v36 = vld [vmem:[#allocation41_spill] sm:$0xff]  ;;  %v2207_v2 = vsel %vm672_vm1, %v5495_v11, %v9497_v19  ;;  %v2303_v49 = vsel %vm2293_vm7, %v2270_v39, %v9498_v5  ;;  %v2272_v13 = vsel %vm2260_vm6, %v2239_v44, %v9501_v8  ;;  %v9512_v50 = vld [vmem:[#allocation160_spill] sm:$0xff]  ;;  %v9515_v6 = vld [vmem:[#allocation78_spill] sm:$0xff] }
 0x4b3   : > { %v3607_v34 = vpop.permute.xlu0 %3606  ;;  %v3481_v58 = vpop.permute.xlu1 %3480  ;;  %v2267_v16 = vsel %vm2260_vm6, %v2234_v63, %v9483_v36  ;;  %v2691_v63 = vld [vmem:[#allocation3 + $0x99] sm:$0xff]  ;;  %v2240_v28 = vsel %vm2227_vm5, %v2207_v2, %v9500_v61  ;;  %v2305_v0 = vsel %vm2293_vm7, %v2272_v13, %v9511_v15  ;;  %v2362_v39 = vsel %vm2359_vm9, %v7929_v17, %v9512_v50  ;;  %v9516_v27 = vld [vmem:[#allocation191_spill] sm:$0xff] }
 0x4b4   : > { %v2300_v55 = vsel %vm2293_vm7, %v2267_v16, %v9484_v31  ;;  %v3963_v1 = vsel %vm2260_vm6, %v3931_v3, %v3481_v58  ;;  %v3995_v23 = vsel %vm3964_vm14, %v3962_v51, %v3607_v34  ;;  %v9496_v58 = vld [vmem:[#allocation55_spill] sm:$0xff]  ;;  %v9504_v42 = vld [vmem:[#allocation61_spill] sm:$0xff]  ;;  %v9513_v51 = vld [vmem:[#allocation192_spill] sm:$0xff] }
 0x4b5   : > { %3436 = vrot.lane.b32.xlu0 %v2659_v18, %s5527_s14  ;;  %v8033_v43 = vsel %vm2326_vm8, %v2302_v4, %v9496_v58  ;;  %v9499_v34 = vld [vmem:[#allocation159_spill] sm:$0xff]  ;;  %v2271_v31 = vsel %vm2260_vm6, %v2238_v40, %v9504_v42  ;;  %v9508_v14 = vld [vmem:[#allocation161_spill] sm:$0xff]  ;;  %v5498_v58 = vld [vmem:[#allocation2 + $0xb0] sm:$0xff] }
 0x4b6   : > { %3562 = vrot.lane.b32.xlu1 %v2690_v37, %s5536_s20  ;;  %v2360_v26 = vsel %vm2359_vm9, %v7910_v12, %v9499_v34  ;;  %v2722_v12 = vld [vmem:[#allocation3 + $0x92] sm:$0xff]  ;;  %v2304_v46 = vsel %vm2293_vm7, %v2271_v31, %v9507_v54  ;;  %v2361_v20 = vsel %vm2359_vm9, %v7937_v56, %v9508_v14  ;;  %v2723_v40 = vld [vmem:[#allocation3 + $0x9a] sm:$0xff]  ;;  %v9520_v2 = vld [vmem:[#allocation223_spill] sm:$0xff] }
 0x4b7   : > { %v3609_v38 = vpop.permute.xlu0 %3608  ;;  %v7989_v29 = vpop.permute.xlu1 %3162  ;;  %v2393_v36 = vsel %vm2392_vm10, %v2360_v26, %v9502_v53  ;;  %v2394_v56 = vsel %vm2392_vm10, %v2361_v20, %v9513_v51  ;;  %v5497_v21 = vld [vmem:[#allocation2 + $0xa8] sm:$0xff]  ;;  %v9519_v11 = vld [vmem:[#allocation70_spill] sm:$0xff]  ;;  %v9522_v26 = vld [vmem:[#allocation72_spill] sm:$0xff] }
 0x4b8   : > { %v3996_v47 = vsel %vm3964_vm14, %v3963_v1, %v3609_v38  ;;  %v9503_v38 = vld [vmem:[#allocation60_spill] sm:$0xff]  ;;  %v2209_v35 = vsel %vm672_vm1, %v5497_v21, %v9514_v33  ;;  %v9518_v59 = vld [vmem:[#allocation69_spill] sm:$0xff]  ;;  %v2210_v19 = vsel %vm672_vm1, %v5498_v58, %v9519_v11  ;;  %v9524_v8 = vld [vmem:[#allocation66_spill] sm:$0xff] }
 0x4b9   : > { %3056 = vrot.lane.b32.xlu0 %v2659_v18, %s5534_s27  ;;  %v8004_v18 = vsel %vm2326_vm8, %v2300_v55, %v9488_v57  ;;  %v9505_v55 = vld [vmem:[#allocation221_spill] sm:$0xff]  ;;  %v9509_v57 = vld [vmem:[#allocation56_spill] sm:$0xff]  ;;  %v2242_v44 = vsel %vm2227_vm5, %v2209_v35, %v9518_v59  ;;  %v8116_v13 = vsel %vm2326_vm8, %v2305_v0, %v9524_v8  ;;  %v2660_v53 = vld [vmem:[#allocation3 + $0xa8] sm:$0xff] }
 0x4ba   : > { %3182 = vrot.lane.b32.xlu1 %v2690_v37, %s5526_s12  ;;  %v2208_v37 = vsel %vm672_vm1, %v5496_v9, %v9503_v38  ;;  %v2425_v30 = vsel %vm350_vm0, %v2393_v36, %v9505_v55  ;;  %v8072_v22 = vsel %vm2326_vm8, %v2303_v49, %v9509_v57  ;;  %v9521_v49 = vld [vmem:[#allocation71_spill] sm:$0xff]  ;;  %v9525_v36 = vld [vmem:[#allocation73_spill] sm:$0xff]  ;;  %v9526_v9 = vld [vmem:[#allocation74_spill] sm:$0xff] }
 0x4bb   : > { %v8010_v24 = vpop.permute.xlu0 %3164  ;;  %v3735_v52 = vpop.permute.xlu1 %3734  ;;  %v2241_v7 = vsel %vm2227_vm5, %v2208_v37, %v9506_v62  ;;  %v2273_v34 = vsel %vm2260_vm6, %v2240_v28, %v9521_v49  ;;  %v9527_v38 = vld [vmem:[#allocation162_spill] sm:$0xff]  ;;  %v5499_v55 = vld [vmem:[#allocation2 + $0xc0] sm:$0xff]  ;;  %v9533_v57 = vld [vmem:[#allocation75_spill] sm:$0xff] }
 0x4bc   : > { %v4027_v25 = vsel %vm2293_vm7, %v3995_v23, %v3735_v52  ;;  %v2274_v4 = vsel %vm2260_vm6, %v2241_v7, %v9515_v6  ;;  %v2395_v23 = vsel %vm2392_vm10, %v2362_v39, %v9516_v27  ;;  %v9517_v52 = vld [vmem:[#allocation224_spill] sm:$0xff]  ;;  %v2364_v37 = vsel %vm2359_vm9, %v7953_v10, %v9527_v38  ;;  %v9528_v42 = vld [vmem:[#allocation194_spill] sm:$0xff]  ;;  %v9535_v0 = vld [vmem:[#allocation225_spill] sm:$0xff] }
 0x4bd   : > { %3564 = vrot.lane.b32.xlu0 %v2691_v63, %s5536_s20  ;;  %5385 = vmatprep.mubr.msk.f32.mxu1 %vm4043_vm15, %v4027_v25  ;;  %v2426_v17 = vsel %vm350_vm0, %v2394_v56, %v9517_v52  ;;  %v2427_v25 = vsel %vm350_vm0, %v2395_v23, %v9520_v2  ;;  %v2307_v28 = vsel %vm2293_vm7, %v2274_v4, %v9526_v9  ;;  %v9530_v7 = vld [vmem:[#allocation88_spill] sm:$0xff]  ;;  %v9532_v20 = vld [vmem:[#allocation226_spill] sm:$0xff]  ;;  %v5500_v51 = vld [vmem:[#allocation2 + $0xc8] sm:$0xff] }
 0x4be   : > { %3690 = vrot.lane.b32.xlu1 %v2722_v12, %s5528_s15  ;;  %v9536_v56 = vld [vmem:[#allocation80_spill] sm:$0xff]  ;;  %v9537_v33 = vld [vmem:[#allocation81_spill] sm:$0xff]  ;;  %v2457_v52 = vld [vmem:[#allocation3] sm:$0xff] }
 0x4bf   : > { %v3737_v32 = vpop.permute.xlu0 %3736  ;;  %v8059_v60 = vpop.permute.xlu1 %3290  ;;  %v2212_v21 = vsel %vm672_vm1, %v5500_v51, %v9536_v56  ;;  %v2275_v35 = vsel %vm2260_vm6, %v2242_v44, %v9537_v33  ;;  %v9538_v6 = vld [vmem:[#allocation165_spill] sm:$0xff]  ;;  %v9539_v27 = vld [vmem:[#allocation76_spill] sm:$0xff]  ;;  %v9540_v59 = vld [vmem:[#allocation83_spill] sm:$0xff] }
 0x4c0   : > { %v4028_v16 = vsel %vm2293_vm7, %v3996_v47, %v3737_v32  ;;  %v2243_v47 = vsel %vm2227_vm5, %v2210_v19, %v9522_v26  ;;  %v9523_v32 = vld [vmem:[#allocation163_spill] sm:$0xff]  ;;  %v2365_v4 = vsel %vm2359_vm9, %v7975_v41, %v9538_v6  ;;  %v8160_v23 = vsel %vm2326_vm8, %v2307_v28, %v9539_v27  ;;  %v9541_v11 = vld [vmem:[#allocation84_spill] sm:$0xff] }
 0x4c1   : > { %3184 = vrot.lane.b32.xlu0 %v2691_v63, %s5526_s12  ;;  %5386 = vmatmul.mubr.msk.f32.gmra.mxu1 %vm4043_vm15, %v4028_v16  ;;  %v9510_v63 = vld [vmem:[#allocation65_spill] sm:$0xff]  ;;  %v2363_v61 = vsel %vm2359_vm9, %v7957_v45, %v9523_v32  ;;  %v2306_v16 = vsel %vm2293_vm7, %v2273_v34, %v9525_v36  ;;  %v2276_v54 = vsel %vm2260_vm6, %v2243_v47, %v9530_v7  ;;  %v9542_v2 = vld [vmem:[#allocation164_spill] sm:$0xff]  ;;  %v9544_v34 = vld [vmem:[#allocation82_spill] sm:$0xff] }
 0x4c2   : > { %5406 = vmatprep.mubr.msk.f32.mxu1 %vm4369_vm4, %v2425_v30  ;;  %v8077_v3 = vsel %vm2326_vm8, %v2304_v46, %v9510_v63  ;;  %v2396_v45 = vsel %vm2392_vm10, %v2363_v61, %v9528_v42  ;;  %3310 = vrot.lane.b32.xlu1 %v2722_v12, %s5535_s9  ;;  %v9529_v30 = vld [vmem:[#allocation77_spill] sm:$0xff]  ;;  %v8141_v63 = vsel %vm2326_vm8, %v2306_v16, %v9533_v57  ;;  %v9534_v12 = vld [vmem:[#allocation79_spill] sm:$0xff]  ;;  %v9547_v36 = vld [vmem:[#allocation228_spill] sm:$0xff] }
 0x4c3   : > { %v8087_v1 = vpop.permute.xlu0 %3418  ;;  %v8103_v5 = vpop.permute.xlu1 %3292  ;;  %v2211_v62 = vsel %vm672_vm1, %v5499_v55, %v9529_v30  ;;  %v9531_v46 = vld [vmem:[#allocation193_spill] sm:$0xff]  ;;  %v2428_v10 = vsel %vm350_vm0, %v2396_v45, %v9532_v20  ;;  %v2308_v58 = vsel %vm2293_vm7, %v2275_v35, %v9540_v59  ;;  %v2309_v19 = vsel %vm2293_vm7, %v2276_v54, %v9541_v11  ;;  %v9546_v61 = vld [vmem:[#allocation195_spill] sm:$0xff]  ;;  %v9554_v20 = vld [vmem:[#allocation272_spill] sm:$0xff] }
 0x4c4   : > { %v2397_v14 = vsel %vm2392_vm10, %v2364_v37, %v9531_v46  ;;  %v2244_v15 = vsel %vm2227_vm5, %v2211_v62, %v9534_v12  ;;  %v2366_v44 = vsel %vm2359_vm9, %v8004_v18, %v9542_v2  ;;  %v2245_v26 = vsel %vm2227_vm5, %v2212_v21, %v9544_v34  ;;  %v9545_v47 = vld [vmem:[#allocation85_spill] sm:$0xff]  ;;  %v2458_v16 = vld [vmem:[#allocation3 + $0x8] sm:$0xff]  ;;  %v9553_v46 = vld [vmem:[#allocation86_spill] sm:$0xff] }
 0x4c5   : > { %3692 = vrot.lane.b32.xlu0 %v2723_v40, %s5528_s15  ;;  %5407 = vmatmul.mubr.msk.f32.vlgmr.msra.gmra.mxu1 %vm4369_vm4, %v2426_v17  ;;  %v2429_v50 = vsel %vm350_vm0, %v2397_v14, %v9535_v0  ;;  %v2661_v17 = vld [vmem:[#allocation3 + $0xb0] sm:$0xff]  ;;  %v8179_v32 = vsel %vm2326_vm8, %v2308_v58, %v9545_v47  ;;  %v2399_v8 = vsel %vm2392_vm10, %v2366_v44, %v9546_v61  ;;  %v5501_v9 = vld [vmem:[#allocation2 + $0xd8] sm:$0xff]  ;;  %v9550_v42 = vld [vmem:[#allocation253_spill] sm:$0xff] }
 0x4c6   : > { %5409 = vmatprep.mubr.msk.f32.mxu1 %vm4369_vm4, %v2427_v25  ;;  %v9543_v25 = vld [vmem:[#allocation196_spill] sm:$0xff]  ;;  %3312 = vrot.lane.b32.xlu1 %v2723_v40, %s5535_s9  ;;  %v9548_v28 = vld [vmem:[#allocation87_spill] sm:$0xff]  ;;  %v3770_v45 = vsel %vm761_vm3, %v2457_v52, %v9550_v42  ;;  %v9551_v30 = vld [vmem:[#allocation89_spill] sm:$0xff]  ;;  %v8202_v14 = vsel %vm2326_vm8, %v2309_v19, %v9553_v46 }
 0x4c7   : > { %v8129_v31 = vpop.permute.xlu0 %3420  ;;  %v8147_v39 = vpop.permute.xlu1 %3038  ;;  %v2398_v41 = vsel %vm2392_vm10, %v2365_v4, %v9543_v25  ;;  %v2213_v40 = vsel %vm672_vm1, %v5501_v9, %v9548_v28  ;;  %v9549_v38 = vld [vmem:[#allocation227_spill] sm:$0xff]  ;;  %v9555_v57 = vld [vmem:[#allocation166_spill] sm:$0xff]  ;;  %v9557_v51 = vld [vmem:[#allocation256_spill] sm:$0xff] }
 0x4c8   : > { %v2430_v18 = vsel %vm350_vm0, %v2398_v41, %v9547_v36  ;;  %v2431_v37 = vsel %vm350_vm0, %v2399_v8, %v9549_v38  ;;  %v8195_v62 = vsel %vm2227_vm5, %v2213_v40, %v9551_v30  ;;  %v9552_v7 = vld [vmem:[#allocation167_spill] sm:$0xff]  ;;  %v2368_v12 = vsel %vm2359_vm9, %v8033_v43, %v9555_v57  ;;  %v9556_v0 = vld [vmem:[#allocation198_spill] sm:$0xff]  ;;  %v9559_v35 = vld [vmem:[#allocation197_spill] sm:$0xff] }
 0x4c9   : > { %3438 = vrot.lane.b32.xlu0 %v2660_v53, %s5527_s14  ;;  %5410 = vmatmul.mubr.msk.f32.gmra.mxu1 %vm4369_vm4, %v2428_v10  ;;  %v2367_v54 = vsel %vm2359_vm9, %v8025_v48, %v9552_v7  ;;  %v3802_v10 = vsel %vm672_vm1, %v3770_v45, %v9554_v20  ;;  %v3771_v56 = vsel %vm761_vm3, %v2458_v16, %v9557_v51  ;;  %v9558_v48 = vld [vmem:[#allocation292_spill] sm:$0xff]  ;;  %v9560_v4 = vld [vmem:[#allocation230_spill] sm:$0xff]  ;;  %v9561_v52 = vld [vmem:[#allocation275_spill] sm:$0xff] }
 0x4ca   : > { %5412 = vmatprep.mubr.msk.f32.mxu1 %vm4369_vm4, %v2429_v50  ;;  %v2400_v50 = vsel %vm2392_vm10, %v2367_v54, %v9556_v0  ;;  %v3835_v21 = vsel %vm3834_vm12, %v3802_v10, %v9558_v48  ;;  %3058 = vrot.lane.b32.xlu1 %v2660_v53, %s5534_s27  ;;  %v2401_v6 = vsel %vm2392_vm10, %v2368_v12, %v9559_v35  ;;  %v2692_v58 = vld [vmem:[#allocation3 + $0xa9] sm:$0xff]  ;;  %v9562_v11 = vld [vmem:[#allocation229_spill] sm:$0xff]  ;;  %v9564_v34 = vld [vmem:[#allocation90_spill] sm:$0xff] }
 0x4cb   : > { %v8173_v49 = vpop.permute.xlu0 %3040  ;;  %v3547_v55 = vpop.permute.xlu1 %3546  ;;  %v2432_v27 = vsel %vm350_vm0, %v2400_v50, %v9560_v4  ;;  %v3803_v43 = vsel %vm672_vm1, %v3771_v56, %v9561_v52  ;;  %v3867_v59 = vsel %vm2227_vm5, %v3835_v21, %v7989_v29  ;;  %v2433_v19 = vsel %vm350_vm0, %v2401_v6, %v9562_v11  ;;  %v9563_v2 = vld [vmem:[#allocation295_spill] sm:$0xff]  ;;  %v5502_v41 = vld [vmem:[#allocation2 + $0xe0] sm:$0xff]  ;;  %v9566_v8 = vld [vmem:[#allocation169_spill] sm:$0xff] }
 0x4cc   : > { %v3836_v53 = vsel %vm3834_vm12, %v3803_v43, %v9563_v2  ;;  %v3900_v44 = vsel %vm3899_vm13, %v3867_v59, %v8059_v60  ;;  %v2214_v29 = vsel %vm672_vm1, %v5502_v41, %v9564_v34  ;;  %v9565_v47 = vld [vmem:[#allocation91_spill] sm:$0xff]  ;;  %v2369_v36 = vsel %vm2359_vm9, %v8072_v22, %v9566_v8  ;;  %v9568_v9 = vld [vmem:[#allocation168_spill] sm:$0xff]  ;;  %v9573_v7 = vld [vmem:[#allocation93_spill] sm:$0xff] }
 0x4cd   : > { %3440 = vrot.lane.b32.xlu0 %v2661_v17, %s5527_s14  ;;  %5413 = vmatmul.mubr.msk.f32.gmra.mxu1 %vm4369_vm4, %v2430_v18  ;;  %v2277_v61 = vsel %vm2260_vm6, %v2244_v15, %v9565_v47  ;;  %v3868_v60 = vsel %vm2227_vm5, %v3836_v53, %v8010_v24  ;;  %v2693_v18 = vld [vmem:[#allocation3 + $0xb1] sm:$0xff]  ;;  %v2370_v28 = vsel %vm2359_vm9, %v8077_v3, %v9568_v9  ;;  %v9571_v42 = vld [vmem:[#allocation199_spill] sm:$0xff]  ;;  %v5503_v57 = vld [vmem:[#allocation2 + $0xf0] sm:$0xff] }
 0x4ce   : > { %5415 = vmatprep.mubr.msk.f32.mxu1 %vm4369_vm4, %v2431_v37  ;;  %v9569_v40 = vld [vmem:[#allocation200_spill] sm:$0xff]  ;;  %v3901_v38 = vsel %vm3899_vm13, %v3868_v60, %v8103_v5  ;;  %3566 = vrot.lane.b32.xlu1 %v2692_v58, %s5536_s20  ;;  %v3932_v3 = vsel %vm2260_vm6, %v3900_v44, %v8087_v1  ;;  %v2310_v54 = vsel %vm2293_vm7, %v2277_v61, %v9573_v7  ;;  %v9574_v5 = vld [vmem:[#allocation231_spill] sm:$0xff]  ;;  %v9576_v50 = vld [vmem:[#allocation94_spill] sm:$0xff] }
 0x4cf   : > { %v3549_v33 = vpop.permute.xlu0 %3548  ;;  %v8231_v25 = vpop.permute.xlu1 %3166  ;;  %v2402_v15 = vsel %vm2392_vm10, %v2369_v36, %v9569_v40  ;;  %v9570_v24 = vld [vmem:[#allocation92_spill] sm:$0xff]  ;;  %v3965_v20 = vsel %vm3964_vm14, %v3932_v3, %v3547_v55  ;;  %v9575_v12 = vld [vmem:[#allocation95_spill] sm:$0xff]  ;;  %v3933_v51 = vsel %vm2260_vm6, %v3901_v38, %v8129_v31  ;;  %v9577_v48 = vld [vmem:[#allocation98_spill] sm:$0xff] }
 0x4d0   : > { %v2247_v37 = vsel %vm2227_vm5, %v2214_v29, %v9570_v24  ;;  %v9572_v45 = vld [vmem:[#allocation232_spill] sm:$0xff]  ;;  %v2215_v0 = vsel %vm672_vm1, %v5503_v57, %v9575_v12  ;;  %v5504_v55 = vld [vmem:[#allocation2 + $0xf8] sm:$0xff]  ;;  %v3966_v4 = vsel %vm3964_vm14, %v3933_v51, %v3549_v33  ;;  %v9580_v43 = vld [vmem:[#allocation170_spill] sm:$0xff] }
 0x4d1   : > { %3060 = vrot.lane.b32.xlu0 %v2661_v17, %s5534_s27  ;;  %5416 = vmatmul.mubr.msk.f32.gmra.mxu1 %vm4369_vm4, %v2432_v27  ;;  %v9567_v17 = vld [vmem:[#allocation96_spill] sm:$0xff]  ;;  %v2434_v30 = vsel %vm350_vm0, %v2402_v15, %v9572_v45  ;;  %v2216_v21 = vsel %vm672_vm1, %v5504_v55, %v9577_v48  ;;  %v9578_v35 = vld [vmem:[#allocation171_spill] sm:$0xff]  ;;  %v2372_v59 = vsel %vm2359_vm9, %v8141_v63, %v9580_v43  ;;  %v9581_v11 = vld [vmem:[#allocation202_spill] sm:$0xff] }
 0x4d2   : > { %5418 = vmatprep.mubr.msk.f32.mxu1 %vm4369_vm4, %v2433_v19  ;;  %v2278_v16 = vsel %vm2260_vm6, %v2245_v26, %v9567_v17  ;;  %v2403_v26 = vsel %vm2392_vm10, %v2370_v28, %v9571_v42  ;;  %v2371_v6 = vsel %vm2359_vm9, %v8116_v13, %v9578_v35  ;;  %3186 = vrot.lane.b32.xlu1 %v2692_v58, %s5526_s12  ;;  %v9579_v31 = vld [vmem:[#allocation104_spill] sm:$0xff]  ;;  %v9582_v53 = vld [vmem:[#allocation99_spill] sm:$0xff]  ;;  %v9583_v58 = vld [vmem:[#allocation201_spill] sm:$0xff] }
 0x4d3   : > { %v8255_v22 = vpop.permute.xlu0 %3168  ;;  %v2435_v46 = vsel %vm350_vm0, %v2403_v26, %v9574_v5  ;;  %v3675_v10 = vpop.permute.xlu1 %3674  ;;  %v8276_v1 = vsel %vm2293_vm7, %v2278_v16, %v9576_v50  ;;  %v2280_v52 = vsel %vm2260_vm6, %v2247_v37, %v9579_v31  ;;  %v2404_v19 = vsel %vm2392_vm10, %v2371_v6, %v9581_v11  ;;  %v2724_v13 = vld [vmem:[#allocation3 + $0xaa] sm:$0xff]  ;;  %v9584_v41 = vld [vmem:[#allocation234_spill] sm:$0xff]  ;;  %v9585_v63 = vld [vmem:[#allocation97_spill] sm:$0xff] }
 0x4d4   : > { %v3997_v56 = vsel %vm2293_vm7, %v3965_v20, %v3675_v10  ;;  %v2279_v33 = vsel %vm2260_vm6, %v8195_v62, %v9582_v53  ;;  %v2405_v44 = vsel %vm2392_vm10, %v2372_v59, %v9583_v58  ;;  %v2436_v34 = vsel %vm350_vm0, %v2404_v19, %v9584_v41  ;;  %v9586_v61 = vld [vmem:[#allocation100_spill] sm:$0xff]  ;;  %v9587_v36 = vld [vmem:[#allocation101_spill] sm:$0xff]  ;;  %v9589_v28 = vld [vmem:[#allocation103_spill] sm:$0xff] }
 0x4d5   : > { %3568 = vrot.lane.b32.xlu0 %v2693_v18, %s5536_s20  ;;  %5419 = vmatmul.mubr.msk.f32.gmra.mxu1 %vm4369_vm4, %v2434_v30  ;;  %v2248_v47 = vsel %vm2227_vm5, %v2215_v0, %v9585_v63  ;;  %v2249_v8 = vsel %vm2227_vm5, %v2216_v21, %v9586_v61  ;;  %v2312_v62 = vsel %vm2293_vm7, %v2279_v33, %v9587_v36  ;;  %v9588_v60 = vld [vmem:[#allocation233_spill] sm:$0xff]  ;;  %v9590_v40 = vld [vmem:[#allocation102_spill] sm:$0xff]  ;;  %v9593_v45 = vld [vmem:[#allocation112_spill] sm:$0xff] }
 0x4d6   : > { %5421 = vmatprep.mubr.msk.f32.mxu1 %vm4369_vm4, %v2435_v46  ;;  %5340 = vmatprep.mubr.msk.f32.mxu0 %vm4043_vm15, %v3997_v56  ;;  %v2437_v17 = vsel %vm350_vm0, %v2405_v44, %v9588_v60  ;;  %v2725_v16 = vld [vmem:[#allocation3 + $0xb2] sm:$0xff]  ;;  %v8322_v15 = vsel %vm2293_vm7, %v2280_v52, %v9590_v40  ;;  %v2282_v30 = vsel %vm2260_vm6, %v2249_v8, %v9593_v45  ;;  %v9596_v20 = vld [vmem:[#allocation106_spill] sm:$0xff]  ;;  %v9597_v57 = vld [vmem:[#allocation107_spill] sm:$0xff] }
 0x4d7   : > { %v3677_v27 = vpop.permute.xlu0 %3676  ;;  %v8305_v29 = vpop.permute.xlu1 %3294  ;;  %v5505_v9 = vld [vmem:[#allocation2 + $0x108] sm:$0xff]  ;;  %3694 = vrot.lane.b32.xlu1 %v2724_v13, %s5528_s15  ;;  %v9594_v3 = vld [vmem:[#allocation172_spill] sm:$0xff]  ;;  %v2281_v12 = vsel %vm2260_vm6, %v2248_v47, %v9597_v57  ;;  %v9598_v0 = vld [vmem:[#allocation203_spill] sm:$0xff] }
 0x4d8   : > { %v3998_v2 = vsel %vm2293_vm7, %v3966_v4, %v3677_v27  ;;  %v9591_v38 = vld [vmem:[#allocation173_spill] sm:$0xff]  ;;  %v2374_v7 = vsel %vm2359_vm9, %v8179_v32, %v9594_v3  ;;  %v9595_v5 = vld [vmem:[#allocation204_spill] sm:$0xff]  ;;  %v9602_v4 = vld [vmem:[#allocation111_spill] sm:$0xff] }
 0x4d9   : > { %3188 = vrot.lane.b32.xlu0 %v2693_v18, %s5526_s12  ;;  %5341 = vmatmul.mubr.msk.f32.vlgmr.msra.gmra.mxu0 %vm4043_vm15, %v3998_v2  ;;  %v2217_v18 = vsel %vm672_vm1, %v5505_v9, %v9589_v28  ;;  %v2373_v24 = vsel %vm2359_vm9, %v8160_v23, %v9591_v38  ;;  %v9592_v42 = vld [vmem:[#allocation105_spill] sm:$0xff]  ;;  %v5506_v23 = vld [vmem:[#allocation2 + $0x110] sm:$0xff]  ;;  %v2407_v50 = vsel %vm2392_vm10, %v2374_v7, %v9598_v0  ;;  %v9599_v51 = vld [vmem:[#allocation236_spill] sm:$0xff] }
 0x4da   : > { %5422 = vmatmul.mubr.msk.f32.gmra.mxu1 %vm4369_vm4, %v2436_v34  ;;  %v2250_v26 = vsel %vm2227_vm5, %v2217_v18, %v9592_v42  ;;  %v2406_v46 = vsel %vm2392_vm10, %v2373_v24, %v9595_v5  ;;  %v2218_v10 = vsel %vm672_vm1, %v5506_v23, %v9596_v20  ;;  %v9600_v32 = vld [vmem:[#allocation108_spill] sm:$0xff]  ;;  %v9601_v21 = vld [vmem:[#allocation109_spill] sm:$0xff]  ;;  %v9603_v31 = vld [vmem:[#allocation235_spill] sm:$0xff] }
 0x4db   : > { %5424 = vmatprep.mubr.msk.f32.mxu1 %vm4369_vm4, %v2437_v17  ;;  %v8329_v37 = vpop.permute.xlu0 %3422  ;;  %v2438_v56 = vsel %vm350_vm0, %v2406_v46, %v9599_v51  ;;  %v8348_v55 = vpop.permute.xlu1 %3296  ;;  %v2251_v48 = vsel %vm2227_vm5, %v2218_v10, %v9600_v32  ;;  %v2314_v35 = vsel %vm2293_vm7, %v2281_v12, %v9601_v21  ;;  %v5507_v6 = vld [vmem:[#allocation2 + $0x120] sm:$0xff]  ;;  %v2439_v52 = vsel %vm350_vm0, %v2407_v50, %v9603_v31  ;;  %v2662_v43 = vld [vmem:[#allocation3 + $0xc0] sm:$0xff]  ;;  %v9606_v53 = vld [vmem:[#allocation175_spill] sm:$0xff] }
 0x4dc   : > { %v2219_v27 = vsel %vm672_vm1, %v5507_v6, %v9602_v4  ;;  %v9604_v59 = vld [vmem:[#allocation144_spill] sm:$0xff]  ;;  %v9605_v19 = vld [vmem:[#allocation110_spill] sm:$0xff]  ;;  %v2375_v33 = vsel %vm2359_vm9, %v8202_v14, %v9606_v53  ;;  %3314 = vrot.lane.b32.xlu1 %v2724_v13, %s5535_s9  ;;  %v9607_v44 = vld [vmem:[#allocation113_spill] sm:$0xff] }
 0x4dd   : > { %3696 = vrot.lane.b32.xlu0 %v2725_v16, %s5528_s15  ;;  %v2343_v11 = vsel %vm2326_vm8, %v2310_v54, %v9604_v59  ;;  %v8364_v2 = vsel %vm2293_vm7, %v2282_v30, %v9605_v19  ;;  %v2252_v41 = vsel %vm2227_vm5, %v2219_v27, %v9607_v44  ;;  %v5508_v34 = vld [vmem:[#allocation2 + $0x128] sm:$0xff]  ;;  %v9608_v63 = vld [vmem:[#allocation114_spill] sm:$0xff]  ;;  %v9611_v14 = vld [vmem:[#allocation115_spill] sm:$0xff] }
 0x4de   : > { %5425 = vmatmul.mubr.msk.f32.gmra.mxu1 %vm4369_vm4, %v2438_v56  ;;  %v2220_v54 = vsel %vm672_vm1, %v5508_v34, %v9608_v63  ;;  %v9609_v47 = vld [vmem:[#allocation174_spill] sm:$0xff]  ;;  %v2283_v60 = vsel %vm2260_vm6, %v2250_v26, %v9611_v14  ;;  %v9612_v17 = vld [vmem:[#allocation120_spill] sm:$0xff]  ;;  %v9613_v9 = vld [vmem:[#allocation205_spill] sm:$0xff] }
 0x4df   : > { %5427 = vmatprep.mubr.msk.f32.mxu1 %vm4369_vm4, %v2439_v52  ;;  %v8371_v58 = vpop.permute.xlu0 %3424  ;;  %v2376_v61 = vsel %vm2359_vm9, %v2343_v11, %v9609_v47  ;;  %v9610_v8 = vld [vmem:[#allocation206_spill] sm:$0xff]  ;;  %v2284_v13 = vsel %vm2260_vm6, %v2251_v48, %v9612_v17  ;;  %v8389_v38 = vpop.permute.xlu1 %3042  ;;  %v9615_v24 = vld [vmem:[#allocation116_spill] sm:$0xff]  ;;  %v9616_v45 = vld [vmem:[#allocation117_spill] sm:$0xff] }
 0x4e0   : > { %v2408_v36 = vsel %vm2392_vm10, %v2375_v33, %v9610_v8  ;;  %v2409_v28 = vsel %vm2392_vm10, %v2376_v61, %v9613_v9  ;;  %v9614_v18 = vld [vmem:[#allocation238_spill] sm:$0xff]  ;;  %v8394_v42 = vsel %vm2227_vm5, %v2220_v54, %v9615_v24  ;;  %v2316_v26 = vsel %vm2293_vm7, %v2283_v60, %v9616_v45  ;;  %v9618_v7 = vld [vmem:[#allocation237_spill] sm:$0xff]  ;;  %v5509_v23 = vld [vmem:[#allocation2 + $0x138] sm:$0xff]  ;;  %3316 = vrot.lane.b32.xlu1 %v2725_v16, %s5535_s9  ;;  %s8816_s9 = scalar_lea.vmem %s9135_s6, %s5146_s18  ;;  %s5044_s18 = sshll.u32 %s9726_s25, 1 }
 0x4e1   : > { %v2440_v40 = vsel %vm350_vm0, %v2408_v36, %v9614_v18  ;;  %3442 = vrot.lane.b32.xlu0 %v2662_v43, %s5527_s14  ;;  %v9617_v30 = vld [vmem:[#allocation146_spill] sm:$0xff]  ;;  %v2441_v5 = vsel %vm350_vm0, %v2409_v28, %v9618_v7  ;;  %v9619_v20 = vld [vmem:[#allocation119_spill] sm:$0xff]  ;;  %v9620_v57 = vld [vmem:[#allocation145_spill] sm:$0xff]  ;;  %s309_s29 = scalar_lea.vmem %s9136_s7, %s5044_s18 }
 0x4e2   : > { %v2344_v3 = vsel %vm2326_vm8, %v8276_v1, %v9617_v30  ;;  %5428 = vmatmul.mubr.msk.f32.gmra.mxu1 %vm4369_vm4, %v2440_v40  ;;  %v2694_v46 = vld [vmem:[#allocation3 + $0xc1] sm:$0xff]  ;;  %v2221_v10 = vsel %vm672_vm1, %v5509_v23, %v9619_v20  ;;  %v2345_v12 = vsel %vm2326_vm8, %v2312_v62, %v9620_v57  ;;  %v9621_v0 = vld [vmem:[#allocation177_spill] sm:$0xff]  ;;  %v9624_v21 = vld [vmem:[#allocation176_spill] sm:$0xff] }
 0x4e3   : > { %v2377_v50 = vsel %vm2359_vm9, %v2344_v3, %v9621_v0  ;;  %5430 = vmatprep.mubr.msk.f32.mxu1 %vm4369_vm4, %v2441_v5  ;;  %v8412_v1 = vpop.permute.xlu0 %3044  ;;  %v9622_v51 = vld [vmem:[#allocation121_spill] sm:$0xff]  ;;  %v9623_v32 = vld [vmem:[#allocation118_spill] sm:$0xff]  ;;  %v2378_v6 = vsel %vm2359_vm9, %v2345_v12, %v9624_v21  ;;  %v9625_v62 = vld [vmem:[#allocation208_spill] sm:$0xff]  ;;  %v3551_v34 = vpop.permute.xlu1 %3550 }
 0x4e4   : > { %v8416_v56 = vsel %vm2227_vm5, %v2221_v10, %v9622_v51  ;;  %v2317_v48 = vsel %vm2293_vm7, %v2284_v13, %v9623_v32  ;;  %v2410_v4 = vsel %vm2392_vm10, %v2377_v50, %v9625_v62  ;;  %v2663_v27 = vld [vmem:[#allocation3 + $0xc8] sm:$0xff]  ;;  %v5510_v31 = vld [vmem:[#allocation2 + $0x140] sm:$0xff]  ;;  %v9626_v52 = vld [vmem:[#allocation122_spill] sm:$0xff] }
 0x4e5   : > { %v8426_v16 = vsel %vm672_vm1, %v5510_v31, %v9626_v52  ;;  %v9627_v43 = vld [vmem:[#allocation207_spill] sm:$0xff]  ;;  %v9628_v11 = vld [vmem:[#allocation240_spill] sm:$0xff]  ;;  %v5511_v53 = vld [vmem:[#allocation3 + $0x18] sm:$0xff]  ;;  %3570 = vrot.lane.b32.xlu0 %v2694_v46, %s5536_s20  ;;  %3444 = vrot.lane.b32.xlu1 %v2663_v27, %s5527_s14 }
 0x4e6   : > { %v2411_v59 = vsel %vm2392_vm10, %v2378_v6, %v9627_v43  ;;  %v2442_v19 = vsel %vm350_vm0, %v2410_v4, %v9628_v11  ;;  %v9629_v33 = vld [vmem:[#allocation255_spill] sm:$0xff]  ;;  %v9631_v47 = vld [vmem:[#allocation148_spill] sm:$0xff]  ;;  %v9633_v14 = vld [vmem:[#allocation274_spill] sm:$0xff] }
 0x4e7   : > { %v3772_v44 = vsel %vm761_vm3, %v5511_v53, %v9629_v33  ;;  %v9630_v63 = vld [vmem:[#allocation147_spill] sm:$0xff]  ;;  %v2346_v61 = vsel %vm2326_vm8, %v8322_v15, %v9631_v47  ;;  %5431 = vmatmul.mubr.msk.f32.gmra.mxu1 %vm4369_vm4, %v2442_v19  ;;  %v5512_v28 = vld [vmem:[#allocation3 + $0x20] sm:$0xff]  ;;  %v3553_v15 = vpop.permute.xlu0 %3552  ;;  %v9638_v7 = vld [vmem:[#allocation277_spill] sm:$0xff]  ;;  %v8469_v50 = vpop.permute.xlu1 %3170 }
 0x4e8   : > { %v2347_v54 = vsel %vm2326_vm8, %v2314_v35, %v9630_v63  ;;  %v9632_v8 = vld [vmem:[#allocation239_spill] sm:$0xff]  ;;  %v3804_v60 = vsel %vm672_vm1, %v3772_v44, %v9633_v14  ;;  %v9635_v18 = vld [vmem:[#allocation258_spill] sm:$0xff]  ;;  %v9639_v20 = vld [vmem:[#allocation209_spill] sm:$0xff] }
 0x4e9   : > { %v2443_v36 = vsel %vm350_vm0, %v2411_v59, %v9632_v8  ;;  %v2726_v17 = vld [vmem:[#allocation3 + $0xc2] sm:$0xff]  ;;  %v3773_v35 = vsel %vm761_vm3, %v5512_v28, %v9635_v18  ;;  %v3837_v40 = vsel %vm3834_vm12, %v3804_v60, %v8147_v39  ;;  %v9643_v6 = vld [vmem:[#allocation241_spill] sm:$0xff]  ;;  %v9647_v43 = vld [vmem:[#allocation180_spill] sm:$0xff] }
 0x4ea   : > { %v9634_v13 = vld [vmem:[#allocation179_spill] sm:$0xff]  ;;  %5433 = vmatprep.mubr.msk.f32.mxu1 %vm4369_vm4, %v2443_v36  ;;  %v9636_v24 = vld [vmem:[#allocation178_spill] sm:$0xff]  ;;  %v3805_v5 = vsel %vm672_vm1, %v3773_v35, %v9638_v7  ;;  %v3869_v46 = vsel %vm2227_vm5, %v3837_v40, %v8231_v25  ;;  %3698 = vrot.lane.b32.xlu0 %v2726_v17, %s5528_s15  ;;  %v9645_v27 = vld [vmem:[#allocation181_spill] sm:$0xff] }
 0x4eb   : > { %v2379_v9 = vsel %vm2359_vm9, %v2346_v61, %v9634_v13  ;;  %v2380_v45 = vsel %vm2359_vm9, %v2347_v54, %v9636_v24  ;;  %v9637_v30 = vld [vmem:[#allocation210_spill] sm:$0xff]  ;;  %v2695_v23 = vld [vmem:[#allocation3 + $0xc9] sm:$0xff]  ;;  %v3838_v12 = vsel %vm3834_vm12, %v3805_v5, %v8173_v49  ;;  %v3902_v0 = vsel %vm3899_vm13, %v3869_v46, %v8305_v29  ;;  %v9644_v29 = vld [vmem:[#allocation149_spill] sm:$0xff]  ;;  %v3679_v8 = vpop.permute.xlu1 %3678 }
 0x4ec   : > { %v2412_v3 = vsel %vm2392_vm10, %v2379_v9, %v9637_v30  ;;  %v2413_v39 = vsel %vm2392_vm10, %v2380_v45, %v9639_v20  ;;  %v9640_v10 = vld [vmem:[#allocation242_spill] sm:$0xff]  ;;  %v9641_v51 = vld [vmem:[#allocation123_spill] sm:$0xff]  ;;  %v3870_v49 = vsel %vm2227_vm5, %v3838_v12, %v8255_v22  ;;  %v2349_v4 = vsel %vm2326_vm8, %v2316_v26, %v9644_v29  ;;  %3572 = vrot.lane.b32.xlu1 %v2695_v23, %s5536_s20  ;;  %v9646_v52 = vld [vmem:[#allocation125_spill] sm:$0xff] }
 0x4ed   : > { %v2444_v57 = vsel %vm350_vm0, %v2412_v3, %v9640_v10  ;;  %v2285_v25 = vsel %vm2260_vm6, %v2252_v41, %v9641_v51  ;;  %v9642_v32 = vld [vmem:[#allocation150_spill] sm:$0xff]  ;;  %v2445_v62 = vsel %vm350_vm0, %v2413_v39, %v9643_v6  ;;  %v3903_v41 = vsel %vm3899_vm13, %v3870_v49, %v8348_v55  ;;  %v9648_v11 = vld [vmem:[#allocation212_spill] sm:$0xff]  ;;  %v9650_v44 = vld [vmem:[#allocation211_spill] sm:$0xff] }
 0x4ee   : > { %v2348_v21 = vsel %vm2326_vm8, %v8364_v2, %v9642_v32  ;;  %5434 = vmatmul.mubr.msk.f32.gmra.mxu1 %vm4369_vm4, %v2444_v57  ;;  %v8490_v2 = vpop.permute.xlu0 %3172  ;;  %v2318_v22 = vsel %vm2293_vm7, %v2285_v25, %v9646_v52  ;;  %v2382_v59 = vsel %vm2359_vm9, %v2349_v4, %v9647_v43  ;;  %v3934_v19 = vsel %vm2260_vm6, %v3902_v0, %v8329_v37  ;;  %v2727_v53 = vld [vmem:[#allocation3 + $0xca] sm:$0xff]  ;;  %v9657_v40 = vld [vmem:[#allocation182_spill] sm:$0xff]  ;;  %v9661_v23 = vld [vmem:[#allocation213_spill] sm:$0xff] }
 0x4ef   : > { %v2381_v31 = vsel %vm2359_vm9, %v2348_v21, %v9645_v27  ;;  %5436 = vmatprep.mubr.msk.f32.mxu1 %vm4369_vm4, %v2445_v62  ;;  %v9649_v55 = vld [vmem:[#allocation128_spill] sm:$0xff]  ;;  %v2415_v63 = vsel %vm2392_vm10, %v2382_v59, %v9650_v44  ;;  %v3967_v61 = vsel %vm3964_vm14, %v3934_v19, %v3551_v34  ;;  %v9653_v60 = vld [vmem:[#allocation243_spill] sm:$0xff]  ;;  %v3935_v17 = vsel %vm2260_vm6, %v3903_v41, %v8371_v58  ;;  %v9658_v45 = vld [vmem:[#allocation214_spill] sm:$0xff]  ;;  %v8541_v10 = vpop.permute.xlu1 %3298 }
 0x4f0   : > { %v2414_v26 = vsel %vm2392_vm10, %v2381_v31, %v9648_v11  ;;  %v2286_v33 = vsel %vm2260_vm6, %v8394_v42, %v9649_v55  ;;  %v9651_v54 = vld [vmem:[#allocation244_spill] sm:$0xff]  ;;  %v2447_v37 = vsel %vm350_vm0, %v2415_v63, %v9653_v60  ;;  %v3999_v42 = vsel %vm2293_vm7, %v3967_v61, %v3679_v8  ;;  %v9654_v13 = vld [vmem:[#allocation151_spill] sm:$0xff]  ;;  %3700 = vrot.lane.b32.xlu1 %v2727_v53, %s5528_s15  ;;  %v9660_v5 = vld [vmem:[#allocation126_spill] sm:$0xff] }
 0x4f1   : > { %v2446_v47 = vsel %vm350_vm0, %v2414_v26, %v9651_v54  ;;  %v9652_v36 = vld [vmem:[#allocation152_spill] sm:$0xff]  ;;  %v2351_v9 = vsel %vm2326_vm8, %v2318_v22, %v9654_v13  ;;  %v9655_v28 = vld [vmem:[#allocation183_spill] sm:$0xff]  ;;  %v3968_v18 = vsel %vm3964_vm14, %v3935_v17, %v3553_v15  ;;  %5343 = vmatprep.mubr.msk.f32.mxu0 %vm4043_vm15, %v3999_v42  ;;  %v2319_v46 = vsel %vm2293_vm7, %v2286_v33, %v9660_v5  ;;  %v9662_v20 = vld [vmem:[#allocation246_spill] sm:$0xff] }
 0x4f2   : > { %v2350_v14 = vsel %vm2326_vm8, %v2317_v48, %v9652_v36  ;;  %5437 = vmatmul.mubr.msk.f32.gmra.mxu1 %vm4369_vm4, %v2446_v47  ;;  %v3681_v48 = vpop.permute.xlu0 %3680  ;;  %v9656_v35 = vld [vmem:[#allocation124_spill] sm:$0xff]  ;;  %v2384_v24 = vsel %vm2359_vm9, %v2351_v9, %v9657_v40  ;;  %v9659_v15 = vld [vmem:[#allocation131_spill] sm:$0xff]  ;;  %v9663_v57 = vld [vmem:[#allocation133_spill] sm:$0xff] }
 0x4f3   : > { %v2383_v34 = vsel %vm2359_vm9, %v2350_v14, %v9655_v28  ;;  %5439 = vmatprep.mubr.msk.f32.mxu1 %vm4369_vm4, %v2447_v37  ;;  %v2255_v58 = vsel %vm2227_vm5, %v8426_v16, %v9656_v35  ;;  %v4000_v3 = vsel %vm2293_vm7, %v3968_v18, %v3681_v48  ;;  %v2287_v7 = vsel %vm2260_vm6, %v8416_v56, %v9659_v15  ;;  %v9664_v0 = vld [vmem:[#allocation136_spill] sm:$0xff]  ;;  %v9665_v56 = vld [vmem:[#allocation154_spill] sm:$0xff]  ;;  %v9666_v32 = vld [vmem:[#allocation245_spill] sm:$0xff]  ;;  %v3301_v37 = vpop.permute.xlu1 %3300 }
 0x4f4   : > { %v2416_v30 = vsel %vm2392_vm10, %v2383_v34, %v9658_v45  ;;  %v2417_v16 = vsel %vm2392_vm10, %v2384_v24, %v9661_v23  ;;  %5344 = vmatmul.mubr.msk.f32.gmra.mxu0 %vm4043_vm15, %v4000_v3  ;;  %v2320_v12 = vsel %vm2293_vm7, %v2287_v7, %v9663_v57  ;;  %v2288_v51 = vsel %vm2260_vm6, %v2255_v58, %v9664_v0  ;;  %v5513_v6 = vld [vmem:[#allocation2 + $0x150] sm:$0xff]  ;;  %v9667_v62 = vld [vmem:[#allocation127_spill] sm:$0xff]  ;;  %v9669_v31 = vld [vmem:[#allocation153_spill] sm:$0xff] }
 0x4f5   : > { %v2448_v39 = vsel %vm350_vm0, %v2416_v30, %v9662_v20  ;;  %v2352_v25 = vsel %vm2326_vm8, %v2319_v46, %v9665_v56  ;;  %v2449_v21 = vsel %vm350_vm0, %v2417_v16, %v9666_v32  ;;  %v2223_v49 = vsel %vm672_vm1, %v5513_v6, %v9667_v62  ;;  %v5514_v29 = vld [vmem:[#allocation2 + $0x158] sm:$0xff]  ;;  %v9668_v4 = vld [vmem:[#allocation130_spill] sm:$0xff]  ;;  %v9670_v52 = vld [vmem:[#allocation185_spill] sm:$0xff] }
 0x4f6   : > { %5440 = vmatmul.mubr.msk.f32.gmra.mxu1 %vm4369_vm4, %v2448_v39  ;;  %v2224_v27 = vsel %vm672_vm1, %v5514_v29, %v9668_v4  ;;  %v2353_v41 = vsel %vm2326_vm8, %v2320_v12, %v9669_v31  ;;  %v2385_v22 = vsel %vm2359_vm9, %v2352_v25, %v9670_v52  ;;  %v8562_v43 = vpop.permute.xlu0 %3426  ;;  %v9671_v59 = vld [vmem:[#allocation129_spill] sm:$0xff]  ;;  %v9672_v26 = vld [vmem:[#allocation132_spill] sm:$0xff]  ;;  %v9675_v63 = vld [vmem:[#allocation138_spill] sm:$0xff] }
 0x4f7   : > { %5442 = vmatprep.mubr.msk.f32.mxu1 %vm4369_vm4, %v2449_v21  ;;  %v2256_v11 = vsel %vm2227_vm5, %v2223_v49, %v9671_v59  ;;  %v2257_v19 = vsel %vm2227_vm5, %v2224_v27, %v9672_v26  ;;  %v9673_v53 = vld [vmem:[#allocation184_spill] sm:$0xff]  ;;  %v9676_v47 = vld [vmem:[#allocation134_spill] sm:$0xff]  ;;  %v9677_v8 = vld [vmem:[#allocation215_spill] sm:$0xff]  ;;  %v3047_v21 = vpop.permute.xlu1 %3046 }
 0x4f8   : > { %v2386_v55 = vsel %vm2359_vm9, %v2353_v41, %v9673_v53  ;;  %v9674_v33 = vld [vmem:[#allocation216_spill] sm:$0xff]  ;;  %v2289_v54 = vsel %vm2260_vm6, %v2256_v11, %v9675_v63  ;;  %v2321_v61 = vsel %vm2293_vm7, %v2288_v51, %v9676_v47  ;;  %v9679_v17 = vld [vmem:[#allocation139_spill] sm:$0xff]  ;;  %v9680_v13 = vld [vmem:[#allocation142_spill] sm:$0xff] }
 0x4f9   : > { %v2418_v44 = vsel %vm2392_vm10, %v2385_v22, %v9674_v33  ;;  %v2419_v36 = vsel %vm2392_vm10, %v2386_v55, %v9677_v8  ;;  %v9678_v14 = vld [vmem:[#allocation248_spill] sm:$0xff]  ;;  %v2322_v42 = vsel %vm2293_vm7, %v2289_v54, %v9679_v17  ;;  %v2290_v9 = vsel %vm2260_vm6, %v2257_v19, %v9680_v13  ;;  %v9682_v18 = vld [vmem:[#allocation247_spill] sm:$0xff]  ;;  %v5515_v35 = vld [vmem:[#allocation2 + $0x168] sm:$0xff] }
 0x4fa   : > { %v2450_v60 = vsel %vm350_vm0, %v2418_v44, %v9678_v14  ;;  %v9681_v28 = vld [vmem:[#allocation156_spill] sm:$0xff]  ;;  %v2451_v48 = vsel %vm350_vm0, %v2419_v36, %v9682_v18  ;;  %v9683_v58 = vld [vmem:[#allocation135_spill] sm:$0xff]  ;;  %v3429_v15 = vpop.permute.xlu0 %3428  ;;  %v9686_v7 = vld [vmem:[#allocation137_spill] sm:$0xff] }
 0x4fb   : > { %v2354_v34 = vsel %vm2326_vm8, %v2321_v61, %v9681_v28  ;;  %5443 = vmatmul.mubr.msk.f32.gmra.mxu1 %vm4369_vm4, %v2450_v60  ;;  %v2225_v40 = vsel %vm672_vm1, %v5515_v35, %v9683_v58  ;;  %v9684_v24 = vld [vmem:[#allocation155_spill] sm:$0xff]  ;;  %v9687_v46 = vld [vmem:[#allocation186_spill] sm:$0xff]  ;;  %v9689_v39 = vld [vmem:[#allocation141_spill] sm:$0xff]  ;;  %v3555_v36 = vpop.permute.xlu1 %3554 }
 0x4fc   : > { %v2355_v45 = vsel %vm2326_vm8, %v2322_v42, %v9684_v24  ;;  %v9685_v30 = vld [vmem:[#allocation187_spill] sm:$0xff]  ;;  %5445 = vmatprep.mubr.msk.f32.mxu1 %vm4369_vm4, %v2451_v48  ;;  %v2258_v5 = vsel %vm2227_vm5, %v2225_v40, %v9686_v7  ;;  %v9688_v16 = vld [vmem:[#allocation218_spill] sm:$0xff]  ;;  %v9690_v12 = vld [vmem:[#allocation140_spill] sm:$0xff] }
 0x4fd   : > { %v2387_v3 = vsel %vm2359_vm9, %v2354_v34, %v9685_v30  ;;  %v2388_v23 = vsel %vm2359_vm9, %v2355_v45, %v9687_v46  ;;  %v2291_v57 = vsel %vm2260_vm6, %v2258_v5, %v9689_v39  ;;  %v2323_v0 = vsel %vm2293_vm7, %v2290_v9, %v9690_v12  ;;  %v9691_v51 = vld [vmem:[#allocation217_spill] sm:$0xff]  ;;  %v9692_v25 = vld [vmem:[#allocation250_spill] sm:$0xff]  ;;  %v9693_v6 = vld [vmem:[#allocation143_spill] sm:$0xff] }
 0x4fe   : > { %v2420_v20 = vsel %vm2392_vm10, %v2387_v3, %v9688_v16  ;;  %v2421_v56 = vsel %vm2392_vm10, %v2388_v23, %v9691_v51  ;;  %v2324_v62 = vsel %vm2293_vm7, %v2291_v57, %v9693_v6  ;;  %v9694_v49 = vld [vmem:[#allocation158_spill] sm:$0xff]  ;;  %v9695_v4 = vld [vmem:[#allocation249_spill] sm:$0xff]  ;;  %v2461_v31 = vld [vmem:[#allocation3 + $0x30] sm:$0xff]  ;;  %v3049_v11 = vpop.permute.xlu0 %3048 }
 0x4ff   : > { %v2452_v32 = vsel %vm350_vm0, %v2420_v20, %v9692_v25  ;;  %v2356_v29 = vsel %vm2326_vm8, %v2323_v0, %v9694_v49  ;;  %v2453_v27 = vsel %vm350_vm0, %v2421_v56, %v9695_v4  ;;  %v9696_v41 = vld [vmem:[#allocation157_spill] sm:$0xff]  ;;  %v9698_v26 = vld [vmem:[#allocation188_spill] sm:$0xff]  ;;  %v9700_v44 = vld [vmem:[#allocation219_spill] sm:$0xff] }
 0x500   : > { %5446 = vmatmul.mubr.msk.f32.gmra.mxu1 %vm4369_vm4, %v2452_v32  ;;  %v2357_v52 = vsel %vm2326_vm8, %v2324_v62, %v9696_v41  ;;  %v9697_v22 = vld [vmem:[#allocation189_spill] sm:$0xff]  ;;  %v9699_v53 = vld [vmem:[#allocation220_spill] sm:$0xff]  ;;  %v9703_v14 = vld [vmem:[#allocation251_spill] sm:$0xff] }
 0x501   : > { %v2389_v59 = vsel %vm2359_vm9, %v2356_v29, %v9697_v22  ;;  %5448 = vmatprep.mubr.msk.f32.mxu1 %vm4369_vm4, %v2453_v27  ;;  %v2390_v19 = vsel %vm2359_vm9, %v2357_v52, %v9698_v26  ;;  %v2462_v33 = vld [vmem:[#allocation3 + $0x38] sm:$0xff]  ;;  %v9701_v54 = vld [vmem:[#allocation252_spill] sm:$0xff]  ;;  %v9706_v18 = vld [vmem:[#allocation279_spill] sm:$0xff] }
 0x502   : > { %v2422_v55 = vsel %vm2392_vm10, %v2389_v59, %v9699_v53  ;;  %v2423_v63 = vsel %vm2392_vm10, %v2390_v19, %v9700_v44  ;;  %v9702_v61 = vld [vmem:[#allocation257_spill] sm:$0xff]  ;;  %v9704_v17 = vld [vmem:[#allocation276_spill] sm:$0xff]  ;;  %v3557_v34 = vpop.permute.xlu0 %3556  ;;  %v9707_v58 = vld [vmem:[#allocation254_spill] sm:$0xff] }
 0x503   : > { %v2454_v47 = vsel %vm350_vm0, %v2422_v55, %v9701_v54  ;;  %v3774_v8 = vsel %vm761_vm3, %v2461_v31, %v9702_v61  ;;  %v2455_v60 = vsel %vm350_vm0, %v2423_v63, %v9703_v14  ;;  %v9705_v13 = vld [vmem:[#allocation260_spill] sm:$0xff]  ;;  %v9708_v40 = vld [vmem:[#allocation222_spill] sm:$0xff]  ;;  %v2463_v0 = vld [vmem:[#allocation3 + $0x48] sm:$0xff] }
 0x504   : > { %v3806_v42 = vsel %vm672_vm1, %v3774_v8, %v9704_v17  ;;  %5449 = vmatmul.mubr.msk.f32.gmra.mxu1 %vm4369_vm4, %v2454_v47  ;;  %v3775_v9 = vsel %vm761_vm3, %v2462_v33, %v9705_v13  ;;  %v2456_v24 = vsel %vm350_vm0, %v9708_v40, %v9707_v58  ;;  %v2464_v56 = vld [vmem:[#allocation3 + $0x50] sm:$0xff]  ;;  %v9710_v6 = vld [vmem:[#allocation278_spill] sm:$0xff]  ;;  %v9712_v31 = vld [vmem:[#allocation281_spill] sm:$0xff]  ;;  %vm4932_vm0 = vcmask 1040384  }
 0x505   : > { %v3839_v28 = vsel %vm3834_vm12, %v3806_v42, %v8389_v38  ;;  %5451 = vmatprep.mubr.msk.f32.mxu1 %vm4369_vm4, %v2455_v60  ;;  %v3807_v48 = vsel %vm672_vm1, %v3775_v9, %v9706_v18  ;;  %v3175_v38 = vpop.permute.xlu1 %3174  ;;  %v9711_v49 = vld [vmem:[#allocation262_spill] sm:$0xff]  ;;  %v2466_v9 = vld [vmem:[#allocation3 + $0x68] sm:$0xff]  ;;  %v9715_v58 = vld [vmem:[#allocation264_spill] sm:$0xff] }
 0x506   : > { %v3871_v35 = vsel %vm2227_vm5, %v3839_v28, %v8469_v50  ;;  %v3840_v45 = vsel %vm3834_vm12, %v3807_v48, %v8412_v1  ;;  %v3177_v5 = vpop.permute.xlu0 %3176  ;;  %v3777_v29 = vsel %vm761_vm3, %v2464_v56, %v9711_v49  ;;  %v2465_v42 = vld [vmem:[#allocation3 + $0x60] sm:$0xff]  ;;  %v9713_v28 = vld [vmem:[#allocation261_spill] sm:$0xff]  ;;  %v9714_v48 = vld [vmem:[#allocation280_spill] sm:$0xff]  ;;  %v3779_v40 = vsel %vm761_vm3, %v2466_v9, %v9715_v58 }
 0x507   : > { %v3904_v30 = vsel %vm3899_vm13, %v3871_v35, %v8541_v10  ;;  %v3872_v3 = vsel %vm2227_vm5, %v3840_v45, %v8490_v2  ;;  %v3809_v41 = vsel %vm672_vm1, %v3777_v29, %v9712_v31  ;;  %v9719_v31 = vld [vmem:[#allocation266_spill] sm:$0xff]  ;;  %v9721_v9 = vld [vmem:[#allocation265_spill] sm:$0xff] }
 0x508   : > { %5452 = vmatmul.mubr.msk.f32.gmra.mxu1 %vm4369_vm4, %v2456_v24  ;;  %v3905_v7 = vsel %vm3899_vm13, %v3872_v3, %v3301_v37  ;;  %v3936_v50 = vsel %vm2260_vm6, %v3904_v30, %v8562_v43  ;;  %v3842_v22 = vsel %vm3834_vm12, %v3809_v41, %v3049_v11  ;;  %v9716_v30 = vld [vmem:[#allocation283_spill] sm:$0xff] }
 0x509   : > { %v3969_v46 = vsel %vm3964_vm14, %v3936_v50, %v3555_v36  ;;  %v3683_v23 = vpop.permute.xlu1 %3682  ;;  %v3937_v1 = vsel %vm2260_vm6, %v3905_v7, %v3429_v15  ;;  %v9709_v15 = vld [vmem:[#allocation259_spill] sm:$0xff]  ;;  %v3874_v19 = vsel %vm2227_vm5, %v3842_v22, %v3177_v5 }
 0x50a   : > { %v4001_v16 = vsel %vm2293_vm7, %v3969_v46, %v3683_v23  ;;  %v3970_v10 = vsel %vm3964_vm14, %v3937_v1, %v3557_v34  ;;  %v3685_v2 = vpop.permute.xlu0 %3684  ;;  %v3776_v25 = vsel %vm761_vm3, %v2463_v0, %v9709_v15  ;;  %v3778_v34 = vsel %vm761_vm3, %v2465_v42, %v9713_v28  ;;  %v8731_v42 = vpop.f32.mrf.mxu1 }
 0x50b   : > { %5346 = vmatprep.mubr.msk.f32.mxu0 %vm4043_vm15, %v4001_v16  ;;  %v4002_v20 = vsel %vm2293_vm7, %v3970_v10, %v3685_v2  ;;  %v3808_v62 = vsel %vm672_vm1, %v3776_v25, %v9710_v6  ;;  %v3810_v35 = vsel %vm672_vm1, %v3778_v34, %v9714_v48  ;;  %v2467_v25 = vld [vmem:[#allocation3 + $0x78] sm:$0xff]  ;;  %v2468_v6 = vld [vmem:[#allocation3 + $0x80] sm:$0xff] }
 0x50c   : > { %5347 = vmatmul.mubr.msk.f32.gmra.mxu0 %vm4043_vm15, %v4002_v20  ;;  %v3841_v4 = vsel %vm3834_vm12, %v3808_v62, %v3047_v21  ;;  %v9717_v62 = vld [vmem:[#allocation263_spill] sm:$0xff]  ;;  %v3781_v41 = vsel %vm761_vm3, %v2468_v6, %v9719_v31 }
 0x50d   : > { %v3303_v39 = vpop.permute.xlu1 %3302  ;;  %v3873_v52 = vsel %vm2227_vm5, %v3841_v4, %v3175_v38  ;;  %v3811_v38 = vsel %vm672_vm1, %v3779_v40, %v9716_v30  ;;  %v3780_v49 = vsel %vm761_vm3, %v2467_v25, %v9717_v62  ;;  %v9718_v4 = vld [vmem:[#allocation282_spill] sm:$0xff] }
 0x50e   : > { %v3431_v37 = vpop.permute.xlu0 %3430  ;;  %v3906_v59 = vsel %vm3899_vm13, %v3873_v52, %v3303_v39 }
 0x50f   : > { %v3938_v33 = vsel %vm2260_vm6, %v3906_v59, %v3431_v37  ;;  %v9720_v59 = vld [vmem:[#allocation285_spill] sm:$0xff] }
 0x511   : > { %v3305_v57 = vpop.permute.xlu1 %3304 }
 0x512   : > { %v3433_v43 = vpop.permute.xlu0 %3432  ;;  %v3907_v53 = vsel %vm3899_vm13, %v3874_v19, %v3305_v57 }
 0x513   : > { %v3939_v63 = vsel %vm2260_vm6, %v3907_v53, %v3433_v43 }
 0x515   : > { %v3051_v12 = vpop.permute.xlu1 %3050 }
 0x516   : > { %v3053_v51 = vpop.permute.xlu0 %3052  ;;  %v3843_v24 = vsel %vm3834_vm12, %v3810_v35, %v3051_v12  ;;  %v8738_v35 = vpop.f32.mrf.mxu1 }
 0x517   : > { %v3844_v7 = vsel %vm3834_vm12, %v3811_v38, %v3053_v51 }
 0x519   : > { %v3559_v32 = vpop.permute.xlu1 %3558 }
 0x51a   : > { %v3561_v27 = vpop.permute.xlu0 %3560  ;;  %v3971_v21 = vsel %vm3964_vm14, %v3938_v33, %v3559_v32 }
 0x51b   : > { %v3972_v47 = vsel %vm3964_vm14, %v3939_v63, %v3561_v27  ;;  %v3812_v27 = vsel %vm672_vm1, %v3780_v49, %v9718_v4 }
 0x51d   : > { %v3179_v26 = vpop.permute.xlu1 %3178 }
 0x51e   : > { %v3181_v55 = vpop.permute.xlu0 %3180  ;;  %v3875_v3 = vsel %vm2227_vm5, %v3843_v24, %v3179_v26  ;;  %v3813_v26 = vsel %vm672_vm1, %v3781_v41, %v9720_v59 }
 0x51f   : > { %v3876_v46 = vsel %vm2227_vm5, %v3844_v7, %v3181_v55 }
 0x521   : > { %v3687_v44 = vpop.permute.xlu1 %3686 }
 0x522   : > { %v4003_v54 = vsel %vm2293_vm7, %v3971_v21, %v3687_v44  ;;  %v3689_v11 = vpop.permute.xlu0 %3688 }
 0x523   : > { %5349 = vmatprep.mubr.msk.f32.mxu0 %vm4043_vm15, %v4003_v54  ;;  %v4004_v61 = vsel %vm2293_vm7, %v3972_v47, %v3689_v11 }
 0x524   : > { %5350 = vmatmul.mubr.msk.f32.gmra.mxu0 %vm4043_vm15, %v4004_v61 }
 0x525   : > { %v3307_v8 = vpop.permute.xlu1 %3306 }
 0x526   : > { %v3435_v36 = vpop.permute.xlu0 %3434  ;;  %v3908_v5 = vsel %vm3899_vm13, %v3875_v3, %v3307_v8  ;;  %v2470_v3 = vld [vmem:[#allocation3 + $0x98] sm:$0xff] }
 0x527   : > { %v3940_v16 = vsel %vm2260_vm6, %v3908_v5, %v3435_v36 }
 0x529   : > { %v3309_v14 = vpop.permute.xlu1 %3308 }
 0x52a   : > { %v3437_v60 = vpop.permute.xlu0 %3436  ;;  %v3909_v23 = vsel %vm3899_vm13, %v3876_v46, %v3309_v14 }
 0x52b   : > { %v3941_v20 = vsel %vm2260_vm6, %v3909_v23, %v3437_v60  ;;  %v2469_v60 = vld [vmem:[#allocation3 + $0x90] sm:$0xff] }
 0x52c   : > { %v3782_v28 = vsel %vm761_vm3, %v2469_v60, %v9721_v9 }
 0x52d   : > { %v3055_v17 = vpop.permute.xlu1 %3054 }
 0x52e   : > { %v3057_v13 = vpop.permute.xlu0 %3056  ;;  %v3845_v52 = vsel %vm3834_vm12, %v3812_v27, %v3055_v17 }
 0x52f   : > { %v3846_v53 = vsel %vm3834_vm12, %v3813_v26, %v3057_v13 }
 0x531   : > { %v3563_v18 = vpop.permute.xlu1 %3562 }
 0x532   : > { %v3565_v45 = vpop.permute.xlu0 %3564  ;;  %v3973_v10 = vsel %vm3964_vm14, %v3940_v16, %v3563_v18  ;;  %v9722_v18 = vld [vmem:[#allocation284_spill] sm:$0xff] }
 0x533   : > { %v3974_v37 = vsel %vm3964_vm14, %v3941_v20, %v3565_v45  ;;  %v3814_v48 = vsel %vm672_vm1, %v3782_v28, %v9722_v18  ;;  %v8742_v45 = vpop.f32.mrf.mxu1 }
 0x535   : > { %v3183_v50 = vpop.permute.xlu1 %3182  ;;  %v8748_v23 = vpop.f32.mrf.mxu1 }
 0x536   : > { %v3185_v1 = vpop.permute.xlu0 %3184  ;;  %v3877_v19 = vsel %vm2227_vm5, %v3845_v52, %v3183_v50  ;;  %v9723_v50 = vld [vmem:[#allocation267_spill] sm:$0xff] }
 0x537   : > { %v3878_v21 = vsel %vm2227_vm5, %v3846_v53, %v3185_v1  ;;  %v3783_v46 = vsel %vm761_vm3, %v2470_v3, %v9723_v50 }
 0x539   : > { %v3691_v2 = vpop.permute.xlu1 %3690 }
 0x53a   : > { %v4005_v39 = vsel %vm2293_vm7, %v3973_v10, %v3691_v2  ;;  %v3693_v57 = vpop.permute.xlu0 %3692  ;;  %v9724_v10 = vld [vmem:[#allocation286_spill] sm:$0xff] }
 0x53b   : > { %5352 = vmatprep.mubr.msk.f32.mxu0 %vm4043_vm15, %v4005_v39  ;;  %v4006_v43 = vsel %vm2293_vm7, %v3974_v37, %v3693_v57  ;;  %v3815_v2 = vsel %vm672_vm1, %v3783_v46, %v9724_v10  ;;  %v8754_v39 = vpop.f32.mrf.mxu1 }
 0x53c   : > { %5353 = vmatmul.mubr.msk.f32.gmra.mxu0 %vm4043_vm15, %v4006_v43 }
 0x53d   : > { %v3311_v12 = vpop.permute.xlu1 %3310 }
 0x53e   : > { %v3439_v0 = vpop.permute.xlu0 %3438  ;;  %v3910_v55 = vsel %vm3899_vm13, %v3877_v19, %v3311_v12 }
 0x53f   : > { %v3942_v54 = vsel %vm2260_vm6, %v3910_v55, %v3439_v0 }
 0x541   : > { %v3313_v51 = vpop.permute.xlu1 %3312 }
 0x542   : > { %v3441_v56 = vpop.permute.xlu0 %3440  ;;  %v3911_v44 = vsel %vm3899_vm13, %v3878_v21, %v3313_v51  ;;  %v8761_v51 = vpop.f32.mrf.mxu1 }
 0x543   : > { %v3943_v61 = vsel %vm2260_vm6, %v3911_v44, %v3441_v56 }
 0x544   : > { %v8765_v6 = vpop.f32.mrf.mxu1 }
 0x545   : > { %v3059_v15 = vpop.permute.xlu1 %3058 }
 0x546   : > { %v3061_v32 = vpop.permute.xlu0 %3060  ;;  %v3847_v58 = vsel %vm3834_vm12, %v3814_v48, %v3059_v15 }
 0x547   : > { %v3848_v37 = vsel %vm3834_vm12, %v3815_v2, %v3061_v32  ;;  %v8768_v32 = vpop.f32.mrf.mxu1 }
 0x549   : > { %v3567_v29 = vpop.permute.xlu1 %3566  ;;  %v8770_v62 = vpop.f32.mrf.mxu1 }
 0x54a   : > { %v3569_v22 = vpop.permute.xlu0 %3568  ;;  %v3975_v47 = vsel %vm3964_vm14, %v3942_v54, %v3567_v29 }
 0x54b   : > { %v3976_v36 = vsel %vm3964_vm14, %v3943_v61, %v3569_v22  ;;  %v8772_v49 = vpop.f32.mrf.mxu1  ;;  %v8807_v61 = vld [vmem:[%s9134_s5] ss:$0 sm:$0xff] }
 0x54d   : > { %v3187_v33 = vpop.permute.xlu1 %3186  ;;  %v8774_v29 = vpop.f32.mrf.mxu1 }
 0x54e   : > { %v3189_v63 = vpop.permute.xlu0 %3188  ;;  %v3879_v24 = vsel %vm2227_vm5, %v3847_v58, %v3187_v33 }
 0x54f   : > { %v3880_v43 = vsel %vm2227_vm5, %v3848_v37, %v3189_v63  ;;  %v8776_v4 = vpop.f32.mrf.mxu1 }
 0x551   : > { %v3695_v11 = vpop.permute.xlu1 %3694 }
 0x552   : > { %v4007_v8 = vsel %vm2293_vm7, %v3975_v47, %v3695_v11  ;;  %v3697_v14 = vpop.permute.xlu0 %3696 }
 0x553   : > { %5355 = vmatprep.mubr.msk.f32.mxu0 %vm4043_vm15, %v4007_v8  ;;  %v4008_v17 = vsel %vm2293_vm7, %v3976_v36, %v3697_v14 }
 0x554   : > { %5356 = vmatmul.mubr.msk.f32.gmra.mxu0 %vm4043_vm15, %v4008_v17 }
 0x555   : > { %v3315_v13 = vpop.permute.xlu1 %3314  ;;  %v8778_v27 = vpop.f32.mrf.mxu1 }
 0x556   : > { %v3443_v34 = vpop.permute.xlu0 %3442  ;;  %v3912_v30 = vsel %vm3899_vm13, %v3879_v24, %v3315_v13 }
 0x557   : > { %v3944_v5 = vsel %vm2260_vm6, %v3912_v30, %v3443_v34  ;;  %v8780_v31 = vpop.f32.mrf.mxu1 }
 0x559   : > { %v3317_v40 = vpop.permute.xlu1 %3316 }
 0x55a   : > { %v3571_v38 = vpop.permute.xlu0 %3570  ;;  %v3913_v12 = vsel %vm3899_vm13, %v3880_v43, %v3317_v40 }
 0x55b   : > { %v3977_v1 = vsel %vm3964_vm14, %v3944_v5, %v3571_v38 }
 0x55d   : > { %v3445_v7 = vpop.permute.xlu1 %3444 }
 0x55e   : > { %v3699_v16 = vpop.permute.xlu0 %3698  ;;  %v3945_v0 = vsel %vm2260_vm6, %v3913_v12, %v3445_v7 }
 0x55f   : > { %v4009_v20 = vsel %vm2293_vm7, %v3977_v1, %v3699_v16 }
 0x560   : > { %5358 = vmatprep.mubr.msk.f32.mxu0 %vm4043_vm15, %v4009_v20 }
 0x561   : > { %v3573_v57 = vpop.permute.xlu1 %3572 }
 0x562   : > { %v3978_v56 = vsel %vm3964_vm14, %v3945_v0, %v3573_v57 }
 0x565   : > { %v3701_v15 = vpop.permute.xlu1 %3700 }
 0x566   : > { %v4010_v25 = vsel %vm2293_vm7, %v3978_v56, %v3701_v15 }
 0x567   : > { %5359 = vmatmul.mubr.msk.f32.gmra.mxu0 %vm4043_vm15, %v4010_v25 }
 0x56d   : > { %v8782_v41 = vpop.f32.mrf.mxu1 }
 0x56f   : > { %v8784_v52 = vpop.f32.mrf.mxu1 }
 0x581   : > { %v8786_v22 = vpop.f32.mrf.mxu1 }
 0x583   : > { %v8788_v59 = vpop.f32.mrf.mxu1 }
 0x585   : > { %v5408_v26 = vpop.f32.mrf.mxu1 }
 0x587   : > { %v4532_v19 = vpop.f32.mrf.mxu1 }
 0x589   : > { %v5411_v53 = vpop.f32.mrf.mxu1 }
 0x58b   : > { %v8790_v55 = vpop.f32.mrf.mxu1 }
 0x58d   : > { %v8792_v33 = vpop.f32.mrf.mxu1 }
 0x58f   : > { %v8794_v21 = vpop.f32.mrf.mxu1 }
 0x591   : > { %v8796_v44 = vpop.f32.mrf.mxu1 }
 0x593   : > { %v8798_v63 = vpop.f32.mrf.mxu1 }
 0x595   : > { %v8800_v54 = vpop.f32.mrf.mxu1 }
 0x597   : > { %v8802_v47 = vpop.f32.mrf.mxu1 }
 0x599   : > { %v5342_v11 = vpop.f32.mrf.mxu0 }
 0x59a   : > { %v4538_v8 = vadd.f32 %v5408_v26, %v5342_v11  ;;  %v8809_v36 = vpop.f32.mrf.mxu1 }
 0x59b   : > { %v4210_v14 = vpop.f32.mrf.mxu0 }
 0x59c   : > { %v4699_v60 = vadd.f32 %v8807_v61, %v4538_v8  ;;  %v4533_v17 = vadd.f32 %v4532_v19, %v4210_v14  ;;  %v8819_v13 = vpop.f32.mrf.mxu1 }
 0x59e   : > { %4731 = vst.msk [vmem:[%s8816_s9 + $0x8] sm:$0xff] %vm672_vm1, %v4699_v60  ;;  %v4832_v9 = vmul.f32 %v4699_v60, %v4699_v60  ;;  %v4698_v28 = vadd.f32 %v8807_v61, %v4533_v17  ;;  %v8824_v34 = vpop.f32.mrf.mxu1  ;;  %v4763_v18 = vsel %vm672_vm1, %v4699_v60, 0.0 }
 0x5a0   : > { %4730 = vst.msk [vmem:[%s8816_s9] sm:$0xff] %vm672_vm1, %v4698_v28  ;;  %v4762_v48 = vsel %vm672_vm1, %v4698_v28, 0.0  ;;  %v4831_v58 = vmul.f32 %v4698_v28, %v4698_v28  ;;  %v8830_v40 = vpop.f32.mrf.mxu1  ;;  %v4864_v30 = vsel %vm672_vm1, %v4832_v9, 0.0 }
 0x5a1   : > { %v4764_v24 = vadd.f32 %v4763_v18, %v4762_v48 }
 0x5a2   : > { %v4863_v38 = vsel %vm672_vm1, %v4831_v58, 0.0  ;;  %v5429_v3 = vpop.f32.mrf.mxu1 }
 0x5a3   : > { %v4865_v7 = vadd.f32 %v4864_v30, %v4863_v38  ;;  %v4608_v5 = vadd.f32 %v5429_v3, %v8731_v42 }
 0x5a4   : > { %v4602_v50 = vpop.f32.mrf.mxu1 }
 0x5a5   : > { %v8836_v46 = vadd.f32 %v8807_v61, %v4608_v5  ;;  %v4603_v1 = vadd.f32 %v4602_v50, %v8738_v35 }
 0x5a7   : > { %v5432_v16 = vpop.f32.mrf.mxu1  ;;  %4745 = vst.msk [vmem:[%s8816_s9 + $0x78] sm:$0xff] %vm672_vm1, %v8836_v46  ;;  %v8843_v10 = vadd.f32 %v8807_v61, %v4603_v1 }
 0x5a8   : > { %v4618_v2 = vadd.f32 %v5432_v16, %v8742_v45 }
 0x5a9   : > { %v4612_v20 = vpop.f32.mrf.mxu1  ;;  %4744 = vst.msk [vmem:[%s8816_s9 + $0x70] sm:$0xff] %vm672_vm1, %v8843_v10 }
 0x5aa   : > { %v8850_v42 = vadd.f32 %v8807_v61, %v4618_v2  ;;  %v4613_v35 = vadd.f32 %v4612_v20, %v8748_v23 }
 0x5ac   : > { %4747 = vst.msk [vmem:[%s8816_s9 + $0x88] sm:$0xff] %vm672_vm1, %v8850_v42  ;;  %v8858_v43 = vadd.f32 %v8807_v61, %v4613_v35 }
 0x5ae   : > { %v5435_v37 = vpop.f32.mrf.mxu1  ;;  %4746 = vst.msk [vmem:[%s8816_s9 + $0x80] sm:$0xff] %vm672_vm1, %v8858_v43 }
 0x5af   : > { %v4628_v57 = vadd.f32 %v5435_v37, %v8754_v39 }
 0x5b0   : > { %v4622_v45 = vpop.f32.mrf.mxu1 }
 0x5b1   : > { %v8861_v12 = vadd.f32 %v8807_v61, %v4628_v57  ;;  %v4623_v0 = vadd.f32 %v4622_v45, %v8761_v51 }
 0x5b2   : > { %v5438_v23 = vpop.f32.mrf.mxu1 }
 0x5b3   : > { %4749 = vst.msk [vmem:[%s8816_s9 + $0x98] sm:$0xff] %vm672_vm1, %v8861_v12  ;;  %v8871_v56 = vadd.f32 %v8807_v61, %v4623_v0  ;;  %v4638_v39 = vadd.f32 %v5438_v23, %v8765_v6 }
 0x5b4   : > { %v4632_v15 = vpop.f32.mrf.mxu1  ;;  %v5345_v25 = vpop.f32.mrf.mxu0 }
 0x5b5   : > { %4748 = vst.msk [vmem:[%s8816_s9 + $0x90] sm:$0xff] %vm672_vm1, %v8871_v56  ;;  %v8878_v51 = vadd.f32 %v8807_v61, %v4638_v39  ;;  %v4633_v26 = vadd.f32 %v4632_v15, %v8768_v32  ;;  %v4548_v19 = vadd.f32 %v5411_v53, %v5345_v25 }
 0x5b6   : > { %v5441_v11 = vpop.f32.mrf.mxu1  ;;  %v4220_v8 = vpop.f32.mrf.mxu0 }
 0x5b7   : > { %4751 = vst.msk [vmem:[%s8816_s9 + $0xa8] sm:$0xff] %vm672_vm1, %v8878_v51  ;;  %v4648_v6 = vadd.f32 %v5441_v11, %v8770_v62  ;;  %v8886_v14 = vadd.f32 %v8807_v61, %v4633_v26  ;;  %v4701_v60 = vadd.f32 %v8807_v61, %v4548_v19  ;;  %v4543_v17 = vadd.f32 %v8790_v55, %v4220_v8 }
 0x5b8   : > { %v4642_v9 = vpop.f32.mrf.mxu1 }
 0x5b9   : > { %v8891_v32 = vadd.f32 %v8807_v61, %v4648_v6  ;;  %v4643_v53 = vadd.f32 %v4642_v9, %v8772_v49  ;;  %4750 = vst.msk [vmem:[%s8816_s9 + $0xa0] sm:$0xff] %vm672_vm1, %v8886_v14  ;;  %4733 = vst.msk [vmem:[%s8816_s9 + $0x18] sm:$0xff] %vm672_vm1, %v4701_v60  ;;  %v4700_v28 = vadd.f32 %v8807_v61, %v4543_v17  ;;  %v4767_v16 = vsel %vm672_vm1, %v4701_v60, 0.0 }
 0x5ba   : > { %v4834_v18 = vmul.f32 %v4701_v60, %v4701_v60 }
 0x5bb   : > { %v5444_v62 = vpop.f32.mrf.mxu1  ;;  %4753 = vst.msk [vmem:[%s8816_s9 + $0xb8] sm:$0xff] %vm672_vm1, %v8891_v32  ;;  %v8904_v55 = vadd.f32 %v8807_v61, %v4643_v53  ;;  %4732 = vst.msk [vmem:[%s8816_s9 + $0x10] sm:$0xff] %vm672_vm1, %v4700_v28  ;;  %v4765_v49 = vsel %vm672_vm1, %v4700_v28, 0.0  ;;  %v4833_v30 = vmul.f32 %v4700_v28, %v4700_v28 }
 0x5bc   : > { %v4658_v48 = vadd.f32 %v5444_v62, %v8774_v29  ;;  %v4766_v38 = vadd.f32 %v4765_v49, %v4764_v24  ;;  %v4868_v2 = vsel %vm672_vm1, %v4834_v18, 0.0 }
 0x5bd   : > { %v4652_v58 = vpop.f32.mrf.mxu1  ;;  %4752 = vst.msk [vmem:[%s8816_s9 + $0xb0] sm:$0xff] %vm672_vm1, %v8904_v55  ;;  %v4866_v29 = vsel %vm672_vm1, %v4833_v30, 0.0 }
 0x5be   : > { %v8914_v3 = vadd.f32 %v8807_v61, %v4658_v48  ;;  %v4653_v5 = vadd.f32 %v4652_v58, %v8776_v4  ;;  %v4867_v20 = vadd.f32 %v4866_v29, %v4865_v7 }
 0x5c0   : > { %v5447_v50 = vpop.f32.mrf.mxu1  ;;  %4755 = vst.msk [vmem:[%s8816_s9 + $0xc8] sm:$0xff] %vm672_vm1, %v8914_v3  ;;  %v8925_v35 = vadd.f32 %v8807_v61, %v4653_v5  ;;  %v4869_v45 = vadd.f32 %v4868_v2, %v4867_v20 }
 0x5c1   : > { %v4668_v1 = vadd.f32 %v5447_v50, %v8778_v27  ;;  %v4768_v27 = vadd.f32 %v4767_v16, %v4766_v38 }
 0x5c2   : > { %v4662_v24 = vpop.f32.mrf.mxu1  ;;  %4754 = vst.msk [vmem:[%s8816_s9 + $0xc0] sm:$0xff] %vm672_vm1, %v8925_v35 }
 0x5c3   : > { %v8928_v4 = vadd.f32 %v8807_v61, %v4668_v1  ;;  %v4663_v37 = vadd.f32 %v4662_v24, %v8780_v31 }
 0x5c4   : > { %v5450_v57 = vpop.f32.mrf.mxu1 }
 0x5c5   : > { %4757 = vst.msk [vmem:[%s8816_s9 + $0xd8] sm:$0xff] %vm672_vm1, %v8928_v4  ;;  %v8938_v7 = vadd.f32 %v8807_v61, %v4663_v37  ;;  %v4678_v0 = vadd.f32 %v5450_v57, %v8782_v41 }
 0x5c6   : > { %v4672_v23 = vpop.f32.mrf.mxu1 }
 0x5c7   : > { %v4673_v31 = vadd.f32 %v4672_v23, %v8784_v52  ;;  %4756 = vst.msk [vmem:[%s8816_s9 + $0xd0] sm:$0xff] %vm672_vm1, %v8938_v7  ;;  %v8946_v39 = vadd.f32 %v8807_v61, %v4678_v0 }
 0x5c8   : > { %v5453_v15 = vpop.f32.mrf.mxu1 }
 0x5c9   : > { %v8949_v25 = vadd.f32 %v8807_v61, %v4673_v31  ;;  %v4688_v26 = vadd.f32 %v5453_v15, %v8786_v22  ;;  %4759 = vst.msk [vmem:[%s8816_s9 + $0xe8] sm:$0xff] %vm672_vm1, %v8946_v39 }
 0x5ca   : > { %v4682_v41 = vpop.f32.mrf.mxu1 }
 0x5cb   : > { %4758 = vst.msk [vmem:[%s8816_s9 + $0xe0] sm:$0xff] %vm672_vm1, %v8949_v25  ;;  %v8959_v52 = vadd.f32 %v8807_v61, %v4688_v26  ;;  %v4683_v19 = vadd.f32 %v4682_v41, %v8788_v59 }
 0x5cc   : > { %v5348_v22 = vpop.f32.mrf.mxu0 }
 0x5cd   : > { %4761 = vst.msk [vmem:[%s8816_s9 + $0xf8] sm:$0xff] %vm672_vm1, %v8959_v52  ;;  %v8966_v11 = vadd.f32 %v8807_v61, %v4683_v19  ;;  %v4558_v6 = vadd.f32 %v8792_v33, %v5348_v22 }
 0x5ce   : > { %v4230_v8 = vpop.f32.mrf.mxu0 }
 0x5cf   : > { %4760 = vst.msk [vmem:[%s8816_s9 + $0xf0] sm:$0xff] %vm672_vm1, %v8966_v11  ;;  %v4703_v60 = vadd.f32 %v8807_v61, %v4558_v6  ;;  %v4553_v17 = vadd.f32 %v8794_v21, %v4230_v8 }
 0x5d1   : > { %4735 = vst.msk [vmem:[%s8816_s9 + $0x28] sm:$0xff] %vm672_vm1, %v4703_v60  ;;  %v4702_v59 = vadd.f32 %v8807_v61, %v4553_v17  ;;  %v4836_v9 = vmul.f32 %v4703_v60, %v4703_v60  ;;  %v4771_v33 = vsel %vm672_vm1, %v4703_v60, 0.0 }
 0x5d3   : > { %4734 = vst.msk [vmem:[%s8816_s9 + $0x20] sm:$0xff] %vm672_vm1, %v4702_v59  ;;  %v4769_v53 = vsel %vm672_vm1, %v4702_v59, 0.0  ;;  %v4835_v62 = vmul.f32 %v4702_v59, %v4702_v59  ;;  %v4872_v21 = vsel %vm672_vm1, %v4836_v9, 0.0 }
 0x5d4   : > { %v4770_v28 = vadd.f32 %v4769_v53, %v4768_v27 }
 0x5d5   : > { %v4870_v18 = vsel %vm672_vm1, %v4835_v62, 0.0 }
 0x5d6   : > { %v4871_v48 = vadd.f32 %v4870_v18, %v4869_v45  ;;  %v4772_v58 = vadd.f32 %v4771_v33, %v4770_v28 }
 0x5d8   : > { %v4873_v49 = vadd.f32 %v4872_v21, %v4871_v48 }
 0x5e4   : > { %v5351_v30 = vpop.f32.mrf.mxu0 }
 0x5e5   : > { %v4568_v38 = vadd.f32 %v8796_v44, %v5351_v30 }
 0x5e6   : > { %v4240_v5 = vpop.f32.mrf.mxu0 }
 0x5e7   : > { %v4705_v50 = vadd.f32 %v8807_v61, %v4568_v38  ;;  %v4563_v29 = vadd.f32 %v8798_v63, %v4240_v5 }
 0x5e9   : > { %4737 = vst.msk [vmem:[%s8816_s9 + $0x38] sm:$0xff] %vm672_vm1, %v4705_v50  ;;  %v4704_v1 = vadd.f32 %v8807_v61, %v4563_v29  ;;  %v4838_v26 = vmul.f32 %v4705_v50, %v4705_v50  ;;  %v4775_v19 = vsel %vm672_vm1, %v4705_v50, 0.0 }
 0x5eb   : > { %4736 = vst.msk [vmem:[%s8816_s9 + $0x30] sm:$0xff] %vm672_vm1, %v4704_v1  ;;  %v4837_v45 = vmul.f32 %v4704_v1, %v4704_v1  ;;  %v4773_v23 = vsel %vm672_vm1, %v4704_v1, 0.0 }
 0x5ec   : > { %v4774_v15 = vadd.f32 %v4773_v23, %v4772_v58  ;;  %v4789_v23 = vsel %vm672_vm1, %v8843_v10, 0.0 }
 0x5ed   : > { %v4874_v31 = vsel %vm672_vm1, %v4837_v45, 0.0 }
 0x5ee   : > { %v4776_v6 = vadd.f32 %v4775_v19, %v4774_v15 }
 0x5fc   : > { %v5354_v16 = vpop.f32.mrf.mxu0 }
 0x5fd   : > { %v4578_v2 = vadd.f32 %v8800_v54, %v5354_v16 }
 0x5fe   : > { %v4250_v20 = vpop.f32.mrf.mxu0 }
 0x5ff   : > { %v4707_v24 = vadd.f32 %v8807_v61, %v4578_v2  ;;  %v4573_v44 = vadd.f32 %v8802_v47, %v4250_v20 }
 0x601   : > { %4739 = vst.msk [vmem:[%s8816_s9 + $0x48] sm:$0xff] %vm672_vm1, %v4707_v24  ;;  %v4706_v63 = vadd.f32 %v8807_v61, %v4573_v44  ;;  %v4840_v59 = vmul.f32 %v4707_v24, %v4707_v24  ;;  %v4779_v62 = vsel %vm672_vm1, %v4707_v24, 0.0 }
 0x603   : > { %4738 = vst.msk [vmem:[%s8816_s9 + $0x40] sm:$0xff] %vm672_vm1, %v4706_v63  ;;  %v4839_v41 = vmul.f32 %v4706_v63, %v4706_v63  ;;  %v4777_v22 = vsel %vm672_vm1, %v4706_v63, 0.0  ;;  %v4880_v48 = vsel %vm672_vm1, %v4840_v59, 0.0  ;;  %v4849_v59 = vmul.f32 %v8871_v56, %v8871_v56 }
 0x604   : > { %v4778_v60 = vadd.f32 %v4777_v22, %v4776_v6 }
 0x605   : > { %v4878_v8 = vsel %vm672_vm1, %v4839_v41, 0.0 }
 0x606   : > { %v4780_v33 = vadd.f32 %v4779_v62, %v4778_v60 }
 0x614   : > { %v5357_v37 = vpop.f32.mrf.mxu0 }
 0x615   : > { %v4588_v27 = vadd.f32 %v8809_v36, %v5357_v37  ;;  %v4875_v36 = vadd.f32 %v4874_v31, %v4873_v49 }
 0x616   : > { %v4260_v57 = vpop.f32.mrf.mxu0 }
 0x617   : > { %v4709_v0 = vadd.f32 %v8807_v61, %v4588_v27  ;;  %v4583_v54 = vadd.f32 %v8819_v13, %v4260_v57  ;;  %v4876_v13 = vsel %vm672_vm1, %v4838_v26, 0.0  ;;  %v4791_v26 = vsel %vm672_vm1, %v8836_v46, 0.0 }
 0x618   : > { %v4877_v17 = vadd.f32 %v4876_v13, %v4875_v36  ;;  %v4847_v36 = vmul.f32 %v8858_v43, %v8858_v43  ;;  %v4848_v13 = vmul.f32 %v8850_v42, %v8850_v42 }
 0x619   : > { %4741 = vst.msk [vmem:[%s8816_s9 + $0x58] sm:$0xff] %vm672_vm1, %v4709_v0  ;;  %v4708_v47 = vadd.f32 %v8807_v61, %v4583_v54  ;;  %v4842_v5 = vmul.f32 %v4709_v0, %v4709_v0  ;;  %v4783_v16 = vsel %vm672_vm1, %v4709_v0, 0.0  ;;  %v4846_v54 = vmul.f32 %v8836_v46, %v8836_v46 }
 0x61a   : > { %v4879_v53 = vadd.f32 %v4878_v8, %v4877_v17  ;;  %v4795_v46 = vsel %vm672_vm1, %v8850_v42, 0.0  ;;  %v4894_v17 = vsel %vm672_vm1, %v4847_v36, 0.0  ;;  %v4896_v62 = vsel %vm672_vm1, %v4848_v13, 0.0 }
 0x61b   : > { %4740 = vst.msk [vmem:[%s8816_s9 + $0x50] sm:$0xff] %vm672_vm1, %v4708_v47  ;;  %v4841_v9 = vmul.f32 %v4708_v47, %v4708_v47  ;;  %v4781_v28 = vsel %vm672_vm1, %v4708_v47, 0.0  ;;  %v4884_v24 = vsel %vm672_vm1, %v4842_v5, 0.0  ;;  %v4892_v6 = vsel %vm672_vm1, %v4846_v54, 0.0 }
 0x61c   : > { %v4782_v49 = vadd.f32 %v4781_v28, %v4780_v33  ;;  %v4881_v30 = vadd.f32 %v4880_v48, %v4879_v53  ;;  %v4850_v28 = vmul.f32 %v8861_v12, %v8861_v12  ;;  %v4799_v42 = vsel %vm672_vm1, %v8861_v12, 0.0 }
 0x61d   : > { %v4882_v58 = vsel %vm672_vm1, %v4841_v9, 0.0  ;;  %v4898_v48 = vsel %vm672_vm1, %v4849_v59, 0.0  ;;  %v4803_v12 = vsel %vm672_vm1, %v8878_v51, 0.0  ;;  %v4861_v59 = vmul.f32 %v8966_v11, %v8966_v11 }
 0x61e   : > { %v4883_v1 = vadd.f32 %v4882_v58, %v4881_v30  ;;  %v4784_v20 = vadd.f32 %v4783_v16, %v4782_v49  ;;  %v4851_v58 = vmul.f32 %v8886_v14, %v8886_v14  ;;  %v4900_v30 = vsel %vm672_vm1, %v4850_v28, 0.0 }
 0x61f   : > { %v4862_v28 = vmul.f32 %v8959_v52, %v8959_v52 }
 0x620   : > { %v4885_v27 = vadd.f32 %v4884_v24, %v4883_v1  ;;  %v4853_v1 = vmul.f32 %v8904_v55, %v8904_v55  ;;  %v4854_v24 = vmul.f32 %v8891_v32, %v8891_v32 }
 0x627   : > { %v5360_v18 = vpop.f32.mrf.mxu0 }
 0x628   : > { %v4598_v21 = vadd.f32 %v8824_v34, %v5360_v18 }
 0x629   : > { %v4270_v38 = vpop.f32.mrf.mxu0 }
 0x62a   : > { %v4711_v50 = vadd.f32 %v8807_v61, %v4598_v21  ;;  %v4593_v29 = vadd.f32 %v8830_v40, %v4270_v38  ;;  %v4845_v40 = vmul.f32 %v8843_v10, %v8843_v10  ;;  %v4793_v10 = vsel %vm672_vm1, %v8858_v43, 0.0 }
 0x62b   : > { %v4797_v43 = vsel %vm672_vm1, %v8871_v56, 0.0  ;;  %v4852_v38 = vmul.f32 %v8878_v51, %v8878_v51  ;;  %v4801_v56 = vsel %vm672_vm1, %v8886_v14, 0.0  ;;  %v4805_v14 = vsel %vm672_vm1, %v8904_v55, 0.0 }
 0x62c   : > { %4743 = vst.msk [vmem:[%s8816_s9 + $0x68] sm:$0xff] %vm672_vm1, %v4711_v50  ;;  %v4710_v2 = vadd.f32 %v8807_v61, %v4593_v29  ;;  %v4844_v44 = vmul.f32 %v4711_v50, %v4711_v50  ;;  %v4787_v57 = vsel %vm672_vm1, %v4711_v50, 0.0  ;;  %v4890_v41 = vsel %vm672_vm1, %v4845_v40, 0.0 }
 0x62d   : > { %v4902_v29 = vsel %vm672_vm1, %v4851_v58, 0.0  ;;  %v4807_v51 = vsel %vm672_vm1, %v8891_v32, 0.0  ;;  %v4809_v55 = vsel %vm672_vm1, %v8925_v35, 0.0  ;;  %v4811_v32 = vsel %vm672_vm1, %v8914_v3, 0.0 }
 0x62e   : > { %4742 = vst.msk [vmem:[%s8816_s9 + $0x60] sm:$0xff] %vm672_vm1, %v4710_v2  ;;  %v4785_v34 = vsel %vm672_vm1, %v4710_v2, 0.0  ;;  %v4843_v63 = vmul.f32 %v4710_v2, %v4710_v2  ;;  %v4888_v47 = vsel %vm672_vm1, %v4844_v44, 0.0  ;;  %v4924_v58 = vsel %vm672_vm1, %v4862_v28, 0.0 }
 0x62f   : > { %v4786_v37 = vadd.f32 %v4785_v34, %v4784_v20  ;;  %v4904_v20 = vsel %vm672_vm1, %v4852_v38, 0.0 }
 0x630   : > { %v4886_v45 = vsel %vm672_vm1, %v4843_v63, 0.0  ;;  %v4906_v63 = vsel %vm672_vm1, %v4853_v1, 0.0 }
 0x631   : > { %v4788_v0 = vadd.f32 %v4787_v57, %v4786_v37  ;;  %v4887_v61 = vadd.f32 %v4886_v45, %v4885_v27  ;;  %v4855_v37 = vmul.f32 %v8925_v35, %v8925_v35  ;;  %v4908_v57 = vsel %vm672_vm1, %v4854_v24, 0.0 }
 0x632   : > { %v4856_v45 = vmul.f32 %v8914_v3, %v8914_v3  ;;  %v4813_v35 = vsel %vm672_vm1, %v8938_v7, 0.0  ;;  %v4815_v3 = vsel %vm672_vm1, %v8928_v4, 0.0 }
 0x633   : > { %v4790_v31 = vadd.f32 %v4789_v23, %v4788_v0  ;;  %v4889_v15 = vadd.f32 %v4888_v47, %v4887_v61  ;;  %v4910_v54 = vsel %vm672_vm1, %v4855_v37, 0.0  ;;  %v4857_v23 = vmul.f32 %v8938_v7, %v8938_v7 }
 0x634   : > { %v4817_v7 = vsel %vm672_vm1, %v8949_v25, 0.0 }
 0x635   : > { %v4792_v19 = vadd.f32 %v4791_v26, %v4790_v31  ;;  %v4891_v22 = vadd.f32 %v4890_v41, %v4889_v15  ;;  %v4912_v15 = vsel %vm672_vm1, %v4856_v45, 0.0  ;;  %v4858_v26 = vmul.f32 %v8928_v4, %v8928_v4 }
 0x636   : > { %v4819_v4 = vsel %vm672_vm1, %v8946_v39, 0.0 }
 0x637   : > { %v4794_v8 = vadd.f32 %v4793_v10, %v4792_v19  ;;  %v4893_v60 = vadd.f32 %v4892_v6, %v4891_v22  ;;  %v4914_v19 = vsel %vm672_vm1, %v4857_v23, 0.0  ;;  %v4859_v22 = vmul.f32 %v8949_v25, %v8949_v25 }
 0x638   : > { %v4916_v10 = vsel %vm672_vm1, %v4858_v26, 0.0  ;;  %v4821_v25 = vsel %vm672_vm1, %v8966_v11, 0.0 }
 0x639   : > { %v4796_v9 = vadd.f32 %v4795_v46, %v4794_v8  ;;  %v4895_v53 = vadd.f32 %v4894_v17, %v4893_v60  ;;  %v4860_v8 = vmul.f32 %v8946_v39, %v8946_v39  ;;  %v4918_v17 = vsel %vm672_vm1, %v4859_v22, 0.0 }
 0x63a   : > { %v4823_v39 = vsel %vm672_vm1, %v8959_v52, 0.0 }
 0x63b   : > { %v4798_v33 = vadd.f32 %v4797_v43, %v4796_v9  ;;  %v4897_v18 = vadd.f32 %v4896_v62, %v4895_v53  ;;  %v4920_v62 = vsel %vm672_vm1, %v4860_v8, 0.0 }
 0x63d   : > { %v4800_v21 = vadd.f32 %v4799_v42, %v4798_v33  ;;  %v4899_v49 = vadd.f32 %v4898_v48, %v4897_v18  ;;  %v4922_v18 = vsel %vm672_vm1, %v4861_v59, 0.0 }
 0x63f   : > { %v4802_v5 = vadd.f32 %v4801_v56, %v4800_v21  ;;  %v4901_v50 = vadd.f32 %v4900_v30, %v4899_v49 }
 0x641   : > { %v4804_v16 = vadd.f32 %v4803_v12, %v4802_v5  ;;  %v4903_v2 = vadd.f32 %v4902_v29, %v4901_v50 }
 0x643   : > { %v4806_v44 = vadd.f32 %v4805_v14, %v4804_v16  ;;  %v4905_v34 = vadd.f32 %v4904_v20, %v4903_v2 }
 0x645   : > { %v4808_v27 = vadd.f32 %v4807_v51, %v4806_v44  ;;  %v4907_v40 = vadd.f32 %v4906_v63, %v4905_v34 }
 0x647   : > { %v4810_v0 = vadd.f32 %v4809_v55, %v4808_v27  ;;  %v4909_v61 = vadd.f32 %v4908_v57, %v4907_v40 }
 0x649   : > { %v4812_v47 = vadd.f32 %v4811_v32, %v4810_v0  ;;  %v4911_v31 = vadd.f32 %v4910_v54, %v4909_v61 }
 0x64b   : > { %v4814_v41 = vadd.f32 %v4813_v35, %v4812_v47  ;;  %v4913_v36 = vadd.f32 %v4912_v15, %v4911_v31 }
 0x64d   : > { %v4816_v6 = vadd.f32 %v4815_v3, %v4814_v41  ;;  %v4915_v13 = vadd.f32 %v4914_v19, %v4913_v36 }
 0x64f   : > { %v4818_v60 = vadd.f32 %v4817_v7, %v4816_v6  ;;  %v4917_v46 = vadd.f32 %v4916_v10, %v4915_v13 }
 0x651   : > { %v4820_v9 = vadd.f32 %v4819_v4, %v4818_v60  ;;  %v4919_v53 = vadd.f32 %v4918_v17, %v4917_v46 }
 0x653   : > { %v4822_v43 = vadd.f32 %v4821_v25, %v4820_v9  ;;  %v4921_v33 = vadd.f32 %v4920_v62, %v4919_v53 }
 0x655   : > { %v4824_v42 = vadd.f32 %v4823_v39, %v4822_v43  ;;  %v4923_v48 = vadd.f32 %v4922_v18, %v4921_v33 }
 0x657   : > { %v4825_v21 = vrot.slane %v4824_v42, 4  ;;  %v4925_v49 = vadd.f32 %v4924_v58, %v4923_v48 }
 0x659   : > { %v4826_v30 = vadd.f32 %v4825_v21, %v4824_v42  ;;  %v4926_v38 = vrot.slane %v4925_v49, 4 }
 0x65b   : > { %v4827_v56 = vrot.slane %v4826_v30, 2  ;;  %v4927_v5 = vadd.f32 %v4926_v38, %v4925_v49 }
 0x65d   : > { %v4828_v50 = vadd.f32 %v4827_v56, %v4826_v30  ;;  %v4928_v11 = vrot.slane %v4927_v5, 2 }
 0x65f   : > { %v4829_v12 = vrot.slane %v4828_v50, 1  ;;  %v4929_v29 = vadd.f32 %v4928_v11, %v4927_v5 }
 0x661   : > { %v4930_v1 = vrot.slane %v4929_v29, 1  ;;  %v4830_v52 = vadd.f32 %v4829_v12, %v4828_v50 }
 0x663   : > { %v4931_v16 = vadd.f32 %v4930_v1, %v4929_v29 }
 0x665   : > { %v4933_v2 = vsel %vm4932_vm0, %v4830_v52, %v4931_v16 }
 0x666   : > { %4934 = vst.msk [vmem:[%s309_s29] sm:$0x3] %vm675_vm2, %v4933_v2 }
 0x667 PF: > { %s18_s24 = sadd.s32 1, %s5522_s24  }
 0x668   : > { %p15_p4 = scmp.ge.s32.totalorder %s18_s24, 4  }
 0x66a   :  { %17 = sbr.rel (!%p15_p4) target bundleno = 1 (0x1), region = 93 }

</bundles_post_ra>
